<compile_context>
chip_gen: v7x
topology: tpu7x:2x2x1
jax: 0.10.0
libtpu: 0.0.40
codegen_flags: <defaults>
</compile_context>

<pallas_src>
import functools

import numpy as np
import jax
import jax.numpy as jnp
from jax.experimental import pallas as pl
from jax.experimental.pallas import tpu as pltpu

VMEM_SPEC = pl.BlockSpec(memory_space=pltpu.MemorySpace.VMEM)
LN_EPS = 1e-5


# ------------------------------ small helpers -------------------------------

def _ln(x, g, b, eps):
    mu = jnp.mean(x, axis=-1, keepdims=True)
    var = jnp.mean(jnp.square(x - mu), axis=-1, keepdims=True)
    return (x - mu) * jax.lax.rsqrt(var + eps) * g + b


def _resident_spec(shape):
    """Full-array block with a constant index map: stays resident in VMEM across the grid."""
    nd = len(shape)
    return pl.BlockSpec(shape, lambda b: (0,) * nd)


# ------------------------- fused transformer block ---------------------------

def _vit_block_kernel(x_ref, ln1_g, ln1_b, wq_ref, wk_ref, wv_ref,
                      bq_ref, bk_ref, bv_ref, wo_ref, proj_b,
                      ln2_g, ln2_b, fc1_w, fc1_b, fc2_w, fc2_b, o_ref,
                      *, num_heads, eps):
    x = x_ref[0]                                           # (S, D)
    S, D = x.shape
    dh = D // num_heads
    scale = float(dh) ** -0.5

    # ---- attention branch: LN1 -> per-head QKV -> softmax(QK^T)V -> proj ----
    h = _ln(x, ln1_g[...], ln1_b[...], eps)
    attn = jnp.zeros((S, D), jnp.float32)
    for hh in range(num_heads):                            # static unroll; all heads, one grid point
        q = jnp.dot(h, wq_ref[hh], preferred_element_type=jnp.float32) + bq_ref[hh]
        k = jnp.dot(h, wk_ref[hh], preferred_element_type=jnp.float32) + bk_ref[hh]
        v = jnp.dot(h, wv_ref[hh], preferred_element_type=jnp.float32) + bv_ref[hh]
        s = jax.lax.dot_general(q, k, (((1,), (1,)), ((), ())),
                                preferred_element_type=jnp.float32) * scale   # q @ k^T -> (S, S)
        s = s - jnp.max(s, axis=-1, keepdims=True)
        p = jnp.exp(s)
        # EUP approximate reciprocal instead of a per-element VALU divide.
        p = p * pl.reciprocal(jnp.sum(p, axis=-1, keepdims=True), approx=True)
        o = jnp.dot(p, v, preferred_element_type=jnp.float32)                 # (S, dh)
        attn = attn + jnp.dot(o, wo_ref[hh], preferred_element_type=jnp.float32)
    x = x + attn + proj_b[...]

    # ---- MLP branch: LN2 -> fc1 -> GELU -> fc2 -> residual ----
    h = _ln(x, ln2_g[...], ln2_b[...], eps)
    h = jnp.dot(h, fc1_w[...], preferred_element_type=jnp.float32) + fc1_b[...]
    h = jax.nn.gelu(h, approximate=True)      # tanh GELU: single EUP transcendental
    h = jnp.dot(h, fc2_w[...], preferred_element_type=jnp.float32) + fc2_b[...]
    o_ref[0] = x + h


def vit_block(x, p, num_heads, eps=LN_EPS):
    """timm-style ViT Block (pre-LN attn + MLP with residuals) as ONE fused Pallas kernel."""
    B, S, D = x.shape
    dh = D // num_heads
    Hmlp = p["fc1_w"].shape[1]

    # Weight-layout plumbing (tiny XLA ops on weights only): split QKV / proj into
    # per-head stacks so the kernel indexes heads on a leading ref axis and never
    # needs lane-offset slicing or in-kernel reshapes/transposes of activations.
    qkv_w, qkv_b = p["qkv_w"], p["qkv_b"]
    wq = qkv_w[:, 0 * D:1 * D].reshape(D, num_heads, dh).transpose(1, 0, 2)
    wk = qkv_w[:, 1 * D:2 * D].reshape(D, num_heads, dh).transpose(1, 0, 2)
    wv = qkv_w[:, 2 * D:3 * D].reshape(D, num_heads, dh).transpose(1, 0, 2)
    bq = qkv_b[0 * D:1 * D].reshape(num_heads, 1, dh)
    bk = qkv_b[1 * D:2 * D].reshape(num_heads, 1, dh)
    bv = qkv_b[2 * D:3 * D].reshape(num_heads, 1, dh)
    wo = p["proj_w"].reshape(num_heads, dh, D)

    weights = [
        p["ln1_g"].reshape(1, D), p["ln1_b"].reshape(1, D),
        wq, wk, wv, bq, bk, bv, wo,
        p["proj_b"].reshape(1, D),
        p["ln2_g"].reshape(1, D), p["ln2_b"].reshape(1, D),
        p["fc1_w"], p["fc1_b"].reshape(1, Hmlp),
        p["fc2_w"], p["fc2_b"].reshape(1, D),
    ]
    x_spec = pl.BlockSpec((1, S, D), lambda b: (b, 0, 0))
    in_specs = [x_spec] + [_resident_spec(w.shape) for w in weights]
    return pl.pallas_call(
        functools.partial(_vit_block_kernel, num_heads=num_heads, eps=eps),
        out_shape=jax.ShapeDtypeStruct((B, S, D), jnp.float32),
        grid=(B,),
        in_specs=in_specs,
        out_specs=x_spec,
        compiler_params=pltpu.CompilerParams(dimension_semantics=("parallel",)),
    )(x, *weights)


# --------------------------- fused LayerNorm + Linear ------------------------

def _ln_linear_kernel(x_ref, g_ref, b_ref, w_ref, wb_ref, o_ref, *, act, eps):
    y = _ln(x_ref[...], g_ref[...], b_ref[...], eps)
    y = jnp.dot(y, w_ref[...], preferred_element_type=jnp.float32) + wb_ref[...]
    if act == "relu":
        y = jnp.maximum(y, 0.0)
    o_ref[...] = y


def ln_linear(x, g, b, w, wb, *, act=None, eps=LN_EPS):
    """(M, K) -> LayerNorm -> @ (K, N) + bias -> optional relu, in one kernel."""
    # TODO(synk): at production sizes grid this over 256-512 row tiles ("parallel")
    # and block K with an f32 accumulator; budget tiles for v7x's 64 MiB VMEM.
    M, K = x.shape
    N = w.shape[1]
    return pl.pallas_call(
        functools.partial(_ln_linear_kernel, act=act, eps=eps),
        out_shape=jax.ShapeDtypeStruct((M, N), jnp.float32),
        in_specs=[VMEM_SPEC] * 5,
        out_specs=VMEM_SPEC,
    )(x, g.reshape(1, K), b.reshape(1, K), w, wb.reshape(1, N))


# ------------------------------ polygon embedding ----------------------------

def _poly_embed_kernel(poly_ref, w0_ref, w1_ref, pb_ref, pos_ref, ow_ref, ob_ref,
                       add_ref, o_ref, *, final_act):
    poly = poly_ref[...]                                   # (N, P, 2)
    # K=2 point "linear" as two VPU broadcast FMAs (no MXU pass wasted on K=2).
    h = poly[:, :, 0:1] * w0_ref[...] + poly[:, :, 1:2] * w1_ref[...] + pb_ref[...]
    h = jnp.maximum(h, 0.0)
    h = h + pos_ref[...]                                   # learned positional table (1, P, D)
    pooled = jnp.mean(h, axis=1)                           # (N, D)
    y = jnp.dot(pooled, ow_ref[...], preferred_element_type=jnp.float32) + ob_ref[...]
    if final_act == "relu":
        y = jnp.maximum(y, 0.0)
    o_ref[...] = y + add_ref[...]                          # fused "+ pos_embed" / "+ road_token"


# TODO(synk): PolyEmbed source was not provided; approximated as per-point linear
# embed + learned positional table + mean pool + output projection.
def poly_embed(poly, p, extra_add, *, final_act="relu"):
    """poly: (N, P, 2) -> (N, D), with the model-level relu and token/pos add fused in."""
    N, P, _ = poly.shape
    D = p["out_w"].shape[0]
    return pl.pallas_call(
        functools.partial(_poly_embed_kernel, final_act=final_act),
        out_shape=jax.ShapeDtypeStruct((N, D), jnp.float32),
        in_specs=[VMEM_SPEC] * 8,
        out_specs=VMEM_SPEC,
    )(poly.astype(jnp.float32),
      p["point_w"][0].reshape(1, 1, D), p["point_w"][1].reshape(1, 1, D),
      p["point_b"].reshape(1, 1, D), p["pos_table"][:P].reshape(1, P, D),
      p["out_w"], p["out_b"].reshape(1, D), extra_add)


# ------------------------------- AutoPoly pieces ------------------------------

def _auto_embed_kernel(poly_ref, lat_ref, w0_ref, w1_ref, b_ref, o_ref):
    poly = poly_ref[...]                                   # (N, L, 2)
    h = poly[:, :, 0:1] * w0_ref[...] + poly[:, :, 1:2] * w1_ref[...] + b_ref[...]
    h = jnp.maximum(h, 0.0)
    o_ref[...] = h + lat_ref[...]                          # latent (N, 1, dec) broadcast over L


def auto_embed(polyin, latent, p):
    N, L, _ = polyin.shape
    dec = latent.shape[-1]
    return pl.pallas_call(
        _auto_embed_kernel,
        out_shape=jax.ShapeDtypeStruct((N, L, dec), jnp.float32),
        in_specs=[VMEM_SPEC] * 5,
        out_specs=VMEM_SPEC,
    )(polyin.astype(jnp.float32), latent.reshape(N, 1, dec),
      p["in_w"][0].reshape(1, 1, dec), p["in_w"][1].reshape(1, 1, dec),
      p["in_b"].reshape(1, 1, dec))


# TODO(synk): AutoPoly source was not provided; approximated as point embed +
# latent conditioning + one transformer block + 3-way head (x, y, stop-logit).
def auto_poly(latent, polyin, p, num_heads):
    """latent: (N, dec), polyin: (N, L, 2) -> (N, L, 3)."""
    N, L, _ = polyin.shape
    dec = latent.shape[-1]
    h = auto_embed(polyin, latent, p)
    h = vit_block(h, p["block"], num_heads)
    # Lane-dense head: pad the (dec, 3) head to 128 output lanes so the kernel's
    # store is a full-width vst; slice the 3 real channels back outside the kernel.
    out_w = jnp.zeros((dec, 128), jnp.float32).at[:, :3].set(p["out_w"])
    out_b = jnp.zeros((128,), jnp.float32).at[:3].set(p["out_b"])
    out = ln_linear(h.reshape(N * L, dec), p["ln_g"], p["ln_b"], out_w, out_b, act=None)
    return out[:, :3].reshape(N, L, 3)


# --------------------------- sin/cos pos embeddings --------------------------

def get_1d_embed(embed_dim, pos):
    omega = jnp.arange(embed_dim // 2, dtype=jnp.float32) / (embed_dim / 2.0)
    omega = 1.0 / (10000.0 ** omega)
    out = pos[..., None] * omega                            # (B, N, embed_dim // 2)
    return jnp.concatenate([jnp.sin(out), jnp.cos(out)], axis=-1)


def pos_embed_cxy(embed_dim, pos):
    emb_h = get_1d_embed(embed_dim // 2, pos[:, :, 0])
    emb_w = get_1d_embed(embed_dim // 2, pos[:, :, 1])
    return jnp.concatenate([emb_h, emb_w], axis=-1)


# -------------------------- encoder / decoder / loss -------------------------

def forward_encoder(params, poly, pos, road, cfg):
    bsz, len_build = poly.shape[:2]
    D = cfg["embed_dim"]
    n_road = road.shape[1]

    pe = pos_embed_cxy(D, pos).reshape(bsz * len_build, D)
    x = poly_embed(poly.reshape(bsz * len_build, poly.shape[2], 2),
                   params["fc_embedding"], extra_add=pe).reshape(bsz, len_build, D)
    road_add = jnp.broadcast_to(params["road_token"].reshape(1, D), (bsz * n_road, D))
    x_road = poly_embed(road.reshape(bsz * n_road, road.shape[2], 2),
                        params["road_embedding"], extra_add=road_add).reshape(bsz, n_road, D)

    mask = jnp.broadcast_to(params["mask_token"], (bsz, 1, D))
    x = jnp.concatenate([mask, x, x_road], axis=1)
    for blk in params["blocks"]:
        x = vit_block(x, blk, cfg["num_heads"])
    # NOTE: the encoder's final LayerNorm is fused into the decoder-embed
    # projections in forward_decoder (LN is per-token: norm-then-split == split-then-norm).
    return x[:, :1 + len_build], x[:, 1 + len_build:]


def forward_decoder(params, latent, latent_road, posall, cfg):
    B, S, D = latent.shape
    dec = cfg["decoder_embed_dim"]
    max_build = cfg["max_build"]

    # fused: encoder final norm + decoder_embed(+relu)
    x = ln_linear(latent.reshape(B * S, D), params["norm_g"], params["norm_b"],
                  params["dec_embed_w"], params["dec_embed_b"],
                  act="relu").reshape(B, S, dec)
    Br, Sr, _ = latent_road.shape
    x_road = ln_linear(latent_road.reshape(Br * Sr, D), params["norm_g"], params["norm_b"],
                       params["dec_embed_road_w"], params["dec_embed_road_b"],
                       act="relu").reshape(Br, Sr, dec)

    mask_tokens = jnp.broadcast_to(x[:, 0:1, :], (B, max_build - (S - 1), dec))
    x_ = jnp.concatenate([x[:, 1:, :], mask_tokens], axis=1)        # (B, max_build, dec)
    x_ = x_ + pos_embed_cxy(dec, posall)
    len_tem = x_.shape[1]
    x_road = x_road + params["road_decoder_token"]
    x_ = jnp.concatenate([x_, x_road], axis=1)

    for blk in params["decoder_blocks"]:
        x_ = vit_block(x_, blk, cfg["decoder_num_heads"])

    # fused: decoder_norm + decoder_pred, applied only to the building slice
    out = ln_linear(x_[:, :len_tem].reshape(B * len_tem, dec),
                    params["dec_norm_g"], params["dec_norm_b"],
                    params["dec_pred_w"], params["dec_pred_b"],
                    act=None).reshape(B, len_tem, dec)
    return out


def compute_loss(out, polyin, len_tar_cat, pos_weight):
    """out: (N, L, 3), polyin: (N, L, 2). Static-shape masked losses (no dynamic concat)."""
    N, L, _ = out.shape
    lens = np.asarray(len_tar_cat, np.int32)
    valid = (np.arange(L)[None, :] < lens[:, None]).astype(np.float32)   # (N, L)
    valid_j = jnp.asarray(valid)

    diff = out[:, :, :2] - polyin
    # nn.MSELoss over the concatenated valid points (name "l1" kept from the reference).
    loss_l1 = jnp.sum(jnp.square(diff) * valid_j[:, :, None]) / float(valid.sum() * 2.0)

    # BCEWithLogits(pos_weight) against the one-hot stop target; built host-side so
    # an out-of-range index raises (torch scatter_ semantics) instead of clamping.
    tar = np.zeros((N, L), np.float32)
    tar[np.arange(N), lens] = 1.0
    tar_j = jnp.asarray(tar)
    logits = out[:, :, 2]
    bce = pos_weight * tar_j * jax.nn.softplus(-logits) + (1.0 - tar_j) * jax.nn.softplus(logits)
    loss_len = jnp.mean(bce)
    return loss_l1, loss_len


def mage_forward(params, poly, pos, postar, polytar, road, *, len_tar, cfg):
    bsz, remain_num = poly.shape[:2]
    posall = jnp.concatenate([pos, postar], axis=1)

    latent, latent_road = forward_encoder(params, poly, pos, road, cfg)
    pred_latent = forward_decoder(params, latent, latent_road, posall, cfg)

    # Static (trace-time) gather indices from the Python len_tar structure: one
    # gather replaces the per-sample dynamic-slice + concat loop.
    counts = [len(l) for l in len_tar]
    b_idx = np.concatenate([np.full(c, i, np.int32) for i, c in enumerate(counts)])
    s_idx = np.concatenate([remain_num + np.arange(c, dtype=np.int32) for c in counts])
    t_idx = np.concatenate([np.arange(c, dtype=np.int32) for c in counts])
    latentautoin = pred_latent[jnp.asarray(b_idx), jnp.asarray(s_idx)]   # (sum(counts), dec)
    polyautoin = polytar[jnp.asarray(b_idx), jnp.asarray(t_idx)]         # (sum(counts), L, 2)

    out = auto_poly(latentautoin, polyautoin, params["automodel"], cfg["decoder_num_heads"])
    len_tar_cat = [int(l) for ls in len_tar for l in ls]
    loss_l1, loss_len = compute_loss(out, polyautoin, len_tar_cat, cfg["pos_weight"])
    return loss_l1, loss_len, out


# ------------------------------- param init ---------------------------------

def xavier(key, shape):
    limit = float(np.sqrt(6.0 / (shape[0] + shape[1])))
    return jax.random.uniform(key, shape, jnp.float32, -limit, limit)


def init_block_params(key, D, mlp_ratio=4.0):
    ks = jax.random.split(key, 4)
    H = int(D * mlp_ratio)
    return dict(
        ln1_g=jnp.ones((D,), jnp.float32), ln1_b=jnp.zeros((D,), jnp.float32),
        qkv_w=xavier(ks[0], (D, 3 * D)), qkv_b=jnp.zeros((3 * D,), jnp.float32),
        proj_w=xavier(ks[1], (D, D)), proj_b=jnp.zeros((D,), jnp.float32),
        ln2_g=jnp.ones((D,), jnp.float32), ln2_b=jnp.zeros((D,), jnp.float32),
        fc1_w=xavier(ks[2], (D, H)), fc1_b=jnp.zeros((H,), jnp.float32),
        fc2_w=xavier(ks[3], (H, D)), fc2_b=jnp.zeros((D,), jnp.float32),
    )


def init_poly_embed_params(key, D, max_pos):
    ks = jax.random.split(key, 3)
    return dict(
        point_w=xavier(ks[0], (2, D)), point_b=jnp.zeros((D,), jnp.float32),
        pos_table=0.02 * jax.random.normal(ks[1], (max_pos, D), jnp.float32),
        out_w=xavier(ks[2], (D, D)), out_b=jnp.zeros((D,), jnp.float32),
    )


def init_params(key, cfg):
    D, dec = cfg["embed_dim"], cfg["decoder_embed_dim"]
    ks = jax.random.split(key, 16)
    return dict(
        fc_embedding=init_poly_embed_params(ks[0], D, cfg["max_poly"]),
        road_embedding=init_poly_embed_params(ks[1], D, cfg["max_road_len"]),
        road_token=jnp.zeros((1, 1, D), jnp.float32),
        mask_token=0.02 * jax.random.normal(ks[2], (1, 1, D), jnp.float32),
        road_decoder_token=jnp.zeros((1, 1, dec), jnp.float32),
        blocks=[init_block_params(k, D) for k in jax.random.split(ks[3], cfg["depth"])],
        norm_g=jnp.ones((D,), jnp.float32), norm_b=jnp.zeros((D,), jnp.float32),
        dec_embed_w=xavier(ks[4], (D, dec)), dec_embed_b=jnp.zeros((dec,), jnp.float32),
        dec_embed_road_w=xavier(ks[5], (D, dec)), dec_embed_road_b=jnp.zeros((dec,), jnp.float32),
        decoder_blocks=[init_block_params(k, dec)
                        for k in jax.random.split(ks[6], cfg["decoder_depth"])],
        dec_norm_g=jnp.ones((dec,), jnp.float32), dec_norm_b=jnp.zeros((dec,), jnp.float32),
        dec_pred_w=xavier(ks[7], (dec, dec)), dec_pred_b=jnp.zeros((dec,), jnp.float32),
        automodel=dict(
            in_w=xavier(ks[8], (2, dec)), in_b=jnp.zeros((dec,), jnp.float32),
            block=init_block_params(ks[9], dec),
            ln_g=jnp.ones((dec,), jnp.float32), ln_b=jnp.zeros((dec,), jnp.float32),
            out_w=xavier(ks[10], (dec, 3)), out_b=jnp.zeros((3,), jnp.float32),
        ),
    )


# ---------------------------------- main -------------------------------------

if __name__ == "__main__":
    cfg = dict(
        embed_dim=32, depth=2, num_heads=4,
        decoder_embed_dim=16, decoder_depth=2, decoder_num_heads=4,
        max_poly=8, max_build=8, max_road_len=6, pos_weight=20.0, discre=50,
    )

    key = jax.random.PRNGKey(0)
    kp, kd = jax.random.split(key)
    params = init_params(jax.random.PRNGKey(42), cfg)

    bsz, remain_num, n_road = 2, 5, 3
    num_tar_slots = cfg["max_build"] - remain_num       # 3

    kds = jax.random.split(kd, 5)
    poly = jax.random.uniform(kds[0], (bsz, remain_num, cfg["max_poly"], 2)) * cfg["discre"]
    pos = jax.random.uniform(kds[1], (bsz, remain_num, 2)) * cfg["discre"]
    postar = jax.random.uniform(kds[2], (bsz, num_tar_slots, 2)) * cfg["discre"]
    polytar = jax.random.uniform(kds[3], (bsz, num_tar_slots, cfg["max_poly"], 2)) * cfg["discre"]
    road = jax.random.uniform(kds[4], (bsz, n_road, cfg["max_road_len"], 2)) * cfg["discre"]
    # per-batch lists of target polygon lengths (values < max_poly)
    len_tar = [[3, 5], [2, 4, 6]]

    fwd = jax.jit(functools.partial(mage_forward, len_tar=len_tar, cfg=cfg))
    loss_l1, loss_len, out = fwd(params, poly, pos, postar, polytar, road)
    jax.block_until_ready((loss_l1, loss_len, out))
    assert out.shape == (sum(len(l) for l in len_tar), cfg["max_poly"], 3)
    print("KERNEL_OK")
</pallas_src>

<mosaic_0001>
module attributes {stable_mosaic.version = 11 : i64} {
  func.func @_poly_embed_kernel(%arg0: memref<6x6x2xf32, #tpu.memory_space<vmem>>, %arg1: memref<1x1x32xf32, #tpu.memory_space<vmem>>, %arg2: memref<1x1x32xf32, #tpu.memory_space<vmem>>, %arg3: memref<1x1x32xf32, #tpu.memory_space<vmem>>, %arg4: memref<1x6x32xf32, #tpu.memory_space<vmem>>, %arg5: memref<32x32xf32, #tpu.memory_space<vmem>>, %arg6: memref<1x32xf32, #tpu.memory_space<vmem>>, %arg7: memref<6x32xf32, #tpu.memory_space<vmem>>, %arg8: memref<6x32xf32, #tpu.memory_space<vmem>>) attributes {dimension_semantics = [], scalar_prefetch = 0 : i64, scratch_operands = 0 : i64, tpu.core_type = #tpu.core_type<tc>} {
    %c0 = arith.constant 0 : index
    %c0_0 = arith.constant 0 : index
    %c0_1 = arith.constant 0 : index
    %0 = vector.load %arg0[%c0, %c0_0, %c0_1] : memref<6x6x2xf32, #tpu.memory_space<vmem>>, vector<6x6x2xf32>
    %1 = vector.extract_strided_slice %0 {offsets = [0, 0, 0], sizes = [6, 6, 1], strides = [1, 1, 1]} : vector<6x6x2xf32> to vector<6x6x1xf32>
    %c0_2 = arith.constant 0 : index
    %c0_3 = arith.constant 0 : index
    %c0_4 = arith.constant 0 : index
    %2 = vector.load %arg1[%c0_2, %c0_3, %c0_4] : memref<1x1x32xf32, #tpu.memory_space<vmem>>, vector<1x1x32xf32>
    %3 = vector.broadcast %1 : vector<6x6x1xf32> to vector<6x6x32xf32>
    %4 = vector.broadcast %2 : vector<1x1x32xf32> to vector<6x6x32xf32>
    %5 = arith.mulf %3, %4 : vector<6x6x32xf32>
    %6 = vector.extract_strided_slice %0 {offsets = [0, 0, 1], sizes = [6, 6, 1], strides = [1, 1, 1]} : vector<6x6x2xf32> to vector<6x6x1xf32>
    %c0_5 = arith.constant 0 : index
    %c0_6 = arith.constant 0 : index
    %c0_7 = arith.constant 0 : index
    %7 = vector.load %arg2[%c0_5, %c0_6, %c0_7] : memref<1x1x32xf32, #tpu.memory_space<vmem>>, vector<1x1x32xf32>
    %8 = vector.broadcast %6 : vector<6x6x1xf32> to vector<6x6x32xf32>
    %9 = vector.broadcast %7 : vector<1x1x32xf32> to vector<6x6x32xf32>
    %10 = arith.mulf %8, %9 : vector<6x6x32xf32>
    %11 = arith.addf %5, %10 : vector<6x6x32xf32>
    %c0_8 = arith.constant 0 : index
    %c0_9 = arith.constant 0 : index
    %c0_10 = arith.constant 0 : index
    %12 = vector.load %arg3[%c0_8, %c0_9, %c0_10] : memref<1x1x32xf32, #tpu.memory_space<vmem>>, vector<1x1x32xf32>
    %13 = vector.broadcast %12 : vector<1x1x32xf32> to vector<6x6x32xf32>
    %14 = arith.addf %11, %13 : vector<6x6x32xf32>
    %cst = arith.constant 0.000000e+00 : f32
    %15 = vector.broadcast %cst : f32 to vector<6x6x32xf32>
    %16 = arith.maximumf %14, %15 : vector<6x6x32xf32>
    %c0_11 = arith.constant 0 : index
    %c0_12 = arith.constant 0 : index
    %c0_13 = arith.constant 0 : index
    %17 = vector.load %arg4[%c0_11, %c0_12, %c0_13] : memref<1x6x32xf32, #tpu.memory_space<vmem>>, vector<1x6x32xf32>
    %18 = vector.broadcast %17 : vector<1x6x32xf32> to vector<6x6x32xf32>
    %19 = arith.addf %16, %18 : vector<6x6x32xf32>
    %cst_14 = arith.constant dense<0.000000e+00> : vector<6x32xf32>
    %20 = vector.multi_reduction <add>, %19, %cst_14 [1] : vector<6x6x32xf32> to vector<6x32xf32>
    %cst_15 = arith.constant 6.000000e+00 : f32
    %21 = vector.broadcast %cst_15 : f32 to vector<6x32xf32>
    %22 = arith.divf %20, %21 : vector<6x32xf32>
    %c0_16 = arith.constant 0 : index
    %c0_17 = arith.constant 0 : index
    %23 = vector.load %arg5[%c0_16, %c0_17] : memref<32x32xf32, #tpu.memory_space<vmem>>, vector<32x32xf32>
    %cst_18 = arith.constant dense<0.000000e+00> : vector<6x32xf32>
    %24 = tpu.matmul %22, %23, %cst_18 {dimension_numbers = #tpu.dot_dimension_numbers<[1], [0], [0], [1], [0, 0, 1, 1], [], []>} : vector<6x32xf32>, vector<32x32xf32>, vector<6x32xf32> -> vector<6x32xf32>
    %c0_19 = arith.constant 0 : index
    %c0_20 = arith.constant 0 : index
    %25 = vector.load %arg6[%c0_19, %c0_20] : memref<1x32xf32, #tpu.memory_space<vmem>>, vector<1x32xf32>
    %26 = vector.broadcast %25 : vector<1x32xf32> to vector<6x32xf32>
    %27 = arith.addf %24, %26 : vector<6x32xf32>
    %cst_21 = arith.constant 0.000000e+00 : f32
    %28 = vector.broadcast %cst_21 : f32 to vector<6x32xf32>
    %29 = arith.maximumf %27, %28 : vector<6x32xf32>
    %c0_22 = arith.constant 0 : index
    %c0_23 = arith.constant 0 : index
    %30 = vector.load %arg7[%c0_22, %c0_23] : memref<6x32xf32, #tpu.memory_space<vmem>>, vector<6x32xf32>
    %31 = arith.addf %29, %30 : vector<6x32xf32>
    %c0_24 = arith.constant 0 : index
    %c0_25 = arith.constant 0 : index
    %32 = vector.load %arg8[%c0_24, %c0_25] : memref<6x32xf32, #tpu.memory_space<vmem>>, vector<6x32xf32>
    tpu.vector_store %arg8[%c0_24, %c0_25], %31 {strides = array<i32>} : memref<6x32xf32, #tpu.memory_space<vmem>>, vector<6x32xf32>,
    return
  }
}

module attributes {stable_mosaic.version = 11 : i64} {
  func.func @_poly_embed_kernel(%arg0: memref<10x8x2xf32, #tpu.memory_space<vmem>>, %arg1: memref<1x1x32xf32, #tpu.memory_space<vmem>>, %arg2: memref<1x1x32xf32, #tpu.memory_space<vmem>>, %arg3: memref<1x1x32xf32, #tpu.memory_space<vmem>>, %arg4: memref<1x8x32xf32, #tpu.memory_space<vmem>>, %arg5: memref<32x32xf32, #tpu.memory_space<vmem>>, %arg6: memref<1x32xf32, #tpu.memory_space<vmem>>, %arg7: memref<10x32xf32, #tpu.memory_space<vmem>>, %arg8: memref<10x32xf32, #tpu.memory_space<vmem>>) attributes {dimension_semantics = [], scalar_prefetch = 0 : i64, scratch_operands = 0 : i64, tpu.core_type = #tpu.core_type<tc>} {
    %c0 = arith.constant 0 : index
    %c0_0 = arith.constant 0 : index
    %c0_1 = arith.constant 0 : index
    %0 = vector.load %arg0[%c0, %c0_0, %c0_1] : memref<10x8x2xf32, #tpu.memory_space<vmem>>, vector<10x8x2xf32>
    %1 = vector.extract_strided_slice %0 {offsets = [0, 0, 0], sizes = [10, 8, 1], strides = [1, 1, 1]} : vector<10x8x2xf32> to vector<10x8x1xf32>
    %c0_2 = arith.constant 0 : index
    %c0_3 = arith.constant 0 : index
    %c0_4 = arith.constant 0 : index
    %2 = vector.load %arg1[%c0_2, %c0_3, %c0_4] : memref<1x1x32xf32, #tpu.memory_space<vmem>>, vector<1x1x32xf32>
    %3 = vector.broadcast %1 : vector<10x8x1xf32> to vector<10x8x32xf32>
    %4 = vector.broadcast %2 : vector<1x1x32xf32> to vector<10x8x32xf32>
    %5 = arith.mulf %3, %4 : vector<10x8x32xf32>
    %6 = vector.extract_strided_slice %0 {offsets = [0, 0, 1], sizes = [10, 8, 1], strides = [1, 1, 1]} : vector<10x8x2xf32> to vector<10x8x1xf32>
    %c0_5 = arith.constant 0 : index
    %c0_6 = arith.constant 0 : index
    %c0_7 = arith.constant 0 : index
    %7 = vector.load %arg2[%c0_5, %c0_6, %c0_7] : memref<1x1x32xf32, #tpu.memory_space<vmem>>, vector<1x1x32xf32>
    %8 = vector.broadcast %6 : vector<10x8x1xf32> to vector<10x8x32xf32>
    %9 = vector.broadcast %7 : vector<1x1x32xf32> to vector<10x8x32xf32>
    %10 = arith.mulf %8, %9 : vector<10x8x32xf32>
    %11 = arith.addf %5, %10 : vector<10x8x32xf32>
    %c0_8 = arith.constant 0 : index
    %c0_9 = arith.constant 0 : index
    %c0_10 = arith.constant 0 : index
    %12 = vector.load %arg3[%c0_8, %c0_9, %c0_10] : memref<1x1x32xf32, #tpu.memory_space<vmem>>, vector<1x1x32xf32>
    %13 = vector.broadcast %12 : vector<1x1x32xf32> to vector<10x8x32xf32>
    %14 = arith.addf %11, %13 : vector<10x8x32xf32>
    %cst = arith.constant 0.000000e+00 : f32
    %15 = vector.broadcast %cst : f32 to vector<10x8x32xf32>
    %16 = arith.maximumf %14, %15 : vector<10x8x32xf32>
    %c0_11 = arith.constant 0 : index
    %c0_12 = arith.constant 0 : index
    %c0_13 = arith.constant 0 : index
    %17 = vector.load %arg4[%c0_11, %c0_12, %c0_13] : memref<1x8x32xf32, #tpu.memory_space<vmem>>, vector<1x8x32xf32>
    %18 = vector.broadcast %17 : vector<1x8x32xf32> to vector<10x8x32xf32>
    %19 = arith.addf %16, %18 : vector<10x8x32xf32>
    %cst_14 = arith.constant dense<0.000000e+00> : vector<10x32xf32>
    %20 = vector.multi_reduction <add>, %19, %cst_14 [1] : vector<10x8x32xf32> to vector<10x32xf32>
    %cst_15 = arith.constant 8.000000e+00 : f32
    %21 = vector.broadcast %cst_15 : f32 to vector<10x32xf32>
    %22 = arith.divf %20, %21 : vector<10x32xf32>
    %c0_16 = arith.constant 0 : index
    %c0_17 = arith.constant 0 : index
    %23 = vector.load %arg5[%c0_16, %c0_17] : memref<32x32xf32, #tpu.memory_space<vmem>>, vector<32x32xf32>
    %cst_18 = arith.constant dense<0.000000e+00> : vector<10x32xf32>
    %24 = tpu.matmul %22, %23, %cst_18 {dimension_numbers = #tpu.dot_dimension_numbers<[1], [0], [0], [1], [0, 0, 1, 1], [], []>} : vector<10x32xf32>, vector<32x32xf32>, vector<10x32xf32> -> vector<10x32xf32>
    %c0_19 = arith.constant 0 : index
    %c0_20 = arith.constant 0 : index
    %25 = vector.load %arg6[%c0_19, %c0_20] : memref<1x32xf32, #tpu.memory_space<vmem>>, vector<1x32xf32>
    %26 = vector.broadcast %25 : vector<1x32xf32> to vector<10x32xf32>
    %27 = arith.addf %24, %26 : vector<10x32xf32>
    %cst_21 = arith.constant 0.000000e+00 : f32
    %28 = vector.broadcast %cst_21 : f32 to vector<10x32xf32>
    %29 = arith.maximumf %27, %28 : vector<10x32xf32>
    %c0_22 = arith.constant 0 : index
    %c0_23 = arith.constant 0 : index
    %30 = vector.load %arg7[%c0_22, %c0_23] : memref<10x32xf32, #tpu.memory_space<vmem>>, vector<10x32xf32>
    %31 = arith.addf %29, %30 : vector<10x32xf32>
    %c0_24 = arith.constant 0 : index
    %c0_25 = arith.constant 0 : index
    %32 = vector.load %arg8[%c0_24, %c0_25] : memref<10x32xf32, #tpu.memory_space<vmem>>, vector<10x32xf32>
    tpu.vector_store %arg8[%c0_24, %c0_25], %31 {strides = array<i32>} : memref<10x32xf32, #tpu.memory_space<vmem>>, vector<10x32xf32>,
    return
  }
}

module attributes {stable_mosaic.version = 11 : i64} {
  func.func @_ln_linear_kernel(%arg0: memref<12x32xf32, #tpu.memory_space<vmem>>, %arg1: memref<1x32xf32, #tpu.memory_space<vmem>>, %arg2: memref<1x32xf32, #tpu.memory_space<vmem>>, %arg3: memref<32x16xf32, #tpu.memory_space<vmem>>, %arg4: memref<1x16xf32, #tpu.memory_space<vmem>>, %arg5: memref<12x16xf32, #tpu.memory_space<vmem>>) attributes {dimension_semantics = [], scalar_prefetch = 0 : i64, scratch_operands = 0 : i64, tpu.core_type = #tpu.core_type<tc>} {
    %c0 = arith.constant 0 : index
    %c0_0 = arith.constant 0 : index
    %0 = vector.load %arg0[%c0, %c0_0] : memref<12x32xf32, #tpu.memory_space<vmem>>, vector<12x32xf32>
    %c0_1 = arith.constant 0 : index
    %c0_2 = arith.constant 0 : index
    %1 = vector.load %arg1[%c0_1, %c0_2] : memref<1x32xf32, #tpu.memory_space<vmem>>, vector<1x32xf32>
    %c0_3 = arith.constant 0 : index
    %c0_4 = arith.constant 0 : index
    %2 = vector.load %arg2[%c0_3, %c0_4] : memref<1x32xf32, #tpu.memory_space<vmem>>, vector<1x32xf32>
    %cst = arith.constant dense<0.000000e+00> : vector<12xf32>
    %3 = vector.multi_reduction <add>, %0, %cst [1] : vector<12x32xf32> to vector<12xf32>
    %4 = vector.shape_cast %3 : vector<12xf32> to vector<12x1xf32>
    %cst_5 = arith.constant 3.200000e+01 : f32
    %5 = vector.broadcast %cst_5 : f32 to vector<12x1xf32>
    %6 = arith.divf %4, %5 : vector<12x1xf32>
    %7 = vector.broadcast %6 : vector<12x1xf32> to vector<12x32xf32>
    %8 = arith.subf %0, %7 : vector<12x32xf32>
    %9 = arith.mulf %8, %8 : vector<12x32xf32>
    %cst_6 = arith.constant dense<0.000000e+00> : vector<12xf32>
    %10 = vector.multi_reduction <add>, %9, %cst_6 [1] : vector<12x32xf32> to vector<12xf32>
    %11 = vector.shape_cast %10 : vector<12xf32> to vector<12x1xf32>
    %cst_7 = arith.constant 3.200000e+01 : f32
    %12 = vector.broadcast %cst_7 : f32 to vector<12x1xf32>
    %13 = arith.divf %11, %12 : vector<12x1xf32>
    %14 = vector.broadcast %6 : vector<12x1xf32> to vector<12x32xf32>
    %15 = arith.subf %0, %14 : vector<12x32xf32>
    %cst_8 = arith.constant 9.99999974E-6 : f32
    %16 = vector.broadcast %cst_8 : f32 to vector<12x1xf32>
    %17 = arith.addf %13, %16 : vector<12x1xf32>
    %18 = math.rsqrt %17 : vector<12x1xf32>
    %19 = vector.broadcast %18 : vector<12x1xf32> to vector<12x32xf32>
    %20 = arith.mulf %15, %19 : vector<12x32xf32>
    %21 = vector.broadcast %1 : vector<1x32xf32> to vector<12x32xf32>
    %22 = arith.mulf %20, %21 : vector<12x32xf32>
    %23 = vector.broadcast %2 : vector<1x32xf32> to vector<12x32xf32>
    %24 = arith.addf %22, %23 : vector<12x32xf32>
    %c0_9 = arith.constant 0 : index
    %c0_10 = arith.constant 0 : index
    %25 = vector.load %arg3[%c0_9, %c0_10] : memref<32x16xf32, #tpu.memory_space<vmem>>, vector<32x16xf32>
    %cst_11 = arith.constant dense<0.000000e+00> : vector<12x16xf32>
    %26 = tpu.matmul %24, %25, %cst_11 {dimension_numbers = #tpu.dot_dimension_numbers<[1], [0], [0], [1], [0, 0, 1, 1], [], []>} : vector<12x32xf32>, vector<32x16xf32>, vector<12x16xf32> -> vector<12x16xf32>
    %c0_12 = arith.constant 0 : index
    %c0_13 = arith.constant 0 : index
    %27 = vector.load %arg4[%c0_12, %c0_13] : memref<1x16xf32, #tpu.memory_space<vmem>>, vector<1x16xf32>
    %28 = vector.broadcast %27 : vector<1x16xf32> to vector<12x16xf32>
    %29 = arith.addf %26, %28 : vector<12x16xf32>
    %cst_14 = arith.constant 0.000000e+00 : f32
    %30 = vector.broadcast %cst_14 : f32 to vector<12x16xf32>
    %31 = arith.maximumf %29, %30 : vector<12x16xf32>
    %c0_15 = arith.constant 0 : index
    %c0_16 = arith.constant 0 : index
    %32 = vector.load %arg5[%c0_15, %c0_16] : memref<12x16xf32, #tpu.memory_space<vmem>>, vector<12x16xf32>
    tpu.vector_store %arg5[%c0_15, %c0_16], %31 {strides = array<i32>} : memref<12x16xf32, #tpu.memory_space<vmem>>, vector<12x16xf32>,
    return
  }
}

module attributes {stable_mosaic.version = 11 : i64} {
  func.func @_vit_block_kernel(%arg0: i32, %arg1: memref<1x9x32xf32, #tpu.memory_space<vmem>>, %arg2: memref<1x32xf32, #tpu.memory_space<vmem>>, %arg3: memref<1x32xf32, #tpu.memory_space<vmem>>, %arg4: memref<4x32x8xf32, #tpu.memory_space<vmem>>, %arg5: memref<4x32x8xf32, #tpu.memory_space<vmem>>, %arg6: memref<4x32x8xf32, #tpu.memory_space<vmem>>, %arg7: memref<4x1x8xf32, #tpu.memory_space<vmem>>, %arg8: memref<4x1x8xf32, #tpu.memory_space<vmem>>, %arg9: memref<4x1x8xf32, #tpu.memory_space<vmem>>, %arg10: memref<4x8x32xf32, #tpu.memory_space<vmem>>, %arg11: memref<1x32xf32, #tpu.memory_space<vmem>>, %arg12: memref<1x32xf32, #tpu.memory_space<vmem>>, %arg13: memref<1x32xf32, #tpu.memory_space<vmem>>, %arg14: memref<32x128xf32, #tpu.memory_space<vmem>>, %arg15: memref<1x128xf32, #tpu.memory_space<vmem>>, %arg16: memref<128x32xf32, #tpu.memory_space<vmem>>, %arg17: memref<1x32xf32, #tpu.memory_space<vmem>>, %arg18: memref<1x9x32xf32, #tpu.memory_space<vmem>>) attributes {dimension_semantics = [#tpu.dimension_semantics<parallel>], iteration_bounds = array<i64: 2>, scalar_prefetch = 0 : i64, scratch_operands = 0 : i64, tpu.core_type = #tpu.core_type<tc>, window_params = [{transform_indices = @transform_0, window_bounds = array<i64: 1, 9, 32>}, {pipeline_mode = #tpu.pipeline_mode<synchronous>, transform_indices = @transform_1, window_bounds = array<i64: 1, 32>}, {pipeline_mode = #tpu.pipeline_mode<synchronous>, transform_indices = @transform_2, window_bounds = array<i64: 1, 32>}, {pipeline_mode = #tpu.pipeline_mode<synchronous>, transform_indices = @transform_3, window_bounds = array<i64: 4, 32, 8>}, {pipeline_mode = #tpu.pipeline_mode<synchronous>, transform_indices = @transform_4, window_bounds = array<i64: 4, 32, 8>}, {pipeline_mode = #tpu.pipeline_mode<synchronous>, transform_indices = @transform_5, window_bounds = array<i64: 4, 32, 8>}, {pipeline_mode = #tpu.pipeline_mode<synchronous>, transform_indices = @transform_6, window_bounds = array<i64: 4, 1, 8>}, {pipeline_mode = #tpu.pipeline_mode<synchronous>, transform_indices = @transform_7, window_bounds = array<i64: 4, 1, 8>}, {pipeline_mode = #tpu.pipeline_mode<synchronous>, transform_indices = @transform_8, window_bounds = array<i64: 4, 1, 8>}, {pipeline_mode = #tpu.pipeline_mode<synchronous>, transform_indices = @transform_9, window_bounds = array<i64: 4, 8, 32>}, {pipeline_mode = #tpu.pipeline_mode<synchronous>, transform_indices = @transform_10, window_bounds = array<i64: 1, 32>}, {pipeline_mode = #tpu.pipeline_mode<synchronous>, transform_indices = @transform_11, window_bounds = array<i64: 1, 32>}, {pipeline_mode = #tpu.pipeline_mode<synchronous>, transform_indices = @transform_12, window_bounds = array<i64: 1, 32>}, {pipeline_mode = #tpu.pipeline_mode<synchronous>, transform_indices = @transform_13, window_bounds = array<i64: 32, 128>}, {pipeline_mode = #tpu.pipeline_mode<synchronous>, transform_indices = @transform_14, window_bounds = array<i64: 1, 128>}, {pipeline_mode = #tpu.pipeline_mode<synchronous>, transform_indices = @transform_15, window_bounds = array<i64: 128, 32>}, {pipeline_mode = #tpu.pipeline_mode<synchronous>, transform_indices = @transform_16, window_bounds = array<i64: 1, 32>}, {transform_indices = @transform_17, window_bounds = array<i64: 1, 9, 32>}]} {
    %c0 = arith.constant 0 : index
    %c0_0 = arith.constant 0 : index
    %c0_1 = arith.constant 0 : index
    %0 = vector.load %arg1[%c0, %c0_0, %c0_1] : memref<1x9x32xf32, #tpu.memory_space<vmem>>, vector<1x9x32xf32>
    %1 = vector.shape_cast %0 : vector<1x9x32xf32> to vector<9x32xf32>
    %c0_2 = arith.constant 0 : index
    %c0_3 = arith.constant 0 : index
    %2 = vector.load %arg2[%c0_2, %c0_3] : memref<1x32xf32, #tpu.memory_space<vmem>>, vector<1x32xf32>
    %c0_4 = arith.constant 0 : index
    %c0_5 = arith.constant 0 : index
    %3 = vector.load %arg3[%c0_4, %c0_5] : memref<1x32xf32, #tpu.memory_space<vmem>>, vector<1x32xf32>
    %cst = arith.constant dense<0.000000e+00> : vector<9xf32>
    %4 = vector.multi_reduction <add>, %1, %cst [1] : vector<9x32xf32> to vector<9xf32>
    %5 = vector.shape_cast %4 : vector<9xf32> to vector<9x1xf32>
    %cst_6 = arith.constant 3.200000e+01 : f32
    %6 = vector.broadcast %cst_6 : f32 to vector<9x1xf32>
    %7 = arith.divf %5, %6 : vector<9x1xf32>
    %8 = vector.broadcast %7 : vector<9x1xf32> to vector<9x32xf32>
    %9 = arith.subf %1, %8 : vector<9x32xf32>
    %10 = arith.mulf %9, %9 : vector<9x32xf32>
    %cst_7 = arith.constant dense<0.000000e+00> : vector<9xf32>
    %11 = vector.multi_reduction <add>, %10, %cst_7 [1] : vector<9x32xf32> to vector<9xf32>
    %12 = vector.shape_cast %11 : vector<9xf32> to vector<9x1xf32>
    %cst_8 = arith.constant 3.200000e+01 : f32
    %13 = vector.broadcast %cst_8 : f32 to vector<9x1xf32>
    %14 = arith.divf %12, %13 : vector<9x1xf32>
    %15 = vector.broadcast %7 : vector<9x1xf32> to vector<9x32xf32>
    %16 = arith.subf %1, %15 : vector<9x32xf32>
    %cst_9 = arith.constant 9.99999974E-6 : f32
    %17 = vector.broadcast %cst_9 : f32 to vector<9x1xf32>
    %18 = arith.addf %14, %17 : vector<9x1xf32>
    %19 = math.rsqrt %18 : vector<9x1xf32>
    %20 = vector.broadcast %19 : vector<9x1xf32> to vector<9x32xf32>
    %21 = arith.mulf %16, %20 : vector<9x32xf32>
    %22 = vector.broadcast %2 : vector<1x32xf32> to vector<9x32xf32>
    %23 = arith.mulf %21, %22 : vector<9x32xf32>
    %24 = vector.broadcast %3 : vector<1x32xf32> to vector<9x32xf32>
    %25 = arith.addf %23, %24 : vector<9x32xf32>
    %cst_10 = arith.constant 0.000000e+00 : f32
    %26 = vector.broadcast %cst_10 : f32 to vector<9x32xf32>
    %c0_11 = arith.constant 0 : index
    %c0_12 = arith.constant 0 : index
    %c0_13 = arith.constant 0 : index
    %27 = vector.load %arg4[%c0_11, %c0_12, %c0_13] : memref<4x32x8xf32, #tpu.memory_space<vmem>>, vector<1x32x8xf32>
    %28 = vector.shape_cast %27 : vector<1x32x8xf32> to vector<32x8xf32>
    %cst_14 = arith.constant dense<0.000000e+00> : vector<9x8xf32>
    %29 = tpu.matmul %25, %28, %cst_14 {dimension_numbers = #tpu.dot_dimension_numbers<[1], [0], [0], [1], [0, 0, 1, 1], [], []>} : vector<9x32xf32>, vector<32x8xf32>, vector<9x8xf32> -> vector<9x8xf32>
    %c0_15 = arith.constant 0 : index
    %c0_16 = arith.constant 0 : index
    %c0_17 = arith.constant 0 : index
    %30 = vector.load %arg7[%c0_15, %c0_16, %c0_17] : memref<4x1x8xf32, #tpu.memory_space<vmem>>, vector<1x1x8xf32>
    %31 = vector.shape_cast %30 : vector<1x1x8xf32> to vector<1x8xf32>
    %32 = vector.broadcast %31 : vector<1x8xf32> to vector<9x8xf32>
    %33 = arith.addf %29, %32 : vector<9x8xf32>
    %c0_18 = arith.constant 0 : index
    %c0_19 = arith.constant 0 : index
    %c0_20 = arith.constant 0 : index
    %34 = vector.load %arg5[%c0_18, %c0_19, %c0_20] : memref<4x32x8xf32, #tpu.memory_space<vmem>>, vector<1x32x8xf32>
    %35 = vector.shape_cast %34 : vector<1x32x8xf32> to vector<32x8xf32>
    %cst_21 = arith.constant dense<0.000000e+00> : vector<9x8xf32>
    %36 = tpu.matmul %25, %35, %cst_21 {dimension_numbers = #tpu.dot_dimension_numbers<[1], [0], [0], [1], [0, 0, 1, 1], [], []>} : vector<9x32xf32>, vector<32x8xf32>, vector<9x8xf32> -> vector<9x8xf32>
    %c0_22 = arith.constant 0 : index
    %c0_23 = arith.constant 0 : index
    %c0_24 = arith.constant 0 : index
    %37 = vector.load %arg8[%c0_22, %c0_23, %c0_24] : memref<4x1x8xf32, #tpu.memory_space<vmem>>, vector<1x1x8xf32>
    %38 = vector.shape_cast %37 : vector<1x1x8xf32> to vector<1x8xf32>
    %39 = vector.broadcast %38 : vector<1x8xf32> to vector<9x8xf32>
    %40 = arith.addf %36, %39 : vector<9x8xf32>
    %c0_25 = arith.constant 0 : index
    %c0_26 = arith.constant 0 : index
    %c0_27 = arith.constant 0 : index
    %41 = vector.load %arg6[%c0_25, %c0_26, %c0_27] : memref<4x32x8xf32, #tpu.memory_space<vmem>>, vector<1x32x8xf32>
    %42 = vector.shape_cast %41 : vector<1x32x8xf32> to vector<32x8xf32>
    %cst_28 = arith.constant dense<0.000000e+00> : vector<9x8xf32>
    %43 = tpu.matmul %25, %42, %cst_28 {dimension_numbers = #tpu.dot_dimension_numbers<[1], [0], [0], [1], [0, 0, 1, 1], [], []>} : vector<9x32xf32>, vector<32x8xf32>, vector<9x8xf32> -> vector<9x8xf32>
    %c0_29 = arith.constant 0 : index
    %c0_30 = arith.constant 0 : index
    %c0_31 = arith.constant 0 : index
    %44 = vector.load %arg9[%c0_29, %c0_30, %c0_31] : memref<4x1x8xf32, #tpu.memory_space<vmem>>, vector<1x1x8xf32>
    %45 = vector.shape_cast %44 : vector<1x1x8xf32> to vector<1x8xf32>
    %46 = vector.broadcast %45 : vector<1x8xf32> to vector<9x8xf32>
    %47 = arith.addf %43, %46 : vector<9x8xf32>
    %cst_32 = arith.constant dense<0.000000e+00> : vector<9x9xf32>
    %48 = tpu.matmul %33, %40, %cst_32 {dimension_numbers = #tpu.dot_dimension_numbers<[1], [1], [0], [0], [0, 0, 1, 0], [], []>} : vector<9x8xf32>, vector<9x8xf32>, vector<9x9xf32> -> vector<9x9xf32>
    %cst_33 = arith.constant 0.353553385 : f32
    %49 = vector.broadcast %cst_33 : f32 to vector<9x9xf32>
    %50 = arith.mulf %48, %49 : vector<9x9xf32>
    %cst_34 = arith.constant dense<0xFF800000> : vector<9xf32>
    %51 = vector.multi_reduction <maximumf>, %50, %cst_34 [1] : vector<9x9xf32> to vector<9xf32>
    %52 = vector.shape_cast %51 : vector<9xf32> to vector<9x1xf32>
    %53 = vector.broadcast %52 : vector<9x1xf32> to vector<9x9xf32>
    %54 = arith.subf %50, %53 : vector<9x9xf32>
    %55 = math.exp %54 : vector<9x9xf32>
    %cst_35 = arith.constant dense<0.000000e+00> : vector<9xf32>
    %56 = vector.multi_reduction <add>, %55, %cst_35 [1] : vector<9x9xf32> to vector<9xf32>
    %57 = vector.shape_cast %56 : vector<9xf32> to vector<9x1xf32>
    %58 = tpu.reciprocal %57 {approx = true} : vector<9x1xf32> -> vector<9x1xf32>
    %59 = vector.broadcast %58 : vector<9x1xf32> to vector<9x9xf32>
    %60 = arith.mulf %55, %59 : vector<9x9xf32>
    %cst_36 = arith.constant dense<0.000000e+00> : vector<9x8xf32>
    %61 = tpu.matmul %60, %47, %cst_36 {dimension_numbers = #tpu.dot_dimension_numbers<[1], [0], [0], [1], [0, 0, 1, 1], [], []>} : vector<9x9xf32>, vector<9x8xf32>, vector<9x8xf32> -> vector<9x8xf32>
    %c0_37 = arith.constant 0 : index
    %c0_38 = arith.constant 0 : index
    %c0_39 = arith.constant 0 : index
    %62 = vector.load %arg10[%c0_37, %c0_38, %c0_39] : memref<4x8x32xf32, #tpu.memory_space<vmem>>, vector<1x8x32xf32>
    %63 = vector.shape_cast %62 : vector<1x8x32xf32> to vector<8x32xf32>
    %cst_40 = arith.constant dense<0.000000e+00> : vector<9x32xf32>
    %64 = tpu.matmul %61, %63, %cst_40 {dimension_numbers = #tpu.dot_dimension_numbers<[1], [0], [0], [1], [0, 0, 1, 1], [], []>} : vector<9x8xf32>, vector<8x32xf32>, vector<9x32xf32> -> vector<9x32xf32>
    %65 = arith.addf %26, %64 : vector<9x32xf32>
    %c1 = arith.constant 1 : index
    %c0_41 = arith.constant 0 : index
    %c0_42 = arith.constant 0 : index
    %66 = vector.load %arg4[%c1, %c0_41, %c0_42] : memref<4x32x8xf32, #tpu.memory_space<vmem>>, vector<1x32x8xf32>
    %67 = vector.shape_cast %66 : vector<1x32x8xf32> to vector<32x8xf32>
    %cst_43 = arith.constant dense<0.000000e+00> : vector<9x8xf32>
    %68 = tpu.matmul %25, %67, %cst_43 {dimension_numbers = #tpu.dot_dimension_numbers<[1], [0], [0], [1], [0, 0, 1, 1], [], []>} : vector<9x32xf32>, vector<32x8xf32>, vector<9x8xf32> -> vector<9x8xf32>
    %c1_44 = arith.constant 1 : index
    %c0_45 = arith.constant 0 : index
    %c0_46 = arith.constant 0 : index
    %69 = vector.load %arg7[%c1_44, %c0_45, %c0_46] : memref<4x1x8xf32, #tpu.memory_space<vmem>>, vector<1x1x8xf32>
    %70 = vector.shape_cast %69 : vector<1x1x8xf32> to vector<1x8xf32>
    %71 = vector.broadcast %70 : vector<1x8xf32> to vector<9x8xf32>
    %72 = arith.addf %68, %71 : vector<9x8xf32>
    %c1_47 = arith.constant 1 : index
    %c0_48 = arith.constant 0 : index
    %c0_49 = arith.constant 0 : index
    %73 = vector.load %arg5[%c1_47, %c0_48, %c0_49] : memref<4x32x8xf32, #tpu.memory_space<vmem>>, vector<1x32x8xf32>
    %74 = vector.shape_cast %73 : vector<1x32x8xf32> to vector<32x8xf32>
    %cst_50 = arith.constant dense<0.000000e+00> : vector<9x8xf32>
    %75 = tpu.matmul %25, %74, %cst_50 {dimension_numbers = #tpu.dot_dimension_numbers<[1], [0], [0], [1], [0, 0, 1, 1], [], []>} : vector<9x32xf32>, vector<32x8xf32>, vector<9x8xf32> -> vector<9x8xf32>
    %c1_51 = arith.constant 1 : index
    %c0_52 = arith.constant 0 : index
    %c0_53 = arith.constant 0 : index
    %76 = vector.load %arg8[%c1_51, %c0_52, %c0_53] : memref<4x1x8xf32, #tpu.memory_space<vmem>>, vector<1x1x8xf32>
    %77 = vector.shape_cast %76 : vector<1x1x8xf32> to vector<1x8xf32>
    %78 = vector.broadcast %77 : vector<1x8xf32> to vector<9x8xf32>
    %79 = arith.addf %75, %78 : vector<9x8xf32>
    %c1_54 = arith.constant 1 : index
    %c0_55 = arith.constant 0 : index
    %c0_56 = arith.constant 0 : index
    %80 = vector.load %arg6[%c1_54, %c0_55, %c0_56] : memref<4x32x8xf32, #tpu.memory_space<vmem>>, vector<1x32x8xf32>
    %81 = vector.shape_cast %80 : vector<1x32x8xf32> to vector<32x8xf32>
    %cst_57 = arith.constant dense<0.000000e+00> : vector<9x8xf32>
    %82 = tpu.matmul %25, %81, %cst_57 {dimension_numbers = #tpu.dot_dimension_numbers<[1], [0], [0], [1], [0, 0, 1, 1], [], []>} : vector<9x32xf32>, vector<32x8xf32>, vector<9x8xf32> -> vector<9x8xf32>
    %c1_58 = arith.constant 1 : index
    %c0_59 = arith.constant 0 : index
    %c0_60 = arith.constant 0 : index
    %83 = vector.load %arg9[%c1_58, %c0_59, %c0_60] : memref<4x1x8xf32, #tpu.memory_space<vmem>>, vector<1x1x8xf32>
    %84 = vector.shape_cast %83 : vector<1x1x8xf32> to vector<1x8xf32>
    %85 = vector.broadcast %84 : vector<1x8xf32> to vector<9x8xf32>
    %86 = arith.addf %82, %85 : vector<9x8xf32>
    %cst_61 = arith.constant dense<0.000000e+00> : vector<9x9xf32>
    %87 = tpu.matmul %72, %79, %cst_61 {dimension_numbers = #tpu.dot_dimension_numbers<[1], [1], [0], [0], [0, 0, 1, 0], [], []>} : vector<9x8xf32>, vector<9x8xf32>, vector<9x9xf32> -> vector<9x9xf32>
    %cst_62 = arith.constant 0.353553385 : f32
    %88 = vector.broadcast %cst_62 : f32 to vector<9x9xf32>
    %89 = arith.mulf %87, %88 : vector<9x9xf32>
    %cst_63 = arith.constant dense<0xFF800000> : vector<9xf32>
    %90 = vector.multi_reduction <maximumf>, %89, %cst_63 [1] : vector<9x9xf32> to vector<9xf32>
    %91 = vector.shape_cast %90 : vector<9xf32> to vector<9x1xf32>
    %92 = vector.broadcast %91 : vector<9x1xf32> to vector<9x9xf32>
    %93 = arith.subf %89, %92 : vector<9x9xf32>
    %94 = math.exp %93 : vector<9x9xf32>
    %cst_64 = arith.constant dense<0.000000e+00> : vector<9xf32>
    %95 = vector.multi_reduction <add>, %94, %cst_64 [1] : vector<9x9xf32> to vector<9xf32>
    %96 = vector.shape_cast %95 : vector<9xf32> to vector<9x1xf32>
    %97 = tpu.reciprocal %96 {approx = true} : vector<9x1xf32> -> vector<9x1xf32>
    %98 = vector.broadcast %97 : vector<9x1xf32> to vector<9x9xf32>
    %99 = arith.mulf %94, %98 : vector<9x9xf32>
    %cst_65 = arith.constant dense<0.000000e+00> : vector<9x8xf32>
    %100 = tpu.matmul %99, %86, %cst_65 {dimension_numbers = #tpu.dot_dimension_numbers<[1], [0], [0], [1], [0, 0, 1, 1], [], []>} : vector<9x9xf32>, vector<9x8xf32>, vector<9x8xf32> -> vector<9x8xf32>
    %c1_66 = arith.constant 1 : index
    %c0_67 = arith.constant 0 : index
    %c0_68 = arith.constant 0 : index
    %101 = vector.load %arg10[%c1_66, %c0_67, %c0_68] : memref<4x8x32xf32, #tpu.memory_space<vmem>>, vector<1x8x32xf32>
    %102 = vector.shape_cast %101 : vector<1x8x32xf32> to vector<8x32xf32>
    %cst_69 = arith.constant dense<0.000000e+00> : vector<9x32xf32>
    %103 = tpu.matmul %100, %102, %cst_69 {dimension_numbers = #tpu.dot_dimension_numbers<[1], [0], [0], [1], [0, 0, 1, 1], [], []>} : vector<9x8xf32>, vector<8x32xf32>, vector<9x32xf32> -> vector<9x32xf32>
    %104 = arith.addf %65, %103 : vector<9x32xf32>
    %c2 = arith.constant 2 : index
    %c0_70 = arith.constant 0 : index
    %c0_71 = arith.constant 0 : index
    %105 = vector.load %arg4[%c2, %c0_70, %c0_71] : memref<4x32x8xf32, #tpu.memory_space<vmem>>, vector<1x32x8xf32>
    %106 = vector.shape_cast %105 : vector<1x32x8xf32> to vector<32x8xf32>
    %cst_72 = arith.constant dense<0.000000e+00> : vector<9x8xf32>
    %107 = tpu.matmul %25, %106, %cst_72 {dimension_numbers = #tpu.dot_dimension_numbers<[1], [0], [0], [1], [0, 0, 1, 1], [], []>} : vector<9x32xf32>, vector<32x8xf32>, vector<9x8xf32> -> vector<9x8xf32>
    %c2_73 = arith.constant 2 : index
    %c0_74 = arith.constant 0 : index
    %c0_75 = arith.constant 0 : index
    %108 = vector.load %arg7[%c2_73, %c0_74, %c0_75] : memref<4x1x8xf32, #tpu.memory_space<vmem>>, vector<1x1x8xf32>
    %109 = vector.shape_cast %108 : vector<1x1x8xf32> to vector<1x8xf32>
    %110 = vector.broadcast %109 : vector<1x8xf32> to vector<9x8xf32>
    %111 = arith.addf %107, %110 : vector<9x8xf32>
    %c2_76 = arith.constant 2 : index
    %c0_77 = arith.constant 0 : index
    %c0_78 = arith.constant 0 : index
    %112 = vector.load %arg5[%c2_76, %c0_77, %c0_78] : memref<4x32x8xf32, #tpu.memory_space<vmem>>, vector<1x32x8xf32>
    %113 = vector.shape_cast %112 : vector<1x32x8xf32> to vector<32x8xf32>
    %cst_79 = arith.constant dense<0.000000e+00> : vector<9x8xf32>
    %114 = tpu.matmul %25, %113, %cst_79 {dimension_numbers = #tpu.dot_dimension_numbers<[1], [0], [0], [1], [0, 0, 1, 1], [], []>} : vector<9x32xf32>, vector<32x8xf32>, vector<9x8xf32> -> vector<9x8xf32>
    %c2_80 = arith.constant 2 : index
    %c0_81 = arith.constant 0 : index
    %c0_82 = arith.constant 0 : index
    %115 = vector.load %arg8[%c2_80, %c0_81, %c0_82] : memref<4x1x8xf32, #tpu.memory_space<vmem>>, vector<1x1x8xf32>
    %116 = vector.shape_cast %115 : vector<1x1x8xf32> to vector<1x8xf32>
    %117 = vector.broadcast %116 : vector<1x8xf32> to vector<9x8xf32>
    %118 = arith.addf %114, %117 : vector<9x8xf32>
    %c2_83 = arith.constant 2 : index
    %c0_84 = arith.constant 0 : index
    %c0_85 = arith.constant 0 : index
    %119 = vector.load %arg6[%c2_83, %c0_84, %c0_85] : memref<4x32x8xf32, #tpu.memory_space<vmem>>, vector<1x32x8xf32>
    %120 = vector.shape_cast %119 : vector<1x32x8xf32> to vector<32x8xf32>
    %cst_86 = arith.constant dense<0.000000e+00> : vector<9x8xf32>
    %121 = tpu.matmul %25, %120, %cst_86 {dimension_numbers = #tpu.dot_dimension_numbers<[1], [0], [0], [1], [0, 0, 1, 1], [], []>} : vector<9x32xf32>, vector<32x8xf32>, vector<9x8xf32> -> vector<9x8xf32>
    %c2_87 = arith.constant 2 : index
    %c0_88 = arith.constant 0 : index
    %c0_89 = arith.constant 0 : index
    %122 = vector.load %arg9[%c2_87, %c0_88, %c0_89] : memref<4x1x8xf32, #tpu.memory_space<vmem>>, vector<1x1x8xf32>
    %123 = vector.shape_cast %122 : vector<1x1x8xf32> to vector<1x8xf32>
    %124 = vector.broadcast %123 : vector<1x8xf32> to vector<9x8xf32>
    %125 = arith.addf %121, %124 : vector<9x8xf32>
    %cst_90 = arith.constant dense<0.000000e+00> : vector<9x9xf32>
    %126 = tpu.matmul %111, %118, %cst_90 {dimension_numbers = #tpu.dot_dimension_numbers<[1], [1], [0], [0], [0, 0, 1, 0], [], []>} : vector<9x8xf32>, vector<9x8xf32>, vector<9x9xf32> -> vector<9x9xf32>
    %cst_91 = arith.constant 0.353553385 : f32
    %127 = vector.broadcast %cst_91 : f32 to vector<9x9xf32>
    %128 = arith.mulf %126, %127 : vector<9x9xf32>
    %cst_92 = arith.constant dense<0xFF800000> : vector<9xf32>
    %129 = vector.multi_reduction <maximumf>, %128, %cst_92 [1] : vector<9x9xf32> to vector<9xf32>
    %130 = vector.shape_cast %129 : vector<9xf32> to vector<9x1xf32>
    %131 = vector.broadcast %130 : vector<9x1xf32> to vector<9x9xf32>
    %132 = arith.subf %128, %131 : vector<9x9xf32>
    %133 = math.exp %132 : vector<9x9xf32>
    %cst_93 = arith.constant dense<0.000000e+00> : vector<9xf32>
    %134 = vector.multi_reduction <add>, %133, %cst_93 [1] : vector<9x9xf32> to vector<9xf32>
    %135 = vector.shape_cast %134 : vector<9xf32> to vector<9x1xf32>
    %136 = tpu.reciprocal %135 {approx = true} : vector<9x1xf32> -> vector<9x1xf32>
    %137 = vector.broadcast %136 : vector<9x1xf32> to vector<9x9xf32>
    %138 = arith.mulf %133, %137 : vector<9x9xf32>
    %cst_94 = arith.constant dense<0.000000e+00> : vector<9x8xf32>
    %139 = tpu.matmul %138, %125, %cst_94 {dimension_numbers = #tpu.dot_dimension_numbers<[1], [0], [0], [1], [0, 0, 1, 1], [], []>} : vector<9x9xf32>, vector<9x8xf32>, vector<9x8xf32> -> vector<9x8xf32>
    %c2_95 = arith.constant 2 : index
    %c0_96 = arith.constant 0 : index
    %c0_97 = arith.constant 0 : index
    %140 = vector.load %arg10[%c2_95, %c0_96, %c0_97] : memref<4x8x32xf32, #tpu.memory_space<vmem>>, vector<1x8x32xf32>
    %141 = vector.shape_cast %140 : vector<1x8x32xf32> to vector<8x32xf32>
    %cst_98 = arith.constant dense<0.000000e+00> : vector<9x32xf32>
    %142 = tpu.matmul %139, %141, %cst_98 {dimension_numbers = #tpu.dot_dimension_numbers<[1], [0], [0], [1], [0, 0, 1, 1], [], []>} : vector<9x8xf32>, vector<8x32xf32>, vector<9x32xf32> -> vector<9x32xf32>
    %143 = arith.addf %104, %142 : vector<9x32xf32>
    %c3 = arith.constant 3 : index
    %c0_99 = arith.constant 0 : index
    %c0_100 = arith.constant 0 : index
    %144 = vector.load %arg4[%c3, %c0_99, %c0_100] : memref<4x32x8xf32, #tpu.memory_space<vmem>>, vector<1x32x8xf32>
    %145 = vector.shape_cast %144 : vector<1x32x8xf32> to vector<32x8xf32>
    %cst_101 = arith.constant dense<0.000000e+00> : vector<9x8xf32>
    %146 = tpu.matmul %25, %145, %cst_101 {dimension_numbers = #tpu.dot_dimension_numbers<[1], [0], [0], [1], [0, 0, 1, 1], [], []>} : vector<9x32xf32>, vector<32x8xf32>, vector<9x8xf32> -> vector<9x8xf32>
    %c3_102 = arith.constant 3 : index
    %c0_103 = arith.constant 0 : index
    %c0_104 = arith.constant 0 : index
    %147 = vector.load %arg7[%c3_102, %c0_103, %c0_104] : memref<4x1x8xf32, #tpu.memory_space<vmem>>, vector<1x1x8xf32>
    %148 = vector.shape_cast %147 : vector<1x1x8xf32> to vector<1x8xf32>
    %149 = vector.broadcast %148 : vector<1x8xf32> to vector<9x8xf32>
    %150 = arith.addf %146, %149 : vector<9x8xf32>
    %c3_105 = arith.constant 3 : index
    %c0_106 = arith.constant 0 : index
    %c0_107 = arith.constant 0 : index
    %151 = vector.load %arg5[%c3_105, %c0_106, %c0_107] : memref<4x32x8xf32, #tpu.memory_space<vmem>>, vector<1x32x8xf32>
    %152 = vector.shape_cast %151 : vector<1x32x8xf32> to vector<32x8xf32>
    %cst_108 = arith.constant dense<0.000000e+00> : vector<9x8xf32>
    %153 = tpu.matmul %25, %152, %cst_108 {dimension_numbers = #tpu.dot_dimension_numbers<[1], [0], [0], [1], [0, 0, 1, 1], [], []>} : vector<9x32xf32>, vector<32x8xf32>, vector<9x8xf32> -> vector<9x8xf32>
    %c3_109 = arith.constant 3 : index
    %c0_110 = arith.constant 0 : index
    %c0_111 = arith.constant 0 : index
    %154 = vector.load %arg8[%c3_109, %c0_110, %c0_111] : memref<4x1x8xf32, #tpu.memory_space<vmem>>, vector<1x1x8xf32>
    %155 = vector.shape_cast %154 : vector<1x1x8xf32> to vector<1x8xf32>
    %156 = vector.broadcast %155 : vector<1x8xf32> to vector<9x8xf32>
    %157 = arith.addf %153, %156 : vector<9x8xf32>
    %c3_112 = arith.constant 3 : index
    %c0_113 = arith.constant 0 : index
    %c0_114 = arith.constant 0 : index
    %158 = vector.load %arg6[%c3_112, %c0_113, %c0_114] : memref<4x32x8xf32, #tpu.memory_space<vmem>>, vector<1x32x8xf32>
    %159 = vector.shape_cast %158 : vector<1x32x8xf32> to vector<32x8xf32>
    %cst_115 = arith.constant dense<0.000000e+00> : vector<9x8xf32>
    %160 = tpu.matmul %25, %159, %cst_115 {dimension_numbers = #tpu.dot_dimension_numbers<[1], [0], [0], [1], [0, 0, 1, 1], [], []>} : vector<9x32xf32>, vector<32x8xf32>, vector<9x8xf32> -> vector<9x8xf32>
    %c3_116 = arith.constant 3 : index
    %c0_117 = arith.constant 0 : index
    %c0_118 = arith.constant 0 : index
    %161 = vector.load %arg9[%c3_116, %c0_117, %c0_118] : memref<4x1x8xf32, #tpu.memory_space<vmem>>, vector<1x1x8xf32>
    %162 = vector.shape_cast %161 : vector<1x1x8xf32> to vector<1x8xf32>
    %163 = vector.broadcast %162 : vector<1x8xf32> to vector<9x8xf32>
    %164 = arith.addf %160, %163 : vector<9x8xf32>
    %cst_119 = arith.constant dense<0.000000e+00> : vector<9x9xf32>
    %165 = tpu.matmul %150, %157, %cst_119 {dimension_numbers = #tpu.dot_dimension_numbers<[1], [1], [0], [0], [0, 0, 1, 0], [], []>} : vector<9x8xf32>, vector<9x8xf32>, vector<9x9xf32> -> vector<9x9xf32>
    %cst_120 = arith.constant 0.353553385 : f32
    %166 = vector.broadcast %cst_120 : f32 to vector<9x9xf32>
    %167 = arith.mulf %165, %166 : vector<9x9xf32>
    %cst_121 = arith.constant dense<0xFF800000> : vector<9xf32>
    %168 = vector.multi_reduction <maximumf>, %167, %cst_121 [1] : vector<9x9xf32> to vector<9xf32>
    %169 = vector.shape_cast %168 : vector<9xf32> to vector<9x1xf32>
    %170 = vector.broadcast %169 : vector<9x1xf32> to vector<9x9xf32>
    %171 = arith.subf %167, %170 : vector<9x9xf32>
    %172 = math.exp %171 : vector<9x9xf32>
    %cst_122 = arith.constant dense<0.000000e+00> : vector<9xf32>
    %173 = vector.multi_reduction <add>, %172, %cst_122 [1] : vector<9x9xf32> to vector<9xf32>
    %174 = vector.shape_cast %173 : vector<9xf32> to vector<9x1xf32>
    %175 = tpu.reciprocal %174 {approx = true} : vector<9x1xf32> -> vector<9x1xf32>
    %176 = vector.broadcast %175 : vector<9x1xf32> to vector<9x9xf32>
    %177 = arith.mulf %172, %176 : vector<9x9xf32>
    %cst_123 = arith.constant dense<0.000000e+00> : vector<9x8xf32>
    %178 = tpu.matmul %177, %164, %cst_123 {dimension_numbers = #tpu.dot_dimension_numbers<[1], [0], [0], [1], [0, 0, 1, 1], [], []>} : vector<9x9xf32>, vector<9x8xf32>, vector<9x8xf32> -> vector<9x8xf32>
    %c3_124 = arith.constant 3 : index
    %c0_125 = arith.constant 0 : index
    %c0_126 = arith.constant 0 : index
    %179 = vector.load %arg10[%c3_124, %c0_125, %c0_126] : memref<4x8x32xf32, #tpu.memory_space<vmem>>, vector<1x8x32xf32>
    %180 = vector.shape_cast %179 : vector<1x8x32xf32> to vector<8x32xf32>
    %cst_127 = arith.constant dense<0.000000e+00> : vector<9x32xf32>
    %181 = tpu.matmul %178, %180, %cst_127 {dimension_numbers = #tpu.dot_dimension_numbers<[1], [0], [0], [1], [0, 0, 1, 1], [], []>} : vector<9x8xf32>, vector<8x32xf32>, vector<9x32xf32> -> vector<9x32xf32>
    %182 = arith.addf %143, %181 : vector<9x32xf32>
    %183 = arith.addf %1, %182 : vector<9x32xf32>
    %c0_128 = arith.constant 0 : index
    %c0_129 = arith.constant 0 : index
    %184 = vector.load %arg11[%c0_128, %c0_129] : memref<1x32xf32, #tpu.memory_space<vmem>>, vector<1x32xf32>
    %185 = vector.broadcast %184 : vector<1x32xf32> to vector<9x32xf32>
    %186 = arith.addf %183, %185 : vector<9x32xf32>
    %c0_130 = arith.constant 0 : index
    %c0_131 = arith.constant 0 : index
    %187 = vector.load %arg12[%c0_130, %c0_131] : memref<1x32xf32, #tpu.memory_space<vmem>>, vector<1x32xf32>
    %c0_132 = arith.constant 0 : index
    %c0_133 = arith.constant 0 : index
    %188 = vector.load %arg13[%c0_132, %c0_133] : memref<1x32xf32, #tpu.memory_space<vmem>>, vector<1x32xf32>
    %cst_134 = arith.constant dense<0.000000e+00> : vector<9xf32>
    %189 = vector.multi_reduction <add>, %186, %cst_134 [1] : vector<9x32xf32> to vector<9xf32>
    %190 = vector.shape_cast %189 : vector<9xf32> to vector<9x1xf32>
    %cst_135 = arith.constant 3.200000e+01 : f32
    %191 = vector.broadcast %cst_135 : f32 to vector<9x1xf32>
    %192 = arith.divf %190, %191 : vector<9x1xf32>
    %193 = vector.broadcast %192 : vector<9x1xf32> to vector<9x32xf32>
    %194 = arith.subf %186, %193 : vector<9x32xf32>
    %195 = arith.mulf %194, %194 : vector<9x32xf32>
    %cst_136 = arith.constant dense<0.000000e+00> : vector<9xf32>
    %196 = vector.multi_reduction <add>, %195, %cst_136 [1] : vector<9x32xf32> to vector<9xf32>
    %197 = vector.shape_cast %196 : vector<9xf32> to vector<9x1xf32>
    %cst_137 = arith.constant 3.200000e+01 : f32
    %198 = vector.broadcast %cst_137 : f32 to vector<9x1xf32>
    %199 = arith.divf %197, %198 : vector<9x1xf32>
    %200 = vector.broadcast %192 : vector<9x1xf32> to vector<9x32xf32>
    %201 = arith.subf %186, %200 : vector<9x32xf32>
    %cst_138 = arith.constant 9.99999974E-6 : f32
    %202 = vector.broadcast %cst_138 : f32 to vector<9x1xf32>
    %203 = arith.addf %199, %202 : vector<9x1xf32>
    %204 = math.rsqrt %203 : vector<9x1xf32>
    %205 = vector.broadcast %204 : vector<9x1xf32> to vector<9x32xf32>
    %206 = arith.mulf %201, %205 : vector<9x32xf32>
    %207 = vector.broadcast %187 : vector<1x32xf32> to vector<9x32xf32>
    %208 = arith.mulf %206, %207 : vector<9x32xf32>
    %209 = vector.broadcast %188 : vector<1x32xf32> to vector<9x32xf32>
    %210 = arith.addf %208, %209 : vector<9x32xf32>
    %c0_139 = arith.constant 0 : index
    %c0_140 = arith.constant 0 : index
    %211 = vector.load %arg14[%c0_139, %c0_140] : memref<32x128xf32, #tpu.memory_space<vmem>>, vector<32x128xf32>
    %cst_141 = arith.constant dense<0.000000e+00> : vector<9x128xf32>
    %212 = tpu.matmul %210, %211, %cst_141 {dimension_numbers = #tpu.dot_dimension_numbers<[1], [0], [0], [1], [0, 0, 1, 1], [], []>} : vector<9x32xf32>, vector<32x128xf32>, vector<9x128xf32> -> vector<9x128xf32>
    %c0_142 = arith.constant 0 : index
    %c0_143 = arith.constant 0 : index
    %213 = vector.load %arg15[%c0_142, %c0_143] : memref<1x128xf32, #tpu.memory_space<vmem>>, vector<1x128xf32>
    %214 = vector.broadcast %213 : vector<1x128xf32> to vector<9x128xf32>
    %215 = arith.addf %212, %214 : vector<9x128xf32>
    %216 = arith.mulf %215, %215 : vector<9x128xf32>
    %217 = arith.mulf %215, %216 : vector<9x128xf32>
    %cst_144 = arith.constant 4.471500e-02 : f32
    %218 = vector.broadcast %cst_144 : f32 to vector<9x128xf32>
    %219 = arith.mulf %218, %217 : vector<9x128xf32>
    %220 = arith.addf %215, %219 : vector<9x128xf32>
    %cst_145 = arith.constant 0.797884583 : f32
    %221 = vector.broadcast %cst_145 : f32 to vector<9x128xf32>
    %222 = arith.mulf %221, %220 : vector<9x128xf32>
    %223 = math.tanh %222 : vector<9x128xf32>
    %cst_146 = arith.constant 1.000000e+00 : f32
    %224 = vector.broadcast %cst_146 : f32 to vector<9x128xf32>
    %225 = arith.addf %224, %223 : vector<9x128xf32>
    %cst_147 = arith.constant 5.000000e-01 : f32
    %226 = vector.broadcast %cst_147 : f32 to vector<9x128xf32>
    %227 = arith.mulf %226, %225 : vector<9x128xf32>
    %228 = arith.mulf %215, %227 : vector<9x128xf32>
    %c0_148 = arith.constant 0 : index
    %c0_149 = arith.constant 0 : index
    %229 = vector.load %arg16[%c0_148, %c0_149] : memref<128x32xf32, #tpu.memory_space<vmem>>, vector<128x32xf32>
    %cst_150 = arith.constant dense<0.000000e+00> : vector<9x32xf32>
    %230 = tpu.matmul %228, %229, %cst_150 {dimension_numbers = #tpu.dot_dimension_numbers<[1], [0], [0], [1], [0, 0, 1, 1], [], []>} : vector<9x128xf32>, vector<128x32xf32>, vector<9x32xf32> -> vector<9x32xf32>
    %c0_151 = arith.constant 0 : index
    %c0_152 = arith.constant 0 : index
    %231 = vector.load %arg17[%c0_151, %c0_152] : memref<1x32xf32, #tpu.memory_space<vmem>>, vector<1x32xf32>
    %232 = vector.broadcast %231 : vector<1x32xf32> to vector<9x32xf32>
    %233 = arith.addf %230, %232 : vector<9x32xf32>
    %234 = arith.addf %186, %233 : vector<9x32xf32>
    %c0_153 = arith.constant 0 : index
    %c0_154 = arith.constant 0 : index
    %c0_155 = arith.constant 0 : index
    %235 = vector.load %arg18[%c0_153, %c0_154, %c0_155] : memref<1x9x32xf32, #tpu.memory_space<vmem>>, vector<1x9x32xf32>
    %236 = vector.shape_cast %235 : vector<1x9x32xf32> to vector<9x32xf32>
    %237 = vector.shape_cast %234 : vector<9x32xf32> to vector<1x9x32xf32>
    tpu.vector_store %arg18[%c0_153, %c0_154, %c0_155], %237 {strides = array<i32>} : memref<1x9x32xf32, #tpu.memory_space<vmem>>, vector<1x9x32xf32>,
    return
  }
  func.func @transform_0(%arg0: i32) -> (i32, i32, i32) {
    %c0_i32 = arith.constant 0 : i32
    %c0_i32_0 = arith.constant 0 : i32
    %c0_i32_1 = arith.constant 0 : i32
    return %arg0, %c0_i32, %c0_i32_0 : i32, i32, i32
  }
  func.func @transform_1(%arg0: i32) -> (i32, i32) {
    %c0_i32 = arith.constant 0 : i32
    %c0_i32_0 = arith.constant 0 : i32
    %c0_i32_1 = arith.constant 0 : i32
    return %c0_i32, %c0_i32_0 : i32, i32
  }
  func.func @transform_2(%arg0: i32) -> (i32, i32) {
    %c0_i32 = arith.constant 0 : i32
    %c0_i32_0 = arith.constant 0 : i32
    %c0_i32_1 = arith.constant 0 : i32
    return %c0_i32, %c0_i32_0 : i32, i32
  }
  func.func @transform_3(%arg0: i32) -> (i32, i32, i32) {
    %c0_i32 = arith.constant 0 : i32
    %c0_i32_0 = arith.constant 0 : i32
    %c0_i32_1 = arith.constant 0 : i32
    %c0_i32_2 = arith.constant 0 : i32
    return %c0_i32, %c0_i32_0, %c0_i32_1 : i32, i32, i32
  }
  func.func @transform_4(%arg0: i32) -> (i32, i32, i32) {
    %c0_i32 = arith.constant 0 : i32
    %c0_i32_0 = arith.constant 0 : i32
    %c0_i32_1 = arith.constant 0 : i32
    %c0_i32_2 = arith.constant 0 : i32
    return %c0_i32, %c0_i32_0, %c0_i32_1 : i32, i32, i32
  }
  func.func @transform_5(%arg0: i32) -> (i32, i32, i32) {
    %c0_i32 = arith.constant 0 : i32
    %c0_i32_0 = arith.constant 0 : i32
    %c0_i32_1 = arith.constant 0 : i32
    %c0_i32_2 = arith.constant 0 : i32
    return %c0_i32, %c0_i32_0, %c0_i32_1 : i32, i32, i32
  }
  func.func @transform_6(%arg0: i32) -> (i32, i32, i32) {
    %c0_i32 = arith.constant 0 : i32
    %c0_i32_0 = arith.constant 0 : i32
    %c0_i32_1 = arith.constant 0 : i32
    %c0_i32_2 = arith.constant 0 : i32
    return %c0_i32, %c0_i32_0, %c0_i32_1 : i32, i32, i32
  }
  func.func @transform_7(%arg0: i32) -> (i32, i32, i32) {
    %c0_i32 = arith.constant 0 : i32
    %c0_i32_0 = arith.constant 0 : i32
    %c0_i32_1 = arith.constant 0 : i32
    %c0_i32_2 = arith.constant 0 : i32
    return %c0_i32, %c0_i32_0, %c0_i32_1 : i32, i32, i32
  }
  func.func @transform_8(%arg0: i32) -> (i32, i32, i32) {
    %c0_i32 = arith.constant 0 : i32
    %c0_i32_0 = arith.constant 0 : i32
    %c0_i32_1 = arith.constant 0 : i32
    %c0_i32_2 = arith.constant 0 : i32
    return %c0_i32, %c0_i32_0, %c0_i32_1 : i32, i32, i32
  }
  func.func @transform_9(%arg0: i32) -> (i32, i32, i32) {
    %c0_i32 = arith.constant 0 : i32
    %c0_i32_0 = arith.constant 0 : i32
    %c0_i32_1 = arith.constant 0 : i32
    %c0_i32_2 = arith.constant 0 : i32
    return %c0_i32, %c0_i32_0, %c0_i32_1 : i32, i32, i32
  }
  func.func @transform_10(%arg0: i32) -> (i32, i32) {
    %c0_i32 = arith.constant 0 : i32
    %c0_i32_0 = arith.constant 0 : i32
    %c0_i32_1 = arith.constant 0 : i32
    return %c0_i32, %c0_i32_0 : i32, i32
  }
  func.func @transform_11(%arg0: i32) -> (i32, i32) {
    %c0_i32 = arith.constant 0 : i32
    %c0_i32_0 = arith.constant 0 : i32
    %c0_i32_1 = arith.constant 0 : i32
    return %c0_i32, %c0_i32_0 : i32, i32
  }
  func.func @transform_12(%arg0: i32) -> (i32, i32) {
    %c0_i32 = arith.constant 0 : i32
    %c0_i32_0 = arith.constant 0 : i32
    %c0_i32_1 = arith.constant 0 : i32
    return %c0_i32, %c0_i32_0 : i32, i32
  }
  func.func @transform_13(%arg0: i32) -> (i32, i32) {
    %c0_i32 = arith.constant 0 : i32
    %c0_i32_0 = arith.constant 0 : i32
    %c0_i32_1 = arith.constant 0 : i32
    return %c0_i32, %c0_i32_0 : i32, i32
  }
  func.func @transform_14(%arg0: i32) -> (i32, i32) {
    %c0_i32 = arith.constant 0 : i32
    %c0_i32_0 = arith.constant 0 : i32
    %c0_i32_1 = arith.constant 0 : i32
    return %c0_i32, %c0_i32_0 : i32, i32
  }
  func.func @transform_15(%arg0: i32) -> (i32, i32) {
    %c0_i32 = arith.constant 0 : i32
    %c0_i32_0 = arith.constant 0 : i32
    %c0_i32_1 = arith.constant 0 : i32
    return %c0_i32, %c0_i32_0 : i32, i32
  }
  func.func @transform_16(%arg0: i32) -> (i32, i32) {
    %c0_i32 = arith.constant 0 : i32
    %c0_i32_0 = arith.constant 0 : i32
    %c0_i32_1 = arith.constant 0 : i32
    return %c0_i32, %c0_i32_0 : i32, i32
  }
  func.func @transform_17(%arg0: i32) -> (i32, i32, i32) {
    %c0_i32 = arith.constant 0 : i32
    %c0_i32_0 = arith.constant 0 : i32
    %c0_i32_1 = arith.constant 0 : i32
    return %arg0, %c0_i32, %c0_i32_0 : i32, i32, i32
  }
}

module attributes {stable_mosaic.version = 11 : i64} {
  func.func @_ln_linear_kernel(%arg0: memref<16x16xf32, #tpu.memory_space<vmem>>, %arg1: memref<1x16xf32, #tpu.memory_space<vmem>>, %arg2: memref<1x16xf32, #tpu.memory_space<vmem>>, %arg3: memref<16x16xf32, #tpu.memory_space<vmem>>, %arg4: memref<1x16xf32, #tpu.memory_space<vmem>>, %arg5: memref<16x16xf32, #tpu.memory_space<vmem>>) attributes {dimension_semantics = [], scalar_prefetch = 0 : i64, scratch_operands = 0 : i64, tpu.core_type = #tpu.core_type<tc>} {
    %c0 = arith.constant 0 : index
    %c0_0 = arith.constant 0 : index
    %0 = vector.load %arg0[%c0, %c0_0] : memref<16x16xf32, #tpu.memory_space<vmem>>, vector<16x16xf32>
    %c0_1 = arith.constant 0 : index
    %c0_2 = arith.constant 0 : index
    %1 = vector.load %arg1[%c0_1, %c0_2] : memref<1x16xf32, #tpu.memory_space<vmem>>, vector<1x16xf32>
    %c0_3 = arith.constant 0 : index
    %c0_4 = arith.constant 0 : index
    %2 = vector.load %arg2[%c0_3, %c0_4] : memref<1x16xf32, #tpu.memory_space<vmem>>, vector<1x16xf32>
    %cst = arith.constant dense<0.000000e+00> : vector<16xf32>
    %3 = vector.multi_reduction <add>, %0, %cst [1] : vector<16x16xf32> to vector<16xf32>
    %4 = vector.shape_cast %3 : vector<16xf32> to vector<16x1xf32>
    %cst_5 = arith.constant 1.600000e+01 : f32
    %5 = vector.broadcast %cst_5 : f32 to vector<16x1xf32>
    %6 = arith.divf %4, %5 : vector<16x1xf32>
    %7 = vector.broadcast %6 : vector<16x1xf32> to vector<16x16xf32>
    %8 = arith.subf %0, %7 : vector<16x16xf32>
    %9 = arith.mulf %8, %8 : vector<16x16xf32>
    %cst_6 = arith.constant dense<0.000000e+00> : vector<16xf32>
    %10 = vector.multi_reduction <add>, %9, %cst_6 [1] : vector<16x16xf32> to vector<16xf32>
    %11 = vector.shape_cast %10 : vector<16xf32> to vector<16x1xf32>
    %cst_7 = arith.constant 1.600000e+01 : f32
    %12 = vector.broadcast %cst_7 : f32 to vector<16x1xf32>
    %13 = arith.divf %11, %12 : vector<16x1xf32>
    %14 = vector.broadcast %6 : vector<16x1xf32> to vector<16x16xf32>
    %15 = arith.subf %0, %14 : vector<16x16xf32>
    %cst_8 = arith.constant 9.99999974E-6 : f32
    %16 = vector.broadcast %cst_8 : f32 to vector<16x1xf32>
    %17 = arith.addf %13, %16 : vector<16x1xf32>
    %18 = math.rsqrt %17 : vector<16x1xf32>
    %19 = vector.broadcast %18 : vector<16x1xf32> to vector<16x16xf32>
    %20 = arith.mulf %15, %19 : vector<16x16xf32>
    %21 = vector.broadcast %1 : vector<1x16xf32> to vector<16x16xf32>
    %22 = arith.mulf %20, %21 : vector<16x16xf32>
    %23 = vector.broadcast %2 : vector<1x16xf32> to vector<16x16xf32>
    %24 = arith.addf %22, %23 : vector<16x16xf32>
    %c0_9 = arith.constant 0 : index
    %c0_10 = arith.constant 0 : index
    %25 = vector.load %arg3[%c0_9, %c0_10] : memref<16x16xf32, #tpu.memory_space<vmem>>, vector<16x16xf32>
    %cst_11 = arith.constant dense<0.000000e+00> : vector<16x16xf32>
    %26 = tpu.matmul %24, %25, %cst_11 {dimension_numbers = #tpu.dot_dimension_numbers<[1], [0], [0], [1], [0, 0, 1, 1], [], []>} : vector<16x16xf32>, vector<16x16xf32>, vector<16x16xf32> -> vector<16x16xf32>
    %c0_12 = arith.constant 0 : index
    %c0_13 = arith.constant 0 : index
    %27 = vector.load %arg4[%c0_12, %c0_13] : memref<1x16xf32, #tpu.memory_space<vmem>>, vector<1x16xf32>
    %28 = vector.broadcast %27 : vector<1x16xf32> to vector<16x16xf32>
    %29 = arith.addf %26, %28 : vector<16x16xf32>
    %c0_14 = arith.constant 0 : index
    %c0_15 = arith.constant 0 : index
    %30 = vector.load %arg5[%c0_14, %c0_15] : memref<16x16xf32, #tpu.memory_space<vmem>>, vector<16x16xf32>
    tpu.vector_store %arg5[%c0_14, %c0_15], %29 {strides = array<i32>} : memref<16x16xf32, #tpu.memory_space<vmem>>, vector<16x16xf32>,
    return
  }
}

module attributes {stable_mosaic.version = 11 : i64} {
  func.func @_ln_linear_kernel(%arg0: memref<6x32xf32, #tpu.memory_space<vmem>>, %arg1: memref<1x32xf32, #tpu.memory_space<vmem>>, %arg2: memref<1x32xf32, #tpu.memory_space<vmem>>, %arg3: memref<32x16xf32, #tpu.memory_space<vmem>>, %arg4: memref<1x16xf32, #tpu.memory_space<vmem>>, %arg5: memref<6x16xf32, #tpu.memory_space<vmem>>) attributes {dimension_semantics = [], scalar_prefetch = 0 : i64, scratch_operands = 0 : i64, tpu.core_type = #tpu.core_type<tc>} {
    %c0 = arith.constant 0 : index
    %c0_0 = arith.constant 0 : index
    %0 = vector.load %arg0[%c0, %c0_0] : memref<6x32xf32, #tpu.memory_space<vmem>>, vector<6x32xf32>
    %c0_1 = arith.constant 0 : index
    %c0_2 = arith.constant 0 : index
    %1 = vector.load %arg1[%c0_1, %c0_2] : memref<1x32xf32, #tpu.memory_space<vmem>>, vector<1x32xf32>
    %c0_3 = arith.constant 0 : index
    %c0_4 = arith.constant 0 : index
    %2 = vector.load %arg2[%c0_3, %c0_4] : memref<1x32xf32, #tpu.memory_space<vmem>>, vector<1x32xf32>
    %cst = arith.constant dense<0.000000e+00> : vector<6xf32>
    %3 = vector.multi_reduction <add>, %0, %cst [1] : vector<6x32xf32> to vector<6xf32>
    %4 = vector.shape_cast %3 : vector<6xf32> to vector<6x1xf32>
    %cst_5 = arith.constant 3.200000e+01 : f32
    %5 = vector.broadcast %cst_5 : f32 to vector<6x1xf32>
    %6 = arith.divf %4, %5 : vector<6x1xf32>
    %7 = vector.broadcast %6 : vector<6x1xf32> to vector<6x32xf32>
    %8 = arith.subf %0, %7 : vector<6x32xf32>
    %9 = arith.mulf %8, %8 : vector<6x32xf32>
    %cst_6 = arith.constant dense<0.000000e+00> : vector<6xf32>
    %10 = vector.multi_reduction <add>, %9, %cst_6 [1] : vector<6x32xf32> to vector<6xf32>
    %11 = vector.shape_cast %10 : vector<6xf32> to vector<6x1xf32>
    %cst_7 = arith.constant 3.200000e+01 : f32
    %12 = vector.broadcast %cst_7 : f32 to vector<6x1xf32>
    %13 = arith.divf %11, %12 : vector<6x1xf32>
    %14 = vector.broadcast %6 : vector<6x1xf32> to vector<6x32xf32>
    %15 = arith.subf %0, %14 : vector<6x32xf32>
    %cst_8 = arith.constant 9.99999974E-6 : f32
    %16 = vector.broadcast %cst_8 : f32 to vector<6x1xf32>
    %17 = arith.addf %13, %16 : vector<6x1xf32>
    %18 = math.rsqrt %17 : vector<6x1xf32>
    %19 = vector.broadcast %18 : vector<6x1xf32> to vector<6x32xf32>
    %20 = arith.mulf %15, %19 : vector<6x32xf32>
    %21 = vector.broadcast %1 : vector<1x32xf32> to vector<6x32xf32>
    %22 = arith.mulf %20, %21 : vector<6x32xf32>
    %23 = vector.broadcast %2 : vector<1x32xf32> to vector<6x32xf32>
    %24 = arith.addf %22, %23 : vector<6x32xf32>
    %c0_9 = arith.constant 0 : index
    %c0_10 = arith.constant 0 : index
    %25 = vector.load %arg3[%c0_9, %c0_10] : memref<32x16xf32, #tpu.memory_space<vmem>>, vector<32x16xf32>
    %cst_11 = arith.constant dense<0.000000e+00> : vector<6x16xf32>
    %26 = tpu.matmul %24, %25, %cst_11 {dimension_numbers = #tpu.dot_dimension_numbers<[1], [0], [0], [1], [0, 0, 1, 1], [], []>} : vector<6x32xf32>, vector<32x16xf32>, vector<6x16xf32> -> vector<6x16xf32>
    %c0_12 = arith.constant 0 : index
    %c0_13 = arith.constant 0 : index
    %27 = vector.load %arg4[%c0_12, %c0_13] : memref<1x16xf32, #tpu.memory_space<vmem>>, vector<1x16xf32>
    %28 = vector.broadcast %27 : vector<1x16xf32> to vector<6x16xf32>
    %29 = arith.addf %26, %28 : vector<6x16xf32>
    %cst_14 = arith.constant 0.000000e+00 : f32
    %30 = vector.broadcast %cst_14 : f32 to vector<6x16xf32>
    %31 = arith.maximumf %29, %30 : vector<6x16xf32>
    %c0_15 = arith.constant 0 : index
    %c0_16 = arith.constant 0 : index
    %32 = vector.load %arg5[%c0_15, %c0_16] : memref<6x16xf32, #tpu.memory_space<vmem>>, vector<6x16xf32>
    tpu.vector_store %arg5[%c0_15, %c0_16], %31 {strides = array<i32>} : memref<6x16xf32, #tpu.memory_space<vmem>>, vector<6x16xf32>,
    return
  }
}

module attributes {stable_mosaic.version = 11 : i64} {
  func.func @_vit_block_kernel(%arg0: i32, %arg1: memref<1x11x16xf32, #tpu.memory_space<vmem>>, %arg2: memref<1x16xf32, #tpu.memory_space<vmem>>, %arg3: memref<1x16xf32, #tpu.memory_space<vmem>>, %arg4: memref<4x16x4xf32, #tpu.memory_space<vmem>>, %arg5: memref<4x16x4xf32, #tpu.memory_space<vmem>>, %arg6: memref<4x16x4xf32, #tpu.memory_space<vmem>>, %arg7: memref<4x1x4xf32, #tpu.memory_space<vmem>>, %arg8: memref<4x1x4xf32, #tpu.memory_space<vmem>>, %arg9: memref<4x1x4xf32, #tpu.memory_space<vmem>>, %arg10: memref<4x4x16xf32, #tpu.memory_space<vmem>>, %arg11: memref<1x16xf32, #tpu.memory_space<vmem>>, %arg12: memref<1x16xf32, #tpu.memory_space<vmem>>, %arg13: memref<1x16xf32, #tpu.memory_space<vmem>>, %arg14: memref<16x64xf32, #tpu.memory_space<vmem>>, %arg15: memref<1x64xf32, #tpu.memory_space<vmem>>, %arg16: memref<64x16xf32, #tpu.memory_space<vmem>>, %arg17: memref<1x16xf32, #tpu.memory_space<vmem>>, %arg18: memref<1x11x16xf32, #tpu.memory_space<vmem>>) attributes {dimension_semantics = [#tpu.dimension_semantics<parallel>], iteration_bounds = array<i64: 2>, scalar_prefetch = 0 : i64, scratch_operands = 0 : i64, tpu.core_type = #tpu.core_type<tc>, window_params = [{transform_indices = @transform_0, window_bounds = array<i64: 1, 11, 16>}, {pipeline_mode = #tpu.pipeline_mode<synchronous>, transform_indices = @transform_1, window_bounds = array<i64: 1, 16>}, {pipeline_mode = #tpu.pipeline_mode<synchronous>, transform_indices = @transform_2, window_bounds = array<i64: 1, 16>}, {pipeline_mode = #tpu.pipeline_mode<synchronous>, transform_indices = @transform_3, window_bounds = array<i64: 4, 16, 4>}, {pipeline_mode = #tpu.pipeline_mode<synchronous>, transform_indices = @transform_4, window_bounds = array<i64: 4, 16, 4>}, {pipeline_mode = #tpu.pipeline_mode<synchronous>, transform_indices = @transform_5, window_bounds = array<i64: 4, 16, 4>}, {pipeline_mode = #tpu.pipeline_mode<synchronous>, transform_indices = @transform_6, window_bounds = array<i64: 4, 1, 4>}, {pipeline_mode = #tpu.pipeline_mode<synchronous>, transform_indices = @transform_7, window_bounds = array<i64: 4, 1, 4>}, {pipeline_mode = #tpu.pipeline_mode<synchronous>, transform_indices = @transform_8, window_bounds = array<i64: 4, 1, 4>}, {pipeline_mode = #tpu.pipeline_mode<synchronous>, transform_indices = @transform_9, window_bounds = array<i64: 4, 4, 16>}, {pipeline_mode = #tpu.pipeline_mode<synchronous>, transform_indices = @transform_10, window_bounds = array<i64: 1, 16>}, {pipeline_mode = #tpu.pipeline_mode<synchronous>, transform_indices = @transform_11, window_bounds = array<i64: 1, 16>}, {pipeline_mode = #tpu.pipeline_mode<synchronous>, transform_indices = @transform_12, window_bounds = array<i64: 1, 16>}, {pipeline_mode = #tpu.pipeline_mode<synchronous>, transform_indices = @transform_13, window_bounds = array<i64: 16, 64>}, {pipeline_mode = #tpu.pipeline_mode<synchronous>, transform_indices = @transform_14, window_bounds = array<i64: 1, 64>}, {pipeline_mode = #tpu.pipeline_mode<synchronous>, transform_indices = @transform_15, window_bounds = array<i64: 64, 16>}, {pipeline_mode = #tpu.pipeline_mode<synchronous>, transform_indices = @transform_16, window_bounds = array<i64: 1, 16>}, {transform_indices = @transform_17, window_bounds = array<i64: 1, 11, 16>}]} {
    %c0 = arith.constant 0 : index
    %c0_0 = arith.constant 0 : index
    %c0_1 = arith.constant 0 : index
    %0 = vector.load %arg1[%c0, %c0_0, %c0_1] : memref<1x11x16xf32, #tpu.memory_space<vmem>>, vector<1x11x16xf32>
    %1 = vector.shape_cast %0 : vector<1x11x16xf32> to vector<11x16xf32>
    %c0_2 = arith.constant 0 : index
    %c0_3 = arith.constant 0 : index
    %2 = vector.load %arg2[%c0_2, %c0_3] : memref<1x16xf32, #tpu.memory_space<vmem>>, vector<1x16xf32>
    %c0_4 = arith.constant 0 : index
    %c0_5 = arith.constant 0 : index
    %3 = vector.load %arg3[%c0_4, %c0_5] : memref<1x16xf32, #tpu.memory_space<vmem>>, vector<1x16xf32>
    %cst = arith.constant dense<0.000000e+00> : vector<11xf32>
    %4 = vector.multi_reduction <add>, %1, %cst [1] : vector<11x16xf32> to vector<11xf32>
    %5 = vector.shape_cast %4 : vector<11xf32> to vector<11x1xf32>
    %cst_6 = arith.constant 1.600000e+01 : f32
    %6 = vector.broadcast %cst_6 : f32 to vector<11x1xf32>
    %7 = arith.divf %5, %6 : vector<11x1xf32>
    %8 = vector.broadcast %7 : vector<11x1xf32> to vector<11x16xf32>
    %9 = arith.subf %1, %8 : vector<11x16xf32>
    %10 = arith.mulf %9, %9 : vector<11x16xf32>
    %cst_7 = arith.constant dense<0.000000e+00> : vector<11xf32>
    %11 = vector.multi_reduction <add>, %10, %cst_7 [1] : vector<11x16xf32> to vector<11xf32>
    %12 = vector.shape_cast %11 : vector<11xf32> to vector<11x1xf32>
    %cst_8 = arith.constant 1.600000e+01 : f32
    %13 = vector.broadcast %cst_8 : f32 to vector<11x1xf32>
    %14 = arith.divf %12, %13 : vector<11x1xf32>
    %15 = vector.broadcast %7 : vector<11x1xf32> to vector<11x16xf32>
    %16 = arith.subf %1, %15 : vector<11x16xf32>
    %cst_9 = arith.constant 9.99999974E-6 : f32
    %17 = vector.broadcast %cst_9 : f32 to vector<11x1xf32>
    %18 = arith.addf %14, %17 : vector<11x1xf32>
    %19 = math.rsqrt %18 : vector<11x1xf32>
    %20 = vector.broadcast %19 : vector<11x1xf32> to vector<11x16xf32>
    %21 = arith.mulf %16, %20 : vector<11x16xf32>
    %22 = vector.broadcast %2 : vector<1x16xf32> to vector<11x16xf32>
    %23 = arith.mulf %21, %22 : vector<11x16xf32>
    %24 = vector.broadcast %3 : vector<1x16xf32> to vector<11x16xf32>
    %25 = arith.addf %23, %24 : vector<11x16xf32>
    %cst_10 = arith.constant 0.000000e+00 : f32
    %26 = vector.broadcast %cst_10 : f32 to vector<11x16xf32>
    %c0_11 = arith.constant 0 : index
    %c0_12 = arith.constant 0 : index
    %c0_13 = arith.constant 0 : index
    %27 = vector.load %arg4[%c0_11, %c0_12, %c0_13] : memref<4x16x4xf32, #tpu.memory_space<vmem>>, vector<1x16x4xf32>
    %28 = vector.shape_cast %27 : vector<1x16x4xf32> to vector<16x4xf32>
    %cst_14 = arith.constant dense<0.000000e+00> : vector<11x4xf32>
    %29 = tpu.matmul %25, %28, %cst_14 {dimension_numbers = #tpu.dot_dimension_numbers<[1], [0], [0], [1], [0, 0, 1, 1], [], []>} : vector<11x16xf32>, vector<16x4xf32>, vector<11x4xf32> -> vector<11x4xf32>
    %c0_15 = arith.constant 0 : index
    %c0_16 = arith.constant 0 : index
    %c0_17 = arith.constant 0 : index
    %30 = vector.load %arg7[%c0_15, %c0_16, %c0_17] : memref<4x1x4xf32, #tpu.memory_space<vmem>>, vector<1x1x4xf32>
    %31 = vector.shape_cast %30 : vector<1x1x4xf32> to vector<1x4xf32>
    %32 = vector.broadcast %31 : vector<1x4xf32> to vector<11x4xf32>
    %33 = arith.addf %29, %32 : vector<11x4xf32>
    %c0_18 = arith.constant 0 : index
    %c0_19 = arith.constant 0 : index
    %c0_20 = arith.constant 0 : index
    %34 = vector.load %arg5[%c0_18, %c0_19, %c0_20] : memref<4x16x4xf32, #tpu.memory_space<vmem>>, vector<1x16x4xf32>
    %35 = vector.shape_cast %34 : vector<1x16x4xf32> to vector<16x4xf32>
    %cst_21 = arith.constant dense<0.000000e+00> : vector<11x4xf32>
    %36 = tpu.matmul %25, %35, %cst_21 {dimension_numbers = #tpu.dot_dimension_numbers<[1], [0], [0], [1], [0, 0, 1, 1], [], []>} : vector<11x16xf32>, vector<16x4xf32>, vector<11x4xf32> -> vector<11x4xf32>
    %c0_22 = arith.constant 0 : index
    %c0_23 = arith.constant 0 : index
    %c0_24 = arith.constant 0 : index
    %37 = vector.load %arg8[%c0_22, %c0_23, %c0_24] : memref<4x1x4xf32, #tpu.memory_space<vmem>>, vector<1x1x4xf32>
    %38 = vector.shape_cast %37 : vector<1x1x4xf32> to vector<1x4xf32>
    %39 = vector.broadcast %38 : vector<1x4xf32> to vector<11x4xf32>
    %40 = arith.addf %36, %39 : vector<11x4xf32>
    %c0_25 = arith.constant 0 : index
    %c0_26 = arith.constant 0 : index
    %c0_27 = arith.constant 0 : index
    %41 = vector.load %arg6[%c0_25, %c0_26, %c0_27] : memref<4x16x4xf32, #tpu.memory_space<vmem>>, vector<1x16x4xf32>
    %42 = vector.shape_cast %41 : vector<1x16x4xf32> to vector<16x4xf32>
    %cst_28 = arith.constant dense<0.000000e+00> : vector<11x4xf32>
    %43 = tpu.matmul %25, %42, %cst_28 {dimension_numbers = #tpu.dot_dimension_numbers<[1], [0], [0], [1], [0, 0, 1, 1], [], []>} : vector<11x16xf32>, vector<16x4xf32>, vector<11x4xf32> -> vector<11x4xf32>
    %c0_29 = arith.constant 0 : index
    %c0_30 = arith.constant 0 : index
    %c0_31 = arith.constant 0 : index
    %44 = vector.load %arg9[%c0_29, %c0_30, %c0_31] : memref<4x1x4xf32, #tpu.memory_space<vmem>>, vector<1x1x4xf32>
    %45 = vector.shape_cast %44 : vector<1x1x4xf32> to vector<1x4xf32>
    %46 = vector.broadcast %45 : vector<1x4xf32> to vector<11x4xf32>
    %47 = arith.addf %43, %46 : vector<11x4xf32>
    %cst_32 = arith.constant dense<0.000000e+00> : vector<11x11xf32>
    %48 = tpu.matmul %33, %40, %cst_32 {dimension_numbers = #tpu.dot_dimension_numbers<[1], [1], [0], [0], [0, 0, 1, 0], [], []>} : vector<11x4xf32>, vector<11x4xf32>, vector<11x11xf32> -> vector<11x11xf32>
    %cst_33 = arith.constant 5.000000e-01 : f32
    %49 = vector.broadcast %cst_33 : f32 to vector<11x11xf32>
    %50 = arith.mulf %48, %49 : vector<11x11xf32>
    %cst_34 = arith.constant dense<0xFF800000> : vector<11xf32>
    %51 = vector.multi_reduction <maximumf>, %50, %cst_34 [1] : vector<11x11xf32> to vector<11xf32>
    %52 = vector.shape_cast %51 : vector<11xf32> to vector<11x1xf32>
    %53 = vector.broadcast %52 : vector<11x1xf32> to vector<11x11xf32>
    %54 = arith.subf %50, %53 : vector<11x11xf32>
    %55 = math.exp %54 : vector<11x11xf32>
    %cst_35 = arith.constant dense<0.000000e+00> : vector<11xf32>
    %56 = vector.multi_reduction <add>, %55, %cst_35 [1] : vector<11x11xf32> to vector<11xf32>
    %57 = vector.shape_cast %56 : vector<11xf32> to vector<11x1xf32>
    %58 = tpu.reciprocal %57 {approx = true} : vector<11x1xf32> -> vector<11x1xf32>
    %59 = vector.broadcast %58 : vector<11x1xf32> to vector<11x11xf32>
    %60 = arith.mulf %55, %59 : vector<11x11xf32>
    %cst_36 = arith.constant dense<0.000000e+00> : vector<11x4xf32>
    %61 = tpu.matmul %60, %47, %cst_36 {dimension_numbers = #tpu.dot_dimension_numbers<[1], [0], [0], [1], [0, 0, 1, 1], [], []>} : vector<11x11xf32>, vector<11x4xf32>, vector<11x4xf32> -> vector<11x4xf32>
    %c0_37 = arith.constant 0 : index
    %c0_38 = arith.constant 0 : index
    %c0_39 = arith.constant 0 : index
    %62 = vector.load %arg10[%c0_37, %c0_38, %c0_39] : memref<4x4x16xf32, #tpu.memory_space<vmem>>, vector<1x4x16xf32>
    %63 = vector.shape_cast %62 : vector<1x4x16xf32> to vector<4x16xf32>
    %cst_40 = arith.constant dense<0.000000e+00> : vector<11x16xf32>
    %64 = tpu.matmul %61, %63, %cst_40 {dimension_numbers = #tpu.dot_dimension_numbers<[1], [0], [0], [1], [0, 0, 1, 1], [], []>} : vector<11x4xf32>, vector<4x16xf32>, vector<11x16xf32> -> vector<11x16xf32>
    %65 = arith.addf %26, %64 : vector<11x16xf32>
    %c1 = arith.constant 1 : index
    %c0_41 = arith.constant 0 : index
    %c0_42 = arith.constant 0 : index
    %66 = vector.load %arg4[%c1, %c0_41, %c0_42] : memref<4x16x4xf32, #tpu.memory_space<vmem>>, vector<1x16x4xf32>
    %67 = vector.shape_cast %66 : vector<1x16x4xf32> to vector<16x4xf32>
    %cst_43 = arith.constant dense<0.000000e+00> : vector<11x4xf32>
    %68 = tpu.matmul %25, %67, %cst_43 {dimension_numbers = #tpu.dot_dimension_numbers<[1], [0], [0], [1], [0, 0, 1, 1], [], []>} : vector<11x16xf32>, vector<16x4xf32>, vector<11x4xf32> -> vector<11x4xf32>
    %c1_44 = arith.constant 1 : index
    %c0_45 = arith.constant 0 : index
    %c0_46 = arith.constant 0 : index
    %69 = vector.load %arg7[%c1_44, %c0_45, %c0_46] : memref<4x1x4xf32, #tpu.memory_space<vmem>>, vector<1x1x4xf32>
    %70 = vector.shape_cast %69 : vector<1x1x4xf32> to vector<1x4xf32>
    %71 = vector.broadcast %70 : vector<1x4xf32> to vector<11x4xf32>
    %72 = arith.addf %68, %71 : vector<11x4xf32>
    %c1_47 = arith.constant 1 : index
    %c0_48 = arith.constant 0 : index
    %c0_49 = arith.constant 0 : index
    %73 = vector.load %arg5[%c1_47, %c0_48, %c0_49] : memref<4x16x4xf32, #tpu.memory_space<vmem>>, vector<1x16x4xf32>
    %74 = vector.shape_cast %73 : vector<1x16x4xf32> to vector<16x4xf32>
    %cst_50 = arith.constant dense<0.000000e+00> : vector<11x4xf32>
    %75 = tpu.matmul %25, %74, %cst_50 {dimension_numbers = #tpu.dot_dimension_numbers<[1], [0], [0], [1], [0, 0, 1, 1], [], []>} : vector<11x16xf32>, vector<16x4xf32>, vector<11x4xf32> -> vector<11x4xf32>
    %c1_51 = arith.constant 1 : index
    %c0_52 = arith.constant 0 : index
    %c0_53 = arith.constant 0 : index
    %76 = vector.load %arg8[%c1_51, %c0_52, %c0_53] : memref<4x1x4xf32, #tpu.memory_space<vmem>>, vector<1x1x4xf32>
    %77 = vector.shape_cast %76 : vector<1x1x4xf32> to vector<1x4xf32>
    %78 = vector.broadcast %77 : vector<1x4xf32> to vector<11x4xf32>
    %79 = arith.addf %75, %78 : vector<11x4xf32>
    %c1_54 = arith.constant 1 : index
    %c0_55 = arith.constant 0 : index
    %c0_56 = arith.constant 0 : index
    %80 = vector.load %arg6[%c1_54, %c0_55, %c0_56] : memref<4x16x4xf32, #tpu.memory_space<vmem>>, vector<1x16x4xf32>
    %81 = vector.shape_cast %80 : vector<1x16x4xf32> to vector<16x4xf32>
    %cst_57 = arith.constant dense<0.000000e+00> : vector<11x4xf32>
    %82 = tpu.matmul %25, %81, %cst_57 {dimension_numbers = #tpu.dot_dimension_numbers<[1], [0], [0], [1], [0, 0, 1, 1], [], []>} : vector<11x16xf32>, vector<16x4xf32>, vector<11x4xf32> -> vector<11x4xf32>
    %c1_58 = arith.constant 1 : index
    %c0_59 = arith.constant 0 : index
    %c0_60 = arith.constant 0 : index
    %83 = vector.load %arg9[%c1_58, %c0_59, %c0_60] : memref<4x1x4xf32, #tpu.memory_space<vmem>>, vector<1x1x4xf32>
    %84 = vector.shape_cast %83 : vector<1x1x4xf32> to vector<1x4xf32>
    %85 = vector.broadcast %84 : vector<1x4xf32> to vector<11x4xf32>
    %86 = arith.addf %82, %85 : vector<11x4xf32>
    %cst_61 = arith.constant dense<0.000000e+00> : vector<11x11xf32>
    %87 = tpu.matmul %72, %79, %cst_61 {dimension_numbers = #tpu.dot_dimension_numbers<[1], [1], [0], [0], [0, 0, 1, 0], [], []>} : vector<11x4xf32>, vector<11x4xf32>, vector<11x11xf32> -> vector<11x11xf32>
    %cst_62 = arith.constant 5.000000e-01 : f32
    %88 = vector.broadcast %cst_62 : f32 to vector<11x11xf32>
    %89 = arith.mulf %87, %88 : vector<11x11xf32>
    %cst_63 = arith.constant dense<0xFF800000> : vector<11xf32>
    %90 = vector.multi_reduction <maximumf>, %89, %cst_63 [1] : vector<11x11xf32> to vector<11xf32>
    %91 = vector.shape_cast %90 : vector<11xf32> to vector<11x1xf32>
    %92 = vector.broadcast %91 : vector<11x1xf32> to vector<11x11xf32>
    %93 = arith.subf %89, %92 : vector<11x11xf32>
    %94 = math.exp %93 : vector<11x11xf32>
    %cst_64 = arith.constant dense<0.000000e+00> : vector<11xf32>
    %95 = vector.multi_reduction <add>, %94, %cst_64 [1] : vector<11x11xf32> to vector<11xf32>
    %96 = vector.shape_cast %95 : vector<11xf32> to vector<11x1xf32>
    %97 = tpu.reciprocal %96 {approx = true} : vector<11x1xf32> -> vector<11x1xf32>
    %98 = vector.broadcast %97 : vector<11x1xf32> to vector<11x11xf32>
    %99 = arith.mulf %94, %98 : vector<11x11xf32>
    %cst_65 = arith.constant dense<0.000000e+00> : vector<11x4xf32>
    %100 = tpu.matmul %99, %86, %cst_65 {dimension_numbers = #tpu.dot_dimension_numbers<[1], [0], [0], [1], [0, 0, 1, 1], [], []>} : vector<11x11xf32>, vector<11x4xf32>, vector<11x4xf32> -> vector<11x4xf32>
    %c1_66 = arith.constant 1 : index
    %c0_67 = arith.constant 0 : index
    %c0_68 = arith.constant 0 : index
    %101 = vector.load %arg10[%c1_66, %c0_67, %c0_68] : memref<4x4x16xf32, #tpu.memory_space<vmem>>, vector<1x4x16xf32>
    %102 = vector.shape_cast %101 : vector<1x4x16xf32> to vector<4x16xf32>
    %cst_69 = arith.constant dense<0.000000e+00> : vector<11x16xf32>
    %103 = tpu.matmul %100, %102, %cst_69 {dimension_numbers = #tpu.dot_dimension_numbers<[1], [0], [0], [1], [0, 0, 1, 1], [], []>} : vector<11x4xf32>, vector<4x16xf32>, vector<11x16xf32> -> vector<11x16xf32>
    %104 = arith.addf %65, %103 : vector<11x16xf32>
    %c2 = arith.constant 2 : index
    %c0_70 = arith.constant 0 : index
    %c0_71 = arith.constant 0 : index
    %105 = vector.load %arg4[%c2, %c0_70, %c0_71] : memref<4x16x4xf32, #tpu.memory_space<vmem>>, vector<1x16x4xf32>
    %106 = vector.shape_cast %105 : vector<1x16x4xf32> to vector<16x4xf32>
    %cst_72 = arith.constant dense<0.000000e+00> : vector<11x4xf32>
    %107 = tpu.matmul %25, %106, %cst_72 {dimension_numbers = #tpu.dot_dimension_numbers<[1], [0], [0], [1], [0, 0, 1, 1], [], []>} : vector<11x16xf32>, vector<16x4xf32>, vector<11x4xf32> -> vector<11x4xf32>
    %c2_73 = arith.constant 2 : index
    %c0_74 = arith.constant 0 : index
    %c0_75 = arith.constant 0 : index
    %108 = vector.load %arg7[%c2_73, %c0_74, %c0_75] : memref<4x1x4xf32, #tpu.memory_space<vmem>>, vector<1x1x4xf32>
    %109 = vector.shape_cast %108 : vector<1x1x4xf32> to vector<1x4xf32>
    %110 = vector.broadcast %109 : vector<1x4xf32> to vector<11x4xf32>
    %111 = arith.addf %107, %110 : vector<11x4xf32>
    %c2_76 = arith.constant 2 : index
    %c0_77 = arith.constant 0 : index
    %c0_78 = arith.constant 0 : index
    %112 = vector.load %arg5[%c2_76, %c0_77, %c0_78] : memref<4x16x4xf32, #tpu.memory_space<vmem>>, vector<1x16x4xf32>
    %113 = vector.shape_cast %112 : vector<1x16x4xf32> to vector<16x4xf32>
    %cst_79 = arith.constant dense<0.000000e+00> : vector<11x4xf32>
    %114 = tpu.matmul %25, %113, %cst_79 {dimension_numbers = #tpu.dot_dimension_numbers<[1], [0], [0], [1], [0, 0, 1, 1], [], []>} : vector<11x16xf32>, vector<16x4xf32>, vector<11x4xf32> -> vector<11x4xf32>
    %c2_80 = arith.constant 2 : index
    %c0_81 = arith.constant 0 : index
    %c0_82 = arith.constant 0 : index
    %115 = vector.load %arg8[%c2_80, %c0_81, %c0_82] : memref<4x1x4xf32, #tpu.memory_space<vmem>>, vector<1x1x4xf32>
    %116 = vector.shape_cast %115 : vector<1x1x4xf32> to vector<1x4xf32>
    %117 = vector.broadcast %116 : vector<1x4xf32> to vector<11x4xf32>
    %118 = arith.addf %114, %117 : vector<11x4xf32>
    %c2_83 = arith.constant 2 : index
    %c0_84 = arith.constant 0 : index
    %c0_85 = arith.constant 0 : index
    %119 = vector.load %arg6[%c2_83, %c0_84, %c0_85] : memref<4x16x4xf32, #tpu.memory_space<vmem>>, vector<1x16x4xf32>
    %120 = vector.shape_cast %119 : vector<1x16x4xf32> to vector<16x4xf32>
    %cst_86 = arith.constant dense<0.000000e+00> : vector<11x4xf32>
    %121 = tpu.matmul %25, %120, %cst_86 {dimension_numbers = #tpu.dot_dimension_numbers<[1], [0], [0], [1], [0, 0, 1, 1], [], []>} : vector<11x16xf32>, vector<16x4xf32>, vector<11x4xf32> -> vector<11x4xf32>
    %c2_87 = arith.constant 2 : index
    %c0_88 = arith.constant 0 : index
    %c0_89 = arith.constant 0 : index
    %122 = vector.load %arg9[%c2_87, %c0_88, %c0_89] : memref<4x1x4xf32, #tpu.memory_space<vmem>>, vector<1x1x4xf32>
    %123 = vector.shape_cast %122 : vector<1x1x4xf32> to vector<1x4xf32>
    %124 = vector.broadcast %123 : vector<1x4xf32> to vector<11x4xf32>
    %125 = arith.addf %121, %124 : vector<11x4xf32>
    %cst_90 = arith.constant dense<0.000000e+00> : vector<11x11xf32>
    %126 = tpu.matmul %111, %118, %cst_90 {dimension_numbers = #tpu.dot_dimension_numbers<[1], [1], [0], [0], [0, 0, 1, 0], [], []>} : vector<11x4xf32>, vector<11x4xf32>, vector<11x11xf32> -> vector<11x11xf32>
    %cst_91 = arith.constant 5.000000e-01 : f32
    %127 = vector.broadcast %cst_91 : f32 to vector<11x11xf32>
    %128 = arith.mulf %126, %127 : vector<11x11xf32>
    %cst_92 = arith.constant dense<0xFF800000> : vector<11xf32>
    %129 = vector.multi_reduction <maximumf>, %128, %cst_92 [1] : vector<11x11xf32> to vector<11xf32>
    %130 = vector.shape_cast %129 : vector<11xf32> to vector<11x1xf32>
    %131 = vector.broadcast %130 : vector<11x1xf32> to vector<11x11xf32>
    %132 = arith.subf %128, %131 : vector<11x11xf32>
    %133 = math.exp %132 : vector<11x11xf32>
    %cst_93 = arith.constant dense<0.000000e+00> : vector<11xf32>
    %134 = vector.multi_reduction <add>, %133, %cst_93 [1] : vector<11x11xf32> to vector<11xf32>
    %135 = vector.shape_cast %134 : vector<11xf32> to vector<11x1xf32>
    %136 = tpu.reciprocal %135 {approx = true} : vector<11x1xf32> -> vector<11x1xf32>
    %137 = vector.broadcast %136 : vector<11x1xf32> to vector<11x11xf32>
    %138 = arith.mulf %133, %137 : vector<11x11xf32>
    %cst_94 = arith.constant dense<0.000000e+00> : vector<11x4xf32>
    %139 = tpu.matmul %138, %125, %cst_94 {dimension_numbers = #tpu.dot_dimension_numbers<[1], [0], [0], [1], [0, 0, 1, 1], [], []>} : vector<11x11xf32>, vector<11x4xf32>, vector<11x4xf32> -> vector<11x4xf32>
    %c2_95 = arith.constant 2 : index
    %c0_96 = arith.constant 0 : index
    %c0_97 = arith.constant 0 : index
    %140 = vector.load %arg10[%c2_95, %c0_96, %c0_97] : memref<4x4x16xf32, #tpu.memory_space<vmem>>, vector<1x4x16xf32>
    %141 = vector.shape_cast %140 : vector<1x4x16xf32> to vector<4x16xf32>
    %cst_98 = arith.constant dense<0.000000e+00> : vector<11x16xf32>
    %142 = tpu.matmul %139, %141, %cst_98 {dimension_numbers = #tpu.dot_dimension_numbers<[1], [0], [0], [1], [0, 0, 1, 1], [], []>} : vector<11x4xf32>, vector<4x16xf32>, vector<11x16xf32> -> vector<11x16xf32>
    %143 = arith.addf %104, %142 : vector<11x16xf32>
    %c3 = arith.constant 3 : index
    %c0_99 = arith.constant 0 : index
    %c0_100 = arith.constant 0 : index
    %144 = vector.load %arg4[%c3, %c0_99, %c0_100] : memref<4x16x4xf32, #tpu.memory_space<vmem>>, vector<1x16x4xf32>
    %145 = vector.shape_cast %144 : vector<1x16x4xf32> to vector<16x4xf32>
    %cst_101 = arith.constant dense<0.000000e+00> : vector<11x4xf32>
    %146 = tpu.matmul %25, %145, %cst_101 {dimension_numbers = #tpu.dot_dimension_numbers<[1], [0], [0], [1], [0, 0, 1, 1], [], []>} : vector<11x16xf32>, vector<16x4xf32>, vector<11x4xf32> -> vector<11x4xf32>
    %c3_102 = arith.constant 3 : index
    %c0_103 = arith.constant 0 : index
    %c0_104 = arith.constant 0 : index
    %147 = vector.load %arg7[%c3_102, %c0_103, %c0_104] : memref<4x1x4xf32, #tpu.memory_space<vmem>>, vector<1x1x4xf32>
    %148 = vector.shape_cast %147 : vector<1x1x4xf32> to vector<1x4xf32>
    %149 = vector.broadcast %148 : vector<1x4xf32> to vector<11x4xf32>
    %150 = arith.addf %146, %149 : vector<11x4xf32>
    %c3_105 = arith.constant 3 : index
    %c0_106 = arith.constant 0 : index
    %c0_107 = arith.constant 0 : index
    %151 = vector.load %arg5[%c3_105, %c0_106, %c0_107] : memref<4x16x4xf32, #tpu.memory_space<vmem>>, vector<1x16x4xf32>
    %152 = vector.shape_cast %151 : vector<1x16x4xf32> to vector<16x4xf32>
    %cst_108 = arith.constant dense<0.000000e+00> : vector<11x4xf32>
    %153 = tpu.matmul %25, %152, %cst_108 {dimension_numbers = #tpu.dot_dimension_numbers<[1], [0], [0], [1], [0, 0, 1, 1], [], []>} : vector<11x16xf32>, vector<16x4xf32>, vector<11x4xf32> -> vector<11x4xf32>
    %c3_109 = arith.constant 3 : index
    %c0_110 = arith.constant 0 : index
    %c0_111 = arith.constant 0 : index
    %154 = vector.load %arg8[%c3_109, %c0_110, %c0_111] : memref<4x1x4xf32, #tpu.memory_space<vmem>>, vector<1x1x4xf32>
    %155 = vector.shape_cast %154 : vector<1x1x4xf32> to vector<1x4xf32>
    %156 = vector.broadcast %155 : vector<1x4xf32> to vector<11x4xf32>
    %157 = arith.addf %153, %156 : vector<11x4xf32>
    %c3_112 = arith.constant 3 : index
    %c0_113 = arith.constant 0 : index
    %c0_114 = arith.constant 0 : index
    %158 = vector.load %arg6[%c3_112, %c0_113, %c0_114] : memref<4x16x4xf32, #tpu.memory_space<vmem>>, vector<1x16x4xf32>
    %159 = vector.shape_cast %158 : vector<1x16x4xf32> to vector<16x4xf32>
    %cst_115 = arith.constant dense<0.000000e+00> : vector<11x4xf32>
    %160 = tpu.matmul %25, %159, %cst_115 {dimension_numbers = #tpu.dot_dimension_numbers<[1], [0], [0], [1], [0, 0, 1, 1], [], []>} : vector<11x16xf32>, vector<16x4xf32>, vector<11x4xf32> -> vector<11x4xf32>
    %c3_116 = arith.constant 3 : index
    %c0_117 = arith.constant 0 : index
    %c0_118 = arith.constant 0 : index
    %161 = vector.load %arg9[%c3_116, %c0_117, %c0_118] : memref<4x1x4xf32, #tpu.memory_space<vmem>>, vector<1x1x4xf32>
    %162 = vector.shape_cast %161 : vector<1x1x4xf32> to vector<1x4xf32>
    %163 = vector.broadcast %162 : vector<1x4xf32> to vector<11x4xf32>
    %164 = arith.addf %160, %163 : vector<11x4xf32>
    %cst_119 = arith.constant dense<0.000000e+00> : vector<11x11xf32>
    %165 = tpu.matmul %150, %157, %cst_119 {dimension_numbers = #tpu.dot_dimension_numbers<[1], [1], [0], [0], [0, 0, 1, 0], [], []>} : vector<11x4xf32>, vector<11x4xf32>, vector<11x11xf32> -> vector<11x11xf32>
    %cst_120 = arith.constant 5.000000e-01 : f32
    %166 = vector.broadcast %cst_120 : f32 to vector<11x11xf32>
    %167 = arith.mulf %165, %166 : vector<11x11xf32>
    %cst_121 = arith.constant dense<0xFF800000> : vector<11xf32>
    %168 = vector.multi_reduction <maximumf>, %167, %cst_121 [1] : vector<11x11xf32> to vector<11xf32>
    %169 = vector.shape_cast %168 : vector<11xf32> to vector<11x1xf32>
    %170 = vector.broadcast %169 : vector<11x1xf32> to vector<11x11xf32>
    %171 = arith.subf %167, %170 : vector<11x11xf32>
    %172 = math.exp %171 : vector<11x11xf32>
    %cst_122 = arith.constant dense<0.000000e+00> : vector<11xf32>
    %173 = vector.multi_reduction <add>, %172, %cst_122 [1] : vector<11x11xf32> to vector<11xf32>
    %174 = vector.shape_cast %173 : vector<11xf32> to vector<11x1xf32>
    %175 = tpu.reciprocal %174 {approx = true} : vector<11x1xf32> -> vector<11x1xf32>
    %176 = vector.broadcast %175 : vector<11x1xf32> to vector<11x11xf32>
    %177 = arith.mulf %172, %176 : vector<11x11xf32>
    %cst_123 = arith.constant dense<0.000000e+00> : vector<11x4xf32>
    %178 = tpu.matmul %177, %164, %cst_123 {dimension_numbers = #tpu.dot_dimension_numbers<[1], [0], [0], [1], [0, 0, 1, 1], [], []>} : vector<11x11xf32>, vector<11x4xf32>, vector<11x4xf32> -> vector<11x4xf32>
    %c3_124 = arith.constant 3 : index
    %c0_125 = arith.constant 0 : index
    %c0_126 = arith.constant 0 : index
    %179 = vector.load %arg10[%c3_124, %c0_125, %c0_126] : memref<4x4x16xf32, #tpu.memory_space<vmem>>, vector<1x4x16xf32>
    %180 = vector.shape_cast %179 : vector<1x4x16xf32> to vector<4x16xf32>
    %cst_127 = arith.constant dense<0.000000e+00> : vector<11x16xf32>
    %181 = tpu.matmul %178, %180, %cst_127 {dimension_numbers = #tpu.dot_dimension_numbers<[1], [0], [0], [1], [0, 0, 1, 1], [], []>} : vector<11x4xf32>, vector<4x16xf32>, vector<11x16xf32> -> vector<11x16xf32>
    %182 = arith.addf %143, %181 : vector<11x16xf32>
    %183 = arith.addf %1, %182 : vector<11x16xf32>
    %c0_128 = arith.constant 0 : index
    %c0_129 = arith.constant 0 : index
    %184 = vector.load %arg11[%c0_128, %c0_129] : memref<1x16xf32, #tpu.memory_space<vmem>>, vector<1x16xf32>
    %185 = vector.broadcast %184 : vector<1x16xf32> to vector<11x16xf32>
    %186 = arith.addf %183, %185 : vector<11x16xf32>
    %c0_130 = arith.constant 0 : index
    %c0_131 = arith.constant 0 : index
    %187 = vector.load %arg12[%c0_130, %c0_131] : memref<1x16xf32, #tpu.memory_space<vmem>>, vector<1x16xf32>
    %c0_132 = arith.constant 0 : index
    %c0_133 = arith.constant 0 : index
    %188 = vector.load %arg13[%c0_132, %c0_133] : memref<1x16xf32, #tpu.memory_space<vmem>>, vector<1x16xf32>
    %cst_134 = arith.constant dense<0.000000e+00> : vector<11xf32>
    %189 = vector.multi_reduction <add>, %186, %cst_134 [1] : vector<11x16xf32> to vector<11xf32>
    %190 = vector.shape_cast %189 : vector<11xf32> to vector<11x1xf32>
    %cst_135 = arith.constant 1.600000e+01 : f32
    %191 = vector.broadcast %cst_135 : f32 to vector<11x1xf32>
    %192 = arith.divf %190, %191 : vector<11x1xf32>
    %193 = vector.broadcast %192 : vector<11x1xf32> to vector<11x16xf32>
    %194 = arith.subf %186, %193 : vector<11x16xf32>
    %195 = arith.mulf %194, %194 : vector<11x16xf32>
    %cst_136 = arith.constant dense<0.000000e+00> : vector<11xf32>
    %196 = vector.multi_reduction <add>, %195, %cst_136 [1] : vector<11x16xf32> to vector<11xf32>
    %197 = vector.shape_cast %196 : vector<11xf32> to vector<11x1xf32>
    %cst_137 = arith.constant 1.600000e+01 : f32
    %198 = vector.broadcast %cst_137 : f32 to vector<11x1xf32>
    %199 = arith.divf %197, %198 : vector<11x1xf32>
    %200 = vector.broadcast %192 : vector<11x1xf32> to vector<11x16xf32>
    %201 = arith.subf %186, %200 : vector<11x16xf32>
    %cst_138 = arith.constant 9.99999974E-6 : f32
    %202 = vector.broadcast %cst_138 : f32 to vector<11x1xf32>
    %203 = arith.addf %199, %202 : vector<11x1xf32>
    %204 = math.rsqrt %203 : vector<11x1xf32>
    %205 = vector.broadcast %204 : vector<11x1xf32> to vector<11x16xf32>
    %206 = arith.mulf %201, %205 : vector<11x16xf32>
    %207 = vector.broadcast %187 : vector<1x16xf32> to vector<11x16xf32>
    %208 = arith.mulf %206, %207 : vector<11x16xf32>
    %209 = vector.broadcast %188 : vector<1x16xf32> to vector<11x16xf32>
    %210 = arith.addf %208, %209 : vector<11x16xf32>
    %c0_139 = arith.constant 0 : index
    %c0_140 = arith.constant 0 : index
    %211 = vector.load %arg14[%c0_139, %c0_140] : memref<16x64xf32, #tpu.memory_space<vmem>>, vector<16x64xf32>
    %cst_141 = arith.constant dense<0.000000e+00> : vector<11x64xf32>
    %212 = tpu.matmul %210, %211, %cst_141 {dimension_numbers = #tpu.dot_dimension_numbers<[1], [0], [0], [1], [0, 0, 1, 1], [], []>} : vector<11x16xf32>, vector<16x64xf32>, vector<11x64xf32> -> vector<11x64xf32>
    %c0_142 = arith.constant 0 : index
    %c0_143 = arith.constant 0 : index
    %213 = vector.load %arg15[%c0_142, %c0_143] : memref<1x64xf32, #tpu.memory_space<vmem>>, vector<1x64xf32>
    %214 = vector.broadcast %213 : vector<1x64xf32> to vector<11x64xf32>
    %215 = arith.addf %212, %214 : vector<11x64xf32>
    %216 = arith.mulf %215, %215 : vector<11x64xf32>
    %217 = arith.mulf %215, %216 : vector<11x64xf32>
    %cst_144 = arith.constant 4.471500e-02 : f32
    %218 = vector.broadcast %cst_144 : f32 to vector<11x64xf32>
    %219 = arith.mulf %218, %217 : vector<11x64xf32>
    %220 = arith.addf %215, %219 : vector<11x64xf32>
    %cst_145 = arith.constant 0.797884583 : f32
    %221 = vector.broadcast %cst_145 : f32 to vector<11x64xf32>
    %222 = arith.mulf %221, %220 : vector<11x64xf32>
    %223 = math.tanh %222 : vector<11x64xf32>
    %cst_146 = arith.constant 1.000000e+00 : f32
    %224 = vector.broadcast %cst_146 : f32 to vector<11x64xf32>
    %225 = arith.addf %224, %223 : vector<11x64xf32>
    %cst_147 = arith.constant 5.000000e-01 : f32
    %226 = vector.broadcast %cst_147 : f32 to vector<11x64xf32>
    %227 = arith.mulf %226, %225 : vector<11x64xf32>
    %228 = arith.mulf %215, %227 : vector<11x64xf32>
    %c0_148 = arith.constant 0 : index
    %c0_149 = arith.constant 0 : index
    %229 = vector.load %arg16[%c0_148, %c0_149] : memref<64x16xf32, #tpu.memory_space<vmem>>, vector<64x16xf32>
    %cst_150 = arith.constant dense<0.000000e+00> : vector<11x16xf32>
    %230 = tpu.matmul %228, %229, %cst_150 {dimension_numbers = #tpu.dot_dimension_numbers<[1], [0], [0], [1], [0, 0, 1, 1], [], []>} : vector<11x64xf32>, vector<64x16xf32>, vector<11x16xf32> -> vector<11x16xf32>
    %c0_151 = arith.constant 0 : index
    %c0_152 = arith.constant 0 : index
    %231 = vector.load %arg17[%c0_151, %c0_152] : memref<1x16xf32, #tpu.memory_space<vmem>>, vector<1x16xf32>
    %232 = vector.broadcast %231 : vector<1x16xf32> to vector<11x16xf32>
    %233 = arith.addf %230, %232 : vector<11x16xf32>
    %234 = arith.addf %186, %233 : vector<11x16xf32>
    %c0_153 = arith.constant 0 : index
    %c0_154 = arith.constant 0 : index
    %c0_155 = arith.constant 0 : index
    %235 = vector.load %arg18[%c0_153, %c0_154, %c0_155] : memref<1x11x16xf32, #tpu.memory_space<vmem>>, vector<1x11x16xf32>
    %236 = vector.shape_cast %235 : vector<1x11x16xf32> to vector<11x16xf32>
    %237 = vector.shape_cast %234 : vector<11x16xf32> to vector<1x11x16xf32>
    tpu.vector_store %arg18[%c0_153, %c0_154, %c0_155], %237 {strides = array<i32>} : memref<1x11x16xf32, #tpu.memory_space<vmem>>, vector<1x11x16xf32>,
    return
  }
  func.func @transform_0(%arg0: i32) -> (i32, i32, i32) {
    %c0_i32 = arith.constant 0 : i32
    %c0_i32_0 = arith.constant 0 : i32
    %c0_i32_1 = arith.constant 0 : i32
    return %arg0, %c0_i32, %c0_i32_0 : i32, i32, i32
  }
  func.func @transform_1(%arg0: i32) -> (i32, i32) {
    %c0_i32 = arith.constant 0 : i32
    %c0_i32_0 = arith.constant 0 : i32
    %c0_i32_1 = arith.constant 0 : i32
    return %c0_i32, %c0_i32_0 : i32, i32
  }
  func.func @transform_2(%arg0: i32) -> (i32, i32) {
    %c0_i32 = arith.constant 0 : i32
    %c0_i32_0 = arith.constant 0 : i32
    %c0_i32_1 = arith.constant 0 : i32
    return %c0_i32, %c0_i32_0 : i32, i32
  }
  func.func @transform_3(%arg0: i32) -> (i32, i32, i32) {
    %c0_i32 = arith.constant 0 : i32
    %c0_i32_0 = arith.constant 0 : i32
    %c0_i32_1 = arith.constant 0 : i32
    %c0_i32_2 = arith.constant 0 : i32
    return %c0_i32, %c0_i32_0, %c0_i32_1 : i32, i32, i32
  }
  func.func @transform_4(%arg0: i32) -> (i32, i32, i32) {
    %c0_i32 = arith.constant 0 : i32
    %c0_i32_0 = arith.constant 0 : i32
    %c0_i32_1 = arith.constant 0 : i32
    %c0_i32_2 = arith.constant 0 : i32
    return %c0_i32, %c0_i32_0, %c0_i32_1 : i32, i32, i32
  }
  func.func @transform_5(%arg0: i32) -> (i32, i32, i32) {
    %c0_i32 = arith.constant 0 : i32
    %c0_i32_0 = arith.constant 0 : i32
    %c0_i32_1 = arith.constant 0 : i32
    %c0_i32_2 = arith.constant 0 : i32
    return %c0_i32, %c0_i32_0, %c0_i32_1 : i32, i32, i32
  }
  func.func @transform_6(%arg0: i32) -> (i32, i32, i32) {
    %c0_i32 = arith.constant 0 : i32
    %c0_i32_0 = arith.constant 0 : i32
    %c0_i32_1 = arith.constant 0 : i32
    %c0_i32_2 = arith.constant 0 : i32
    return %c0_i32, %c0_i32_0, %c0_i32_1 : i32, i32, i32
  }
  func.func @transform_7(%arg0: i32) -> (i32, i32, i32) {
    %c0_i32 = arith.constant 0 : i32
    %c0_i32_0 = arith.constant 0 : i32
    %c0_i32_1 = arith.constant 0 : i32
    %c0_i32_2 = arith.constant 0 : i32
    return %c0_i32, %c0_i32_0, %c0_i32_1 : i32, i32, i32
  }
  func.func @transform_8(%arg0: i32) -> (i32, i32, i32) {
    %c0_i32 = arith.constant 0 : i32
    %c0_i32_0 = arith.constant 0 : i32
    %c0_i32_1 = arith.constant 0 : i32
    %c0_i32_2 = arith.constant 0 : i32
    return %c0_i32, %c0_i32_0, %c0_i32_1 : i32, i32, i32
  }
  func.func @transform_9(%arg0: i32) -> (i32, i32, i32) {
    %c0_i32 = arith.constant 0 : i32
    %c0_i32_0 = arith.constant 0 : i32
    %c0_i32_1 = arith.constant 0 : i32
    %c0_i32_2 = arith.constant 0 : i32
    return %c0_i32, %c0_i32_0, %c0_i32_1 : i32, i32, i32
  }
  func.func @transform_10(%arg0: i32) -> (i32, i32) {
    %c0_i32 = arith.constant 0 : i32
    %c0_i32_0 = arith.constant 0 : i32
    %c0_i32_1 = arith.constant 0 : i32
    return %c0_i32, %c0_i32_0 : i32, i32
  }
  func.func @transform_11(%arg0: i32) -> (i32, i32) {
    %c0_i32 = arith.constant 0 : i32
    %c0_i32_0 = arith.constant 0 : i32
    %c0_i32_1 = arith.constant 0 : i32
    return %c0_i32, %c0_i32_0 : i32, i32
  }
  func.func @transform_12(%arg0: i32) -> (i32, i32) {
    %c0_i32 = arith.constant 0 : i32
    %c0_i32_0 = arith.constant 0 : i32
    %c0_i32_1 = arith.constant 0 : i32
    return %c0_i32, %c0_i32_0 : i32, i32
  }
  func.func @transform_13(%arg0: i32) -> (i32, i32) {
    %c0_i32 = arith.constant 0 : i32
    %c0_i32_0 = arith.constant 0 : i32
    %c0_i32_1 = arith.constant 0 : i32
    return %c0_i32, %c0_i32_0 : i32, i32
  }
  func.func @transform_14(%arg0: i32) -> (i32, i32) {
    %c0_i32 = arith.constant 0 : i32
    %c0_i32_0 = arith.constant 0 : i32
    %c0_i32_1 = arith.constant 0 : i32
    return %c0_i32, %c0_i32_0 : i32, i32
  }
  func.func @transform_15(%arg0: i32) -> (i32, i32) {
    %c0_i32 = arith.constant 0 : i32
    %c0_i32_0 = arith.constant 0 : i32
    %c0_i32_1 = arith.constant 0 : i32
    return %c0_i32, %c0_i32_0 : i32, i32
  }
  func.func @transform_16(%arg0: i32) -> (i32, i32) {
    %c0_i32 = arith.constant 0 : i32
    %c0_i32_0 = arith.constant 0 : i32
    %c0_i32_1 = arith.constant 0 : i32
    return %c0_i32, %c0_i32_0 : i32, i32
  }
  func.func @transform_17(%arg0: i32) -> (i32, i32, i32) {
    %c0_i32 = arith.constant 0 : i32
    %c0_i32_0 = arith.constant 0 : i32
    %c0_i32_1 = arith.constant 0 : i32
    return %arg0, %c0_i32, %c0_i32_0 : i32, i32, i32
  }
}

module attributes {stable_mosaic.version = 11 : i64} {
  func.func @_auto_embed_kernel(%arg0: memref<5x8x2xf32, #tpu.memory_space<vmem>>, %arg1: memref<5x1x16xf32, #tpu.memory_space<vmem>>, %arg2: memref<1x1x16xf32, #tpu.memory_space<vmem>>, %arg3: memref<1x1x16xf32, #tpu.memory_space<vmem>>, %arg4: memref<1x1x16xf32, #tpu.memory_space<vmem>>, %arg5: memref<5x8x16xf32, #tpu.memory_space<vmem>>) attributes {dimension_semantics = [], scalar_prefetch = 0 : i64, scratch_operands = 0 : i64, tpu.core_type = #tpu.core_type<tc>} {
    %c0 = arith.constant 0 : index
    %c0_0 = arith.constant 0 : index
    %c0_1 = arith.constant 0 : index
    %0 = vector.load %arg0[%c0, %c0_0, %c0_1] : memref<5x8x2xf32, #tpu.memory_space<vmem>>, vector<5x8x2xf32>
    %1 = vector.extract_strided_slice %0 {offsets = [0, 0, 0], sizes = [5, 8, 1], strides = [1, 1, 1]} : vector<5x8x2xf32> to vector<5x8x1xf32>
    %c0_2 = arith.constant 0 : index
    %c0_3 = arith.constant 0 : index
    %c0_4 = arith.constant 0 : index
    %2 = vector.load %arg2[%c0_2, %c0_3, %c0_4] : memref<1x1x16xf32, #tpu.memory_space<vmem>>, vector<1x1x16xf32>
    %3 = vector.broadcast %1 : vector<5x8x1xf32> to vector<5x8x16xf32>
    %4 = vector.broadcast %2 : vector<1x1x16xf32> to vector<5x8x16xf32>
    %5 = arith.mulf %3, %4 : vector<5x8x16xf32>
    %6 = vector.extract_strided_slice %0 {offsets = [0, 0, 1], sizes = [5, 8, 1], strides = [1, 1, 1]} : vector<5x8x2xf32> to vector<5x8x1xf32>
    %c0_5 = arith.constant 0 : index
    %c0_6 = arith.constant 0 : index
    %c0_7 = arith.constant 0 : index
    %7 = vector.load %arg3[%c0_5, %c0_6, %c0_7] : memref<1x1x16xf32, #tpu.memory_space<vmem>>, vector<1x1x16xf32>
    %8 = vector.broadcast %6 : vector<5x8x1xf32> to vector<5x8x16xf32>
    %9 = vector.broadcast %7 : vector<1x1x16xf32> to vector<5x8x16xf32>
    %10 = arith.mulf %8, %9 : vector<5x8x16xf32>
    %11 = arith.addf %5, %10 : vector<5x8x16xf32>
    %c0_8 = arith.constant 0 : index
    %c0_9 = arith.constant 0 : index
    %c0_10 = arith.constant 0 : index
    %12 = vector.load %arg4[%c0_8, %c0_9, %c0_10] : memref<1x1x16xf32, #tpu.memory_space<vmem>>, vector<1x1x16xf32>
    %13 = vector.broadcast %12 : vector<1x1x16xf32> to vector<5x8x16xf32>
    %14 = arith.addf %11, %13 : vector<5x8x16xf32>
    %cst = arith.constant 0.000000e+00 : f32
    %15 = vector.broadcast %cst : f32 to vector<5x8x16xf32>
    %16 = arith.maximumf %14, %15 : vector<5x8x16xf32>
    %c0_11 = arith.constant 0 : index
    %c0_12 = arith.constant 0 : index
    %c0_13 = arith.constant 0 : index
    %17 = vector.load %arg1[%c0_11, %c0_12, %c0_13] : memref<5x1x16xf32, #tpu.memory_space<vmem>>, vector<5x1x16xf32>
    %18 = vector.broadcast %17 : vector<5x1x16xf32> to vector<5x8x16xf32>
    %19 = arith.addf %16, %18 : vector<5x8x16xf32>
    %c0_14 = arith.constant 0 : index
    %c0_15 = arith.constant 0 : index
    %c0_16 = arith.constant 0 : index
    %20 = vector.load %arg5[%c0_14, %c0_15, %c0_16] : memref<5x8x16xf32, #tpu.memory_space<vmem>>, vector<5x8x16xf32>
    tpu.vector_store %arg5[%c0_14, %c0_15, %c0_16], %19 {strides = array<i32>} : memref<5x8x16xf32, #tpu.memory_space<vmem>>, vector<5x8x16xf32>,
    return
  }
}

module attributes {stable_mosaic.version = 11 : i64} {
  func.func @_ln_linear_kernel(%arg0: memref<40x16xf32, #tpu.memory_space<vmem>>, %arg1: memref<1x16xf32, #tpu.memory_space<vmem>>, %arg2: memref<1x16xf32, #tpu.memory_space<vmem>>, %arg3: memref<16x128xf32, #tpu.memory_space<vmem>>, %arg4: memref<1x128xf32, #tpu.memory_space<vmem>>, %arg5: memref<40x128xf32, #tpu.memory_space<vmem>>) attributes {dimension_semantics = [], scalar_prefetch = 0 : i64, scratch_operands = 0 : i64, tpu.core_type = #tpu.core_type<tc>} {
    %c0 = arith.constant 0 : index
    %c0_0 = arith.constant 0 : index
    %0 = vector.load %arg0[%c0, %c0_0] : memref<40x16xf32, #tpu.memory_space<vmem>>, vector<40x16xf32>
    %c0_1 = arith.constant 0 : index
    %c0_2 = arith.constant 0 : index
    %1 = vector.load %arg1[%c0_1, %c0_2] : memref<1x16xf32, #tpu.memory_space<vmem>>, vector<1x16xf32>
    %c0_3 = arith.constant 0 : index
    %c0_4 = arith.constant 0 : index
    %2 = vector.load %arg2[%c0_3, %c0_4] : memref<1x16xf32, #tpu.memory_space<vmem>>, vector<1x16xf32>
    %cst = arith.constant dense<0.000000e+00> : vector<40xf32>
    %3 = vector.multi_reduction <add>, %0, %cst [1] : vector<40x16xf32> to vector<40xf32>
    %4 = vector.shape_cast %3 : vector<40xf32> to vector<40x1xf32>
    %cst_5 = arith.constant 1.600000e+01 : f32
    %5 = vector.broadcast %cst_5 : f32 to vector<40x1xf32>
    %6 = arith.divf %4, %5 : vector<40x1xf32>
    %7 = vector.broadcast %6 : vector<40x1xf32> to vector<40x16xf32>
    %8 = arith.subf %0, %7 : vector<40x16xf32>
    %9 = arith.mulf %8, %8 : vector<40x16xf32>
    %cst_6 = arith.constant dense<0.000000e+00> : vector<40xf32>
    %10 = vector.multi_reduction <add>, %9, %cst_6 [1] : vector<40x16xf32> to vector<40xf32>
    %11 = vector.shape_cast %10 : vector<40xf32> to vector<40x1xf32>
    %cst_7 = arith.constant 1.600000e+01 : f32
    %12 = vector.broadcast %cst_7 : f32 to vector<40x1xf32>
    %13 = arith.divf %11, %12 : vector<40x1xf32>
    %14 = vector.broadcast %6 : vector<40x1xf32> to vector<40x16xf32>
    %15 = arith.subf %0, %14 : vector<40x16xf32>
    %cst_8 = arith.constant 9.99999974E-6 : f32
    %16 = vector.broadcast %cst_8 : f32 to vector<40x1xf32>
    %17 = arith.addf %13, %16 : vector<40x1xf32>
    %18 = math.rsqrt %17 : vector<40x1xf32>
    %19 = vector.broadcast %18 : vector<40x1xf32> to vector<40x16xf32>
    %20 = arith.mulf %15, %19 : vector<40x16xf32>
    %21 = vector.broadcast %1 : vector<1x16xf32> to vector<40x16xf32>
    %22 = arith.mulf %20, %21 : vector<40x16xf32>
    %23 = vector.broadcast %2 : vector<1x16xf32> to vector<40x16xf32>
    %24 = arith.addf %22, %23 : vector<40x16xf32>
    %c0_9 = arith.constant 0 : index
    %c0_10 = arith.constant 0 : index
    %25 = vector.load %arg3[%c0_9, %c0_10] : memref<16x128xf32, #tpu.memory_space<vmem>>, vector<16x128xf32>
    %cst_11 = arith.constant dense<0.000000e+00> : vector<40x128xf32>
    %26 = tpu.matmul %24, %25, %cst_11 {dimension_numbers = #tpu.dot_dimension_numbers<[1], [0], [0], [1], [0, 0, 1, 1], [], []>} : vector<40x16xf32>, vector<16x128xf32>, vector<40x128xf32> -> vector<40x128xf32>
    %c0_12 = arith.constant 0 : index
    %c0_13 = arith.constant 0 : index
    %27 = vector.load %arg4[%c0_12, %c0_13] : memref<1x128xf32, #tpu.memory_space<vmem>>, vector<1x128xf32>
    %28 = vector.broadcast %27 : vector<1x128xf32> to vector<40x128xf32>
    %29 = arith.addf %26, %28 : vector<40x128xf32>
    %c0_14 = arith.constant 0 : index
    %c0_15 = arith.constant 0 : index
    %30 = vector.load %arg5[%c0_14, %c0_15] : memref<40x128xf32, #tpu.memory_space<vmem>>, vector<40x128xf32>
    tpu.vector_store %arg5[%c0_14, %c0_15], %29 {strides = array<i32>} : memref<40x128xf32, #tpu.memory_space<vmem>>, vector<40x128xf32>,
    return
  }
}

module attributes {stable_mosaic.version = 11 : i64} {
  func.func @_vit_block_kernel(%arg0: i32, %arg1: memref<1x8x16xf32, #tpu.memory_space<vmem>>, %arg2: memref<1x16xf32, #tpu.memory_space<vmem>>, %arg3: memref<1x16xf32, #tpu.memory_space<vmem>>, %arg4: memref<4x16x4xf32, #tpu.memory_space<vmem>>, %arg5: memref<4x16x4xf32, #tpu.memory_space<vmem>>, %arg6: memref<4x16x4xf32, #tpu.memory_space<vmem>>, %arg7: memref<4x1x4xf32, #tpu.memory_space<vmem>>, %arg8: memref<4x1x4xf32, #tpu.memory_space<vmem>>, %arg9: memref<4x1x4xf32, #tpu.memory_space<vmem>>, %arg10: memref<4x4x16xf32, #tpu.memory_space<vmem>>, %arg11: memref<1x16xf32, #tpu.memory_space<vmem>>, %arg12: memref<1x16xf32, #tpu.memory_space<vmem>>, %arg13: memref<1x16xf32, #tpu.memory_space<vmem>>, %arg14: memref<16x64xf32, #tpu.memory_space<vmem>>, %arg15: memref<1x64xf32, #tpu.memory_space<vmem>>, %arg16: memref<64x16xf32, #tpu.memory_space<vmem>>, %arg17: memref<1x16xf32, #tpu.memory_space<vmem>>, %arg18: memref<1x8x16xf32, #tpu.memory_space<vmem>>) attributes {dimension_semantics = [#tpu.dimension_semantics<parallel>], iteration_bounds = array<i64: 5>, scalar_prefetch = 0 : i64, scratch_operands = 0 : i64, tpu.core_type = #tpu.core_type<tc>, window_params = [{transform_indices = @transform_0, window_bounds = array<i64: 1, 8, 16>}, {pipeline_mode = #tpu.pipeline_mode<synchronous>, transform_indices = @transform_1, window_bounds = array<i64: 1, 16>}, {pipeline_mode = #tpu.pipeline_mode<synchronous>, transform_indices = @transform_2, window_bounds = array<i64: 1, 16>}, {pipeline_mode = #tpu.pipeline_mode<synchronous>, transform_indices = @transform_3, window_bounds = array<i64: 4, 16, 4>}, {pipeline_mode = #tpu.pipeline_mode<synchronous>, transform_indices = @transform_4, window_bounds = array<i64: 4, 16, 4>}, {pipeline_mode = #tpu.pipeline_mode<synchronous>, transform_indices = @transform_5, window_bounds = array<i64: 4, 16, 4>}, {pipeline_mode = #tpu.pipeline_mode<synchronous>, transform_indices = @transform_6, window_bounds = array<i64: 4, 1, 4>}, {pipeline_mode = #tpu.pipeline_mode<synchronous>, transform_indices = @transform_7, window_bounds = array<i64: 4, 1, 4>}, {pipeline_mode = #tpu.pipeline_mode<synchronous>, transform_indices = @transform_8, window_bounds = array<i64: 4, 1, 4>}, {pipeline_mode = #tpu.pipeline_mode<synchronous>, transform_indices = @transform_9, window_bounds = array<i64: 4, 4, 16>}, {pipeline_mode = #tpu.pipeline_mode<synchronous>, transform_indices = @transform_10, window_bounds = array<i64: 1, 16>}, {pipeline_mode = #tpu.pipeline_mode<synchronous>, transform_indices = @transform_11, window_bounds = array<i64: 1, 16>}, {pipeline_mode = #tpu.pipeline_mode<synchronous>, transform_indices = @transform_12, window_bounds = array<i64: 1, 16>}, {pipeline_mode = #tpu.pipeline_mode<synchronous>, transform_indices = @transform_13, window_bounds = array<i64: 16, 64>}, {pipeline_mode = #tpu.pipeline_mode<synchronous>, transform_indices = @transform_14, window_bounds = array<i64: 1, 64>}, {pipeline_mode = #tpu.pipeline_mode<synchronous>, transform_indices = @transform_15, window_bounds = array<i64: 64, 16>}, {pipeline_mode = #tpu.pipeline_mode<synchronous>, transform_indices = @transform_16, window_bounds = array<i64: 1, 16>}, {transform_indices = @transform_17, window_bounds = array<i64: 1, 8, 16>}]} {
    %c0 = arith.constant 0 : index
    %c0_0 = arith.constant 0 : index
    %c0_1 = arith.constant 0 : index
    %0 = vector.load %arg1[%c0, %c0_0, %c0_1] : memref<1x8x16xf32, #tpu.memory_space<vmem>>, vector<1x8x16xf32>
    %1 = vector.shape_cast %0 : vector<1x8x16xf32> to vector<8x16xf32>
    %c0_2 = arith.constant 0 : index
    %c0_3 = arith.constant 0 : index
    %2 = vector.load %arg2[%c0_2, %c0_3] : memref<1x16xf32, #tpu.memory_space<vmem>>, vector<1x16xf32>
    %c0_4 = arith.constant 0 : index
    %c0_5 = arith.constant 0 : index
    %3 = vector.load %arg3[%c0_4, %c0_5] : memref<1x16xf32, #tpu.memory_space<vmem>>, vector<1x16xf32>
    %cst = arith.constant dense<0.000000e+00> : vector<8xf32>
    %4 = vector.multi_reduction <add>, %1, %cst [1] : vector<8x16xf32> to vector<8xf32>
    %5 = vector.shape_cast %4 : vector<8xf32> to vector<8x1xf32>
    %cst_6 = arith.constant 1.600000e+01 : f32
    %6 = vector.broadcast %cst_6 : f32 to vector<8x1xf32>
    %7 = arith.divf %5, %6 : vector<8x1xf32>
    %8 = vector.broadcast %7 : vector<8x1xf32> to vector<8x16xf32>
    %9 = arith.subf %1, %8 : vector<8x16xf32>
    %10 = arith.mulf %9, %9 : vector<8x16xf32>
    %cst_7 = arith.constant dense<0.000000e+00> : vector<8xf32>
    %11 = vector.multi_reduction <add>, %10, %cst_7 [1] : vector<8x16xf32> to vector<8xf32>
    %12 = vector.shape_cast %11 : vector<8xf32> to vector<8x1xf32>
    %cst_8 = arith.constant 1.600000e+01 : f32
    %13 = vector.broadcast %cst_8 : f32 to vector<8x1xf32>
    %14 = arith.divf %12, %13 : vector<8x1xf32>
    %15 = vector.broadcast %7 : vector<8x1xf32> to vector<8x16xf32>
    %16 = arith.subf %1, %15 : vector<8x16xf32>
    %cst_9 = arith.constant 9.99999974E-6 : f32
    %17 = vector.broadcast %cst_9 : f32 to vector<8x1xf32>
    %18 = arith.addf %14, %17 : vector<8x1xf32>
    %19 = math.rsqrt %18 : vector<8x1xf32>
    %20 = vector.broadcast %19 : vector<8x1xf32> to vector<8x16xf32>
    %21 = arith.mulf %16, %20 : vector<8x16xf32>
    %22 = vector.broadcast %2 : vector<1x16xf32> to vector<8x16xf32>
    %23 = arith.mulf %21, %22 : vector<8x16xf32>
    %24 = vector.broadcast %3 : vector<1x16xf32> to vector<8x16xf32>
    %25 = arith.addf %23, %24 : vector<8x16xf32>
    %cst_10 = arith.constant 0.000000e+00 : f32
    %26 = vector.broadcast %cst_10 : f32 to vector<8x16xf32>
    %c0_11 = arith.constant 0 : index
    %c0_12 = arith.constant 0 : index
    %c0_13 = arith.constant 0 : index
    %27 = vector.load %arg4[%c0_11, %c0_12, %c0_13] : memref<4x16x4xf32, #tpu.memory_space<vmem>>, vector<1x16x4xf32>
    %28 = vector.shape_cast %27 : vector<1x16x4xf32> to vector<16x4xf32>
    %cst_14 = arith.constant dense<0.000000e+00> : vector<8x4xf32>
    %29 = tpu.matmul %25, %28, %cst_14 {dimension_numbers = #tpu.dot_dimension_numbers<[1], [0], [0], [1], [0, 0, 1, 1], [], []>} : vector<8x16xf32>, vector<16x4xf32>, vector<8x4xf32> -> vector<8x4xf32>
    %c0_15 = arith.constant 0 : index
    %c0_16 = arith.constant 0 : index
    %c0_17 = arith.constant 0 : index
    %30 = vector.load %arg7[%c0_15, %c0_16, %c0_17] : memref<4x1x4xf32, #tpu.memory_space<vmem>>, vector<1x1x4xf32>
    %31 = vector.shape_cast %30 : vector<1x1x4xf32> to vector<1x4xf32>
    %32 = vector.broadcast %31 : vector<1x4xf32> to vector<8x4xf32>
    %33 = arith.addf %29, %32 : vector<8x4xf32>
    %c0_18 = arith.constant 0 : index
    %c0_19 = arith.constant 0 : index
    %c0_20 = arith.constant 0 : index
    %34 = vector.load %arg5[%c0_18, %c0_19, %c0_20] : memref<4x16x4xf32, #tpu.memory_space<vmem>>, vector<1x16x4xf32>
    %35 = vector.shape_cast %34 : vector<1x16x4xf32> to vector<16x4xf32>
    %cst_21 = arith.constant dense<0.000000e+00> : vector<8x4xf32>
    %36 = tpu.matmul %25, %35, %cst_21 {dimension_numbers = #tpu.dot_dimension_numbers<[1], [0], [0], [1], [0, 0, 1, 1], [], []>} : vector<8x16xf32>, vector<16x4xf32>, vector<8x4xf32> -> vector<8x4xf32>
    %c0_22 = arith.constant 0 : index
    %c0_23 = arith.constant 0 : index
    %c0_24 = arith.constant 0 : index
    %37 = vector.load %arg8[%c0_22, %c0_23, %c0_24] : memref<4x1x4xf32, #tpu.memory_space<vmem>>, vector<1x1x4xf32>
    %38 = vector.shape_cast %37 : vector<1x1x4xf32> to vector<1x4xf32>
    %39 = vector.broadcast %38 : vector<1x4xf32> to vector<8x4xf32>
    %40 = arith.addf %36, %39 : vector<8x4xf32>
    %c0_25 = arith.constant 0 : index
    %c0_26 = arith.constant 0 : index
    %c0_27 = arith.constant 0 : index
    %41 = vector.load %arg6[%c0_25, %c0_26, %c0_27] : memref<4x16x4xf32, #tpu.memory_space<vmem>>, vector<1x16x4xf32>
    %42 = vector.shape_cast %41 : vector<1x16x4xf32> to vector<16x4xf32>
    %cst_28 = arith.constant dense<0.000000e+00> : vector<8x4xf32>
    %43 = tpu.matmul %25, %42, %cst_28 {dimension_numbers = #tpu.dot_dimension_numbers<[1], [0], [0], [1], [0, 0, 1, 1], [], []>} : vector<8x16xf32>, vector<16x4xf32>, vector<8x4xf32> -> vector<8x4xf32>
    %c0_29 = arith.constant 0 : index
    %c0_30 = arith.constant 0 : index
    %c0_31 = arith.constant 0 : index
    %44 = vector.load %arg9[%c0_29, %c0_30, %c0_31] : memref<4x1x4xf32, #tpu.memory_space<vmem>>, vector<1x1x4xf32>
    %45 = vector.shape_cast %44 : vector<1x1x4xf32> to vector<1x4xf32>
    %46 = vector.broadcast %45 : vector<1x4xf32> to vector<8x4xf32>
    %47 = arith.addf %43, %46 : vector<8x4xf32>
    %cst_32 = arith.constant dense<0.000000e+00> : vector<8x8xf32>
    %48 = tpu.matmul %33, %40, %cst_32 {dimension_numbers = #tpu.dot_dimension_numbers<[1], [1], [0], [0], [0, 0, 1, 0], [], []>} : vector<8x4xf32>, vector<8x4xf32>, vector<8x8xf32> -> vector<8x8xf32>
    %cst_33 = arith.constant 5.000000e-01 : f32
    %49 = vector.broadcast %cst_33 : f32 to vector<8x8xf32>
    %50 = arith.mulf %48, %49 : vector<8x8xf32>
    %cst_34 = arith.constant dense<0xFF800000> : vector<8xf32>
    %51 = vector.multi_reduction <maximumf>, %50, %cst_34 [1] : vector<8x8xf32> to vector<8xf32>
    %52 = vector.shape_cast %51 : vector<8xf32> to vector<8x1xf32>
    %53 = vector.broadcast %52 : vector<8x1xf32> to vector<8x8xf32>
    %54 = arith.subf %50, %53 : vector<8x8xf32>
    %55 = math.exp %54 : vector<8x8xf32>
    %cst_35 = arith.constant dense<0.000000e+00> : vector<8xf32>
    %56 = vector.multi_reduction <add>, %55, %cst_35 [1] : vector<8x8xf32> to vector<8xf32>
    %57 = vector.shape_cast %56 : vector<8xf32> to vector<8x1xf32>
    %58 = tpu.reciprocal %57 {approx = true} : vector<8x1xf32> -> vector<8x1xf32>
    %59 = vector.broadcast %58 : vector<8x1xf32> to vector<8x8xf32>
    %60 = arith.mulf %55, %59 : vector<8x8xf32>
    %cst_36 = arith.constant dense<0.000000e+00> : vector<8x4xf32>
    %61 = tpu.matmul %60, %47, %cst_36 {dimension_numbers = #tpu.dot_dimension_numbers<[1], [0], [0], [1], [0, 0, 1, 1], [], []>} : vector<8x8xf32>, vector<8x4xf32>, vector<8x4xf32> -> vector<8x4xf32>
    %c0_37 = arith.constant 0 : index
    %c0_38 = arith.constant 0 : index
    %c0_39 = arith.constant 0 : index
    %62 = vector.load %arg10[%c0_37, %c0_38, %c0_39] : memref<4x4x16xf32, #tpu.memory_space<vmem>>, vector<1x4x16xf32>
    %63 = vector.shape_cast %62 : vector<1x4x16xf32> to vector<4x16xf32>
    %cst_40 = arith.constant dense<0.000000e+00> : vector<8x16xf32>
    %64 = tpu.matmul %61, %63, %cst_40 {dimension_numbers = #tpu.dot_dimension_numbers<[1], [0], [0], [1], [0, 0, 1, 1], [], []>} : vector<8x4xf32>, vector<4x16xf32>, vector<8x16xf32> -> vector<8x16xf32>
    %65 = arith.addf %26, %64 : vector<8x16xf32>
    %c1 = arith.constant 1 : index
    %c0_41 = arith.constant 0 : index
    %c0_42 = arith.constant 0 : index
    %66 = vector.load %arg4[%c1, %c0_41, %c0_42] : memref<4x16x4xf32, #tpu.memory_space<vmem>>, vector<1x16x4xf32>
    %67 = vector.shape_cast %66 : vector<1x16x4xf32> to vector<16x4xf32>
    %cst_43 = arith.constant dense<0.000000e+00> : vector<8x4xf32>
    %68 = tpu.matmul %25, %67, %cst_43 {dimension_numbers = #tpu.dot_dimension_numbers<[1], [0], [0], [1], [0, 0, 1, 1], [], []>} : vector<8x16xf32>, vector<16x4xf32>, vector<8x4xf32> -> vector<8x4xf32>
    %c1_44 = arith.constant 1 : index
    %c0_45 = arith.constant 0 : index
    %c0_46 = arith.constant 0 : index
    %69 = vector.load %arg7[%c1_44, %c0_45, %c0_46] : memref<4x1x4xf32, #tpu.memory_space<vmem>>, vector<1x1x4xf32>
    %70 = vector.shape_cast %69 : vector<1x1x4xf32> to vector<1x4xf32>
    %71 = vector.broadcast %70 : vector<1x4xf32> to vector<8x4xf32>
    %72 = arith.addf %68, %71 : vector<8x4xf32>
    %c1_47 = arith.constant 1 : index
    %c0_48 = arith.constant 0 : index
    %c0_49 = arith.constant 0 : index
    %73 = vector.load %arg5[%c1_47, %c0_48, %c0_49] : memref<4x16x4xf32, #tpu.memory_space<vmem>>, vector<1x16x4xf32>
    %74 = vector.shape_cast %73 : vector<1x16x4xf32> to vector<16x4xf32>
    %cst_50 = arith.constant dense<0.000000e+00> : vector<8x4xf32>
    %75 = tpu.matmul %25, %74, %cst_50 {dimension_numbers = #tpu.dot_dimension_numbers<[1], [0], [0], [1], [0, 0, 1, 1], [], []>} : vector<8x16xf32>, vector<16x4xf32>, vector<8x4xf32> -> vector<8x4xf32>
    %c1_51 = arith.constant 1 : index
    %c0_52 = arith.constant 0 : index
    %c0_53 = arith.constant 0 : index
    %76 = vector.load %arg8[%c1_51, %c0_52, %c0_53] : memref<4x1x4xf32, #tpu.memory_space<vmem>>, vector<1x1x4xf32>
    %77 = vector.shape_cast %76 : vector<1x1x4xf32> to vector<1x4xf32>
    %78 = vector.broadcast %77 : vector<1x4xf32> to vector<8x4xf32>
    %79 = arith.addf %75, %78 : vector<8x4xf32>
    %c1_54 = arith.constant 1 : index
    %c0_55 = arith.constant 0 : index
    %c0_56 = arith.constant 0 : index
    %80 = vector.load %arg6[%c1_54, %c0_55, %c0_56] : memref<4x16x4xf32, #tpu.memory_space<vmem>>, vector<1x16x4xf32>
    %81 = vector.shape_cast %80 : vector<1x16x4xf32> to vector<16x4xf32>
    %cst_57 = arith.constant dense<0.000000e+00> : vector<8x4xf32>
    %82 = tpu.matmul %25, %81, %cst_57 {dimension_numbers = #tpu.dot_dimension_numbers<[1], [0], [0], [1], [0, 0, 1, 1], [], []>} : vector<8x16xf32>, vector<16x4xf32>, vector<8x4xf32> -> vector<8x4xf32>
    %c1_58 = arith.constant 1 : index
    %c0_59 = arith.constant 0 : index
    %c0_60 = arith.constant 0 : index
    %83 = vector.load %arg9[%c1_58, %c0_59, %c0_60] : memref<4x1x4xf32, #tpu.memory_space<vmem>>, vector<1x1x4xf32>
    %84 = vector.shape_cast %83 : vector<1x1x4xf32> to vector<1x4xf32>
    %85 = vector.broadcast %84 : vector<1x4xf32> to vector<8x4xf32>
    %86 = arith.addf %82, %85 : vector<8x4xf32>
    %cst_61 = arith.constant dense<0.000000e+00> : vector<8x8xf32>
    %87 = tpu.matmul %72, %79, %cst_61 {dimension_numbers = #tpu.dot_dimension_numbers<[1], [1], [0], [0], [0, 0, 1, 0], [], []>} : vector<8x4xf32>, vector<8x4xf32>, vector<8x8xf32> -> vector<8x8xf32>
    %cst_62 = arith.constant 5.000000e-01 : f32
    %88 = vector.broadcast %cst_62 : f32 to vector<8x8xf32>
    %89 = arith.mulf %87, %88 : vector<8x8xf32>
    %cst_63 = arith.constant dense<0xFF800000> : vector<8xf32>
    %90 = vector.multi_reduction <maximumf>, %89, %cst_63 [1] : vector<8x8xf32> to vector<8xf32>
    %91 = vector.shape_cast %90 : vector<8xf32> to vector<8x1xf32>
    %92 = vector.broadcast %91 : vector<8x1xf32> to vector<8x8xf32>
    %93 = arith.subf %89, %92 : vector<8x8xf32>
    %94 = math.exp %93 : vector<8x8xf32>
    %cst_64 = arith.constant dense<0.000000e+00> : vector<8xf32>
    %95 = vector.multi_reduction <add>, %94, %cst_64 [1] : vector<8x8xf32> to vector<8xf32>
    %96 = vector.shape_cast %95 : vector<8xf32> to vector<8x1xf32>
    %97 = tpu.reciprocal %96 {approx = true} : vector<8x1xf32> -> vector<8x1xf32>
    %98 = vector.broadcast %97 : vector<8x1xf32> to vector<8x8xf32>
    %99 = arith.mulf %94, %98 : vector<8x8xf32>
    %cst_65 = arith.constant dense<0.000000e+00> : vector<8x4xf32>
    %100 = tpu.matmul %99, %86, %cst_65 {dimension_numbers = #tpu.dot_dimension_numbers<[1], [0], [0], [1], [0, 0, 1, 1], [], []>} : vector<8x8xf32>, vector<8x4xf32>, vector<8x4xf32> -> vector<8x4xf32>
    %c1_66 = arith.constant 1 : index
    %c0_67 = arith.constant 0 : index
    %c0_68 = arith.constant 0 : index
    %101 = vector.load %arg10[%c1_66, %c0_67, %c0_68] : memref<4x4x16xf32, #tpu.memory_space<vmem>>, vector<1x4x16xf32>
    %102 = vector.shape_cast %101 : vector<1x4x16xf32> to vector<4x16xf32>
    %cst_69 = arith.constant dense<0.000000e+00> : vector<8x16xf32>
    %103 = tpu.matmul %100, %102, %cst_69 {dimension_numbers = #tpu.dot_dimension_numbers<[1], [0], [0], [1], [0, 0, 1, 1], [], []>} : vector<8x4xf32>, vector<4x16xf32>, vector<8x16xf32> -> vector<8x16xf32>
    %104 = arith.addf %65, %103 : vector<8x16xf32>
    %c2 = arith.constant 2 : index
    %c0_70 = arith.constant 0 : index
    %c0_71 = arith.constant 0 : index
    %105 = vector.load %arg4[%c2, %c0_70, %c0_71] : memref<4x16x4xf32, #tpu.memory_space<vmem>>, vector<1x16x4xf32>
    %106 = vector.shape_cast %105 : vector<1x16x4xf32> to vector<16x4xf32>
    %cst_72 = arith.constant dense<0.000000e+00> : vector<8x4xf32>
    %107 = tpu.matmul %25, %106, %cst_72 {dimension_numbers = #tpu.dot_dimension_numbers<[1], [0], [0], [1], [0, 0, 1, 1], [], []>} : vector<8x16xf32>, vector<16x4xf32>, vector<8x4xf32> -> vector<8x4xf32>
    %c2_73 = arith.constant 2 : index
    %c0_74 = arith.constant 0 : index
    %c0_75 = arith.constant 0 : index
    %108 = vector.load %arg7[%c2_73, %c0_74, %c0_75] : memref<4x1x4xf32, #tpu.memory_space<vmem>>, vector<1x1x4xf32>
    %109 = vector.shape_cast %108 : vector<1x1x4xf32> to vector<1x4xf32>
    %110 = vector.broadcast %109 : vector<1x4xf32> to vector<8x4xf32>
    %111 = arith.addf %107, %110 : vector<8x4xf32>
    %c2_76 = arith.constant 2 : index
    %c0_77 = arith.constant 0 : index
    %c0_78 = arith.constant 0 : index
    %112 = vector.load %arg5[%c2_76, %c0_77, %c0_78] : memref<4x16x4xf32, #tpu.memory_space<vmem>>, vector<1x16x4xf32>
    %113 = vector.shape_cast %112 : vector<1x16x4xf32> to vector<16x4xf32>
    %cst_79 = arith.constant dense<0.000000e+00> : vector<8x4xf32>
    %114 = tpu.matmul %25, %113, %cst_79 {dimension_numbers = #tpu.dot_dimension_numbers<[1], [0], [0], [1], [0, 0, 1, 1], [], []>} : vector<8x16xf32>, vector<16x4xf32>, vector<8x4xf32> -> vector<8x4xf32>
    %c2_80 = arith.constant 2 : index
    %c0_81 = arith.constant 0 : index
    %c0_82 = arith.constant 0 : index
    %115 = vector.load %arg8[%c2_80, %c0_81, %c0_82] : memref<4x1x4xf32, #tpu.memory_space<vmem>>, vector<1x1x4xf32>
    %116 = vector.shape_cast %115 : vector<1x1x4xf32> to vector<1x4xf32>
    %117 = vector.broadcast %116 : vector<1x4xf32> to vector<8x4xf32>
    %118 = arith.addf %114, %117 : vector<8x4xf32>
    %c2_83 = arith.constant 2 : index
    %c0_84 = arith.constant 0 : index
    %c0_85 = arith.constant 0 : index
    %119 = vector.load %arg6[%c2_83, %c0_84, %c0_85] : memref<4x16x4xf32, #tpu.memory_space<vmem>>, vector<1x16x4xf32>
    %120 = vector.shape_cast %119 : vector<1x16x4xf32> to vector<16x4xf32>
    %cst_86 = arith.constant dense<0.000000e+00> : vector<8x4xf32>
    %121 = tpu.matmul %25, %120, %cst_86 {dimension_numbers = #tpu.dot_dimension_numbers<[1], [0], [0], [1], [0, 0, 1, 1], [], []>} : vector<8x16xf32>, vector<16x4xf32>, vector<8x4xf32> -> vector<8x4xf32>
    %c2_87 = arith.constant 2 : index
    %c0_88 = arith.constant 0 : index
    %c0_89 = arith.constant 0 : index
    %122 = vector.load %arg9[%c2_87, %c0_88, %c0_89] : memref<4x1x4xf32, #tpu.memory_space<vmem>>, vector<1x1x4xf32>
    %123 = vector.shape_cast %122 : vector<1x1x4xf32> to vector<1x4xf32>
    %124 = vector.broadcast %123 : vector<1x4xf32> to vector<8x4xf32>
    %125 = arith.addf %121, %124 : vector<8x4xf32>
    %cst_90 = arith.constant dense<0.000000e+00> : vector<8x8xf32>
    %126 = tpu.matmul %111, %118, %cst_90 {dimension_numbers = #tpu.dot_dimension_numbers<[1], [1], [0], [0], [0, 0, 1, 0], [], []>} : vector<8x4xf32>, vector<8x4xf32>, vector<8x8xf32> -> vector<8x8xf32>
    %cst_91 = arith.constant 5.000000e-01 : f32
    %127 = vector.broadcast %cst_91 : f32 to vector<8x8xf32>
    %128 = arith.mulf %126, %127 : vector<8x8xf32>
    %cst_92 = arith.constant dense<0xFF800000> : vector<8xf32>
    %129 = vector.multi_reduction <maximumf>, %128, %cst_92 [1] : vector<8x8xf32> to vector<8xf32>
    %130 = vector.shape_cast %129 : vector<8xf32> to vector<8x1xf32>
    %131 = vector.broadcast %130 : vector<8x1xf32> to vector<8x8xf32>
    %132 = arith.subf %128, %131 : vector<8x8xf32>
    %133 = math.exp %132 : vector<8x8xf32>
    %cst_93 = arith.constant dense<0.000000e+00> : vector<8xf32>
    %134 = vector.multi_reduction <add>, %133, %cst_93 [1] : vector<8x8xf32> to vector<8xf32>
    %135 = vector.shape_cast %134 : vector<8xf32> to vector<8x1xf32>
    %136 = tpu.reciprocal %135 {approx = true} : vector<8x1xf32> -> vector<8x1xf32>
    %137 = vector.broadcast %136 : vector<8x1xf32> to vector<8x8xf32>
    %138 = arith.mulf %133, %137 : vector<8x8xf32>
    %cst_94 = arith.constant dense<0.000000e+00> : vector<8x4xf32>
    %139 = tpu.matmul %138, %125, %cst_94 {dimension_numbers = #tpu.dot_dimension_numbers<[1], [0], [0], [1], [0, 0, 1, 1], [], []>} : vector<8x8xf32>, vector<8x4xf32>, vector<8x4xf32> -> vector<8x4xf32>
    %c2_95 = arith.constant 2 : index
    %c0_96 = arith.constant 0 : index
    %c0_97 = arith.constant 0 : index
    %140 = vector.load %arg10[%c2_95, %c0_96, %c0_97] : memref<4x4x16xf32, #tpu.memory_space<vmem>>, vector<1x4x16xf32>
    %141 = vector.shape_cast %140 : vector<1x4x16xf32> to vector<4x16xf32>
    %cst_98 = arith.constant dense<0.000000e+00> : vector<8x16xf32>
    %142 = tpu.matmul %139, %141, %cst_98 {dimension_numbers = #tpu.dot_dimension_numbers<[1], [0], [0], [1], [0, 0, 1, 1], [], []>} : vector<8x4xf32>, vector<4x16xf32>, vector<8x16xf32> -> vector<8x16xf32>
    %143 = arith.addf %104, %142 : vector<8x16xf32>
    %c3 = arith.constant 3 : index
    %c0_99 = arith.constant 0 : index
    %c0_100 = arith.constant 0 : index
    %144 = vector.load %arg4[%c3, %c0_99, %c0_100] : memref<4x16x4xf32, #tpu.memory_space<vmem>>, vector<1x16x4xf32>
    %145 = vector.shape_cast %144 : vector<1x16x4xf32> to vector<16x4xf32>
    %cst_101 = arith.constant dense<0.000000e+00> : vector<8x4xf32>
    %146 = tpu.matmul %25, %145, %cst_101 {dimension_numbers = #tpu.dot_dimension_numbers<[1], [0], [0], [1], [0, 0, 1, 1], [], []>} : vector<8x16xf32>, vector<16x4xf32>, vector<8x4xf32> -> vector<8x4xf32>
    %c3_102 = arith.constant 3 : index
    %c0_103 = arith.constant 0 : index
    %c0_104 = arith.constant 0 : index
    %147 = vector.load %arg7[%c3_102, %c0_103, %c0_104] : memref<4x1x4xf32, #tpu.memory_space<vmem>>, vector<1x1x4xf32>
    %148 = vector.shape_cast %147 : vector<1x1x4xf32> to vector<1x4xf32>
    %149 = vector.broadcast %148 : vector<1x4xf32> to vector<8x4xf32>
    %150 = arith.addf %146, %149 : vector<8x4xf32>
    %c3_105 = arith.constant 3 : index
    %c0_106 = arith.constant 0 : index
    %c0_107 = arith.constant 0 : index
    %151 = vector.load %arg5[%c3_105, %c0_106, %c0_107] : memref<4x16x4xf32, #tpu.memory_space<vmem>>, vector<1x16x4xf32>
    %152 = vector.shape_cast %151 : vector<1x16x4xf32> to vector<16x4xf32>
    %cst_108 = arith.constant dense<0.000000e+00> : vector<8x4xf32>
    %153 = tpu.matmul %25, %152, %cst_108 {dimension_numbers = #tpu.dot_dimension_numbers<[1], [0], [0], [1], [0, 0, 1, 1], [], []>} : vector<8x16xf32>, vector<16x4xf32>, vector<8x4xf32> -> vector<8x4xf32>
    %c3_109 = arith.constant 3 : index
    %c0_110 = arith.constant 0 : index
    %c0_111 = arith.constant 0 : index
    %154 = vector.load %arg8[%c3_109, %c0_110, %c0_111] : memref<4x1x4xf32, #tpu.memory_space<vmem>>, vector<1x1x4xf32>
    %155 = vector.shape_cast %154 : vector<1x1x4xf32> to vector<1x4xf32>
    %156 = vector.broadcast %155 : vector<1x4xf32> to vector<8x4xf32>
    %157 = arith.addf %153, %156 : vector<8x4xf32>
    %c3_112 = arith.constant 3 : index
    %c0_113 = arith.constant 0 : index
    %c0_114 = arith.constant 0 : index
    %158 = vector.load %arg6[%c3_112, %c0_113, %c0_114] : memref<4x16x4xf32, #tpu.memory_space<vmem>>, vector<1x16x4xf32>
    %159 = vector.shape_cast %158 : vector<1x16x4xf32> to vector<16x4xf32>
    %cst_115 = arith.constant dense<0.000000e+00> : vector<8x4xf32>
    %160 = tpu.matmul %25, %159, %cst_115 {dimension_numbers = #tpu.dot_dimension_numbers<[1], [0], [0], [1], [0, 0, 1, 1], [], []>} : vector<8x16xf32>, vector<16x4xf32>, vector<8x4xf32> -> vector<8x4xf32>
    %c3_116 = arith.constant 3 : index
    %c0_117 = arith.constant 0 : index
    %c0_118 = arith.constant 0 : index
    %161 = vector.load %arg9[%c3_116, %c0_117, %c0_118] : memref<4x1x4xf32, #tpu.memory_space<vmem>>, vector<1x1x4xf32>
    %162 = vector.shape_cast %161 : vector<1x1x4xf32> to vector<1x4xf32>
    %163 = vector.broadcast %162 : vector<1x4xf32> to vector<8x4xf32>
    %164 = arith.addf %160, %163 : vector<8x4xf32>
    %cst_119 = arith.constant dense<0.000000e+00> : vector<8x8xf32>
    %165 = tpu.matmul %150, %157, %cst_119 {dimension_numbers = #tpu.dot_dimension_numbers<[1], [1], [0], [0], [0, 0, 1, 0], [], []>} : vector<8x4xf32>, vector<8x4xf32>, vector<8x8xf32> -> vector<8x8xf32>
    %cst_120 = arith.constant 5.000000e-01 : f32
    %166 = vector.broadcast %cst_120 : f32 to vector<8x8xf32>
    %167 = arith.mulf %165, %166 : vector<8x8xf32>
    %cst_121 = arith.constant dense<0xFF800000> : vector<8xf32>
    %168 = vector.multi_reduction <maximumf>, %167, %cst_121 [1] : vector<8x8xf32> to vector<8xf32>
    %169 = vector.shape_cast %168 : vector<8xf32> to vector<8x1xf32>
    %170 = vector.broadcast %169 : vector<8x1xf32> to vector<8x8xf32>
    %171 = arith.subf %167, %170 : vector<8x8xf32>
    %172 = math.exp %171 : vector<8x8xf32>
    %cst_122 = arith.constant dense<0.000000e+00> : vector<8xf32>
    %173 = vector.multi_reduction <add>, %172, %cst_122 [1] : vector<8x8xf32> to vector<8xf32>
    %174 = vector.shape_cast %173 : vector<8xf32> to vector<8x1xf32>
    %175 = tpu.reciprocal %174 {approx = true} : vector<8x1xf32> -> vector<8x1xf32>
    %176 = vector.broadcast %175 : vector<8x1xf32> to vector<8x8xf32>
    %177 = arith.mulf %172, %176 : vector<8x8xf32>
    %cst_123 = arith.constant dense<0.000000e+00> : vector<8x4xf32>
    %178 = tpu.matmul %177, %164, %cst_123 {dimension_numbers = #tpu.dot_dimension_numbers<[1], [0], [0], [1], [0, 0, 1, 1], [], []>} : vector<8x8xf32>, vector<8x4xf32>, vector<8x4xf32> -> vector<8x4xf32>
    %c3_124 = arith.constant 3 : index
    %c0_125 = arith.constant 0 : index
    %c0_126 = arith.constant 0 : index
    %179 = vector.load %arg10[%c3_124, %c0_125, %c0_126] : memref<4x4x16xf32, #tpu.memory_space<vmem>>, vector<1x4x16xf32>
    %180 = vector.shape_cast %179 : vector<1x4x16xf32> to vector<4x16xf32>
    %cst_127 = arith.constant dense<0.000000e+00> : vector<8x16xf32>
    %181 = tpu.matmul %178, %180, %cst_127 {dimension_numbers = #tpu.dot_dimension_numbers<[1], [0], [0], [1], [0, 0, 1, 1], [], []>} : vector<8x4xf32>, vector<4x16xf32>, vector<8x16xf32> -> vector<8x16xf32>
    %182 = arith.addf %143, %181 : vector<8x16xf32>
    %183 = arith.addf %1, %182 : vector<8x16xf32>
    %c0_128 = arith.constant 0 : index
    %c0_129 = arith.constant 0 : index
    %184 = vector.load %arg11[%c0_128, %c0_129] : memref<1x16xf32, #tpu.memory_space<vmem>>, vector<1x16xf32>
    %185 = vector.broadcast %184 : vector<1x16xf32> to vector<8x16xf32>
    %186 = arith.addf %183, %185 : vector<8x16xf32>
    %c0_130 = arith.constant 0 : index
    %c0_131 = arith.constant 0 : index
    %187 = vector.load %arg12[%c0_130, %c0_131] : memref<1x16xf32, #tpu.memory_space<vmem>>, vector<1x16xf32>
    %c0_132 = arith.constant 0 : index
    %c0_133 = arith.constant 0 : index
    %188 = vector.load %arg13[%c0_132, %c0_133] : memref<1x16xf32, #tpu.memory_space<vmem>>, vector<1x16xf32>
    %cst_134 = arith.constant dense<0.000000e+00> : vector<8xf32>
    %189 = vector.multi_reduction <add>, %186, %cst_134 [1] : vector<8x16xf32> to vector<8xf32>
    %190 = vector.shape_cast %189 : vector<8xf32> to vector<8x1xf32>
    %cst_135 = arith.constant 1.600000e+01 : f32
    %191 = vector.broadcast %cst_135 : f32 to vector<8x1xf32>
    %192 = arith.divf %190, %191 : vector<8x1xf32>
    %193 = vector.broadcast %192 : vector<8x1xf32> to vector<8x16xf32>
    %194 = arith.subf %186, %193 : vector<8x16xf32>
    %195 = arith.mulf %194, %194 : vector<8x16xf32>
    %cst_136 = arith.constant dense<0.000000e+00> : vector<8xf32>
    %196 = vector.multi_reduction <add>, %195, %cst_136 [1] : vector<8x16xf32> to vector<8xf32>
    %197 = vector.shape_cast %196 : vector<8xf32> to vector<8x1xf32>
    %cst_137 = arith.constant 1.600000e+01 : f32
    %198 = vector.broadcast %cst_137 : f32 to vector<8x1xf32>
    %199 = arith.divf %197, %198 : vector<8x1xf32>
    %200 = vector.broadcast %192 : vector<8x1xf32> to vector<8x16xf32>
    %201 = arith.subf %186, %200 : vector<8x16xf32>
    %cst_138 = arith.constant 9.99999974E-6 : f32
    %202 = vector.broadcast %cst_138 : f32 to vector<8x1xf32>
    %203 = arith.addf %199, %202 : vector<8x1xf32>
    %204 = math.rsqrt %203 : vector<8x1xf32>
    %205 = vector.broadcast %204 : vector<8x1xf32> to vector<8x16xf32>
    %206 = arith.mulf %201, %205 : vector<8x16xf32>
    %207 = vector.broadcast %187 : vector<1x16xf32> to vector<8x16xf32>
    %208 = arith.mulf %206, %207 : vector<8x16xf32>
    %209 = vector.broadcast %188 : vector<1x16xf32> to vector<8x16xf32>
    %210 = arith.addf %208, %209 : vector<8x16xf32>
    %c0_139 = arith.constant 0 : index
    %c0_140 = arith.constant 0 : index
    %211 = vector.load %arg14[%c0_139, %c0_140] : memref<16x64xf32, #tpu.memory_space<vmem>>, vector<16x64xf32>
    %cst_141 = arith.constant dense<0.000000e+00> : vector<8x64xf32>
    %212 = tpu.matmul %210, %211, %cst_141 {dimension_numbers = #tpu.dot_dimension_numbers<[1], [0], [0], [1], [0, 0, 1, 1], [], []>} : vector<8x16xf32>, vector<16x64xf32>, vector<8x64xf32> -> vector<8x64xf32>
    %c0_142 = arith.constant 0 : index
    %c0_143 = arith.constant 0 : index
    %213 = vector.load %arg15[%c0_142, %c0_143] : memref<1x64xf32, #tpu.memory_space<vmem>>, vector<1x64xf32>
    %214 = vector.broadcast %213 : vector<1x64xf32> to vector<8x64xf32>
    %215 = arith.addf %212, %214 : vector<8x64xf32>
    %216 = arith.mulf %215, %215 : vector<8x64xf32>
    %217 = arith.mulf %215, %216 : vector<8x64xf32>
    %cst_144 = arith.constant 4.471500e-02 : f32
    %218 = vector.broadcast %cst_144 : f32 to vector<8x64xf32>
    %219 = arith.mulf %218, %217 : vector<8x64xf32>
    %220 = arith.addf %215, %219 : vector<8x64xf32>
    %cst_145 = arith.constant 0.797884583 : f32
    %221 = vector.broadcast %cst_145 : f32 to vector<8x64xf32>
    %222 = arith.mulf %221, %220 : vector<8x64xf32>
    %223 = math.tanh %222 : vector<8x64xf32>
    %cst_146 = arith.constant 1.000000e+00 : f32
    %224 = vector.broadcast %cst_146 : f32 to vector<8x64xf32>
    %225 = arith.addf %224, %223 : vector<8x64xf32>
    %cst_147 = arith.constant 5.000000e-01 : f32
    %226 = vector.broadcast %cst_147 : f32 to vector<8x64xf32>
    %227 = arith.mulf %226, %225 : vector<8x64xf32>
    %228 = arith.mulf %215, %227 : vector<8x64xf32>
    %c0_148 = arith.constant 0 : index
    %c0_149 = arith.constant 0 : index
    %229 = vector.load %arg16[%c0_148, %c0_149] : memref<64x16xf32, #tpu.memory_space<vmem>>, vector<64x16xf32>
    %cst_150 = arith.constant dense<0.000000e+00> : vector<8x16xf32>
    %230 = tpu.matmul %228, %229, %cst_150 {dimension_numbers = #tpu.dot_dimension_numbers<[1], [0], [0], [1], [0, 0, 1, 1], [], []>} : vector<8x64xf32>, vector<64x16xf32>, vector<8x16xf32> -> vector<8x16xf32>
    %c0_151 = arith.constant 0 : index
    %c0_152 = arith.constant 0 : index
    %231 = vector.load %arg17[%c0_151, %c0_152] : memref<1x16xf32, #tpu.memory_space<vmem>>, vector<1x16xf32>
    %232 = vector.broadcast %231 : vector<1x16xf32> to vector<8x16xf32>
    %233 = arith.addf %230, %232 : vector<8x16xf32>
    %234 = arith.addf %186, %233 : vector<8x16xf32>
    %c0_153 = arith.constant 0 : index
    %c0_154 = arith.constant 0 : index
    %c0_155 = arith.constant 0 : index
    %235 = vector.load %arg18[%c0_153, %c0_154, %c0_155] : memref<1x8x16xf32, #tpu.memory_space<vmem>>, vector<1x8x16xf32>
    %236 = vector.shape_cast %235 : vector<1x8x16xf32> to vector<8x16xf32>
    %237 = vector.shape_cast %234 : vector<8x16xf32> to vector<1x8x16xf32>
    tpu.vector_store %arg18[%c0_153, %c0_154, %c0_155], %237 {strides = array<i32>} : memref<1x8x16xf32, #tpu.memory_space<vmem>>, vector<1x8x16xf32>,
    return
  }
  func.func @transform_0(%arg0: i32) -> (i32, i32, i32) {
    %c0_i32 = arith.constant 0 : i32
    %c0_i32_0 = arith.constant 0 : i32
    %c0_i32_1 = arith.constant 0 : i32
    return %arg0, %c0_i32, %c0_i32_0 : i32, i32, i32
  }
  func.func @transform_1(%arg0: i32) -> (i32, i32) {
    %c0_i32 = arith.constant 0 : i32
    %c0_i32_0 = arith.constant 0 : i32
    %c0_i32_1 = arith.constant 0 : i32
    return %c0_i32, %c0_i32_0 : i32, i32
  }
  func.func @transform_2(%arg0: i32) -> (i32, i32) {
    %c0_i32 = arith.constant 0 : i32
    %c0_i32_0 = arith.constant 0 : i32
    %c0_i32_1 = arith.constant 0 : i32
    return %c0_i32, %c0_i32_0 : i32, i32
  }
  func.func @transform_3(%arg0: i32) -> (i32, i32, i32) {
    %c0_i32 = arith.constant 0 : i32
    %c0_i32_0 = arith.constant 0 : i32
    %c0_i32_1 = arith.constant 0 : i32
    %c0_i32_2 = arith.constant 0 : i32
    return %c0_i32, %c0_i32_0, %c0_i32_1 : i32, i32, i32
  }
  func.func @transform_4(%arg0: i32) -> (i32, i32, i32) {
    %c0_i32 = arith.constant 0 : i32
    %c0_i32_0 = arith.constant 0 : i32
    %c0_i32_1 = arith.constant 0 : i32
    %c0_i32_2 = arith.constant 0 : i32
    return %c0_i32, %c0_i32_0, %c0_i32_1 : i32, i32, i32
  }
  func.func @transform_5(%arg0: i32) -> (i32, i32, i32) {
    %c0_i32 = arith.constant 0 : i32
    %c0_i32_0 = arith.constant 0 : i32
    %c0_i32_1 = arith.constant 0 : i32
    %c0_i32_2 = arith.constant 0 : i32
    return %c0_i32, %c0_i32_0, %c0_i32_1 : i32, i32, i32
  }
  func.func @transform_6(%arg0: i32) -> (i32, i32, i32) {
    %c0_i32 = arith.constant 0 : i32
    %c0_i32_0 = arith.constant 0 : i32
    %c0_i32_1 = arith.constant 0 : i32
    %c0_i32_2 = arith.constant 0 : i32
    return %c0_i32, %c0_i32_0, %c0_i32_1 : i32, i32, i32
  }
  func.func @transform_7(%arg0: i32) -> (i32, i32, i32) {
    %c0_i32 = arith.constant 0 : i32
    %c0_i32_0 = arith.constant 0 : i32
    %c0_i32_1 = arith.constant 0 : i32
    %c0_i32_2 = arith.constant 0 : i32
    return %c0_i32, %c0_i32_0, %c0_i32_1 : i32, i32, i32
  }
  func.func @transform_8(%arg0: i32) -> (i32, i32, i32) {
    %c0_i32 = arith.constant 0 : i32
    %c0_i32_0 = arith.constant 0 : i32
    %c0_i32_1 = arith.constant 0 : i32
    %c0_i32_2 = arith.constant 0 : i32
    return %c0_i32, %c0_i32_0, %c0_i32_1 : i32, i32, i32
  }
  func.func @transform_9(%arg0: i32) -> (i32, i32, i32) {
    %c0_i32 = arith.constant 0 : i32
    %c0_i32_0 = arith.constant 0 : i32
    %c0_i32_1 = arith.constant 0 : i32
    %c0_i32_2 = arith.constant 0 : i32
    return %c0_i32, %c0_i32_0, %c0_i32_1 : i32, i32, i32
  }
  func.func @transform_10(%arg0: i32) -> (i32, i32) {
    %c0_i32 = arith.constant 0 : i32
    %c0_i32_0 = arith.constant 0 : i32
    %c0_i32_1 = arith.constant 0 : i32
    return %c0_i32, %c0_i32_0 : i32, i32
  }
  func.func @transform_11(%arg0: i32) -> (i32, i32) {
    %c0_i32 = arith.constant 0 : i32
    %c0_i32_0 = arith.constant 0 : i32
    %c0_i32_1 = arith.constant 0 : i32
    return %c0_i32, %c0_i32_0 : i32, i32
  }
  func.func @transform_12(%arg0: i32) -> (i32, i32) {
    %c0_i32 = arith.constant 0 : i32
    %c0_i32_0 = arith.constant 0 : i32
    %c0_i32_1 = arith.constant 0 : i32
    return %c0_i32, %c0_i32_0 : i32, i32
  }
  func.func @transform_13(%arg0: i32) -> (i32, i32) {
    %c0_i32 = arith.constant 0 : i32
    %c0_i32_0 = arith.constant 0 : i32
    %c0_i32_1 = arith.constant 0 : i32
    return %c0_i32, %c0_i32_0 : i32, i32
  }
  func.func @transform_14(%arg0: i32) -> (i32, i32) {
    %c0_i32 = arith.constant 0 : i32
    %c0_i32_0 = arith.constant 0 : i32
    %c0_i32_1 = arith.constant 0 : i32
    return %c0_i32, %c0_i32_0 : i32, i32
  }
  func.func @transform_15(%arg0: i32) -> (i32, i32) {
    %c0_i32 = arith.constant 0 : i32
    %c0_i32_0 = arith.constant 0 : i32
    %c0_i32_1 = arith.constant 0 : i32
    return %c0_i32, %c0_i32_0 : i32, i32
  }
  func.func @transform_16(%arg0: i32) -> (i32, i32) {
    %c0_i32 = arith.constant 0 : i32
    %c0_i32_0 = arith.constant 0 : i32
    %c0_i32_1 = arith.constant 0 : i32
    return %c0_i32, %c0_i32_0 : i32, i32
  }
  func.func @transform_17(%arg0: i32) -> (i32, i32, i32) {
    %c0_i32 = arith.constant 0 : i32
    %c0_i32_0 = arith.constant 0 : i32
    %c0_i32_1 = arith.constant 0 : i32
    return %arg0, %c0_i32, %c0_i32_0 : i32, i32, i32
  }
}

</mosaic_0001>

<bundles_post_ra>
// kernel: mage_forward.13
= control target key start
LH: loop header
LB: loop body
LE: loop exit
PB: predicated region body
PF: predicated region fallthrough
CT: control target
= control target key end

     0   :  { %v340_v0 = vmov 1   ;;  %v341_v1 = vmov 0   ;;  %v342_v8 = vmov 0.0|0.0   ;;  %vm343_vm0 = vmmov 0   ;;  %s448_s0 = inlined_call_operand.vmem [shape: f32[6,6,2], index: 0, kind: input, shape index: {}]   ;;  %s449_s5 = inlined_call_operand.vmem [shape: f32[32,32], index: 5, kind: input, shape index: {}]   ;;  %s450_s2 = inlined_call_operand.vmem [shape: f32[1,1,32], index: 2, kind: input, shape index: {}]   ;;  %s451_s1 = inlined_call_operand.vmem [shape: f32[1,1,32], index: 1, kind: input, shape index: {}]   ;;  %s452_s3 = inlined_call_operand.vmem [shape: f32[1,1,32], index: 3, kind: input, shape index: {}]   ;;  %s453_s4 = inlined_call_operand.vmem [shape: f32[1,6,32], index: 4, kind: input, shape index: {}]   ;;  %s454_s6 = inlined_call_operand.vmem [shape: f32[1,32], index: 6, kind: input, shape index: {}]   ;;  %s455_s7 = inlined_call_operand.vmem [shape: f32[6,32], index: 7, kind: input, shape index: {}]   ;;  %s456_s8 = inlined_call_operand.vmem [shape: f32[6,32], index: 8, kind: output, shape index: {}]  }
   0x1   :  { %338 = vset.pattern.permute.xlu1 %v340_v0  ;;  %337 = vset.pattern.permute.xlu0 %v341_v1  ;;  %v29_v2 = vld [vmem:[%s448_s0] sm:$0x3f]  ;;  %v30_v3 = vld [vmem:[%s448_s0 + $0x8] sm:$0x3f]  ;;  %v31_v4 = vld [vmem:[%s448_s0 + $0x10] sm:$0x3f] }
   0x2   :  { %80 = vperm.xlu1 %338, %v29_v2   ;;  %38 = vperm.xlu0 %337, %v29_v2   ;;  %v32_v5 = vld [vmem:[%s448_s0 + $0x18] sm:$0x3f]  ;;  %v33_v6 = vld [vmem:[%s448_s0 + $0x20] sm:$0x3f]  ;;  %v34_v7 = vld [vmem:[%s448_s0 + $0x28] sm:$0x3f] }
   0x3   :  { %326 = vmatprep.subr.bf16.mxu0 %v342_v8  ;;  %v197_v9 = vld [vmem:[%s449_s5] sm:$0xff]  ;;  %v198_v10 = vld [vmem:[%s449_s5 + $0x8] sm:$0xff]  ;;  %v199_v11 = vld [vmem:[%s449_s5 + $0x10] sm:$0xff]  ;;  %v344_v12 = vmov 0.0   ;;  %vm147_vm1 = vcmask 259072   ;;  %vm214_vm2 = vcmask 1041409  }
   0x4   :  { %323 = vmatprep.mubr.msk.f32.mxu0 %vm343_vm0, %v344_v12  ;;  %v327_v13 = vpack.c.bf16 %v198_v10, %v197_v9  ;;  %v200_v14 = vld [vmem:[%s449_s5 + $0x18] sm:$0xff]  ;;  %v306_v16 = vld [vmem:[%s450_s2] ss:$0 sm:$0xff]  ;;  %vm216_vm3 = vcmask 1042434   ;;  %vm218_vm4 = vcmask 1043459   ;;  %vm220_vm5 = vcmask 1044484  }
   0x5   :  { %v330_v15 = vpack.c.bf16 %v200_v14, %v199_v11  ;;  %v305_v17 = vld [vmem:[%s451_s1] ss:$0 sm:$0xff]  ;;  %vm222_vm6 = vcmask 1045509   ;;  %vm224_vm7 = vcmask 261120  }
   0x6   :  { %84 = vperm.xlu1 %338, %v30_v3   ;;  %43 = vperm.xlu0 %337, %v30_v3   ;;  %v307_v22 = vld [vmem:[%s452_s3] ss:$0 sm:$0xff] }
   0x7   :  { %328 = vmatpush3.bf16.msra.mxu0 %v327_v13  ;;  %v140_v29 = vld [vmem:[%s453_s4] sm:$0x3f] }
   0x8   :  { %329 = vmatprep.subr.bf16.mxu0 %v342_v8 }
   0xa   :  { %88 = vperm.xlu1 %338, %v31_v4   ;;  %48 = vperm.xlu0 %337, %v31_v4  }
   0xb   :  { %331 = vmatpush3.bf16.msra.mxu0 %v330_v15 }
   0xe   :  { %92 = vperm.xlu1 %338, %v32_v5   ;;  %53 = vperm.xlu0 %337, %v32_v5  }
  0x12   :  { %96 = vperm.xlu1 %338, %v33_v6   ;;  %58 = vperm.xlu0 %337, %v33_v6  }
  0x16   :  { %100 = vperm.xlu1 %338, %v34_v7   ;;  %63 = vperm.xlu0 %337, %v34_v7  }
  0x1a   :  { %339 = vset.pattern.permute.xlu0 %v340_v0 }
  0x81   :  { %v81_v18 = vpop.permute.xlu1 %80  ;;  %v39_v19 = vpop.permute.xlu0 %38 }
  0x82   :  { %v109_v20 = vmul.f32 %v306_v16, %v81_v18  ;;  %v72_v21 = vmul.f32 %v305_v17, %v39_v19 }
  0x84   :  { %v115_v23 = vadd.f32 %v109_v20, %v72_v21 }
  0x85   :  { %v85_v24 = vpop.permute.xlu1 %84  ;;  %v44_v25 = vpop.permute.xlu0 %43 }
  0x86   :  { %v128_v26 = vadd.f32 %v307_v22, %v115_v23  ;;  %v110_v27 = vmul.f32 %v306_v16, %v85_v24  ;;  %v73_v28 = vmul.f32 %v305_v17, %v44_v25 }
  0x88   :  { %v134_v30 = vmax.f32 %v128_v26, 0.0  ;;  %v116_v31 = vadd.f32 %v110_v27, %v73_v28 }
  0x89   :  { %v89_v32 = vpop.permute.xlu1 %88  ;;  %v49_v33 = vpop.permute.xlu0 %48 }
  0x8a   :  { %v141_v34 = vadd.f32 %v140_v29, %v134_v30  ;;  %v129_v35 = vadd.f32 %v307_v22, %v116_v31  ;;  %v111_v36 = vmul.f32 %v306_v16, %v89_v32  ;;  %v74_v37 = vmul.f32 %v305_v17, %v49_v33 }
  0x8c   :  { %v135_v38 = vmax.f32 %v129_v35, 0.0  ;;  %v117_v39 = vadd.f32 %v111_v36, %v74_v37  ;;  %v148_v40 = vsel %vm147_vm1, %v141_v34, 0.0 }
  0x8d   :  { %v93_v41 = vpop.permute.xlu1 %92  ;;  %v54_v42 = vpop.permute.xlu0 %53  ;;  %v149_v50 = vrot.slane %v148_v40, 4 }
  0x8e   :  { %v142_v43 = vadd.f32 %v140_v29, %v135_v38  ;;  %v130_v44 = vadd.f32 %v307_v22, %v117_v39  ;;  %v112_v45 = vmul.f32 %v306_v16, %v93_v41  ;;  %v75_v46 = vmul.f32 %v305_v17, %v54_v42 }
  0x8f   :  { %v150_v62 = vadd.f32 %v149_v50, %v148_v40 }
  0x90   :  { %v155_v47 = vsel %vm147_vm1, %v142_v43, 0.0  ;;  %v136_v48 = vmax.f32 %v130_v44, 0.0  ;;  %v118_v49 = vadd.f32 %v112_v45, %v75_v46 }
  0x91   :  { %v156_v51 = vrot.slane %v155_v47, 4  ;;  %v97_v52 = vpop.permute.xlu1 %96  ;;  %v59_v53 = vpop.permute.xlu0 %58  ;;  %v151_v11 = vrot.slane %v150_v62, 2 }
  0x92   :  { %v143_v54 = vadd.f32 %v140_v29, %v136_v48  ;;  %v131_v55 = vadd.f32 %v307_v22, %v118_v49  ;;  %v113_v56 = vmul.f32 %v306_v16, %v97_v52  ;;  %v76_v57 = vmul.f32 %v305_v17, %v59_v53 }
  0x93   :  { %v157_v58 = vadd.f32 %v156_v51, %v155_v47  ;;  %v152_v24 = vadd.f32 %v151_v11, %v150_v62 }
  0x94   :  { %v162_v59 = vsel %vm147_vm1, %v143_v54, 0.0  ;;  %v137_v60 = vmax.f32 %v131_v55, 0.0  ;;  %v119_v61 = vadd.f32 %v113_v56, %v76_v57  ;;  %v308_v57 = vld [vmem:[%s454_s6] ss:$0 sm:$0xff] }
  0x95   :  { %v163_v63 = vrot.slane %v162_v59, 4  ;;  %v101_v0 = vpop.permute.xlu1 %100  ;;  %v64_v1 = vpop.permute.xlu0 %63  ;;  %v158_v6 = vrot.slane %v157_v58, 2  ;;  %v153_v32 = vrot.slane %v152_v24, 1 }
  0x96   :  { %v144_v2 = vadd.f32 %v140_v29, %v137_v60  ;;  %v132_v3 = vadd.f32 %v307_v22, %v119_v61  ;;  %v114_v4 = vmul.f32 %v306_v16, %v101_v0  ;;  %v77_v5 = vmul.f32 %v305_v17, %v64_v1  ;;  %v298_v61 = vld [vmem:[%s455_s7] sm:$0x3f] }
  0x97   :  { %v164_v7 = vadd.f32 %v163_v63, %v162_v59  ;;  %v159_v18 = vadd.f32 %v158_v6, %v157_v58  ;;  %v154_v39 = vadd.f32 %v153_v32, %v152_v24 }
  0x98   :  { %v169_v8 = vsel %vm147_vm1, %v144_v2, 0.0  ;;  %v138_v9 = vmax.f32 %v132_v3, 0.0  ;;  %v120_v10 = vadd.f32 %v114_v4, %v77_v5 }
  0x99   :  { %v165_v12 = vrot.slane %v164_v7, 2  ;;  %v170_v13 = vrot.slane %v169_v8, 4  ;;  %v160_v26 = vrot.slane %v159_v18, 1  ;;  %v191_v46 = vmul.f32 0.16666667, %v154_v39 }
  0x9a   :  { %v145_v14 = vadd.f32 %v140_v29, %v138_v9  ;;  %v133_v15 = vadd.f32 %v307_v22, %v120_v10 }
  0x9b   :  { %v171_v19 = vadd.f32 %v170_v13, %v169_v8  ;;  %v166_v20 = vadd.f32 %v165_v12, %v164_v7  ;;  %v161_v35 = vadd.f32 %v160_v26, %v159_v18 }
  0x9c   :  { %v176_v21 = vsel %vm147_vm1, %v145_v14, 0.0  ;;  %v139_v23 = vmax.f32 %v133_v15, 0.0 }
  0x9d   :  { %v172_v16 = vrot.slane %v171_v19, 2  ;;  %v177_v17 = vrot.slane %v176_v21, 4  ;;  %v167_v30 = vrot.slane %v166_v20, 1  ;;  %v192_v43 = vmul.f32 0.16666667, %v161_v35 }
  0x9e   :  { %v146_v25 = vadd.f32 %v140_v29, %v139_v23 }
  0x9f   :  { %v173_v27 = vadd.f32 %v172_v16, %v171_v19  ;;  %v178_v28 = vadd.f32 %v177_v17, %v176_v21  ;;  %v168_v38 = vadd.f32 %v167_v30, %v166_v20  ;;  %v215_v51 = vsel %vm214_vm2, %v192_v43, %v191_v46 }
  0xa0   :  { %v183_v31 = vsel %vm147_vm1, %v146_v25, 0.0 }
  0xa1   :  { %v174_v33 = vrot.slane %v173_v27, 1  ;;  %v179_v34 = vrot.slane %v178_v28, 2  ;;  %v184_v22 = vrot.slane %v183_v31, 4  ;;  %v193_v45 = vmul.f32 0.16666667, %v168_v38 }
  0xa3   :  { %v180_v36 = vadd.f32 %v179_v34, %v178_v28  ;;  %v185_v37 = vadd.f32 %v184_v22, %v183_v31  ;;  %v175_v41 = vadd.f32 %v174_v33, %v173_v27  ;;  %v217_v52 = vsel %vm216_vm3, %v193_v45, %v215_v51 }
  0xa5   :  { %v186_v40 = vrot.slane %v185_v37, 2  ;;  %v181_v42 = vrot.slane %v180_v36, 1  ;;  %v194_v48 = vmul.f32 0.16666667, %v175_v41 }
  0xa7   :  { %v182_v29 = vadd.f32 %v181_v42, %v180_v36  ;;  %v187_v44 = vadd.f32 %v186_v40, %v185_v37  ;;  %v219_v54 = vsel %vm218_vm4, %v194_v48, %v217_v52 }
  0xa9   :  { %v188_v47 = vrot.slane %v187_v44, 1  ;;  %v195_v49 = vmul.f32 0.16666667, %v182_v29 }
  0xab   :  { %v189_v50 = vadd.f32 %v188_v47, %v187_v44  ;;  %v221_v55 = vsel %vm220_vm5, %v195_v49, %v219_v54 }
  0xad   :  { %v196_v53 = vmul.f32 0.16666667, %v189_v50 }
  0xaf   :  { %v223_v56 = vsel %vm222_vm6, %v196_v53, %v221_v55 }
  0xb0   :  { %324 = vmatmul.mubr.msk.f32.vlgmr.msra.gmra.mrb[0].mxu0 %vm224_vm7, %v223_v56 }
 0x183   :  { %v293_v58 = vpop.f32.mrb[0].mxu0 }
 0x184   :  { %v294_v59 = vadd.f32 %v308_v57, %v293_v58  ;;  %v325_v60 = vpop.f32.mrb[1].mxu0 }
 0x186   :  { %v297_v62 = vmax.f32 %v294_v59, 0.0 }
 0x188   :  { %v299_v63 = vadd.f32 %v298_v61, %v297_v62 }
 0x18a   :  { %300 = vst.msk [vmem:[%s456_s8] sm:$0x3f] %vm147_vm1, %v299_v63 }

// kernel: mage_forward.12
= control target key start
LH: loop header
LB: loop body
LE: loop exit
PB: predicated region body
PF: predicated region fallthrough
CT: control target
= control target key end

     0   :  { %v459_v0 = vmov 1   ;;  %v460_v1 = vmov 0   ;;  %vm211_vm0 = vcmask 261120   ;;  %vm314_vm1 = vcmask 1041409   ;;  %s641_s0 = inlined_call_operand.vmem [shape: f32[10,8,2], index: 0, kind: input, shape index: {}]   ;;  %s642_s5 = inlined_call_operand.vmem [shape: f32[32,32], index: 5, kind: input, shape index: {}]   ;;  %s643_s2 = inlined_call_operand.vmem [shape: f32[1,1,32], index: 2, kind: input, shape index: {}]   ;;  %s644_s1 = inlined_call_operand.vmem [shape: f32[1,1,32], index: 1, kind: input, shape index: {}]   ;;  %s645_s3 = inlined_call_operand.vmem [shape: f32[1,1,32], index: 3, kind: input, shape index: {}]   ;;  %s646_s4 = inlined_call_operand.vmem [shape: f32[1,8,32], index: 4, kind: input, shape index: {}]   ;;  %s647_s6 = inlined_call_operand.vmem [shape: f32[1,32], index: 6, kind: input, shape index: {}]   ;;  %s648_s7 = inlined_call_operand.vmem [shape: f32[10,32], index: 7, kind: input, shape index: {}]   ;;  %s649_s8 = inlined_call_operand.vmem [shape: f32[10,32], index: 8, kind: output, shape index: {}]  }
   0x1   :  { %455 = vset.pattern.permute.xlu1 %v459_v0  ;;  %454 = vset.pattern.permute.xlu0 %v460_v1  ;;  %v29_v2 = vld [vmem:[%s641_s0] sm:$0xff]  ;;  %v30_v3 = vld [vmem:[%s641_s0 + $0x8] sm:$0xff]  ;;  %v31_v4 = vld [vmem:[%s641_s0 + $0x10] sm:$0xff]  ;;  %vm316_vm2 = vcmask 1042434   ;;  %vm318_vm3 = vcmask 1043459   ;;  %vm320_vm4 = vcmask 1044484  }
   0x2   :  { %108 = vperm.xlu1 %455, %v29_v2   ;;  %42 = vperm.xlu0 %454, %v29_v2   ;;  %v32_v5 = vld [vmem:[%s641_s0 + $0x18] sm:$0xff]  ;;  %v33_v6 = vld [vmem:[%s641_s0 + $0x20] sm:$0xff]  ;;  %v34_v7 = vld [vmem:[%s641_s0 + $0x28] sm:$0xff]  ;;  %vm322_vm5 = vcmask 1045509   ;;  %vm324_vm6 = vcmask 1046534   ;;  %vm326_vm7 = vcmask 1047559  }
   0x3   :  { %v35_v8 = vld [vmem:[%s641_s0 + $0x30] sm:$0xff]  ;;  %v36_v9 = vld [vmem:[%s641_s0 + $0x38] sm:$0xff]  ;;  %v37_v10 = vld [vmem:[%s641_s0 + $0x40] sm:$0xff]  ;;  %vm415_vm8 = vcmask 254976  }
   0x4   :  { %v38_v11 = vld [vmem:[%s641_s0 + $0x48] sm:$0xff]  ;;  %v293_v12 = vld [vmem:[%s642_s5] sm:$0xff]  ;;  %v295_v14 = vld [vmem:[%s642_s5 + $0x10] sm:$0xff] }
   0x5   :  { %v294_v13 = vld [vmem:[%s642_s5 + $0x8] sm:$0xff]  ;;  %v296_v16 = vld [vmem:[%s642_s5 + $0x18] sm:$0xff]  ;;  %v551_v18 = vld [vmem:[%s643_s2] ss:$0 sm:$0xff] }
   0x6   :  { %112 = vperm.xlu1 %455, %v30_v3   ;;  %47 = vperm.xlu0 %454, %v30_v3   ;;  %v444_v15 = vpack.c.bf16 %v294_v13, %v293_v12  ;;  %v448_v17 = vpack.c.bf16 %v296_v16, %v295_v14  ;;  %v556_v19 = vld [vmem:[%s644_s1] ss:$0 sm:$0xff] }
   0x7   :  { %v563_v24 = vld [vmem:[%s645_s3] ss:$0 sm:$0xff] }
   0x8   :  { %445 = vmatprep.subr.bf16.mxu0 %v444_v15  ;;  %v571_v35 = vld [vmem:[%s646_s4] sm:$0xff] }
   0x9   :  { %447 = vmatpush3.bf16.msra.mxu0 %v444_v15 }
   0xa   :  { %116 = vperm.xlu1 %455, %v31_v4   ;;  %52 = vperm.xlu0 %454, %v31_v4  }
   0xb   :  { %449 = vmatprep.subr.bf16.mxu0 %v448_v17 }
   0xd   :  { %451 = vmatpush3.bf16.msra.mxu0 %v448_v17 }
   0xe   :  { %120 = vperm.xlu1 %455, %v32_v5   ;;  %57 = vperm.xlu0 %454, %v32_v5  }
  0x12   :  { %124 = vperm.xlu1 %455, %v33_v6   ;;  %62 = vperm.xlu0 %454, %v33_v6  }
  0x16   :  { %128 = vperm.xlu1 %455, %v34_v7   ;;  %67 = vperm.xlu0 %454, %v34_v7  }
  0x1a   :  { %132 = vperm.xlu1 %455, %v35_v8   ;;  %72 = vperm.xlu0 %454, %v35_v8  }
  0x1e   :  { %136 = vperm.xlu1 %455, %v36_v9   ;;  %77 = vperm.xlu0 %454, %v36_v9  }
  0x22   :  { %456 = vset.pattern.permute.xlu1 %v460_v1  ;;  %82 = vperm.xlu0 %454, %v37_v10  }
  0x23   :  { %87 = vperm.xlu1 %456, %v38_v11  }
  0x26   :  { %457 = vset.pattern.permute.xlu0 %v459_v0 }
  0x27   :  { %458 = vset.pattern.permute.xlu1 %v459_v0  ;;  %140 = vperm.xlu0 %457, %v37_v10  }
  0x28   :  { %144 = vperm.xlu1 %458, %v38_v11  }
  0x81   :  { %v109_v20 = vpop.permute.xlu1 %108  ;;  %v43_v21 = vpop.permute.xlu0 %42 }
  0x82   :  { %v153_v22 = vmul.f32 %v551_v18, %v109_v20  ;;  %v96_v23 = vmul.f32 %v556_v19, %v43_v21 }
  0x84   :  { %v163_v25 = vadd.f32 %v153_v22, %v96_v23 }
  0x85   :  { %v113_v26 = vpop.permute.xlu1 %112  ;;  %v48_v27 = vpop.permute.xlu0 %47 }
  0x86   :  { %v180_v28 = vadd.f32 %v563_v24, %v163_v25  ;;  %v154_v29 = vmul.f32 %v551_v18, %v113_v26  ;;  %v97_v30 = vmul.f32 %v556_v19, %v48_v27 }
  0x88   :  { %v164_v31 = vadd.f32 %v154_v29, %v97_v30  ;;  %v190_v32 = vmax.f32 %v180_v28, 0.0 }
  0x89   :  { %v117_v33 = vpop.permute.xlu1 %116  ;;  %v53_v34 = vpop.permute.xlu0 %52 }
  0x8a   :  { %v181_v36 = vadd.f32 %v563_v24, %v164_v31  ;;  %v155_v37 = vmul.f32 %v551_v18, %v117_v33  ;;  %v98_v38 = vmul.f32 %v556_v19, %v53_v34  ;;  %v201_v41 = vadd.f32 %v571_v35, %v190_v32 }
  0x8c   :  { %v191_v39 = vmax.f32 %v181_v36, 0.0  ;;  %v165_v40 = vadd.f32 %v155_v37, %v98_v38  ;;  %v212_v51 = vsel %vm211_vm0, %v201_v41, 0.0 }
  0x8d   :  { %v121_v42 = vpop.permute.xlu1 %120  ;;  %v58_v43 = vpop.permute.xlu0 %57  ;;  %v213_v59 = vrot.slane %v212_v51, 4 }
  0x8e   :  { %v202_v44 = vadd.f32 %v571_v35, %v191_v39  ;;  %v182_v45 = vadd.f32 %v563_v24, %v165_v40  ;;  %v156_v46 = vmul.f32 %v551_v18, %v121_v42  ;;  %v99_v47 = vmul.f32 %v556_v19, %v58_v43 }
  0x8f   :  { %v214_v7 = vadd.f32 %v213_v59, %v212_v51 }
  0x90   :  { %v219_v48 = vsel %vm211_vm0, %v202_v44, 0.0  ;;  %v192_v49 = vmax.f32 %v182_v45, 0.0  ;;  %v166_v50 = vadd.f32 %v156_v46, %v99_v47 }
  0x91   :  { %v220_v52 = vrot.slane %v219_v48, 4  ;;  %v125_v53 = vpop.permute.xlu1 %124  ;;  %v63_v54 = vpop.permute.xlu0 %62  ;;  %v215_v23 = vrot.slane %v214_v7, 2 }
  0x92   :  { %v203_v55 = vadd.f32 %v571_v35, %v192_v49  ;;  %v183_v56 = vadd.f32 %v563_v24, %v166_v50  ;;  %v157_v57 = vmul.f32 %v551_v18, %v125_v53  ;;  %v100_v58 = vmul.f32 %v556_v19, %v63_v54 }
  0x93   :  { %v221_v63 = vadd.f32 %v220_v52, %v219_v48  ;;  %v216_v43 = vadd.f32 %v215_v23, %v214_v7 }
  0x94   :  { %v226_v60 = vsel %vm211_vm0, %v203_v55, 0.0  ;;  %v193_v61 = vmax.f32 %v183_v56, 0.0  ;;  %v167_v62 = vadd.f32 %v157_v57, %v100_v58 }
  0x95   :  { %v227_v0 = vrot.slane %v226_v60, 4  ;;  %v129_v1 = vpop.permute.xlu1 %128  ;;  %v68_v2 = vpop.permute.xlu0 %67  ;;  %v222_v11 = vrot.slane %v221_v63, 2  ;;  %v217_v57 = vrot.slane %v216_v43, 1 }
  0x96   :  { %v204_v3 = vadd.f32 %v571_v35, %v193_v61  ;;  %v184_v4 = vadd.f32 %v563_v24, %v167_v62  ;;  %v158_v5 = vmul.f32 %v551_v18, %v129_v1  ;;  %v101_v6 = vmul.f32 %v556_v19, %v68_v2 }
  0x97   :  { %v228_v12 = vadd.f32 %v227_v0, %v226_v60  ;;  %v223_v28 = vadd.f32 %v222_v11, %v221_v63 }
  0x98   :  { %v233_v8 = vsel %vm211_vm0, %v204_v3, 0.0  ;;  %v194_v9 = vmax.f32 %v184_v4, 0.0  ;;  %v168_v10 = vadd.f32 %v158_v5, %v101_v6 }
  0x99   :  { %v234_v13 = vrot.slane %v233_v8, 4  ;;  %v133_v14 = vpop.permute.xlu1 %132  ;;  %v73_v15 = vpop.permute.xlu0 %72  ;;  %v229_v29 = vrot.slane %v228_v12, 2  ;;  %v224_v44 = vrot.slane %v223_v28, 1 }
  0x9a   :  { %v205_v16 = vadd.f32 %v571_v35, %v194_v9  ;;  %v185_v17 = vadd.f32 %v563_v24, %v168_v10  ;;  %v159_v20 = vmul.f32 %v551_v18, %v133_v14  ;;  %v102_v21 = vmul.f32 %v556_v19, %v73_v15 }
  0x9b   :  { %v235_v22 = vadd.f32 %v234_v13, %v233_v8  ;;  %v230_v48 = vadd.f32 %v229_v29, %v228_v12  ;;  %v225_v60 = vadd.f32 %v224_v44, %v223_v28  ;;  %v218_v14 = vadd.f32 %v217_v57, %v216_v43 }
  0x9c   :  { %v240_v25 = vsel %vm211_vm0, %v205_v16, 0.0  ;;  %v195_v26 = vmax.f32 %v185_v17, 0.0  ;;  %v169_v27 = vadd.f32 %v159_v20, %v102_v21 }
  0x9d   :  { %v236_v30 = vrot.slane %v235_v22, 2  ;;  %v241_v31 = vrot.slane %v240_v25, 4  ;;  %v137_v32 = vpop.permute.xlu1 %136  ;;  %v78_v33 = vpop.permute.xlu0 %77  ;;  %v231_v61 = vrot.slane %v230_v48, 1  ;;  %v284_v23 = vmul.f32 0.125, %v225_v60 }
  0x9e   :  { %v206_v34 = vadd.f32 %v571_v35, %v195_v26  ;;  %v186_v36 = vadd.f32 %v563_v24, %v169_v27  ;;  %v160_v37 = vmul.f32 %v551_v18, %v137_v32  ;;  %v103_v38 = vmul.f32 %v556_v19, %v78_v33 }
  0x9f   :  { %v242_v39 = vadd.f32 %v241_v31, %v240_v25  ;;  %v237_v49 = vadd.f32 %v236_v30, %v235_v22  ;;  %v232_v15 = vadd.f32 %v231_v61, %v230_v48  ;;  %v283_v29 = vmul.f32 0.125, %v218_v14 }
  0xa0   :  { %v247_v40 = vsel %vm211_vm0, %v206_v34, 0.0  ;;  %v196_v41 = vmax.f32 %v186_v36, 0.0  ;;  %v170_v42 = vadd.f32 %v160_v37, %v103_v38 }
  0xa1   :  { %v243_v45 = vrot.slane %v242_v39, 2  ;;  %v248_v46 = vrot.slane %v247_v40, 4  ;;  %v83_v47 = vpop.permute.xlu0 %82  ;;  %v238_v62 = vrot.slane %v237_v49, 1  ;;  %v285_v30 = vmul.f32 0.125, %v232_v15 }
  0xa2   :  { %v207_v50 = vadd.f32 %v571_v35, %v196_v41  ;;  %v187_v51 = vadd.f32 %v563_v24, %v170_v42  ;;  %v88_v52 = vpop.permute.xlu1 %87  ;;  %v104_v2 = vmul.f32 %v556_v19, %v83_v47  ;;  %v315_v41 = vsel %vm314_vm1, %v284_v23, %v283_v29 }
  0xa3   :  { %v249_v53 = vadd.f32 %v248_v46, %v247_v40  ;;  %v244_v54 = vadd.f32 %v243_v45, %v242_v39  ;;  %v105_v8 = vmul.f32 %v556_v19, %v88_v52  ;;  %v239_v17 = vadd.f32 %v238_v62, %v237_v49 }
  0xa4   :  { %v254_v55 = vsel %vm211_vm0, %v207_v50, 0.0  ;;  %v197_v56 = vmax.f32 %v187_v51, 0.0  ;;  %v317_v45 = vsel %vm316_vm2, %v285_v30, %v315_v41 }
  0xa5   :  { %v250_v58 = vrot.slane %v249_v53, 2  ;;  %v255_v59 = vrot.slane %v254_v55, 4  ;;  %v245_v6 = vrot.slane %v244_v54, 1  ;;  %v286_v36 = vmul.f32 0.125, %v239_v17 }
  0xa6   :  { %v208_v63 = vadd.f32 %v571_v35, %v197_v56  ;;  %v141_v0 = vpop.permute.xlu0 %140 }
  0xa7   :  { %v256_v1 = vadd.f32 %v255_v59, %v254_v55  ;;  %v161_v3 = vmul.f32 %v551_v18, %v141_v0  ;;  %v145_v4 = vpop.permute.xlu1 %144  ;;  %v251_v5 = vadd.f32 %v250_v58, %v249_v53  ;;  %v246_v26 = vadd.f32 %v245_v6, %v244_v54  ;;  %v411_v6 = vld [vmem:[%s648_s7 + $0x8] sm:$0x3] }
  0xa8   :  { %v261_v7 = vsel %vm211_vm0, %v208_v63, 0.0  ;;  %v162_v9 = vmul.f32 %v551_v18, %v145_v4  ;;  %v319_v48 = vsel %vm318_vm3, %v286_v36, %v317_v45 }
  0xa9   :  { %v262_v10 = vrot.slane %v261_v7, 4  ;;  %v171_v11 = vadd.f32 %v161_v3, %v104_v2  ;;  %v252_v12 = vrot.slane %v251_v5, 1  ;;  %v257_v13 = vrot.slane %v256_v1, 2  ;;  %v424_v2 = vld [vmem:[%s647_s6] ss:$0 sm:$0xff] }
  0xaa   :  { %v172_v16 = vadd.f32 %v162_v9, %v105_v8  ;;  %v287_v38 = vmul.f32 0.125, %v246_v26  ;;  %v410_v9 = vld [vmem:[%s648_s7] sm:$0xff] }
  0xab   :  { %v188_v20 = vadd.f32 %v563_v24, %v171_v11  ;;  %v258_v21 = vadd.f32 %v257_v13, %v256_v1  ;;  %v263_v22 = vadd.f32 %v262_v10, %v261_v7  ;;  %v253_v18 = vadd.f32 %v252_v12, %v251_v5 }
  0xac   :  { %v189_v25 = vadd.f32 %v563_v24, %v172_v16  ;;  %v321_v49 = vsel %vm320_vm4, %v287_v38, %v319_v48 }
  0xad   :  { %v198_v19 = vmax.f32 %v188_v20, 0.0  ;;  %v259_v27 = vrot.slane %v258_v21, 1  ;;  %v264_v28 = vrot.slane %v263_v22, 2  ;;  %v288_v40 = vmul.f32 0.125, %v253_v18 }
  0xae   :  { %v199_v31 = vmax.f32 %v189_v25, 0.0 }
  0xaf   :  { %v209_v32 = vadd.f32 %v571_v35, %v198_v19  ;;  %v260_v33 = vadd.f32 %v259_v27, %v258_v21  ;;  %v265_v34 = vadd.f32 %v264_v28, %v263_v22  ;;  %v323_v52 = vsel %vm322_vm5, %v288_v40, %v321_v49 }
  0xb0   :  { %v210_v37 = vadd.f32 %v571_v35, %v199_v31 }
  0xb1   :  { %v268_v24 = vsel %vm211_vm0, %v209_v32, 0.0  ;;  %v266_v39 = vrot.slane %v265_v34, 1  ;;  %v289_v44 = vmul.f32 0.125, %v260_v33 }
  0xb2   :  { %v269_v42 = vrot.slane %v268_v24, 4  ;;  %v275_v43 = vsel %vm211_vm0, %v210_v37, 0.0 }
  0xb3   :  { %v276_v46 = vrot.slane %v275_v43, 4  ;;  %v267_v47 = vadd.f32 %v266_v39, %v265_v34  ;;  %v325_v54 = vsel %vm324_vm6, %v289_v44, %v323_v52 }
  0xb4   :  { %v270_v35 = vadd.f32 %v269_v42, %v268_v24 }
  0xb5   :  { %v277_v50 = vadd.f32 %v276_v46, %v275_v43  ;;  %v290_v51 = vmul.f32 0.125, %v267_v47 }
  0xb6   :  { %v271_v53 = vrot.slane %v270_v35, 2 }
  0xb7   :  { %v278_v55 = vrot.slane %v277_v50, 2  ;;  %v327_v56 = vsel %vm326_vm7, %v290_v51, %v325_v54 }
  0xb8   :  { %441 = vmatprep.mubr.msk.f32.mxu0 %vm211_vm0, %v327_v56  ;;  %v272_v57 = vadd.f32 %v271_v53, %v270_v35 }
  0xb9   :  { %v279_v58 = vadd.f32 %v278_v55, %v277_v50 }
  0xba   :  { %v273_v59 = vrot.slane %v272_v57, 1 }
  0xbb   :  { %v280_v60 = vrot.slane %v279_v58, 1 }
  0xbc   :  { %v274_v61 = vadd.f32 %v273_v59, %v272_v57 }
  0xbd   :  { %v281_v62 = vadd.f32 %v280_v60, %v279_v58 }
  0xbe   :  { %v291_v63 = vmul.f32 0.125, %v274_v61 }
  0xbf   :  { %v292_v0 = vmul.f32 0.125, %v281_v62 }
  0xc1   :  { %v328_v1 = vsel %vm314_vm1, %v292_v0, %v291_v63 }
  0xc2   :  { %442 = vmatmul.mubr.msk.f32.vlgmr.msra.gmra.mrb[0].mxu0 %vm211_vm0, %v328_v1 }
 0x195   :  { %v443_v3 = vpop.f32.mrb[0].mxu0 }
 0x196   :  { %v405_v4 = vadd.f32 %v443_v3, %v424_v2  ;;  %v399_v5 = vpop.f32.mrb[1].mxu0 }
 0x197   :  { %v400_v7 = vadd.f32 %v424_v2, %v399_v5 }
 0x198   :  { %v409_v8 = vmax.f32 %v405_v4, 0.0 }
 0x199   :  { %v408_v10 = vmax.f32 %v400_v7, 0.0 }
 0x19a   :  { %v413_v11 = vadd.f32 %v411_v6, %v409_v8 }
 0x19b   :  { %v412_v12 = vadd.f32 %v410_v9, %v408_v10 }
 0x19c   :  { %416 = vst.msk [vmem:[%s649_s8 + $0x8] sm:$0x3] %vm415_vm8, %v413_v11 }
 0x19d   :  { %414 = vst.msk [vmem:[%s649_s8] sm:$0xff] %vm211_vm0, %v412_v12 }

// kernel: mage_forward.16
= control target key start
LH: loop header
LB: loop body
LE: loop exit
PB: predicated region body
PF: predicated region fallthrough
CT: control target
= control target key end

     0   :  { %vm24_vm0 = vcmask 261120   ;;  %vm28_vm1 = vcmask 257024   ;;  %vm165_vm2 = vcmask 125952   ;;  %vm163_vm3 = vcmask 130048   ;;  %s272_s0 = inlined_call_operand.vmem [shape: f32[12,32], index: 0, kind: input, shape index: {}]   ;;  %s273_s3 = inlined_call_operand.vmem [shape: f32[32,16], index: 3, kind: input, shape index: {}]   ;;  %s274_s1 = inlined_call_operand.vmem [shape: f32[1,32], index: 1, kind: input, shape index: {}]   ;;  %s275_s2 = inlined_call_operand.vmem [shape: f32[1,32], index: 2, kind: input, shape index: {}]   ;;  %s276_s4 = inlined_call_operand.vmem [shape: f32[1,16], index: 4, kind: input, shape index: {}]   ;;  %s277_s5 = inlined_call_operand.vmem [shape: f32[12,16], index: 5, kind: output, shape index: {}]  }
   0x1   :  { %v20_v0 = vld [vmem:[%s272_s0] sm:$0xff]  ;;  %v21_v1 = vld [vmem:[%s272_s0 + $0x8] sm:$0xf]  ;;  %v71_v16 = vld [vmem:[%s273_s3 + $0x10] sm:$0xff] }
   0x2   :  { %v25_v2 = vsel %vm24_vm0, %v20_v0, 0.0  ;;  %v29_v3 = vsel %vm28_vm1, %v21_v1, 0.0  ;;  %v69_v14 = vld [vmem:[%s273_s3] sm:$0xff]  ;;  %v70_v15 = vld [vmem:[%s273_s3 + $0x8] sm:$0xff]  ;;  %v72_v18 = vld [vmem:[%s273_s3 + $0x18] sm:$0xff] }
   0x3   :  { %26 = vadd.xlane.f32.xlu0 %v25_v2  ;;  %v193_v17 = vpack.c.bf16 %v70_v15, %v69_v14  ;;  %v197_v19 = vpack.c.bf16 %v72_v18, %v71_v16  ;;  %v171_v27 = vld [vmem:[%s274_s1] ss:$0 sm:$0xff] }
   0x4   :  { %v172_v29 = vld [vmem:[%s275_s2] ss:$0 sm:$0xff] }
   0x5   :  { %194 = vmatprep.subr.bf16.mxu0 %v193_v17  ;;  %v173_v36 = vld [vmem:[%s276_s4] ss:$0 sm:$0xff] }
   0x6   :  { %196 = vmatpush3.bf16.msra.mxu0 %v193_v17 }
   0x7   :  { %30 = vadd.xlane.f32.xlu0 %v29_v3  ;;  %198 = vmatprep.subr.bf16.mxu0 %v197_v19 }
   0xa   :  { %200 = vmatpush3.bf16.msra.mxu0 %v197_v19 }
  0x90   :  { %v27_v4 = vpop.xlane.xlu0 %26 }
  0x91   :  { %v33_v5 = vmul.f32 0.03125, %v27_v4 }
  0x93   :  { %v35_v6 = vsub.f32 %v20_v0, %v33_v5 }
  0x94   :  { %v31_v7 = vpop.xlane.xlu0 %30 }
  0x95   :  { %v34_v8 = vmul.f32 0.03125, %v31_v7  ;;  %v37_v9 = vmul.f32 %v35_v6, %v35_v6 }
  0x97   :  { %v36_v10 = vsub.f32 %v21_v1, %v34_v8  ;;  %v39_v11 = vsel %vm24_vm0, %v37_v9, 0.0 }
  0x98   :  { %40 = vadd.xlane.f32.xlu1 %v39_v11 }
  0x99   :  { %v38_v12 = vmul.f32 %v36_v10, %v36_v10 }
  0x9b   :  { %v42_v13 = vsel %vm28_vm1, %v38_v12, 0.0 }
  0x9c   :  { %43 = vadd.xlane.f32.xlu1 %v42_v13 }
 0x125   :  { %v41_v20 = vpop.xlane.xlu1 %40 }
 0x126   :  { %v45_v21 = vmul.f32 0.03125, %v41_v20 }
 0x128   :  { %v47_v22 = vadd.f32 1e-05, %v45_v21 }
 0x129   :  { %v44_v23 = vpop.xlane.xlu1 %43 }
 0x12a   :  { %201 = vrsqrt.f32 %v47_v22  ;;  %v46_v24 = vmul.f32 0.03125, %v44_v23 }
 0x12c   :  { %v48_v25 = vadd.f32 1e-05, %v46_v24 }
 0x12e   :  { %203 = vrsqrt.f32 %v48_v25 }
 0x134   :  { %v202_v26 = vpop.eup %201 }
 0x135   :  { %v51_v28 = vmul.f32 %v202_v26, %v35_v6 }
 0x137   :  { %v59_v30 = vmul.f32 %v171_v27, %v51_v28 }
 0x138   :  { %v204_v31 = vpop.eup %203 }
 0x139   :  { %v52_v32 = vmul.f32 %v204_v31, %v36_v10  ;;  %v67_v33 = vadd.f32 %v172_v29, %v59_v30 }
 0x13b   :  { %v60_v34 = vmul.f32 %v171_v27, %v52_v32  ;;  %190 = vmatprep.mubr.msk.f32.mxu0 %vm24_vm0, %v67_v33 }
 0x13d   :  { %v68_v35 = vadd.f32 %v172_v29, %v60_v34 }
 0x13f   :  { %191 = vmatmul.mubr.msk.f32.vlgmr.msra.gmra.mrb[0].mxu0 %vm24_vm0, %v68_v35 }
 0x212   :  { %v192_v37 = vpop.f32.mrb[0].mxu0 }
 0x213   :  { %v158_v38 = vadd.f32 %v192_v37, %v173_v36  ;;  %v152_v39 = vpop.f32.mrb[1].mxu0 }
 0x214   :  { %v153_v40 = vadd.f32 %v173_v36, %v152_v39 }
 0x215   :  { %v162_v41 = vmax.f32 %v158_v38, 0.0 }
 0x216   :  { %v161_v42 = vmax.f32 %v153_v40, 0.0 }
 0x217   :  { %166 = vst.msk [vmem:[%s277_s5 + $0x8] sm:$0xf] %vm165_vm2, %v162_v41 }
 0x218   :  { %164 = vst.msk [vmem:[%s277_s5] sm:$0xff] %vm163_vm3, %v161_v42 }

// kernel: mage_forward.20
= control target key start
LH: loop header
LB: loop body
LE: loop exit
PB: predicated region body
PF: predicated region fallthrough
CT: control target
= control target key end

     0   :  { %vm24_vm0 = vcmask 130048   ;;  %s253_s0 = inlined_call_operand.vmem [shape: f32[16,16], index: 0, kind: input, shape index: {}]   ;;  %s254_s3 = inlined_call_operand.vmem [shape: f32[16,16], index: 3, kind: input, shape index: {}]   ;;  %s255_s1 = inlined_call_operand.vmem [shape: f32[1,16], index: 1, kind: input, shape index: {}]   ;;  %s256_s2 = inlined_call_operand.vmem [shape: f32[1,16], index: 2, kind: input, shape index: {}]   ;;  %s257_s4 = inlined_call_operand.vmem [shape: f32[1,16], index: 4, kind: input, shape index: {}]   ;;  %s258_s5 = inlined_call_operand.vmem [shape: f32[16,16], index: 5, kind: output, shape index: {}]  }
   0x1   :  { %v20_v0 = vld [vmem:[%s253_s0] sm:$0xff]  ;;  %v21_v1 = vld [vmem:[%s253_s0 + $0x8] sm:$0xff] }
   0x2   :  { %v25_v2 = vsel %vm24_vm0, %v20_v0, 0.0  ;;  %v28_v3 = vsel %vm24_vm0, %v21_v1, 0.0  ;;  %v68_v14 = vld [vmem:[%s254_s3] sm:$0xff]  ;;  %v69_v15 = vld [vmem:[%s254_s3 + $0x8] sm:$0xff] }
   0x3   :  { %26 = vadd.xlane.f32.xlu0 %v25_v2  ;;  %v180_v16 = vpack.c.bf16 %v69_v15, %v68_v14  ;;  %v164_v24 = vld [vmem:[%s255_s1] ss:$0 sm:$0xff] }
   0x4   :  { %v165_v26 = vld [vmem:[%s256_s2] ss:$0 sm:$0xff] }
   0x5   :  { %181 = vmatprep.subr.bf16.mxu0 %v180_v16  ;;  %v166_v33 = vld [vmem:[%s257_s4] ss:$0 sm:$0xff] }
   0x6   :  { %183 = vmatpush3.bf16.msra.mxu0 %v180_v16 }
   0x7   :  { %29 = vadd.xlane.f32.xlu0 %v28_v3 }
  0x90   :  { %v27_v4 = vpop.xlane.xlu0 %26 }
  0x91   :  { %v32_v5 = vmul.f32 0.0625, %v27_v4 }
  0x93   :  { %v34_v6 = vsub.f32 %v20_v0, %v32_v5 }
  0x94   :  { %v30_v7 = vpop.xlane.xlu0 %29 }
  0x95   :  { %v33_v8 = vmul.f32 0.0625, %v30_v7  ;;  %v36_v9 = vmul.f32 %v34_v6, %v34_v6 }
  0x97   :  { %v35_v10 = vsub.f32 %v21_v1, %v33_v8  ;;  %v38_v11 = vsel %vm24_vm0, %v36_v9, 0.0 }
  0x98   :  { %39 = vadd.xlane.f32.xlu1 %v38_v11 }
  0x99   :  { %v37_v12 = vmul.f32 %v35_v10, %v35_v10 }
  0x9b   :  { %v41_v13 = vsel %vm24_vm0, %v37_v12, 0.0 }
  0x9c   :  { %42 = vadd.xlane.f32.xlu1 %v41_v13 }
 0x125   :  { %v40_v17 = vpop.xlane.xlu1 %39 }
 0x126   :  { %v44_v18 = vmul.f32 0.0625, %v40_v17 }
 0x128   :  { %v46_v19 = vadd.f32 1e-05, %v44_v18 }
 0x129   :  { %v43_v20 = vpop.xlane.xlu1 %42 }
 0x12a   :  { %184 = vrsqrt.f32 %v46_v19  ;;  %v45_v21 = vmul.f32 0.0625, %v43_v20 }
 0x12c   :  { %v47_v22 = vadd.f32 1e-05, %v45_v21 }
 0x12e   :  { %186 = vrsqrt.f32 %v47_v22 }
 0x134   :  { %v185_v23 = vpop.eup %184 }
 0x135   :  { %v50_v25 = vmul.f32 %v185_v23, %v34_v6 }
 0x137   :  { %v58_v27 = vmul.f32 %v164_v24, %v50_v25 }
 0x138   :  { %v187_v28 = vpop.eup %186 }
 0x139   :  { %v51_v29 = vmul.f32 %v187_v28, %v35_v10  ;;  %v66_v30 = vadd.f32 %v165_v26, %v58_v27 }
 0x13b   :  { %v59_v31 = vmul.f32 %v164_v24, %v51_v29  ;;  %177 = vmatprep.mubr.msk.f32.mxu0 %vm24_vm0, %v66_v30 }
 0x13d   :  { %v67_v32 = vadd.f32 %v165_v26, %v59_v31 }
 0x13f   :  { %178 = vmatmul.mubr.msk.f32.vlgmr.msra.gmra.mrb[0].mxu0 %vm24_vm0, %v67_v32 }
 0x212   :  { %v179_v34 = vpop.f32.mrb[0].mxu0 }
 0x213   :  { %v155_v35 = vadd.f32 %v179_v34, %v166_v33  ;;  %v149_v36 = vpop.f32.mrb[1].mxu0 }
 0x214   :  { %v150_v37 = vadd.f32 %v166_v33, %v149_v36 }
 0x215   :  { %159 = vst.msk [vmem:[%s258_s5 + $0x8] sm:$0xff] %vm24_vm0, %v155_v35 }
 0x216   :  { %158 = vst.msk [vmem:[%s258_s5] sm:$0xff] %vm24_vm0, %v150_v37 }

// kernel: mage_forward.17
= control target key start
LH: loop header
LB: loop body
LE: loop exit
PB: predicated region body
PF: predicated region fallthrough
CT: control target
= control target key end

     0   :  { %vm23_vm0 = vcmask 259072   ;;  %v175_v7 = vmov 0.0|0.0   ;;  %vm176_vm1 = vmmov 0   ;;  %v177_v11 = vmov 0.0   ;;  %s235_s0 = inlined_call_operand.vmem [shape: f32[6,32], index: 0, kind: input, shape index: {}]   ;;  %s236_s3 = inlined_call_operand.vmem [shape: f32[32,16], index: 3, kind: input, shape index: {}]   ;;  %s237_s1 = inlined_call_operand.vmem [shape: f32[1,32], index: 1, kind: input, shape index: {}]   ;;  %s238_s2 = inlined_call_operand.vmem [shape: f32[1,32], index: 2, kind: input, shape index: {}]   ;;  %s239_s4 = inlined_call_operand.vmem [shape: f32[1,16], index: 4, kind: input, shape index: {}]   ;;  %s240_s5 = inlined_call_operand.vmem [shape: f32[6,16], index: 5, kind: output, shape index: {}]  }
   0x1   :  { %v20_v0 = vld [vmem:[%s235_s0] sm:$0x3f]  ;;  %164 = vmatprep.subr.bf16.mxu0 %v175_v7  ;;  %v53_v9 = vld [vmem:[%s236_s3 + $0x8] sm:$0xff]  ;;  %v54_v10 = vld [vmem:[%s236_s3 + $0x10] sm:$0xff]  ;;  %161 = vmatprep.mubr.msk.f32.mxu0 %vm176_vm1, %v177_v11  ;;  %vm63_vm2 = vcmask 261120   ;;  %vm138_vm3 = vcmask 128000  }
   0x2   :  { %v24_v1 = vsel %vm23_vm0, %v20_v0, 0.0  ;;  %v52_v8 = vld [vmem:[%s236_s3] sm:$0xff]  ;;  %v55_v13 = vld [vmem:[%s236_s3 + $0x18] sm:$0xff] }
   0x3   :  { %25 = vadd.xlane.f32.xlu0 %v24_v1  ;;  %v165_v12 = vpack.c.bf16 %v53_v9, %v52_v8  ;;  %v168_v14 = vpack.c.bf16 %v55_v13, %v54_v10  ;;  %v144_v19 = vld [vmem:[%s237_s1] ss:$0 sm:$0xff] }
   0x4   :  { %v145_v21 = vld [vmem:[%s238_s2] ss:$0 sm:$0xff] }
   0x5   :  { %166 = vmatpush3.bf16.msra.mxu0 %v165_v12  ;;  %v146_v24 = vld [vmem:[%s239_s4] ss:$0 sm:$0xff] }
   0x6   :  { %167 = vmatprep.subr.bf16.mxu0 %v175_v7 }
   0x9   :  { %169 = vmatpush3.bf16.msra.mxu0 %v168_v14 }
  0x90   :  { %v26_v2 = vpop.xlane.xlu0 %25 }
  0x91   :  { %v28_v3 = vmul.f32 0.03125, %v26_v2 }
  0x93   :  { %v29_v4 = vsub.f32 %v20_v0, %v28_v3 }
  0x95   :  { %v30_v5 = vmul.f32 %v29_v4, %v29_v4 }
  0x97   :  { %v31_v6 = vsel %vm23_vm0, %v30_v5, 0.0 }
  0x98   :  { %32 = vadd.xlane.f32.xlu0 %v31_v6 }
 0x125   :  { %v33_v15 = vpop.xlane.xlu0 %32 }
 0x126   :  { %v34_v16 = vmul.f32 0.03125, %v33_v15 }
 0x128   :  { %v35_v17 = vadd.f32 1e-05, %v34_v16 }
 0x12a   :  { %173 = vrsqrt.f32 %v35_v17 }
 0x134   :  { %v174_v18 = vpop.eup %173 }
 0x135   :  { %v37_v20 = vmul.f32 %v174_v18, %v29_v4 }
 0x137   :  { %v44_v22 = vmul.f32 %v144_v19, %v37_v20 }
 0x139   :  { %v51_v23 = vadd.f32 %v145_v21, %v44_v22 }
 0x13b   :  { %162 = vmatmul.mubr.msk.f32.vlgmr.msra.gmra.mrb[0].mxu0 %vm63_vm2, %v51_v23 }
 0x20e   :  { %v133_v25 = vpop.f32.mrb[0].mxu0 }
 0x20f   :  { %v134_v26 = vadd.f32 %v146_v24, %v133_v25  ;;  %v163_v27 = vpop.f32.mrb[1].mxu0 }
 0x211   :  { %v137_v28 = vmax.f32 %v134_v26, 0.0 }
 0x213   :  { %139 = vst.msk [vmem:[%s240_s5] sm:$0x3f] %vm138_vm3, %v137_v28 }

// kernel: mage_forward.21
= control target key start
LH: loop header
LB: loop body
LE: loop exit
PB: predicated region body
PF: predicated region fallthrough
CT: control target
= control target key end

     0   :  { %v180_v0 = vmov 0   ;;  %v181_v6 = vmov 1   ;;  %vm156_vm0 = vcmask 130048   ;;  %s271_s0 = inlined_call_operand.vmem [shape: f32[5,8,2], index: 0, kind: input, shape index: {}]   ;;  %s272_s2 = inlined_call_operand.vmem [shape: f32[1,1,16], index: 2, kind: input, shape index: {}]   ;;  %s273_s3 = inlined_call_operand.vmem [shape: f32[1,1,16], index: 3, kind: input, shape index: {}]   ;;  %s274_s4 = inlined_call_operand.vmem [shape: f32[1,1,16], index: 4, kind: input, shape index: {}]   ;;  %s275_s1 = inlined_call_operand.vmem [shape: f32[5,1,16], index: 1, kind: input, shape index: {}]   ;;  %s276_s5 = inlined_call_operand.vmem [shape: f32[5,8,16], index: 5, kind: output, shape index: {}]  }
   0x1   :  { %177 = vset.pattern.permute.xlu1 %v180_v0  ;;  %176 = vset.pattern.permute.xlu0 %v180_v0  ;;  %v22_v1 = vld [vmem:[%s271_s0 + $0x10] sm:$0xff]  ;;  %v20_v2 = vld [vmem:[%s271_s0] sm:$0xff]  ;;  %v23_v3 = vld [vmem:[%s271_s0 + $0x18] sm:$0xff] }
   0x2   :  { %38 = vperm.xlu1 %177, %v22_v1   ;;  %28 = vperm.xlu0 %176, %v20_v2   ;;  %v21_v4 = vld [vmem:[%s271_s0 + $0x8] sm:$0xff]  ;;  %v24_v5 = vld [vmem:[%s271_s0 + $0x20] sm:$0xff] }
   0x3   :  { %v166_v11 = vld [vmem:[%s272_s2] ss:$0 sm:$0xff]  ;;  %v171_v38 = vld [vmem:[%s275_s1 + $0x2] ss:$0 sm:$0xff]  ;;  %v170_v39 = vld [vmem:[%s275_s1 + $0x1] ss:$0 sm:$0xff] }
   0x4   :  { %v167_v12 = vld [vmem:[%s273_s3] ss:$0 sm:$0xff]  ;;  %v172_v48 = vld [vmem:[%s275_s1 + $0x3] ss:$0 sm:$0xff]  ;;  %v173_v51 = vld [vmem:[%s275_s1 + $0x4] ss:$0 sm:$0xff] }
   0x5   :  { %v168_v17 = vld [vmem:[%s274_s4] ss:$0 sm:$0xff] }
   0x6   :  { %43 = vperm.xlu1 %177, %v23_v3   ;;  %33 = vperm.xlu0 %176, %v21_v4   ;;  %v169_v26 = vld [vmem:[%s275_s1] ss:$0 sm:$0xff] }
   0xa   :  { %178 = vset.pattern.permute.xlu1 %v181_v6  ;;  %48 = vperm.xlu0 %176, %v24_v5  }
   0xb   :  { %64 = vperm.xlu1 %178, %v20_v2  }
   0xe   :  { %179 = vset.pattern.permute.xlu0 %v181_v6 }
   0xf   :  { %72 = vperm.xlu1 %178, %v22_v1   ;;  %68 = vperm.xlu0 %179, %v21_v4  }
  0x13   :  { %76 = vperm.xlu1 %178, %v23_v3   ;;  %80 = vperm.xlu0 %179, %v24_v5  }
  0x81   :  { %v39_v7 = vpop.permute.xlu1 %38  ;;  %v29_v8 = vpop.permute.xlu0 %28 }
  0x82   :  { %v57_v15 = vmul.f32 %v166_v11, %v29_v8  ;;  %v59_v19 = vmul.f32 %v166_v11, %v39_v7 }
  0x85   :  { %v44_v9 = vpop.permute.xlu1 %43  ;;  %v34_v10 = vpop.permute.xlu0 %33 }
  0x86   :  { %v58_v22 = vmul.f32 %v166_v11, %v34_v10  ;;  %v60_v30 = vmul.f32 %v166_v11, %v44_v9 }
  0x89   :  { %v49_v13 = vpop.permute.xlu0 %48 }
  0x8a   :  { %v65_v14 = vpop.permute.xlu1 %64  ;;  %v61_v37 = vmul.f32 %v166_v11, %v49_v13 }
  0x8b   :  { %v89_v16 = vmul.f32 %v167_v12, %v65_v14 }
  0x8d   :  { %v94_v18 = vadd.f32 %v89_v16, %v57_v15 }
  0x8e   :  { %v73_v20 = vpop.permute.xlu1 %72  ;;  %v69_v21 = vpop.permute.xlu0 %68 }
  0x8f   :  { %v106_v23 = vadd.f32 %v168_v17, %v94_v18  ;;  %v91_v24 = vmul.f32 %v167_v12, %v73_v20  ;;  %v90_v25 = vmul.f32 %v167_v12, %v69_v21 }
  0x91   :  { %v111_v27 = vmax.f32 %v106_v23, 0.0  ;;  %v96_v28 = vadd.f32 %v91_v24, %v59_v19  ;;  %v95_v29 = vadd.f32 %v90_v25, %v58_v22 }
  0x92   :  { %v77_v31 = vpop.permute.xlu1 %76  ;;  %v81_v32 = vpop.permute.xlu0 %80 }
  0x93   :  { %v151_v33 = vadd.f32 %v169_v26, %v111_v27  ;;  %v108_v34 = vadd.f32 %v168_v17, %v96_v28  ;;  %v107_v35 = vadd.f32 %v168_v17, %v95_v29  ;;  %v92_v36 = vmul.f32 %v167_v12, %v77_v31 }
  0x94   :  { %v93_v40 = vmul.f32 %v167_v12, %v81_v32 }
  0x95   :  { %157 = vst.msk [vmem:[%s276_s5] sm:$0xff] %vm156_vm0, %v151_v33  ;;  %v113_v41 = vmax.f32 %v108_v34, 0.0  ;;  %v112_v42 = vmax.f32 %v107_v35, 0.0  ;;  %v97_v43 = vadd.f32 %v92_v36, %v60_v30 }
  0x96   :  { %v98_v44 = vadd.f32 %v93_v40, %v61_v37 }
  0x97   :  { %v153_v45 = vadd.f32 %v171_v38, %v113_v41  ;;  %v152_v46 = vadd.f32 %v170_v39, %v112_v42  ;;  %v109_v47 = vadd.f32 %v168_v17, %v97_v43 }
  0x98   :  { %v110_v49 = vadd.f32 %v168_v17, %v98_v44 }
  0x99   :  { %159 = vst.msk [vmem:[%s276_s5 + $0x10] sm:$0xff] %vm156_vm0, %v153_v45  ;;  %158 = vst.msk [vmem:[%s276_s5 + $0x8] sm:$0xff] %vm156_vm0, %v152_v46  ;;  %v114_v50 = vmax.f32 %v109_v47, 0.0 }
  0x9a   :  { %v115_v52 = vmax.f32 %v110_v49, 0.0 }
  0x9b   :  { %v154_v53 = vadd.f32 %v172_v48, %v114_v50 }
  0x9c   :  { %v155_v54 = vadd.f32 %v173_v51, %v115_v52 }
  0x9d   :  { %160 = vst.msk [vmem:[%s276_s5 + $0x18] sm:$0xff] %vm156_vm0, %v154_v53 }
  0x9e   :  { %161 = vst.msk [vmem:[%s276_s5 + $0x20] sm:$0xff] %vm156_vm0, %v155_v54 }

// kernel: mage_forward.14
= control target key start
LH: loop header
LB: loop body
LE: loop exit
PB: predicated region body
PF: predicated region fallthrough
CT: control target
= control target key end

     0   :  { %s3973_s24 = smov 0   ;;  %s4442_s0 = inlined_call_operand.vmem [shape: f32[2,9,32], index: 0, kind: input, shape index: {}]   ;;  %s4443_s1 = inlined_call_operand.vmem [shape: f32[1,32], index: 1, kind: input, shape index: {}]   ;;  %s4444_s2 = inlined_call_operand.vmem [shape: f32[1,32], index: 2, kind: input, shape index: {}]   ;;  %s4445_s3 = inlined_call_operand.vmem [shape: f32[4,32,8], index: 3, kind: input, shape index: {}]   ;;  %s4446_s4 = inlined_call_operand.vmem [shape: f32[4,32,8], index: 4, kind: input, shape index: {}]   ;;  %s4447_s5 = inlined_call_operand.vmem [shape: f32[4,32,8], index: 5, kind: input, shape index: {}]   ;;  %s4448_s6 = inlined_call_operand.vmem [shape: f32[4,1,8], index: 6, kind: input, shape index: {}]   ;;  %s4449_s7 = inlined_call_operand.vmem [shape: f32[4,1,8], index: 7, kind: input, shape index: {}]   ;;  %s4450_s8 = inlined_call_operand.vmem [shape: f32[4,1,8], index: 8, kind: input, shape index: {}]   ;;  %s4451_s9 = inlined_call_operand.vmem [shape: f32[4,8,32], index: 9, kind: input, shape index: {}]   ;;  %s4452_s10 = inlined_call_operand.vmem [shape: f32[1,32], index: 10, kind: input, shape index: {}]   ;;  %s4453_s11 = inlined_call_operand.vmem [shape: f32[1,32], index: 11, kind: input, shape index: {}]   ;;  %s4454_s12 = inlined_call_operand.vmem [shape: f32[1,32], index: 12, kind: input, shape index: {}]   ;;  %s4455_s13 = inlined_call_operand.vmem [shape: f32[32,128], index: 13, kind: input, shape index: {}]   ;;  %s4456_s14 = inlined_call_operand.vmem [shape: f32[1,128], index: 14, kind: input, shape index: {}]   ;;  %s4457_s15 = inlined_call_operand.vmem [shape: f32[128,32], index: 15, kind: input, shape index: {}]   ;;  %s4458_s16 = inlined_call_operand.vmem [shape: f32[1,32], index: 16, kind: input, shape index: {}]   ;;  %s4459_s17 = inlined_call_operand.vmem [shape: f32[2,9,32], index: 17, kind: output, shape index: {}]  }
   0x1   :  { %4460 = sst [smem:[#allocation2_spill]] %s4442_s0 }
   0x2   :  { %4461 = sst [smem:[#allocation3_spill]] %s4443_s1 }
   0x3 LB: > { %s3095_s25 = sadd.s32 4294967295, %s3880_s24   ;;  %p3099_p0 = scmp.ge.s32.totalorder %s3880_s24, 1  ;;  %s3880_s24 = sphi %s3973_s24, %s27_s24  }
   0x4   : > { %p487_p1 = scmp.lt.s32.totalorder %s3880_s24, 3 }
   0x6   : > { %p488_p2 = pnand %p3099_p0, %p487_p1 }
   0x7   : > { %p539_p3 = scmp.lt.s32.totalorder (!%p488_p2), %s3095_s25, 1  ;;  %vm553_vm0 = vcmask (!%p488_p2), 261120   ;;  %s4462_s29 = sld [smem:[#allocation2_spill]] (!%p488_p2)  ;;  %vm557_vm1 = vcmask (!%p488_p2), 253952   ;;  %v598_v14 = vld [vmem:[%s4445_s3] sm:$0xff] (!%p488_p2)  ;;  %v599_v15 = vld [vmem:[%s4445_s3 + $0x8] sm:$0xff] (!%p488_p2) }
   0x8   : > { %491 = sbr.rel (%p488_p2) target bundleno = 5030 (0x13a6), region = 88  ;;  %v3631_v16 = vpack.c.bf16 (!%p488_p2), %v599_v15, %v598_v14  ;;  %v600_v17 = vld [vmem:[%s4445_s3 + $0x10] sm:$0xff] (!%p488_p2)  ;;  %v601_v18 = vld [vmem:[%s4445_s3 + $0x18] sm:$0xff] (!%p488_p2)  ;;  %v690_v20 = vld [vmem:[%s4446_s4] sm:$0xff] (!%p488_p2)  ;;  %s4463_s19 = sld [smem:[#allocation3_spill]] (!%p488_p2)  ;;  %vm862_vm2 = vcmask (!%p488_p2), 64512  }
   0x9   : > { %v3635_v19 = vpack.c.bf16 (!%p488_p2), %v601_v18, %v600_v17  ;;  %v691_v21 = vld [vmem:[%s4446_s4 + $0x8] sm:$0xff] (!%p488_p2)  ;;  %v3105_v32 = vld [vmem:[%s4444_s2] ss:$0 sm:$0xff] (!%p488_p2)  ;;  %v692_v37 = vld [vmem:[%s4446_s4 + $0x10] sm:$0xff] (!%p488_p2)  ;;  %vm982_vm4 = vcmask (!%p488_p2), 1040384   ;;  %vm3882_vm5 = vmmov (!%p488_p2), 1  }
   0xa   : > { %3632 = vmatprep.subr.bf16.mxu1 (!%p488_p2), %v3631_v16  ;;  %v3639_v22 = vpack.c.bf16 (!%p488_p2), %v691_v21, %v690_v20  ;;  %v693_v38 = vld [vmem:[%s4446_s4 + $0x18] sm:$0xff] (!%p488_p2)  ;;  %v776_v42 = vld [vmem:[%s4447_s5] sm:$0xff] (!%p488_p2)  ;;  %v777_v43 = vld [vmem:[%s4447_s5 + $0x8] sm:$0xff] (!%p488_p2)  ;;  %vm956_vm7 = vcmask (!%p488_p2), 65536   ;;  %vm952_vm8 = vcmask (!%p488_p2), 72704  }
   0xb   : > { %3634 = vmatpush3.bf16.msra.mxu1 (!%p488_p2), %v3631_v16  ;;  %v3643_v41 = vpack.c.bf16 (!%p488_p2), %v693_v38, %v692_v37  ;;  %v3647_v44 = vpack.c.bf16 (!%p488_p2), %v777_v43, %v776_v42  ;;  %v778_v45 = vld [vmem:[%s4447_s5 + $0x10] sm:$0xff] (!%p488_p2)  ;;  %v779_v46 = vld [vmem:[%s4447_s5 + $0x18] sm:$0xff] (!%p488_p2)  ;;  %v3106_v48 = vld [vmem:[%s4448_s6] ss:$0 sm:$0xff] (!%p488_p2) }
   0xc   : > { %3636 = vmatprep.subr.bf16.mxu1 (!%p488_p2), %v3635_v19  ;;  %v3651_v47 = vpack.c.bf16 (!%p488_p2), %v779_v46, %v778_v45  ;;  %v3109_v52 = vld [vmem:[%s4449_s7] ss:$0 sm:$0xff] (!%p488_p2)  ;;  %v3123_v57 = vld [vmem:[%s4445_s3 + $0x28] sm:$0xff] (!%p488_p2)  ;;  %vm4074_vm3 = vmpackc.low (!%p488_p2), %vm862_vm2, %vm862_vm2 }
   0xd   : > { %v3122_v56 = vld [vmem:[%s4445_s3 + $0x20] sm:$0xff] (!%p488_p2)  ;;  %vm4091_vm6 = vmpackc.low (!%p488_p2), %vm982_vm4, %vm3882_vm5  ;;  %v3140_v14 = vld [vmem:[%s4447_s5 + $0x30] sm:$0xff] (!%p488_p2) }
   0xe   : > { %v3104_v30 = vld [vmem:[%s4463_s19] ss:$0 sm:$0xff] (!%p488_p2)  ;;  %v3667_v61 = vpack.c.bf16 (!%p488_p2), %v3123_v57, %v3122_v56  ;;  %v3141_v15 = vld [vmem:[%s4447_s5 + $0x38] sm:$0xff] (!%p488_p2)  ;;  %v3131_v46 = vld [vmem:[%s4446_s4 + $0x28] sm:$0xff] (!%p488_p2) }
   0xf   : > { %s4469_s25 = smov (!%p539_p3, %s3095_s25), 1  ;;  %3638 = vmatpush3.bf16.msra.mxu1 %v3635_v19  ;;  %v3112_v62 = vld [vmem:[%s4450_s8] ss:$0 sm:$0xff]  ;;  %v3687_v16 = vpack.c.bf16 %v3141_v15, %v3140_v14 }
  0x10   : > { %s3235_s26 = sshll.u32 %s4469_s25, 4  ;;  %3640 = vmatprep.subr.bf16.mxu1 %v3639_v22  ;;  %v3130_v45 = vld [vmem:[%s4446_s4 + $0x20] sm:$0xff] }
  0x11   : > { %s543_s0 = scalar_lea.vmem %s4462_s29, %s3235_s26  ;;  %s548_s21 = scalar_lea.vmem %s4459_s17, %s3235_s26 }
  0x12   : > { %v3989_v0 = vld [vmem:[%s543_s0] sm:$0xff]  ;;  %v3991_v1 = vld [vmem:[%s543_s0 + $0x8] sm:$0x1] }
  0x13   : > { %v554_v2 = vsel %vm553_vm0, %v3989_v0, 0.0  ;;  %v558_v3 = vsel %vm557_vm1, %v3991_v1, 0.0 }
  0x14   : > { %555 = vadd.xlane.f32.xlu0 %v554_v2 }
  0x18   : > { %559 = vadd.xlane.f32.xlu0 %v558_v3 }
  0xa1   : > { %v556_v4 = vpop.xlane.xlu0 %555 }
  0xa2   : > { %v562_v5 = vmul.f32 0.03125, %v556_v4  ;;  %v3124_v4 = vld [vmem:[%s4445_s3 + $0x30] sm:$0xff] }
  0xa4   : > { %v564_v6 = vsub.f32 %v3989_v0, %v562_v5  ;;  %v3125_v5 = vld [vmem:[%s4445_s3 + $0x38] sm:$0xff] }
  0xa5   : > { %v560_v7 = vpop.xlane.xlu0 %559 }
  0xa6   : > { %v563_v8 = vmul.f32 0.03125, %v560_v7  ;;  %v566_v9 = vmul.f32 %v564_v6, %v564_v6 }
  0xa8   : > { %v565_v10 = vsub.f32 %v3991_v1, %v563_v8  ;;  %v568_v11 = vsel %vm553_vm0, %v566_v9, 0.0 }
  0xa9   : > { %569 = vadd.xlane.f32.xlu1 %v568_v11  ;;  %v3138_v11 = vld [vmem:[%s4447_s5 + $0x20] sm:$0xff] }
  0xaa   : > { %v567_v12 = vmul.f32 %v565_v10, %v565_v10 }
  0xac   : > { %v571_v13 = vsel %vm557_vm1, %v567_v12, 0.0  ;;  %v3139_v12 = vld [vmem:[%s4447_s5 + $0x28] sm:$0xff] }
  0xad   : > { %572 = vadd.xlane.f32.xlu1 %v571_v13  ;;  %v3683_v13 = vpack.c.bf16 %v3139_v12, %v3138_v11 }
 0x136   : > { %v570_v23 = vpop.xlane.xlu1 %569 }
 0x137   : > { %v574_v24 = vmul.f32 0.03125, %v570_v23  ;;  %v3127_v23 = vld [vmem:[%s4448_s6 + $0x1] ss:$0 sm:$0xff] }
 0x139   : > { %v576_v25 = vadd.f32 1e-05, %v574_v24 }
 0x13a   : > { %v573_v26 = vpop.xlane.xlu1 %572 }
 0x13b   : > { %3830 = vrsqrt.f32 %v576_v25  ;;  %v575_v27 = vmul.f32 0.03125, %v573_v26 }
 0x13d   : > { %v577_v28 = vadd.f32 1e-05, %v575_v27  ;;  %v3143_v27 = vld [vmem:[%s4450_s8 + $0x1] ss:$0 sm:$0xff] }
 0x13f   : > { %3832 = vrsqrt.f32 %v577_v28 }
 0x145   : > { %v3831_v29 = vpop.eup %3830 }
 0x146   : > { %v580_v31 = vmul.f32 %v3831_v29, %v564_v6 }
 0x148   : > { %v588_v33 = vmul.f32 %v3104_v30, %v580_v31 }
 0x149   : > { %v3833_v34 = vpop.eup %3832 }
 0x14a   : > { %v4025_v35 = vadd.f32 %v3105_v32, %v588_v33  ;;  %v581_v36 = vmul.f32 %v3833_v34, %v565_v10  ;;  %v3671_v10 = vpack.c.bf16 %v3125_v5, %v3124_v4 }
 0x14c   : > { %v589_v39 = vmul.f32 %v3104_v30, %v581_v36  ;;  %3385 = vmatprep.mubr.msk.f32.mxu1 %vm553_vm0, %v4025_v35 }
 0x14e   : > { %v4035_v40 = vadd.f32 %v3105_v32, %v589_v39 }
 0x150   : > { %3386 = vmatmul.mubr.msk.f32.vlgmr.msra.gmra.mrb[0].mxu1 %vm553_vm0, %v4035_v40 }
 0x151   : > { %3642 = vmatpush3.bf16.msra.mxu1 %v3639_v22  ;;  %3396 = vmatprep.mubr.msk.f32.mxu1 %vm553_vm0, %v4025_v35 }
 0x152   : > { %3644 = vmatprep.subr.bf16.mxu1 %v3643_v41 }
 0x155   : > { %3646 = vmatpush3.bf16.msra.mxu1 %v3643_v41 }
 0x156   : > { %3648 = vmatprep.subr.bf16.mxu1 %v3647_v44 }
 0x158   : > { %3397 = vmatmul.mubr.msk.f32.vlgmr.msra.gmra.mrb[2].mxu1 %vm553_vm0, %v4035_v40 }
 0x159   : > { %3650 = vmatpush3.bf16.msra.mxu1 %v3647_v44  ;;  %3407 = vmatprep.mubr.msk.f32.mxu1 %vm553_vm0, %v4025_v35 }
 0x15a   : > { %3652 = vmatprep.subr.bf16.mxu1 %v3651_v47 }
 0x15d   : > { %3654 = vmatpush3.bf16.msra.mxu1 %v3651_v47  ;;  %v3675_v47 = vpack.c.bf16 %v3131_v46, %v3130_v45  ;;  %v3167_v45 = vld [vmem:[%s4446_s4 + $0x48] sm:$0xff] }
 0x160   : > { %3408 = vmatmul.mubr.msk.f32.vlgmr.msra.gmra.mrb[4].mxu1 %vm553_vm0, %v4035_v40 }
 0x223   : > { %v3387_v49 = vpop.f32.mrb[0].mxu1 }
 0x224   : > { %v681_v50 = vpop.f32.mrb[1].mxu1  ;;  %v687_v8 = vadd.f32 %v3387_v49, %v3106_v48 }
 0x225   : > { %v682_v51 = vadd.f32 %v3106_v48, %v681_v50 }
 0x227   : > { %3414 = vmatprep.mubr.msk.f32.mxu1 %vm862_vm2, %v682_v51  ;;  %v3132_v51 = vld [vmem:[%s4446_s4 + $0x30] sm:$0xff] }
 0x22b   : > { %v3398_v53 = vpop.f32.mrb[2].mxu1 }
 0x22c   : > { %v773_v54 = vadd.f32 %v3398_v53, %v3109_v52  ;;  %v767_v55 = vpop.f32.mrb[3].mxu1 }
 0x22d   : > { %v768_v58 = vadd.f32 %v3109_v52, %v767_v55  ;;  %v3133_v52 = vld [vmem:[%s4446_s4 + $0x38] sm:$0xff] }
 0x22e   : > { %v3679_v56 = vpack.c.bf16 %v3133_v52, %v3132_v51  ;;  %v3169_v51 = vld [vmem:[%s4446_s4 + $0x58] sm:$0xff] }
 0x22f   : > { %v3655_v60 = vpack.c.bf16 %v773_v54, %v768_v58 }
 0x231   : > { %3657 = vmatprep.subr.msk.bf16.mxu1 %vm4074_vm3, %v3655_v60 }
 0x232   : > { %3660 = vmatpush3.bf16.xpose.msk.msra.mxu1 %vm4074_vm3, %v3655_v60 }
 0x233   : > { %v3409_v63 = vpop.f32.mrb[4].mxu1  ;;  %3668 = vmatprep.subr.bf16.mxu1 %v3667_v61 }
 0x234   : > { %v859_v2 = vadd.f32 %v3409_v63, %v3112_v62  ;;  %v853_v3 = vpop.f32.mrb[5].mxu1 }
 0x235   : > { %v854_v6 = vadd.f32 %v3112_v62, %v853_v3 }
 0x237   : > { %v3661_v9 = vpack.c.bf16 %v859_v2, %v854_v6 }
 0x239   : > { %3415 = vmatmul.mubr.msk.f32.vlgmr.msra.gmra.mrb[6].mxu1 %vm862_vm2, %v687_v8  ;;  %3663 = vmatprep.subr.msk.bf16.mxu0 %vm4091_vm6, %v3661_v9 }
 0x23a   : > { %3666 = vmatpush3.bf16.msk.msra.mxu0 %vm4091_vm6, %v3661_v9  ;;  %3670 = vmatpush3.bf16.msra.mxu1 %v3667_v61  ;;  %v3135_v61 = vld [vmem:[%s4449_s7 + $0x1] ss:$0 sm:$0xff] }
 0x23b   : > { %3432 = vmatprep.mubr.msk.f32.mxu1 %vm553_vm0, %v4025_v35  ;;  %3672 = vmatprep.subr.bf16.mxu1 %v3671_v10 }
 0x23c   : > { %3676 = vmatprep.subr.bf16.mxu0 %v3675_v47 }
 0x23e   : > { %3674 = vmatpush3.bf16.msra.mxu1 %v3671_v10 }
 0x23f   : > { %3684 = vmatprep.subr.bf16.mxu1 %v3683_v13 }
 0x241   : > { %3433 = vmatmul.mubr.msk.f32.vlgmr.msra.gmra.mrb[8].mxu1 %vm553_vm0, %v4035_v40 }
 0x242   : > { %3686 = vmatpush3.bf16.msra.mxu1 %v3683_v13  ;;  %3454 = vmatprep.mubr.msk.f32.mxu1 %vm553_vm0, %v4025_v35 }
 0x243   : > { %3688 = vmatprep.subr.bf16.mxu1 %v3687_v16 }
 0x246   : > { %3690 = vmatpush3.bf16.msra.mxu1 %v3687_v16 }
 0x249   : > { %3455 = vmatmul.mubr.msk.f32.vlgmr.msra.gmra.mrb[10].mxu1 %vm553_vm0, %v4035_v40 }
 0x30c   : > { %v3416_v17 = vpop.f32.mrb[6].mxu1 }
 0x30d   : > { %v951_v18 = vmul.f32 0.35355338, %v3416_v17  ;;  %v941_v19 = vpop.f32.mrb[7].mxu1 }
 0x30e   : > { %v950_v20 = vmul.f32 0.35355338, %v941_v19 }
 0x30f   : > { %v957_v21 = vsel %vm956_vm7, %v951_v18, -inf }
 0x310   : > { %958 = vmax.xlane.f32.xlu1 %v957_v21  ;;  %v953_v22 = vsel %vm952_vm8, %v950_v20, -inf }
 0x311   : > { %954 = vmax.xlane.f32.xlu0 %v953_v22  ;;  %v3158_v22 = vld [vmem:[%s4445_s3 + $0x40] sm:$0xff] }
 0x314   : > { %v3434_v24 = vpop.f32.mrb[8].mxu1 }
 0x315   : > { %v1147_v25 = vadd.f32 %v3434_v24, %v3127_v23  ;;  %v1141_v26 = vpop.f32.mrb[9].mxu1 }
 0x316   : > { %v1142_v57 = vadd.f32 %v3127_v23, %v1141_v26  ;;  %v3159_v23 = vld [vmem:[%s4445_s3 + $0x48] sm:$0xff] }
 0x317   : > { %v3703_v24 = vpack.c.bf16 %v3159_v23, %v3158_v22 }
 0x31c   : > { %v3456_v28 = vpop.f32.mrb[10].mxu1 }
 0x31d   : > { %v1323_v29 = vadd.f32 %v3456_v28, %v3143_v27  ;;  %v1317_v30 = vpop.f32.mrb[11].mxu1 }
 0x31e   : > { %v1318_v31 = vadd.f32 %v3143_v27, %v1317_v30  ;;  %v3161_v30 = vld [vmem:[%s4445_s3 + $0x58] sm:$0xff] }
 0x320   : > { %v3697_v32 = vpack.c.bf16 %v1323_v29, %v1318_v31  ;;  %v3160_v29 = vld [vmem:[%s4445_s3 + $0x50] sm:$0xff] }
 0x322   : > { %3699 = vmatprep.subr.msk.bf16.mxu1 %vm4091_vm6, %v3697_v32 }
 0x323   : > { %3702 = vmatpush3.bf16.msk.msra.mxu1 %vm4091_vm6, %v3697_v32 }
 0x324   : > { %3704 = vmatprep.subr.bf16.mxu1 %v3703_v24 }
 0x39d   : > { %v959_v33 = vpop.xlane.xlu1 %958 }
 0x39e   : > { %v961_v34 = vsub.f32 %v951_v18, %v959_v33  ;;  %v955_v36 = vpop.xlane.xlu0 %954 }
 0x39f   : > { %v960_v37 = vsub.f32 %v950_v20, %v955_v36  ;;  %v3174_v36 = vld [vmem:[%s4447_s5 + $0x40] sm:$0xff] }
 0x3a0   : > { %v964_v38 = vmul.f32 1.442695, %v961_v34  ;;  %v3707_v34 = vpack.c.bf16 %v3161_v30, %v3160_v29 }
 0x3a1   : > { %v962_v39 = vmul.f32 1.442695, %v960_v37  ;;  %v3175_v37 = vld [vmem:[%s4447_s5 + $0x48] sm:$0xff] }
 0x3a2   : > { %3834 = vpow2.f32 %v964_v38  ;;  %v3719_v38 = vpack.c.bf16 %v3175_v37, %v3174_v36 }
 0x3a3   : > { %3836 = vpow2.f32 %v962_v39  ;;  %v3176_v39 = vld [vmem:[%s4447_s5 + $0x50] sm:$0xff] }
 0x3ac   : > { %v3835_v41 = vpop.eup %3834 }
 0x3ad   : > { %v3837_v42 = vpop.eup %3836  ;;  %v969_v43 = vsel %vm956_vm7, %v3835_v41, 0.0 }
 0x3ae   : > { %970 = vadd.xlane.f32.xlu1 %v969_v43  ;;  %v966_v44 = vsel %vm952_vm8, %v3837_v42, 0.0  ;;  %v1061_v43 = vld [vmem:[%s4451_s9] sm:$0xff] }
 0x3af   : > { %967 = vadd.xlane.f32.xlu0 %v966_v44  ;;  %v3166_v44 = vld [vmem:[%s4446_s4 + $0x40] sm:$0xff] }
 0x43b   : > { %v971_v48 = vpop.xlane.xlu1 %970 }
 0x43c   : > { %3838 = vrcp.f32 %v971_v48  ;;  %v968_v49 = vpop.xlane.xlu0 %967  ;;  %v3711_v48 = vpack.c.bf16 %v3167_v45, %v3166_v44  ;;  %v3211_v44 = vld [vmem:[%s4447_s5 + $0x78] sm:$0xff] }
 0x43d   : > { %3840 = vrcp.f32 %v968_v49  ;;  %v3163_v49 = vld [vmem:[%s4448_s6 + $0x2] ss:$0 sm:$0xff] }
 0x446   : > { %v3839_v50 = vpop.eup %3838 }
 0x447   : > { %v3841_v53 = vpop.eup %3840  ;;  %v975_v55 = vmul.f32 %v3839_v50, %v3835_v41  ;;  %v3177_v41 = vld [vmem:[%s4447_s5 + $0x58] sm:$0xff]  ;;  %v3168_v50 = vld [vmem:[%s4446_s4 + $0x50] sm:$0xff] }
 0x448   : > { %v974_v54 = vmul.f32 %v3841_v53, %v3837_v42  ;;  %v3723_v42 = vpack.c.bf16 %v3177_v41, %v3176_v39  ;;  %v3208_v39 = vld [vmem:[%s4447_s5 + $0x60] sm:$0xff]  ;;  %v3209_v41 = vld [vmem:[%s4447_s5 + $0x68] sm:$0xff] }
 0x44a   : > { %3421 = vmatprep.mubr.msk.f32.mxu0 %vm952_vm8, %v974_v54 }
 0x44b   : > { %3422 = vmatmul.mubr.msk.f32.vlgmr.msra.gmra.mrb[0].mxu0 %vm952_vm8, %v975_v55  ;;  %v3715_v55 = vpack.c.bf16 %v3169_v51, %v3168_v50  ;;  %v3203_v50 = vld [vmem:[%s4446_s4 + $0x78] sm:$0xff] }
 0x44c   : > { %3678 = vmatpush3.bf16.msra.mxu0 %v3675_v47  ;;  %3443 = vmatprep.mubr.msk.f32.mxu0 %vm553_vm0, %v4025_v35 }
 0x44d   : > { %3680 = vmatprep.subr.bf16.mxu0 %v3679_v56 }
 0x450   : > { %3682 = vmatpush3.bf16.msra.mxu0 %v3679_v56  ;;  %v3179_v56 = vld [vmem:[%s4450_s8 + $0x2] ss:$0 sm:$0xff] }
 0x453   : > { %3444 = vmatmul.mubr.msk.f32.vlgmr.msra.gmra.mrb[2].mxu0 %vm553_vm0, %v4035_v40 }
 0x454   : > { %3461 = vmatprep.mubr.msk.f32.mxu0 %vm862_vm2, %v1142_v57 }
 0x51e   : > { %v4153_v58 = vpop.f32.mrb[0].mxu0 }
 0x51f   : > { %v4155_v60 = vpop.f32.mrb[1].mxu0 }
 0x526   : > { %v3445_v62 = vpop.f32.mrb[2].mxu0 }
 0x527   : > { %v1235_v63 = vadd.f32 %v3445_v62, %v3135_v61  ;;  %v1229_v2 = vpop.f32.mrb[3].mxu0 }
 0x528   : > { %v1230_v3 = vadd.f32 %v3135_v61, %v1229_v2 }
 0x52a   : > { %v3691_v4 = vpack.c.bf16 %v1235_v63, %v1230_v3 }
 0x52c   : > { %3693 = vmatprep.subr.msk.bf16.mxu0 %vm4074_vm3, %v3691_v4 }
 0x52d   : > { %3696 = vmatpush3.bf16.xpose.msk.msra.mxu0 %vm4074_vm3, %v3691_v4 }
 0x534   : > { %3462 = vmatmul.mubr.msk.f32.vlgmr.msra.gmra.mrb[4].mxu0 %vm862_vm2, %v1147_v25  ;;  %v3153_v25 = vld [vmem:[%s4451_s9 + $0x8] sm:$0xff] }
 0x535   : > { %3471 = vmatprep.subr.mxu0 %v3153_v25 }
 0x536   : > { %3472 = vmatpush3.msra.mxu0 %v3153_v25  ;;  %v3192_v25 = vld [vmem:[%s4445_s3 + $0x60] sm:$0xff] }
 0x537   : > { %3476 = vmatprep.subr.mxu0 %v1061_v43 }
 0x607   : > { %v3463_v5 = vpop.f32.mrb[4].mxu0 }
 0x608   : > { %v1414_v6 = vmul.f32 0.35355338, %v3463_v5  ;;  %v1404_v8 = vpop.f32.mrb[5].mxu0 }
 0x609   : > { %v1413_v9 = vmul.f32 0.35355338, %v1404_v8 }
 0x60a   : > { %v1418_v10 = vsel %vm956_vm7, %v1414_v6, -inf }
 0x60b   : > { %1419 = vmax.xlane.f32.xlu1 %v1418_v10  ;;  %v1415_v11 = vsel %vm952_vm8, %v1413_v9, -inf }
 0x60c   : > { %1416 = vmax.xlane.f32.xlu0 %v1415_v11 }
 0x698   : > { %v1420_v12 = vpop.xlane.xlu1 %1419 }
 0x699   : > { %v1422_v13 = vsub.f32 %v1414_v6, %v1420_v12  ;;  %v1417_v14 = vpop.xlane.xlu0 %1416 }
 0x69a   : > { %v1421_v15 = vsub.f32 %v1413_v9, %v1417_v14 }
 0x69b   : > { %v1425_v16 = vmul.f32 1.442695, %v1422_v13 }
 0x69c   : > { %v1423_v17 = vmul.f32 1.442695, %v1421_v15 }
 0x69d   : > { %3842 = vpow2.f32 %v1425_v16 }
 0x69e   : > { %3844 = vpow2.f32 %v1423_v17 }
 0x6a7   : > { %v3843_v18 = vpop.eup %3842 }
 0x6a8   : > { %v3845_v19 = vpop.eup %3844  ;;  %v1430_v20 = vsel %vm956_vm7, %v3843_v18, 0.0 }
 0x6a9   : > { %1431 = vadd.xlane.f32.xlu1 %v1430_v20  ;;  %v1427_v21 = vsel %vm952_vm8, %v3845_v19, 0.0 }
 0x6aa   : > { %1428 = vadd.xlane.f32.xlu0 %v1427_v21 }
 0x736   : > { %v1432_v26 = vpop.xlane.xlu1 %1431 }
 0x737   : > { %3846 = vrcp.f32 %v1432_v26  ;;  %v1429_v27 = vpop.xlane.xlu0 %1428  ;;  %v3193_v26 = vld [vmem:[%s4445_s3 + $0x68] sm:$0xff] }
 0x738   : > { %3848 = vrcp.f32 %v1429_v27  ;;  %v3739_v27 = vpack.c.bf16 %v3193_v26, %v3192_v25 }
 0x741   : > { %v3847_v28 = vpop.eup %3846 }
 0x742   : > { %v3849_v31 = vpop.eup %3848  ;;  %v1436_v33 = vmul.f32 %v3847_v28, %v3843_v18  ;;  %v3189_v28 = vld [vmem:[%s4451_s9 + $0x10] sm:$0xff] }
 0x743   : > { %v1435_v32 = vmul.f32 %v3849_v31, %v3845_v19 }
 0x745   : > { %3468 = vmatprep.mubr.msk.f32.mxu1 %vm952_vm8, %v1435_v32  ;;  %v3194_v32 = vld [vmem:[%s4445_s3 + $0x70] sm:$0xff] }
 0x746   : > { %3469 = vmatmul.mubr.msk.f32.vlgmr.msra.gmra.mrb[12].mxu1 %vm952_vm8, %v1436_v33  ;;  %v3195_v33 = vld [vmem:[%s4445_s3 + $0x78] sm:$0xff] }
 0x747   : > { %3706 = vmatpush3.bf16.msra.mxu1 %v3703_v24  ;;  %3489 = vmatprep.mubr.msk.f32.mxu1 %vm553_vm0, %v4025_v35 }
 0x748   : > { %3708 = vmatprep.subr.bf16.mxu1 %v3707_v34 }
 0x74b   : > { %3710 = vmatpush3.bf16.msra.mxu1 %v3707_v34 }
 0x74c   : > { %3720 = vmatprep.subr.bf16.mxu1 %v3719_v38 }
 0x74e   : > { %3490 = vmatmul.mubr.msk.f32.vlgmr.msra.gmra.mrb[14].mxu1 %vm553_vm0, %v4035_v40 }
 0x74f   : > { %3722 = vmatpush3.bf16.msra.mxu1 %v3719_v38  ;;  %3511 = vmatprep.mubr.msk.f32.mxu1 %vm553_vm0, %v4025_v35  ;;  %v3743_v38 = vpack.c.bf16 %v3195_v33, %v3194_v32  ;;  %v3226_v33 = vld [vmem:[%s4452_s10] ss:$0 sm:$0xff] }
 0x750   : > { %3724 = vmatprep.subr.bf16.mxu1 %v3723_v42 }
 0x753   : > { %3726 = vmatpush3.bf16.msra.mxu1 %v3723_v42  ;;  %v3755_v42 = vpack.c.bf16 %v3209_v41, %v3208_v39 }
 0x756   : > { %3512 = vmatmul.mubr.msk.f32.vlgmr.msra.gmra.mrb[16].mxu1 %vm553_vm0, %v4035_v40 }
 0x819   : > { %v3470_v46 = vpop.f32.mrb[12].mxu1 }
 0x81a   : > { %v1512_v47 = vpop.f32.mrb[13].mxu1 }
 0x81b   : > { %3473 = vmatprep.mubr.msk.f32.mxu0 %vm862_vm2, %v1512_v47  ;;  %v3201_v47 = vld [vmem:[%s4446_s4 + $0x68] sm:$0xff] }
 0x81c   : > { %3474 = vmatmul.mubr.msk.f32.vlgmr.msra.gmra.mrb[6].mxu0 %vm862_vm2, %v3470_v46  ;;  %v3200_v46 = vld [vmem:[%s4446_s4 + $0x60] sm:$0xff] }
 0x81d   : > { %3477 = vmatpush3.msra.mxu0 %v1061_v43  ;;  %3478 = vmatprep.mubr.msk.f32.mxu0 %vm862_vm2, %v4155_v60  ;;  %v3210_v43 = vld [vmem:[%s4447_s5 + $0x70] sm:$0xff] }
 0x81e   : > { %3712 = vmatprep.subr.bf16.mxu0 %v3711_v48  ;;  %v3759_v45 = vpack.c.bf16 %v3211_v44, %v3210_v43 }
 0x821   : > { %v3491_v52 = vpop.f32.mrb[14].mxu1 }
 0x822   : > { %v1770_v53 = vadd.f32 %v3491_v52, %v3163_v49  ;;  %v1764_v54 = vpop.f32.mrb[15].mxu1 }
 0x823   : > { %v1765_v62 = vadd.f32 %v3163_v49, %v1764_v54  ;;  %v3202_v49 = vld [vmem:[%s4446_s4 + $0x70] sm:$0xff]  ;;  %v3197_v54 = vld [vmem:[%s4448_s6 + $0x3] ss:$0 sm:$0xff] }
 0x824   : > { %3479 = vmatmul.mubr.msk.f32.vlgmr.msra.gmra.mrb[6].mxu0 %vm862_vm2, %v4153_v58  ;;  %v3171_v58 = vld [vmem:[%s4449_s7 + $0x2] ss:$0 sm:$0xff] }
 0x825   : > { %3714 = vmatpush3.bf16.msra.mxu0 %v3711_v48  ;;  %3500 = vmatprep.mubr.msk.f32.mxu0 %vm553_vm0, %v4025_v35  ;;  %v3747_v48 = vpack.c.bf16 %v3201_v47, %v3200_v46 }
 0x826   : > { %3716 = vmatprep.subr.bf16.mxu0 %v3715_v55 }
 0x829   : > { %3718 = vmatpush3.bf16.msra.mxu0 %v3715_v55  ;;  %v3513_v57 = vpop.f32.mrb[16].mxu1 }
 0x82a   : > { %v1946_v60 = vadd.f32 %v3513_v57, %v3179_v56  ;;  %v1940_v61 = vpop.f32.mrb[17].mxu1 }
 0x82b   : > { %v1941_v63 = vadd.f32 %v3179_v56, %v1940_v61  ;;  %v3213_v61 = vld [vmem:[%s4450_s8 + $0x3] ss:$0 sm:$0xff] }
 0x82c   : > { %3501 = vmatmul.mubr.msk.f32.vlgmr.msra.gmra.mrb[8].mxu0 %vm553_vm0, %v4035_v40 }
 0x82d   : > { %v3733_v2 = vpack.c.bf16 %v1946_v60, %v1941_v63  ;;  %3518 = vmatprep.mubr.msk.f32.mxu0 %vm862_vm2, %v1765_v62 }
 0x82f   : > { %3735 = vmatprep.subr.msk.bf16.mxu1 %vm4091_vm6, %v3733_v2 }
 0x830   : > { %3738 = vmatpush3.bf16.msk.msra.mxu1 %vm4091_vm6, %v3733_v2 }
 0x831   : > { %3740 = vmatprep.subr.bf16.mxu1 %v3739_v27 }
 0x8ff   : > { %v3502_v3 = vpop.f32.mrb[8].mxu0 }
 0x900   : > { %v1858_v4 = vadd.f32 %v3502_v3, %v3171_v58  ;;  %v1852_v5 = vpop.f32.mrb[9].mxu0 }
 0x901   : > { %v1853_v6 = vadd.f32 %v3171_v58, %v1852_v5 }
 0x903   : > { %v3727_v8 = vpack.c.bf16 %v1858_v4, %v1853_v6 }
 0x905   : > { %3729 = vmatprep.subr.msk.bf16.mxu0 %vm4074_vm3, %v3727_v8 }
 0x906   : > { %3732 = vmatpush3.bf16.xpose.msk.msra.mxu0 %vm4074_vm3, %v3727_v8 }
 0x907   : > { %3528 = vmatprep.subr.mxu0 %v3189_v28 }
 0x90d   : > { %3519 = vmatmul.mubr.msk.f32.vlgmr.msra.gmra.mrb[10].mxu0 %vm862_vm2, %v1770_v53  ;;  %v3751_v53 = vpack.c.bf16 %v3203_v50, %v3202_v49 }
 0x90e   : > { %3529 = vmatpush3.msra.mxu0 %v3189_v28 }
 0x90f   : > { %3748 = vmatprep.subr.bf16.mxu0 %v3747_v48 }
 0x9e0   : > { %v3520_v9 = vpop.f32.mrb[10].mxu0 }
 0x9e1   : > { %v2037_v10 = vmul.f32 0.35355338, %v3520_v9  ;;  %v2027_v11 = vpop.f32.mrb[11].mxu0 }
 0x9e2   : > { %v2036_v12 = vmul.f32 0.35355338, %v2027_v11 }
 0x9e3   : > { %v2041_v13 = vsel %vm956_vm7, %v2037_v10, -inf }
 0x9e4   : > { %2042 = vmax.xlane.f32.xlu1 %v2041_v13  ;;  %v2038_v14 = vsel %vm952_vm8, %v2036_v12, -inf }
 0x9e5   : > { %2039 = vmax.xlane.f32.xlu0 %v2038_v14 }
 0xa71   : > { %v2043_v15 = vpop.xlane.xlu1 %2042 }
 0xa72   : > { %v2045_v16 = vsub.f32 %v2037_v10, %v2043_v15  ;;  %v2040_v17 = vpop.xlane.xlu0 %2039 }
 0xa73   : > { %v2044_v18 = vsub.f32 %v2036_v12, %v2040_v17 }
 0xa74   : > { %v2048_v19 = vmul.f32 1.442695, %v2045_v16 }
 0xa75   : > { %v2046_v20 = vmul.f32 1.442695, %v2044_v18 }
 0xa76   : > { %3850 = vpow2.f32 %v2048_v19 }
 0xa77   : > { %3852 = vpow2.f32 %v2046_v20 }
 0xa80   : > { %v3851_v21 = vpop.eup %3850 }
 0xa81   : > { %v3853_v22 = vpop.eup %3852  ;;  %v2053_v23 = vsel %vm956_vm7, %v3851_v21, 0.0 }
 0xa82   : > { %2054 = vadd.xlane.f32.xlu1 %v2053_v23  ;;  %v2050_v24 = vsel %vm952_vm8, %v3853_v22, 0.0  ;;  %v3223_v23 = vld [vmem:[%s4451_s9 + $0x18] sm:$0xff] }
 0xa83   : > { %2051 = vadd.xlane.f32.xlu0 %v2050_v24 }
 0xb0f   : > { %v2055_v29 = vpop.xlane.xlu1 %2054 }
 0xb10   : > { %3854 = vrcp.f32 %v2055_v29  ;;  %v2052_v30 = vpop.xlane.xlu0 %2051 }
 0xb11   : > { %3856 = vrcp.f32 %v2052_v30 }
 0xb1a   : > { %v3855_v31 = vpop.eup %3854 }
 0xb1b   : > { %v3857_v34 = vpop.eup %3856  ;;  %v2059_v37 = vmul.f32 %v3855_v31, %v3851_v21 }
 0xb1c   : > { %v2058_v36 = vmul.f32 %v3857_v34, %v3853_v22 }
 0xb1e   : > { %3525 = vmatprep.mubr.msk.f32.mxu1 %vm952_vm8, %v2058_v36 }
 0xb1f   : > { %3526 = vmatmul.mubr.msk.f32.vlgmr.msra.gmra.mrb[18].mxu1 %vm952_vm8, %v2059_v37 }
 0xb20   : > { %3742 = vmatpush3.bf16.msra.mxu1 %v3739_v27  ;;  %3541 = vmatprep.mubr.msk.f32.mxu1 %vm553_vm0, %v4025_v35 }
 0xb21   : > { %3744 = vmatprep.subr.bf16.mxu1 %v3743_v38 }
 0xb24   : > { %3746 = vmatpush3.bf16.msra.mxu1 %v3743_v38 }
 0xb25   : > { %3756 = vmatprep.subr.bf16.mxu1 %v3755_v42 }
 0xb27   : > { %3542 = vmatmul.mubr.msk.f32.vlgmr.msra.gmra.mrb[20].mxu1 %vm553_vm0, %v4035_v40 }
 0xb28   : > { %3758 = vmatpush3.bf16.msra.mxu1 %v3755_v42  ;;  %3563 = vmatprep.mubr.msk.f32.mxu1 %vm553_vm0, %v4025_v35 }
 0xb29   : > { %3760 = vmatprep.subr.bf16.mxu1 %v3759_v45 }
 0xb2c   : > { %3762 = vmatpush3.bf16.msra.mxu1 %v3759_v45 }
 0xb2f   : > { %3564 = vmatmul.mubr.msk.f32.vlgmr.msra.gmra.mrb[22].mxu1 %vm553_vm0, %v4035_v40 }
 0xbf2   : > { %v3527_v51 = vpop.f32.mrb[18].mxu1 }
 0xbf3   : > { %v2135_v52 = vpop.f32.mrb[19].mxu1 }
 0xbf4   : > { %3530 = vmatprep.mubr.msk.f32.mxu0 %vm862_vm2, %v2135_v52  ;;  %v2829_v52 = vld [vmem:[%s4455_s13 + $0x8] sm:$0xff] }
 0xbf5   : > { %3531 = vmatmul.mubr.msk.f32.vlgmr.msra.gmra.mrb[6].mxu0 %vm862_vm2, %v3527_v51  ;;  %v2828_v51 = vld [vmem:[%s4455_s13] sm:$0xff] }
 0xbf6   : > { %3750 = vmatpush3.bf16.msra.mxu0 %v3747_v48  ;;  %3552 = vmatprep.mubr.msk.f32.mxu0 %vm553_vm0, %v4025_v35 }
 0xbf7   : > { %3752 = vmatprep.subr.bf16.mxu0 %v3751_v53 }
 0xbfa   : > { %v3543_v55 = vpop.f32.mrb[20].mxu1  ;;  %3754 = vmatpush3.bf16.msra.mxu0 %v3751_v53  ;;  %v3775_v53 = vpack.c.bf16 %v2829_v52, %v2828_v51 }
 0xbfb   : > { %v2314_v56 = vadd.f32 %v3543_v55, %v3197_v54  ;;  %v2308_v57 = vpop.f32.mrb[21].mxu1  ;;  %v2831_v55 = vld [vmem:[%s4455_s13 + $0x18] sm:$0xff] }
 0xbfc   : > { %v2309_v60 = vadd.f32 %v3197_v54, %v2308_v57  ;;  %v2830_v54 = vld [vmem:[%s4455_s13 + $0x10] sm:$0xff] }
 0xbfd   : > { %3553 = vmatmul.mubr.msk.f32.vlgmr.msra.gmra.mrb[12].mxu0 %vm553_vm0, %v4035_v40  ;;  %v3205_v40 = vld [vmem:[%s4449_s7 + $0x3] ss:$0 sm:$0xff] }
 0xbfe   : > { %3570 = vmatprep.mubr.msk.f32.mxu0 %vm862_vm2, %v2309_v60 }
 0xc02   : > { %v3565_v35 = vpop.f32.mrb[22].mxu1 }
 0xc03   : > { %v2490_v62 = vadd.f32 %v3565_v35, %v3213_v61  ;;  %v2484_v63 = vpop.f32.mrb[23].mxu1 }
 0xc04   : > { %v2485_v2 = vadd.f32 %v3213_v61, %v2484_v63 }
 0xc06   : > { %v3769_v58 = vpack.c.bf16 %v2490_v62, %v2485_v2 }
 0xc08   : > { %3771 = vmatprep.subr.msk.bf16.mxu1 %vm4091_vm6, %v3769_v58 }
 0xc09   : > { %3774 = vmatpush3.bf16.msk.msra.mxu1 %vm4091_vm6, %v3769_v58  ;;  %v3227_v58 = vld [vmem:[%s4453_s11] ss:$0 sm:$0xff] }
 0xc0a   : > { %3776 = vmatprep.subr.bf16.mxu1 %v3775_v53 }
 0xcd0   : > { %v3554_v3 = vpop.f32.mrb[12].mxu0 }
 0xcd1   : > { %v2402_v4 = vadd.f32 %v3554_v3, %v3205_v40  ;;  %v2396_v5 = vpop.f32.mrb[13].mxu0 }
 0xcd2   : > { %v2397_v6 = vadd.f32 %v3205_v40, %v2396_v5  ;;  %v3228_v5 = vld [vmem:[%s4454_s12] ss:$0 sm:$0xff] }
 0xcd4   : > { %v3763_v8 = vpack.c.bf16 %v2402_v4, %v2397_v6 }
 0xcd6   : > { %3765 = vmatprep.subr.msk.bf16.mxu0 %vm4074_vm3, %v3763_v8 }
 0xcd7   : > { %3768 = vmatpush3.bf16.xpose.msk.msra.mxu0 %vm4074_vm3, %v3763_v8 }
 0xcd8   : > { %3580 = vmatprep.subr.mxu0 %v3223_v23 }
 0xcde   : > { %3571 = vmatmul.mubr.msk.f32.vlgmr.msra.gmra.mrb[14].mxu0 %vm862_vm2, %v2314_v56  ;;  %v3779_v56 = vpack.c.bf16 %v2831_v55, %v2830_v54 }
 0xcdf   : > { %3581 = vmatpush3.msra.mxu0 %v3223_v23  ;;  %v2948_v23 = vld [vmem:[%s4457_s15 + $0x50] sm:$0xff] }
 0xdb1   : > { %v3572_v9 = vpop.f32.mrb[14].mxu0 }
 0xdb2   : > { %v2581_v7 = vmul.f32 0.35355338, %v3572_v9  ;;  %v2571_v10 = vpop.f32.mrb[15].mxu0 }
 0xdb3   : > { %v2580_v11 = vmul.f32 0.35355338, %v2571_v10  ;;  %v2938_v10 = vld [vmem:[%s4457_s15] sm:$0xff] }
 0xdb4   : > { %v2585_v12 = vsel %vm956_vm7, %v2581_v7, -inf }
 0xdb5   : > { %2586 = vmax.xlane.f32.xlu1 %v2585_v12  ;;  %v2582_v13 = vsel %vm952_vm8, %v2580_v11, -inf }
 0xdb6   : > { %2583 = vmax.xlane.f32.xlu0 %v2582_v13  ;;  %v2940_v13 = vld [vmem:[%s4457_s15 + $0x10] sm:$0xff] }
 0xe42   : > { %v2587_v14 = vpop.xlane.xlu1 %2586 }
 0xe43   : > { %v2589_v15 = vsub.f32 %v2581_v7, %v2587_v14  ;;  %v2584_v16 = vpop.xlane.xlu0 %2583  ;;  %v2941_v14 = vld [vmem:[%s4457_s15 + $0x18] sm:$0xff] }
 0xe44   : > { %v2588_v17 = vsub.f32 %v2580_v11, %v2584_v16  ;;  %v2939_v11 = vld [vmem:[%s4457_s15 + $0x8] sm:$0xff]  ;;  %v2942_v16 = vld [vmem:[%s4457_s15 + $0x20] sm:$0xff] }
 0xe45   : > { %v2592_v18 = vmul.f32 1.442695, %v2589_v15  ;;  %v3783_v12 = vpack.c.bf16 %v2939_v11, %v2938_v10  ;;  %v3787_v15 = vpack.c.bf16 %v2941_v14, %v2940_v13 }
 0xe46   : > { %v2590_v19 = vmul.f32 1.442695, %v2588_v17  ;;  %v2943_v17 = vld [vmem:[%s4457_s15 + $0x28] sm:$0xff] }
 0xe47   : > { %3858 = vpow2.f32 %v2592_v18  ;;  %3784 = vmatprep.subr.bf16.mxu0 %v3783_v12  ;;  %v3791_v18 = vpack.c.bf16 %v2943_v17, %v2942_v16 }
 0xe48   : > { %3860 = vpow2.f32 %v2590_v19  ;;  %v2944_v19 = vld [vmem:[%s4457_s15 + $0x30] sm:$0xff] }
 0xe51   : > { %v3859_v59 = vpop.eup %3858 }
 0xe52   : > { %v3861_v20 = vpop.eup %3860  ;;  %v2597_v21 = vsel %vm956_vm7, %v3859_v59, 0.0 }
 0xe53   : > { %2598 = vadd.xlane.f32.xlu1 %v2597_v21  ;;  %v2594_v22 = vsel %vm952_vm8, %v3861_v20, 0.0  ;;  %v2946_v21 = vld [vmem:[%s4457_s15 + $0x40] sm:$0xff] }
 0xe54   : > { %2595 = vadd.xlane.f32.xlu0 %v2594_v22  ;;  %v2947_v22 = vld [vmem:[%s4457_s15 + $0x48] sm:$0xff] }
 0xee0   : > { %v2599_v24 = vpop.xlane.xlu1 %2598 }
 0xee1   : > { %3862 = vrcp.f32 %v2599_v24  ;;  %v2596_v25 = vpop.xlane.xlu0 %2595  ;;  %v3799_v24 = vpack.c.bf16 %v2947_v22, %v2946_v21 }
 0xee2   : > { %3864 = vrcp.f32 %v2596_v25  ;;  %v2949_v25 = vld [vmem:[%s4457_s15 + $0x58] sm:$0xff] }
 0xeeb   : > { %v3863_v26 = vpop.eup %3862 }
 0xeec   : > { %v3865_v27 = vpop.eup %3864  ;;  %v2603_v29 = vmul.f32 %v3863_v26, %v3859_v59  ;;  %v2945_v59 = vld [vmem:[%s4457_s15 + $0x38] sm:$0xff]  ;;  %v3803_v26 = vpack.c.bf16 %v2949_v25, %v2948_v23 }
 0xeed   : > { %v2602_v28 = vmul.f32 %v3865_v27, %v3861_v20  ;;  %v3795_v20 = vpack.c.bf16 %v2945_v59, %v2944_v19  ;;  %v2950_v27 = vld [vmem:[%s4457_s15 + $0x60] sm:$0xff] }
 0xeef   : > { %3577 = vmatprep.mubr.msk.f32.mxu1 %vm952_vm8, %v2602_v28  ;;  %v2951_v28 = vld [vmem:[%s4457_s15 + $0x68] sm:$0xff] }
 0xef0   : > { %3578 = vmatmul.mubr.msk.f32.vlgmr.msra.gmra.mrb[24].mxu1 %vm952_vm8, %v2603_v29  ;;  %v3807_v29 = vpack.c.bf16 %v2951_v28, %v2950_v27 }
 0xef1   : > { %3778 = vmatpush3.bf16.msra.mxu1 %v3775_v53 }
 0xef2   : > { %3780 = vmatprep.subr.bf16.mxu1 %v3779_v56 }
 0xef5   : > { %3782 = vmatpush3.bf16.msra.mxu1 %v3779_v56 }
 0xfc3   : > { %v3579_v30 = vpop.f32.mrb[24].mxu1 }
 0xfc4   : > { %v2679_v31 = vpop.f32.mrb[25].mxu1 }
 0xfc5   : > { %3582 = vmatprep.mubr.msk.f32.mxu0 %vm862_vm2, %v2679_v31  ;;  %v2953_v31 = vld [vmem:[%s4457_s15 + $0x78] sm:$0xff] }
 0xfc6   : > { %3583 = vmatmul.mubr.msk.f32.vlgmr.msra.gmra.mrb[6].mxu0 %vm862_vm2, %v3579_v30  ;;  %v2952_v30 = vld [vmem:[%s4457_s15 + $0x70] sm:$0xff] }
 0xfc7   : > { %3786 = vmatpush3.bf16.msra.mxu0 %v3783_v12 }
 0xfc8   : > { %3788 = vmatprep.subr.bf16.mxu0 %v3787_v15 }
 0xfcb   : > { %3790 = vmatpush3.bf16.msra.mxu0 %v3787_v15 }
 0xfcc   : > { %3792 = vmatprep.subr.bf16.mxu0 %v3791_v18 }
 0xfcf   : > { %3794 = vmatpush3.bf16.msra.mxu0 %v3791_v18 }
 0xfd0   : > { %3796 = vmatprep.subr.bf16.mxu0 %v3795_v20 }
 0xfd3   : > { %3798 = vmatpush3.bf16.msra.mxu0 %v3795_v20 }
 0xfd4   : > { %3800 = vmatprep.subr.bf16.mxu0 %v3799_v24 }
 0xfd7   : > { %3802 = vmatpush3.bf16.msra.mxu0 %v3799_v24 }
 0xfd8   : > { %3804 = vmatprep.subr.bf16.mxu0 %v3803_v26 }
 0xfdb   : > { %3806 = vmatpush3.bf16.msra.mxu0 %v3803_v26 }
 0xfdc   : > { %3808 = vmatprep.subr.bf16.mxu0 %v3807_v29 }
 0xfdf   : > { %3810 = vmatpush3.bf16.msra.mxu0 %v3807_v29 }
0x1099   : > { %v3584_v32 = vpop.f32.mrb[6].mxu0 }
0x109a   : > { %v2774_v34 = vadd.f32 %v3584_v32, %v3991_v1  ;;  %v2762_v36 = vpop.f32.mrb[7].mxu0  ;;  %v3811_v32 = vpack.c.bf16 %v2953_v31, %v2952_v30 }
0x109b   : > { %v2773_v37 = vadd.f32 %v2762_v36, %v3989_v0 }
0x109c   : > { %v4344_v38 = vadd.f32 %v3226_v33, %v2774_v34  ;;  %3812 = vmatprep.subr.bf16.mxu0 %v3811_v32 }
0x109d   : > { %v4346_v39 = vadd.f32 %v3226_v33, %v2773_v37  ;;  %3814 = vmatpush3.bf16.msra.mxu0 %v3811_v32  ;;  %v3229_v33 = vld [vmem:[%s4456_s14] ss:$0 sm:$0xff] }
0x109e   : > { %v2789_v41 = vsel %vm557_vm1, %v4344_v38, 0.0 }
0x109f   : > { %2790 = vadd.xlane.f32.xlu1 %v2789_v41  ;;  %v2786_v42 = vsel %vm553_vm0, %v4346_v39, 0.0 }
0x10a0   : > { %2787 = vadd.xlane.f32.xlu0 %v2786_v42 }
0x112c   : > { %v2791_v43 = vpop.xlane.xlu1 %2790 }
0x112d   : > { %v2793_v44 = vmul.f32 0.03125, %v2791_v43  ;;  %v2788_v45 = vpop.xlane.xlu0 %2787 }
0x112e   : > { %v2792_v46 = vmul.f32 0.03125, %v2788_v45 }
0x112f   : > { %v2795_v1 = vsub.f32 %v4344_v38, %v2793_v44 }
0x1130   : > { %v2794_v0 = vsub.f32 %v4346_v39, %v2792_v46 }
0x1131   : > { %v2797_v47 = vmul.f32 %v2795_v1, %v2795_v1 }
0x1132   : > { %v2796_v48 = vmul.f32 %v2794_v0, %v2794_v0 }
0x1133   : > { %v2801_v49 = vsel %vm557_vm1, %v2797_v47, 0.0 }
0x1134   : > { %2802 = vadd.xlane.f32.xlu1 %v2801_v49  ;;  %v2798_v50 = vsel %vm553_vm0, %v2796_v48, 0.0 }
0x1135   : > { %2799 = vadd.xlane.f32.xlu0 %v2798_v50 }
0x11c1   : > { %v2803_v57 = vpop.xlane.xlu1 %2802 }
0x11c2   : > { %v2805_v60 = vmul.f32 0.03125, %v2803_v57  ;;  %v2800_v61 = vpop.xlane.xlu0 %2799 }
0x11c3   : > { %v2804_v35 = vmul.f32 0.03125, %v2800_v61 }
0x11c4   : > { %v2807_v62 = vadd.f32 1e-05, %v2805_v60  ;;  %v3232_v60 = vld [vmem:[%s4458_s16] ss:$0 sm:$0xff] }
0x11c5   : > { %v2806_v63 = vadd.f32 1e-05, %v2804_v35 }
0x11c6   : > { %3866 = vrsqrt.f32 %v2807_v62 }
0x11c7   : > { %3868 = vrsqrt.f32 %v2806_v63 }
0x11d0   : > { %v3867_v2 = vpop.eup %3866 }
0x11d1   : > { %v3869_v40 = vpop.eup %3868  ;;  %v2811_v3 = vmul.f32 %v3867_v2, %v2795_v1 }
0x11d2   : > { %v2810_v4 = vmul.f32 %v3869_v40, %v2794_v0 }
0x11d3   : > { %v2819_v6 = vmul.f32 %v3227_v58, %v2811_v3 }
0x11d4   : > { %v2818_v8 = vmul.f32 %v3227_v58, %v2810_v4 }
0x11d5   : > { %v2827_v7 = vadd.f32 %v3228_v5, %v2819_v6 }
0x11d6   : > { %v2826_v9 = vadd.f32 %v3228_v5, %v2818_v8 }
0x11d8   : > { %3593 = vmatprep.mubr.msk.f32.mxu1 %vm553_vm0, %v2826_v9 }
0x11d9   : > { %3594 = vmatmul.mubr.msk.f32.vlgmr.msra.gmra.mrb[26].mxu1 %vm553_vm0, %v2827_v7 }
0x12ac   : > { %v3595_v34 = vpop.f32.mrb[26].mxu1 }
0x12ad   : > { %v2917_v36 = vadd.f32 %v3595_v34, %v3229_v33  ;;  %v2911_v37 = vpop.f32.mrb[27].mxu1 }
0x12ae   : > { %v2912_v41 = vadd.f32 %v3229_v33, %v2911_v37 }
0x12af   : > { %v2921_v42 = vmul.f32 %v2917_v36, %v2917_v36 }
0x12b0   : > { %v2920_v43 = vmul.f32 %v2912_v41, %v2912_v41 }
0x12b1   : > { %v2923_v44 = vmul.f32 %v2921_v42, %v2917_v36 }
0x12b2   : > { %v2922_v45 = vmul.f32 %v2920_v43, %v2912_v41 }
0x12b3   : > { %v2925_v46 = vmul.f32 0.044715, %v2923_v44 }
0x12b4   : > { %v2924_v1 = vmul.f32 0.044715, %v2922_v45 }
0x12b5   : > { %v2927_v0 = vadd.f32 %v2925_v46, %v2917_v36 }
0x12b6   : > { %v2926_v47 = vadd.f32 %v2924_v1, %v2912_v41 }
0x12b7   : > { %v2929_v48 = vmul.f32 0.7978846, %v2927_v0 }
0x12b8   : > { %v2928_v49 = vmul.f32 0.7978846, %v2926_v47 }
0x12b9   : > { %3870 = vtanh.f32 %v2929_v48 }
0x12ba   : > { %3872 = vtanh.f32 %v2928_v49 }
0x12c3   : > { %v3871_v50 = vpop.eup %3870 }
0x12c4   : > { %v3873_v51 = vpop.eup %3872  ;;  %v2933_v52 = vadd.f32 1.0, %v3871_v50 }
0x12c5   : > { %v2932_v53 = vadd.f32 1.0, %v3873_v51 }
0x12c6   : > { %v2935_v54 = vmul.f32 0.5, %v2933_v52 }
0x12c7   : > { %v2934_v55 = vmul.f32 0.5, %v2932_v53 }
0x12c8   : > { %v2937_v57 = vmul.f32 %v2935_v54, %v2917_v36 }
0x12c9   : > { %v2936_v56 = vmul.f32 %v2934_v55, %v2912_v41 }
0x12cb   : > { %3628 = vmatprep.mubr.f32.mxu0 %v2936_v56 }
0x12cc   : > { %3629 = vmatmul.mubr.f32.vlgmr.msra.gmra.mrb[16].mxu0 %v2937_v57 }
0x139f   : > { %v3630_v61 = vpop.f32.mrb[16].mxu0 }
0x13a0   : > { %v3033_v35 = vadd.f32 %v3630_v61, %v3232_v60  ;;  %v3027_v62 = vpop.f32.mrb[17].mxu0 }
0x13a1   : > { %v3028_v63 = vadd.f32 %v3232_v60, %v3027_v62 }
0x13a2   : > { %v3037_v2 = vadd.f32 %v3033_v35, %v4344_v38 }
0x13a3   : > { %v3036_v58 = vadd.f32 %v3028_v63, %v4346_v39 }
0x13a4   : > { %3039 = vst.msk [vmem:[%s548_s21 + $0x8] sm:$0x1] %vm557_vm1, %v3037_v2 }
0x13a5   : > { %3038 = vst.msk [vmem:[%s548_s21] sm:$0xff] %vm553_vm0, %v3036_v58 }
0x13a6 PF: > { %s27_s24 = sadd.s32 1, %s3880_s24  }
0x13a7   : > { %p24_p4 = scmp.ge.s32.totalorder %s27_s24, 4  }
0x13a9   :  { %26 = sbr.rel (!%p24_p4) target bundleno = 3 (0x3), region = 139 }

// kernel: mage_forward.23
= control target key start
LH: loop header
LB: loop body
LE: loop exit
PB: predicated region body
PF: predicated region fallthrough
CT: control target
= control target key end

     0   :  { %vm27_vm0 = vcmask 130048   ;;  %v291_v35 = vmov 0.0|0.0   ;;  %vm292_vm1 = vmmov 0   ;;  %v293_v38 = vmov 0.0   ;;  %s404_s0 = inlined_call_operand.vmem [shape: f32[40,16], index: 0, kind: input, shape index: {}]   ;;  %s405_s3 = inlined_call_operand.vmem [shape: f32[16,128], index: 3, kind: input, shape index: {}]   ;;  %s406_s1 = inlined_call_operand.vmem [shape: f32[1,16], index: 1, kind: input, shape index: {}]   ;;  %s407_s2 = inlined_call_operand.vmem [shape: f32[1,16], index: 2, kind: input, shape index: {}]   ;;  %s408_s4 = inlined_call_operand.vmem [shape: f32[1,128], index: 4, kind: input, shape index: {}]   ;;  %s409_s5 = inlined_call_operand.vmem [shape: f32[40,128], index: 5, kind: output, shape index: {}]  }
   0x1   :  { %v20_v0 = vld [vmem:[%s404_s0] sm:$0xff]  ;;  %v23_v1 = vld [vmem:[%s404_s0 + $0x18] sm:$0xff]  ;;  %v21_v2 = vld [vmem:[%s404_s0 + $0x8] sm:$0xff]  ;;  %273 = vmatprep.subr.bf16.mxu0 %v291_v35  ;;  %258 = vmatprep.mubr.msk.f32.mxu0 %vm292_vm1, %v293_v38 }
   0x2   :  { %v28_v3 = vsel %vm27_vm0, %v20_v0, 0.0  ;;  %v37_v4 = vsel %vm27_vm0, %v23_v1, 0.0  ;;  %v22_v5 = vld [vmem:[%s404_s0 + $0x10] sm:$0xff]  ;;  %v31_v6 = vsel %vm27_vm0, %v21_v2, 0.0  ;;  %v24_v8 = vld [vmem:[%s404_s0 + $0x20] sm:$0xff]  ;;  %v117_v37 = vld [vmem:[%s405_s3 + $0x8] sm:$0xff]  ;;  %276 = vmatprep.subr.bf16.mxu1 %v291_v35  ;;  %267 = vmatprep.mubr.msk.f32.mxu1 %vm292_vm1, %v293_v38 }
   0x3   :  { %29 = vadd.xlane.f32.xlu0 %v28_v3  ;;  %38 = vadd.xlane.f32.xlu1 %v37_v4  ;;  %v34_v7 = vsel %vm27_vm0, %v22_v5, 0.0  ;;  %v40_v9 = vsel %vm27_vm0, %v24_v8, 0.0  ;;  %v116_v36 = vld [vmem:[%s405_s3] sm:$0xff] }
   0x4   :  { %v274_v39 = vpack.c.bf16 %v117_v37, %v116_v36  ;;  %v239_v56 = vld [vmem:[%s406_s1] ss:$0 sm:$0xff] }
   0x5   :  { %v240_v58 = vld [vmem:[%s407_s2] ss:$0 sm:$0xff] }
   0x6   :  { %275 = vmatpush3.bf16.msra.mxu0 %v274_v39  ;;  %277 = vmatpush3.bf16.msra.mxu1 %v274_v39 }
   0x7   :  { %32 = vadd.xlane.f32.xlu0 %v31_v6  ;;  %35 = vadd.xlane.f32.xlu1 %v34_v7 }
   0xb   :  { %41 = vadd.xlane.f32.xlu0 %v40_v9 }
  0x90   :  { %v30_v10 = vpop.xlane.xlu0 %29  ;;  %v39_v11 = vpop.xlane.xlu1 %38 }
  0x91   :  { %v44_v12 = vmul.f32 0.0625, %v30_v10  ;;  %v47_v13 = vmul.f32 0.0625, %v39_v11 }
  0x93   :  { %v344_v14 = vsub.f32 %v20_v0, %v44_v12  ;;  %v346_v15 = vsub.f32 %v23_v1, %v47_v13  ;;  %v241_v13 = vld [vmem:[%s408_s4] ss:$0 sm:$0xff] }
  0x94   :  { %v33_v16 = vpop.xlane.xlu0 %32  ;;  %v36_v17 = vpop.xlane.xlu1 %35 }
  0x95   :  { %v45_v18 = vmul.f32 0.0625, %v33_v16  ;;  %v46_v19 = vmul.f32 0.0625, %v36_v17  ;;  %v54_v20 = vmul.f32 %v344_v14, %v344_v14  ;;  %v57_v21 = vmul.f32 %v346_v15, %v346_v15 }
  0x97   :  { %v50_v22 = vsub.f32 %v21_v2, %v45_v18  ;;  %v352_v23 = vsub.f32 %v22_v5, %v46_v19  ;;  %v59_v24 = vsel %vm27_vm0, %v54_v20, 0.0  ;;  %v68_v27 = vsel %vm27_vm0, %v57_v21, 0.0 }
  0x98   :  { %60 = vadd.xlane.f32.xlu1 %v59_v24  ;;  %v42_v25 = vpop.xlane.xlu0 %41 }
  0x99   :  { %v48_v26 = vmul.f32 0.0625, %v42_v25  ;;  %v55_v28 = vmul.f32 %v50_v22, %v50_v22  ;;  %v56_v29 = vmul.f32 %v352_v23, %v352_v23 }
  0x9b   :  { %v53_v30 = vsub.f32 %v24_v8, %v48_v26  ;;  %v62_v31 = vsel %vm27_vm0, %v55_v28, 0.0  ;;  %v65_v32 = vsel %vm27_vm0, %v56_v29, 0.0 }
  0x9c   :  { %69 = vadd.xlane.f32.xlu1 %v68_v27  ;;  %63 = vadd.xlane.f32.xlu0 %v62_v31 }
  0x9d   :  { %v58_v33 = vmul.f32 %v53_v30, %v53_v30 }
  0x9f   :  { %v71_v34 = vsel %vm27_vm0, %v58_v33, 0.0 }
  0xa0   :  { %66 = vadd.xlane.f32.xlu0 %v65_v32  ;;  %72 = vadd.xlane.f32.xlu1 %v71_v34 }
 0x125   :  { %v61_v40 = vpop.xlane.xlu1 %60 }
 0x126   :  { %v74_v41 = vmul.f32 0.0625, %v61_v40 }
 0x128   :  { %v79_v42 = vadd.f32 1e-05, %v74_v41 }
 0x129   :  { %v70_v43 = vpop.xlane.xlu1 %69  ;;  %v64_v44 = vpop.xlane.xlu0 %63 }
 0x12a   :  { %281 = vrsqrt.f32 %v79_v42  ;;  %v77_v45 = vmul.f32 0.0625, %v70_v43  ;;  %v75_v46 = vmul.f32 0.0625, %v64_v44 }
 0x12c   :  { %v82_v47 = vadd.f32 1e-05, %v77_v45  ;;  %v80_v48 = vadd.f32 1e-05, %v75_v46 }
 0x12d   :  { %v73_v49 = vpop.xlane.xlu1 %72  ;;  %v67_v50 = vpop.xlane.xlu0 %66 }
 0x12e   :  { %283 = vrsqrt.f32 %v82_v47  ;;  %v78_v51 = vmul.f32 0.0625, %v73_v49  ;;  %v76_v52 = vmul.f32 0.0625, %v67_v50 }
 0x12f   :  { %285 = vrsqrt.f32 %v80_v48 }
 0x130   :  { %v83_v53 = vadd.f32 1e-05, %v78_v51  ;;  %v81_v54 = vadd.f32 1e-05, %v76_v52 }
 0x132   :  { %287 = vrsqrt.f32 %v83_v53 }
 0x133   :  { %289 = vrsqrt.f32 %v81_v54 }
 0x134   :  { %v282_v55 = vpop.eup %281 }
 0x135   :  { %v89_v57 = vmul.f32 %v282_v55, %v344_v14 }
 0x137   :  { %v100_v59 = vmul.f32 %v239_v56, %v89_v57 }
 0x138   :  { %v284_v60 = vpop.eup %283 }
 0x139   :  { %v286_v61 = vpop.eup %285  ;;  %v111_v62 = vadd.f32 %v240_v58, %v100_v59  ;;  %v92_v63 = vmul.f32 %v284_v60, %v346_v15 }
 0x13a   :  { %v90_v0 = vmul.f32 %v286_v61, %v50_v22 }
 0x13b   :  { %259 = vmatmul.mubr.msk.f32.vlgmr.msra.gmra.mrb[0].mxu0 %vm27_vm0, %v111_v62  ;;  %v103_v1 = vmul.f32 %v239_v56, %v92_v63 }
 0x13c   :  { %v288_v2 = vpop.eup %287  ;;  %261 = vmatprep.mubr.msk.f32.mxu0 %vm292_vm1, %v293_v38  ;;  %v101_v3 = vmul.f32 %v239_v56, %v90_v0 }
 0x13d   :  { %v290_v4 = vpop.eup %289  ;;  %v114_v5 = vadd.f32 %v240_v58, %v103_v1  ;;  %v93_v6 = vmul.f32 %v288_v2, %v53_v30 }
 0x13e   :  { %v112_v7 = vadd.f32 %v240_v58, %v101_v3  ;;  %v91_v8 = vmul.f32 %v290_v4, %v352_v23 }
 0x13f   :  { %268 = vmatmul.mubr.msk.f32.vlgmr.msra.gmra.mrb[0].mxu1 %vm27_vm0, %v114_v5  ;;  %v104_v9 = vmul.f32 %v239_v56, %v93_v6 }
 0x140   :  { %262 = vmatmul.mubr.msk.f32.gmra.mrb[2].mxu0 %vm27_vm0, %v112_v7  ;;  %270 = vmatprep.mubr.msk.f32.mxu1 %vm292_vm1, %v293_v38  ;;  %v102_v10 = vmul.f32 %v239_v56, %v91_v8 }
 0x141   :  { %264 = vmatprep.mubr.msk.f32.mxu0 %vm292_vm1, %v293_v38  ;;  %v115_v11 = vadd.f32 %v240_v58, %v104_v9 }
 0x142   :  { %v113_v12 = vadd.f32 %v240_v58, %v102_v10 }
 0x143   :  { %271 = vmatmul.mubr.msk.f32.gmra.mrb[2].mxu1 %vm27_vm0, %v115_v11 }
 0x144   :  { %265 = vmatmul.mubr.msk.f32.gmra.mrb[4].mxu0 %vm27_vm0, %v113_v12 }
 0x20e   :  { %v206_v14 = vpop.f32.mrb[0].mxu0 }
 0x20f   :  { %v207_v15 = vadd.f32 %v241_v13, %v206_v14  ;;  %v260_v16 = vpop.f32.mrb[1].mxu0 }
 0x211   :  { %230 = vst [vmem:[%s409_s5] sm:$0xff] %v207_v15 }
 0x212   :  { %v221_v17 = vpop.f32.mrb[0].mxu1 }
 0x213   :  { %v211_v18 = vpop.f32.mrb[2].mxu0  ;;  %v222_v19 = vadd.f32 %v241_v13, %v221_v17  ;;  %v269_v20 = vpop.f32.mrb[1].mxu1 }
 0x214   :  { %v212_v21 = vadd.f32 %v241_v13, %v211_v18  ;;  %v263_v22 = vpop.f32.mrb[3].mxu0 }
 0x215   :  { %233 = vst [vmem:[%s409_s5 + $0x18] sm:$0xff] %v222_v19 }
 0x216   :  { %231 = vst [vmem:[%s409_s5 + $0x8] sm:$0xff] %v212_v21  ;;  %v226_v23 = vpop.f32.mrb[2].mxu1 }
 0x217   :  { %v216_v24 = vpop.f32.mrb[4].mxu0  ;;  %v227_v25 = vadd.f32 %v241_v13, %v226_v23  ;;  %v272_v26 = vpop.f32.mrb[3].mxu1 }
 0x218   :  { %v217_v27 = vadd.f32 %v241_v13, %v216_v24  ;;  %v266_v28 = vpop.f32.mrb[5].mxu0 }
 0x219   :  { %234 = vst [vmem:[%s409_s5 + $0x20] sm:$0xff] %v227_v25 }
 0x21a   :  { %232 = vst [vmem:[%s409_s5 + $0x10] sm:$0xff] %v217_v27 }

// kernel: mage_forward.18
= control target key start
LH: loop header
LB: loop body
LE: loop exit
PB: predicated region body
PF: predicated region fallthrough
CT: control target
= control target key end

     0   :  { %s3777_s24 = smov 0   ;;  %s4162_s0 = inlined_call_operand.vmem [shape: f32[2,11,16], index: 0, kind: input, shape index: {}]   ;;  %s4163_s1 = inlined_call_operand.vmem [shape: f32[1,16], index: 1, kind: input, shape index: {}]   ;;  %s4164_s2 = inlined_call_operand.vmem [shape: f32[1,16], index: 2, kind: input, shape index: {}]   ;;  %s4165_s3 = inlined_call_operand.vmem [shape: f32[4,16,4], index: 3, kind: input, shape index: {}]   ;;  %s4166_s4 = inlined_call_operand.vmem [shape: f32[4,16,4], index: 4, kind: input, shape index: {}]   ;;  %s4167_s5 = inlined_call_operand.vmem [shape: f32[4,16,4], index: 5, kind: input, shape index: {}]   ;;  %s4168_s6 = inlined_call_operand.vmem [shape: f32[4,1,4], index: 6, kind: input, shape index: {}]   ;;  %s4169_s7 = inlined_call_operand.vmem [shape: f32[4,1,4], index: 7, kind: input, shape index: {}]   ;;  %s4170_s8 = inlined_call_operand.vmem [shape: f32[4,1,4], index: 8, kind: input, shape index: {}]   ;;  %s4171_s9 = inlined_call_operand.vmem [shape: f32[4,4,16], index: 9, kind: input, shape index: {}]   ;;  %s4172_s10 = inlined_call_operand.vmem [shape: f32[1,16], index: 10, kind: input, shape index: {}]   ;;  %s4173_s11 = inlined_call_operand.vmem [shape: f32[1,16], index: 11, kind: input, shape index: {}]   ;;  %s4174_s12 = inlined_call_operand.vmem [shape: f32[1,16], index: 12, kind: input, shape index: {}]   ;;  %s4175_s13 = inlined_call_operand.vmem [shape: f32[16,64], index: 13, kind: input, shape index: {}]   ;;  %s4176_s14 = inlined_call_operand.vmem [shape: f32[1,64], index: 14, kind: input, shape index: {}]   ;;  %s4177_s15 = inlined_call_operand.vmem [shape: f32[64,16], index: 15, kind: input, shape index: {}]   ;;  %s4178_s16 = inlined_call_operand.vmem [shape: f32[1,16], index: 16, kind: input, shape index: {}]   ;;  %s4179_s17 = inlined_call_operand.vmem [shape: f32[2,11,16], index: 17, kind: output, shape index: {}]  }
   0x1   :  { %4180 = sst [smem:[#allocation2_spill]] %s4162_s0 }
   0x2   :  { %4181 = sst [smem:[#allocation3_spill]] %s4163_s1 }
   0x3 LB: > { %s3081_s25 = sadd.s32 4294967295, %s3684_s24   ;;  %p3085_p0 = scmp.ge.s32.totalorder %s3684_s24, 1  ;;  %s3684_s24 = sphi %s3777_s24, %s27_s24  }
   0x4   : > { %p487_p1 = scmp.lt.s32.totalorder %s3684_s24, 3 }
   0x6   : > { %p488_p2 = pnand %p3085_p0, %p487_p1 }
   0x7   : > { %p539_p3 = scmp.lt.s32.totalorder (!%p488_p2), %s3081_s25, 1  ;;  %vm553_vm0 = vcmask (!%p488_p2), 130048   ;;  %s4182_s29 = sld [smem:[#allocation2_spill]] (!%p488_p2)  ;;  %vm557_vm1 = vcmask (!%p488_p2), 124928   ;;  %v598_v14 = vld [vmem:[%s4165_s3] sm:$0xff] (!%p488_p2)  ;;  %v599_v15 = vld [vmem:[%s4165_s3 + $0x8] sm:$0xff] (!%p488_p2) }
   0x8   : > { %491 = sbr.rel (%p488_p2) target bundleno = 4471 (0x1177), region = 88  ;;  %v3503_v16 = vpack.c.bf16 (!%p488_p2), %v599_v15, %v598_v14  ;;  %v688_v17 = vld [vmem:[%s4166_s4] sm:$0xff] (!%p488_p2)  ;;  %v689_v18 = vld [vmem:[%s4166_s4 + $0x8] sm:$0xff] (!%p488_p2)  ;;  %vm856_vm2 = vcmask (!%p488_p2), 31744   ;;  %v3114_v47 = vld [vmem:[%s4166_s4 + $0x10] sm:$0xff] (!%p488_p2)  ;;  %vm976_vm4 = vcmask (!%p488_p2), 1042432  }
   0x9   : > { %v3507_v19 = vpack.c.bf16 (!%p488_p2), %v689_v18, %v688_v17  ;;  %v3091_v29 = vld [vmem:[%s4164_s2] ss:$0 sm:$0xff] (!%p488_p2)  ;;  %v773_v35 = vld [vmem:[%s4167_s5 + $0x8] sm:$0xff] (!%p488_p2)  ;;  %v3115_v48 = vld [vmem:[%s4166_s4 + $0x18] sm:$0xff] (!%p488_p2)  ;;  %vm3686_vm5 = vmmov (!%p488_p2), 1   ;;  %vm950_vm7 = vcmask (!%p488_p2), 83968  }
   0xa   : > { %3504 = vmatprep.subr.bf16.mxu0 (!%p488_p2), %v3503_v16  ;;  %v772_v34 = vld [vmem:[%s4167_s5] sm:$0xff] (!%p488_p2)  ;;  %vm3863_vm3 = vmpackc.low (!%p488_p2), %vm856_vm2, %vm856_vm2  ;;  %v3531_v54 = vpack.c.bf16 (!%p488_p2), %v3115_v48, %v3114_v47  ;;  %vm946_vm8 = vcmask (!%p488_p2), 89088   ;;  %vm1517_vm9 = vcmask (!%p488_p2), 1043456   ;;  %vm2940_vm10 = vcmask (!%p488_p2), 523264  }
   0xb   : > { %3506 = vmatpush3.bf16.msra.mxu0 (!%p488_p2), %v3503_v16  ;;  %v3511_v38 = vpack.c.bf16 (!%p488_p2), %v773_v35, %v772_v34  ;;  %v3092_v39 = vld [vmem:[%s4168_s6] ss:$0 sm:$0xff] (!%p488_p2)  ;;  %vm3871_vm6 = vmpackc.low (!%p488_p2), %vm976_vm4, %vm3686_vm5  ;;  %v3141_v35 = vld [vmem:[%s4165_s3 + $0x28] sm:$0xff] (!%p488_p2) }
   0xc   : > { %3508 = vmatprep.subr.bf16.mxu0 (!%p488_p2), %v3507_v19  ;;  %v3095_v43 = vld [vmem:[%s4169_s7] ss:$0 sm:$0xff] (!%p488_p2) }
   0xd   : > { %v3098_v50 = vld [vmem:[%s4170_s8] ss:$0 sm:$0xff] (!%p488_p2) }
   0xe   : > { %v3140_v34 = vld [vmem:[%s4165_s3 + $0x20] sm:$0xff] (!%p488_p2) }
   0xf   : > { %s4189_s25 = smov (!%p539_p3, %s3081_s25), 1 }
  0x10   : > { %s3209_s26 = sshll.u32 %s4189_s25, 4 }
  0x11   : > { %s543_s0 = scalar_lea.vmem %s4182_s29, %s3209_s26  ;;  %s4183_s29 = sld [smem:[#allocation3_spill]] }
  0x12   : > { %v3793_v0 = vld [vmem:[%s543_s0] sm:$0xff]  ;;  %v3795_v1 = vld [vmem:[%s543_s0 + $0x8] sm:$0x7]  ;;  %s548_s28 = scalar_lea.vmem %s4179_s17, %s3209_s26 }
  0x13   : > { %v554_v2 = vsel %vm553_vm0, %v3793_v0, 0.0  ;;  %v558_v3 = vsel %vm557_vm1, %v3795_v1, 0.0 }
  0x14   : > { %555 = vadd.xlane.f32.xlu0 %v554_v2 }
  0x17   : > { %v3090_v27 = vld [vmem:[%s4183_s29] ss:$0 sm:$0xff] }
  0x18   : > { %559 = vadd.xlane.f32.xlu0 %v558_v3  ;;  %v3117_v3 = vld [vmem:[%s4169_s7 + $0x1] ss:$0 sm:$0xff] }
  0xa1   : > { %v556_v4 = vpop.xlane.xlu0 %555 }
  0xa2   : > { %v562_v5 = vmul.f32 0.0625, %v556_v4 }
  0xa4   : > { %v564_v6 = vsub.f32 %v3793_v0, %v562_v5 }
  0xa5   : > { %v560_v7 = vpop.xlane.xlu0 %559 }
  0xa6   : > { %v563_v8 = vmul.f32 0.0625, %v560_v7  ;;  %v566_v9 = vmul.f32 %v564_v6, %v564_v6 }
  0xa8   : > { %v565_v10 = vsub.f32 %v3795_v1, %v563_v8  ;;  %v568_v11 = vsel %vm553_vm0, %v566_v9, 0.0 }
  0xa9   : > { %569 = vadd.xlane.f32.xlu1 %v568_v11 }
  0xaa   : > { %v567_v12 = vmul.f32 %v565_v10, %v565_v10 }
  0xac   : > { %v571_v13 = vsel %vm557_vm1, %v567_v12, 0.0 }
  0xad   : > { %572 = vadd.xlane.f32.xlu1 %v571_v13 }
 0x136   : > { %v570_v20 = vpop.xlane.xlu1 %569 }
 0x137   : > { %v574_v21 = vmul.f32 0.0625, %v570_v20 }
 0x139   : > { %v576_v22 = vadd.f32 1e-05, %v574_v21  ;;  %v3108_v21 = vld [vmem:[%s4165_s3 + $0x10] sm:$0xff] }
 0x13a   : > { %v573_v23 = vpop.xlane.xlu1 %572 }
 0x13b   : > { %3634 = vrsqrt.f32 %v576_v22  ;;  %v575_v24 = vmul.f32 0.0625, %v573_v23  ;;  %v3109_v22 = vld [vmem:[%s4165_s3 + $0x18] sm:$0xff] }
 0x13c   : > { %v3527_v23 = vpack.c.bf16 %v3109_v22, %v3108_v21 }
 0x13d   : > { %v577_v25 = vadd.f32 1e-05, %v575_v24 }
 0x13f   : > { %3636 = vrsqrt.f32 %v577_v25 }
 0x145   : > { %v3635_v26 = vpop.eup %3634 }
 0x146   : > { %v580_v28 = vmul.f32 %v3635_v26, %v564_v6 }
 0x148   : > { %v588_v30 = vmul.f32 %v3090_v27, %v580_v28  ;;  %v3121_v28 = vld [vmem:[%s4167_s5 + $0x18] sm:$0xff] }
 0x149   : > { %v3637_v31 = vpop.eup %3636 }
 0x14a   : > { %v3823_v32 = vadd.f32 %v3091_v29, %v588_v30  ;;  %v581_v33 = vmul.f32 %v3637_v31, %v565_v10 }
 0x14c   : > { %v589_v36 = vmul.f32 %v3090_v27, %v581_v33  ;;  %3321 = vmatprep.mubr.msk.f32.mxu0 %vm553_vm0, %v3823_v32  ;;  %v3120_v27 = vld [vmem:[%s4167_s5 + $0x10] sm:$0xff] }
 0x14d   : > { %v3535_v33 = vpack.c.bf16 %v3121_v28, %v3120_v27 }
 0x14e   : > { %v3833_v37 = vadd.f32 %v3091_v29, %v589_v36  ;;  %v3551_v36 = vpack.c.bf16 %v3141_v35, %v3140_v34 }
 0x150   : > { %3322 = vmatmul.mubr.msk.f32.vlgmr.msra.gmra.mrb[0].mxu0 %vm553_vm0, %v3833_v37 }
 0x151   : > { %3510 = vmatpush3.bf16.msra.mxu0 %v3507_v19  ;;  %3328 = vmatprep.mubr.msk.f32.mxu0 %vm553_vm0, %v3823_v32 }
 0x152   : > { %3512 = vmatprep.subr.bf16.mxu0 %v3511_v38 }
 0x154   : > { %3329 = vmatmul.mubr.msk.f32.vlgmr.msra.gmra.mrb[2].mxu0 %vm553_vm0, %v3833_v37 }
 0x155   : > { %3514 = vmatpush3.bf16.msra.mxu0 %v3511_v38  ;;  %3335 = vmatprep.mubr.msk.f32.mxu0 %vm553_vm0, %v3823_v32 }
 0x158   : > { %3336 = vmatmul.mubr.msk.f32.vlgmr.msra.gmra.mrb[4].mxu0 %vm553_vm0, %v3833_v37 }
 0x223   : > { %v3323_v40 = vpop.f32.mrb[0].mxu0 }
 0x224   : > { %v679_v41 = vpop.f32.mrb[1].mxu0  ;;  %v685_v60 = vadd.f32 %v3323_v40, %v3092_v39  ;;  %v3111_v40 = vld [vmem:[%s4168_s6 + $0x1] ss:$0 sm:$0xff] }
 0x225   : > { %v680_v42 = vadd.f32 %v3092_v39, %v679_v41 }
 0x227   : > { %v3330_v44 = vpop.f32.mrb[2].mxu0  ;;  %3342 = vmatprep.mubr.msk.f32.mxu1 %vm856_vm2, %v680_v42  ;;  %v3146_v42 = vld [vmem:[%s4166_s4 + $0x20] sm:$0xff] }
 0x228   : > { %v769_v45 = vadd.f32 %v3330_v44, %v3095_v43  ;;  %v763_v46 = vpop.f32.mrb[3].mxu0 }
 0x229   : > { %v764_v49 = vadd.f32 %v3095_v43, %v763_v46  ;;  %v3147_v43 = vld [vmem:[%s4166_s4 + $0x28] sm:$0xff]  ;;  %v3123_v46 = vld [vmem:[%s4170_s8 + $0x1] ss:$0 sm:$0xff] }
 0x22a   : > { %v3555_v48 = vpack.c.bf16 %v3147_v43, %v3146_v42 }
 0x22b   : > { %v3337_v52 = vpop.f32.mrb[4].mxu0  ;;  %v3515_v53 = vpack.c.bf16 %v769_v45, %v764_v49 }
 0x22c   : > { %v853_v55 = vadd.f32 %v3337_v52, %v3098_v50  ;;  %v847_v56 = vpop.f32.mrb[5].mxu0 }
 0x22d   : > { %v848_v57 = vadd.f32 %v3098_v50, %v847_v56  ;;  %3517 = vmatprep.subr.msk.bf16.mxu1 %vm3863_vm3, %v3515_v53 }
 0x22e   : > { %3520 = vmatpush3.bf16.xpose.msk.msra.mxu1 %vm3863_vm3, %v3515_v53 }
 0x22f   : > { %v3521_v59 = vpack.c.bf16 %v853_v55, %v848_v57  ;;  %3532 = vmatprep.subr.bf16.mxu1 %v3531_v54 }
 0x231   : > { %3523 = vmatprep.subr.msk.bf16.mxu0 %vm3871_vm6, %v3521_v59 }
 0x232   : > { %3526 = vmatpush3.bf16.msk.msra.mxu0 %vm3871_vm6, %v3521_v59 }
 0x233   : > { %3528 = vmatprep.subr.bf16.mxu0 %v3527_v23 }
 0x235   : > { %3343 = vmatmul.mubr.msk.f32.vlgmr.msra.gmra.mrb[0].mxu1 %vm856_vm2, %v685_v60 }
 0x236   : > { %3534 = vmatpush3.bf16.msra.mxu1 %v3531_v54  ;;  %3363 = vmatprep.mubr.msk.f32.mxu1 %vm553_vm0, %v3823_v32 }
 0x239   : > { %3364 = vmatmul.mubr.msk.f32.vlgmr.msra.gmra.mrb[2].mxu1 %vm553_vm0, %v3833_v37 }
 0x308   : > { %v3344_v61 = vpop.f32.mrb[0].mxu1 }
 0x309   : > { %v945_v62 = vmul.f32 0.5, %v3344_v61  ;;  %v935_v63 = vpop.f32.mrb[1].mxu1  ;;  %v3143_v61 = vld [vmem:[%s4168_s6 + $0x2] ss:$0 sm:$0xff] }
 0x30a   : > { %v944_v2 = vmul.f32 0.5, %v935_v63 }
 0x30b   : > { %v951_v4 = vsel %vm950_vm7, %v945_v62, -inf }
 0x30c   : > { %952 = vmax.xlane.f32.xlu1 %v951_v4  ;;  %v3365_v5 = vpop.f32.mrb[2].mxu1  ;;  %v947_v6 = vsel %vm946_vm8, %v944_v2, -inf  ;;  %v3149_v4 = vld [vmem:[%s4169_s7 + $0x2] ss:$0 sm:$0xff] }
 0x30d   : > { %v1225_v7 = vadd.f32 %v3365_v5, %v3117_v3  ;;  %v1219_v8 = vpop.f32.mrb[3].mxu1  ;;  %948 = vmax.xlane.f32.xlu0 %v947_v6 }
 0x30e   : > { %v1220_v9 = vadd.f32 %v3117_v3, %v1219_v8  ;;  %v3169_v8 = vld [vmem:[%s4165_s3 + $0x30] sm:$0xff] }
 0x310   : > { %v3539_v10 = vpack.c.bf16 %v1225_v7, %v1220_v9  ;;  %v3170_v9 = vld [vmem:[%s4165_s3 + $0x38] sm:$0xff] }
 0x312   : > { %3541 = vmatprep.subr.msk.bf16.mxu1 %vm3863_vm3, %v3539_v10 }
 0x313   : > { %3544 = vmatpush3.bf16.xpose.msk.msra.mxu1 %vm3863_vm3, %v3539_v10 }
 0x314   : > { %3552 = vmatprep.subr.bf16.mxu1 %v3551_v36 }
 0x399   : > { %v953_v11 = vpop.xlane.xlu1 %952 }
 0x39a   : > { %v955_v12 = vsub.f32 %v945_v62, %v953_v11  ;;  %v949_v13 = vpop.xlane.xlu0 %948 }
 0x39b   : > { %v954_v14 = vsub.f32 %v944_v2, %v949_v13  ;;  %v3181_v13 = vld [vmem:[%s4167_s5 + $0x30] sm:$0xff] }
 0x39c   : > { %v958_v15 = vmul.f32 1.442695, %v955_v12  ;;  %v3575_v12 = vpack.c.bf16 %v3170_v9, %v3169_v8 }
 0x39d   : > { %v956_v16 = vmul.f32 1.442695, %v954_v14  ;;  %v3182_v14 = vld [vmem:[%s4167_s5 + $0x38] sm:$0xff] }
 0x39e   : > { %3638 = vpow2.f32 %v958_v15 }
 0x39f   : > { %3640 = vpow2.f32 %v956_v16  ;;  %v3583_v16 = vpack.c.bf16 %v3182_v14, %v3181_v13 }
 0x3a8   : > { %v3639_v17 = vpop.eup %3638 }
 0x3a9   : > { %v3641_v18 = vpop.eup %3640  ;;  %v963_v19 = vsel %vm950_vm7, %v3639_v17, 0.0 }
 0x3aa   : > { %964 = vadd.xlane.f32.xlu1 %v963_v19  ;;  %v960_v20 = vsel %vm946_vm8, %v3641_v18, 0.0 }
 0x3ab   : > { %961 = vadd.xlane.f32.xlu0 %v960_v20 }
 0x437   : > { %v965_v24 = vpop.xlane.xlu1 %964 }
 0x438   : > { %3642 = vrcp.f32 %v965_v24  ;;  %v962_v25 = vpop.xlane.xlu0 %961 }
 0x439   : > { %3644 = vrcp.f32 %v962_v25 }
 0x442   : > { %v3643_v26 = vpop.eup %3642 }
 0x443   : > { %v3645_v29 = vpop.eup %3644  ;;  %v969_v31 = vmul.f32 %v3643_v26, %v3639_v17 }
 0x444   : > { %v968_v30 = vmul.f32 %v3645_v29, %v3641_v18 }
 0x446   : > { %3349 = vmatprep.mubr.msk.f32.mxu0 %vm946_vm8, %v968_v30 }
 0x447   : > { %3350 = vmatmul.mubr.msk.f32.vlgmr.msra.gmra.mrb[6].mxu0 %vm946_vm8, %v969_v31  ;;  %v3992_v31 = vld [vmem:[%s4168_s6 + $0x3] ss:$0 sm:$0xff] }
 0x448   : > { %3530 = vmatpush3.bf16.msra.mxu0 %v3527_v23  ;;  %3356 = vmatprep.mubr.msk.f32.mxu0 %vm553_vm0, %v3823_v32 }
 0x449   : > { %3536 = vmatprep.subr.bf16.mxu0 %v3535_v33 }
 0x44b   : > { %3357 = vmatmul.mubr.msk.f32.vlgmr.msra.gmra.mrb[8].mxu0 %vm553_vm0, %v3833_v37 }
 0x44c   : > { %3538 = vmatpush3.bf16.msra.mxu0 %v3535_v33  ;;  %3370 = vmatprep.mubr.msk.f32.mxu0 %vm553_vm0, %v3823_v32 }
 0x44f   : > { %3371 = vmatmul.mubr.msk.f32.vlgmr.msra.gmra.mrb[10].mxu0 %vm553_vm0, %v3833_v37 }
 0x51a   : > { %v3923_v38 = vpop.f32.mrb[6].mxu0 }
 0x51b   : > { %v3925_v39 = vpop.f32.mrb[7].mxu0 }
 0x51e   : > { %v3358_v41 = vpop.f32.mrb[8].mxu0 }
 0x51f   : > { %v1133_v44 = vpop.f32.mrb[9].mxu0  ;;  %v1139_v47 = vadd.f32 %v3358_v41, %v3111_v40  ;;  %v3184_v41 = vld [vmem:[%s4170_s8 + $0x3] ss:$0 sm:$0xff] }
 0x520   : > { %v1134_v45 = vadd.f32 %v3111_v40, %v1133_v44 }
 0x522   : > { %v3372_v49 = vpop.f32.mrb[10].mxu0  ;;  %3377 = vmatprep.mubr.msk.f32.mxu1 %vm856_vm2, %v1134_v45 }
 0x523   : > { %v1311_v50 = vadd.f32 %v3372_v49, %v3123_v46  ;;  %v1305_v52 = vpop.f32.mrb[11].mxu0  ;;  %3378 = vmatmul.mubr.msk.f32.vlgmr.msra.gmra.mrb[4].mxu1 %vm856_vm2, %v1139_v47  ;;  %v3133_v47 = vld [vmem:[%s4171_s9 + $0x4] sm:$0xf] }
 0x524   : > { %v1306_v53 = vadd.f32 %v3123_v46, %v1305_v52  ;;  %3554 = vmatpush3.bf16.msra.mxu1 %v3551_v36  ;;  %3401 = vmatprep.mubr.msk.f32.mxu1 %vm553_vm0, %v3823_v32 }
 0x525   : > { %3556 = vmatprep.subr.bf16.mxu1 %v3555_v48 }
 0x526   : > { %v3545_v54 = vpack.c.bf16 %v1311_v50, %v1306_v53 }
 0x527   : > { %3402 = vmatmul.mubr.msk.f32.vlgmr.msra.gmra.mrb[6].mxu1 %vm553_vm0, %v3833_v37 }
 0x528   : > { %3547 = vmatprep.subr.msk.bf16.mxu0 %vm3871_vm6, %v3545_v54  ;;  %3558 = vmatpush3.bf16.msra.mxu1 %v3555_v48 }
 0x529   : > { %3408 = vmatprep.mubr.msk.f32.mxu1 %vm553_vm0, %v3823_v32  ;;  %3550 = vmatpush3.bf16.msk.msra.mxu0 %vm3871_vm6, %v3545_v54 }
 0x52a   : > { %3387 = vmatprep.subr.msk.mxu0 %vm1517_vm9, %v3133_v47 }
 0x52b   : > { %3409 = vmatmul.mubr.msk.f32.vlgmr.msra.gmra.mrb[8].mxu1 %vm553_vm0, %v3833_v37 }
 0x5f6   : > { %v3379_v55 = vpop.f32.mrb[4].mxu1 }
 0x5f7   : > { %v1402_v56 = vmul.f32 0.5, %v3379_v55  ;;  %v1392_v57 = vpop.f32.mrb[5].mxu1 }
 0x5f8   : > { %v1401_v59 = vmul.f32 0.5, %v1392_v57 }
 0x5f9   : > { %v1406_v60 = vsel %vm950_vm7, %v1402_v56, -inf }
 0x5fa   : > { %1407 = vmax.xlane.f32.xlu1 %v1406_v60  ;;  %v3403_v62 = vpop.f32.mrb[6].mxu1  ;;  %v1403_v63 = vsel %vm946_vm8, %v1401_v59, -inf }
 0x5fb   : > { %v1757_v2 = vpop.f32.mrb[7].mxu1  ;;  %1404 = vmax.xlane.f32.xlu0 %v1403_v63  ;;  %v1763_v15 = vadd.f32 %v3403_v62, %v3143_v61 }
 0x5fc   : > { %v1758_v3 = vadd.f32 %v3143_v61, %v1757_v2 }
 0x5fe   : > { %v3410_v5 = vpop.f32.mrb[8].mxu1  ;;  %3422 = vmatprep.mubr.msk.f32.mxu1 %vm856_vm2, %v1758_v3 }
 0x5ff   : > { %v1849_v6 = vadd.f32 %v3410_v5, %v3149_v4  ;;  %v1843_v7 = vpop.f32.mrb[9].mxu1  ;;  %v3152_v5 = vld [vmem:[%s4167_s5 + $0x20] sm:$0xff] }
 0x600   : > { %v1844_v10 = vadd.f32 %v3149_v4, %v1843_v7  ;;  %v1055_v4 = vld [vmem:[%s4171_s9] sm:$0xf] }
 0x602   : > { %v3563_v11 = vpack.c.bf16 %v1849_v6, %v1844_v10  ;;  %v3153_v6 = vld [vmem:[%s4167_s5 + $0x28] sm:$0xff] }
 0x603   : > { %v3559_v9 = vpack.c.bf16 %v3153_v6, %v3152_v5 }
 0x604   : > { %3565 = vmatprep.subr.msk.bf16.mxu1 %vm3863_vm3, %v3563_v11 }
 0x605   : > { %3568 = vmatpush3.bf16.xpose.msk.msra.mxu1 %vm3863_vm3, %v3563_v11 }
 0x606   : > { %3576 = vmatprep.subr.bf16.mxu1 %v3575_v12 }
 0x60c   : > { %3423 = vmatmul.mubr.msk.f32.vlgmr.msra.gmra.mrb[10].mxu1 %vm856_vm2, %v1763_v15 }
 0x60d   : > { %3578 = vmatpush3.bf16.msra.mxu1 %v3575_v12  ;;  %3441 = vmatprep.mubr.msk.f32.mxu1 %vm553_vm0, %v3823_v32 }
 0x60e   : > { %3584 = vmatprep.subr.bf16.mxu1 %v3583_v16 }
 0x610   : > { %3442 = vmatmul.mubr.msk.f32.vlgmr.msra.gmra.mrb[12].mxu1 %vm553_vm0, %v3833_v37 }
 0x611   : > { %3586 = vmatpush3.bf16.msra.mxu1 %v3583_v16  ;;  %3455 = vmatprep.mubr.msk.f32.mxu1 %vm553_vm0, %v3823_v32 }
 0x614   : > { %3456 = vmatmul.mubr.msk.f32.vlgmr.msra.gmra.mrb[14].mxu1 %vm553_vm0, %v3833_v37 }
 0x687   : > { %v1408_v17 = vpop.xlane.xlu1 %1407 }
 0x688   : > { %v1410_v18 = vsub.f32 %v1402_v56, %v1408_v17  ;;  %v1405_v19 = vpop.xlane.xlu0 %1404 }
 0x689   : > { %v1409_v20 = vsub.f32 %v1401_v59, %v1405_v19  ;;  %v3165_v19 = vld [vmem:[%s4171_s9 + $0x8] sm:$0xf] }
 0x68a   : > { %v1413_v21 = vmul.f32 1.442695, %v1410_v18 }
 0x68b   : > { %v1411_v22 = vmul.f32 1.442695, %v1409_v20 }
 0x68c   : > { %3646 = vpow2.f32 %v1413_v21  ;;  %v3175_v21 = vld [vmem:[%s4166_s4 + $0x30] sm:$0xff] }
 0x68d   : > { %3648 = vpow2.f32 %v1411_v22  ;;  %v3176_v22 = vld [vmem:[%s4166_s4 + $0x38] sm:$0xff] }
 0x696   : > { %v3647_v23 = vpop.eup %3646 }
 0x697   : > { %v3649_v24 = vpop.eup %3648  ;;  %v1418_v25 = vsel %vm950_vm7, %v3647_v23, 0.0 }
 0x698   : > { %1419 = vadd.xlane.f32.xlu1 %v1418_v25  ;;  %v1415_v26 = vsel %vm946_vm8, %v3649_v24, 0.0 }
 0x699   : > { %1416 = vadd.xlane.f32.xlu0 %v1415_v26  ;;  %v3178_v26 = vld [vmem:[%s4169_s7 + $0x3] ss:$0 sm:$0xff] }
 0x6df   : > { %v3424_v27 = vpop.f32.mrb[10].mxu1 }
 0x6e0   : > { %v2026_v28 = vmul.f32 0.5, %v3424_v27  ;;  %v2016_v29 = vpop.f32.mrb[11].mxu1 }
 0x6e1   : > { %v2025_v30 = vmul.f32 0.5, %v2016_v29 }
 0x6e2   : > { %v2030_v33 = vsel %vm950_vm7, %v2026_v28, -inf }
 0x6e3   : > { %2031 = vmax.xlane.f32.xlu1 %v2030_v33  ;;  %v3443_v34 = vpop.f32.mrb[12].mxu1  ;;  %v2027_v35 = vsel %vm946_vm8, %v2025_v30, -inf }
 0x6e4   : > { %v3997_v36 = vadd.f32 %v3443_v34, %v3992_v31  ;;  %v3999_v40 = vpop.f32.mrb[13].mxu1  ;;  %2028 = vmax.xlane.f32.xlu0 %v2027_v35 }
 0x6e5   : > { %v2299_v25 = vadd.f32 %v3992_v31, %v3999_v40 }
 0x6e7   : > { %v3457_v42 = vpop.f32.mrb[14].mxu1 }
 0x6e8   : > { %v2476_v43 = vadd.f32 %v3457_v42, %v3184_v41  ;;  %v2470_v44 = vpop.f32.mrb[15].mxu1 }
 0x6e9   : > { %v2471_v45 = vadd.f32 %v3184_v41, %v2470_v44 }
 0x6eb   : > { %v3593_v46 = vpack.c.bf16 %v2476_v43, %v2471_v45 }
 0x6ed   : > { %3595 = vmatprep.subr.msk.bf16.mxu1 %vm3871_vm6, %v3593_v46 }
 0x6ee   : > { %3598 = vmatpush3.bf16.msk.msra.mxu1 %vm3871_vm6, %v3593_v46 }
 0x725   : > { %v1420_v48 = vpop.xlane.xlu1 %1419 }
 0x726   : > { %3650 = vrcp.f32 %v1420_v48  ;;  %v1417_v49 = vpop.xlane.xlu0 %1416 }
 0x727   : > { %3652 = vrcp.f32 %v1417_v49  ;;  %v3194_v49 = vld [vmem:[%s4171_s9 + $0xc] sm:$0xf] }
 0x730   : > { %v3651_v50 = vpop.eup %3650 }
 0x731   : > { %v3653_v52 = vpop.eup %3652  ;;  %v1424_v54 = vmul.f32 %v3651_v50, %v3647_v23  ;;  %v3579_v23 = vpack.c.bf16 %v3176_v22, %v3175_v21 }
 0x732   : > { %v1423_v53 = vmul.f32 %v3653_v52, %v3649_v24 }
 0x734   : > { %3384 = vmatprep.mubr.msk.f32.mxu0 %vm946_vm8, %v1423_v53 }
 0x735   : > { %3385 = vmatmul.mubr.msk.f32.vlgmr.msra.gmra.mrb[12].mxu0 %vm946_vm8, %v1424_v54 }
 0x736   : > { %3388 = vmatpush3.msk.msra.mxu0 %vm1517_vm9, %v3133_v47 }
 0x737   : > { %3392 = vmatprep.subr.msk.mxu0 %vm1517_vm9, %v1055_v4 }
 0x770   : > { %v2032_v55 = vpop.xlane.xlu1 %2031 }
 0x771   : > { %v2034_v56 = vsub.f32 %v2026_v28, %v2032_v55  ;;  %v2029_v57 = vpop.xlane.xlu0 %2028 }
 0x772   : > { %v2033_v59 = vsub.f32 %v2025_v30, %v2029_v57 }
 0x773   : > { %v2037_v60 = vmul.f32 1.442695, %v2034_v56 }
 0x774   : > { %v2035_v61 = vmul.f32 1.442695, %v2033_v59 }
 0x775   : > { %3654 = vpow2.f32 %v2037_v60 }
 0x776   : > { %3656 = vpow2.f32 %v2035_v61  ;;  %v3198_v61 = vld [vmem:[%s4172_s10] ss:$0 sm:$0xff] }
 0x77f   : > { %v3655_v62 = vpop.eup %3654 }
 0x780   : > { %v3657_v63 = vpop.eup %3656  ;;  %v2042_v2 = vsel %vm950_vm7, %v3655_v62, 0.0 }
 0x781   : > { %2043 = vadd.xlane.f32.xlu1 %v2042_v2  ;;  %v2039_v3 = vsel %vm946_vm8, %v3657_v63, 0.0 }
 0x782   : > { %2040 = vadd.xlane.f32.xlu0 %v2039_v3 }
 0x808   : > { %v3386_v7 = vpop.f32.mrb[12].mxu0 }
 0x809   : > { %v1500_v8 = vpop.f32.mrb[13].mxu0 }
 0x80a   : > { %3389 = vmatprep.mubr.msk.f32.mxu0 %vm856_vm2, %v1500_v8 }
 0x80b   : > { %3390 = vmatmul.mubr.msk.f32.vlgmr.msra.gmra.mrb[14].mxu0 %vm856_vm2, %v3386_v7 }
 0x80c   : > { %3393 = vmatpush3.msk.msra.mxu0 %vm1517_vm9, %v1055_v4  ;;  %3394 = vmatprep.mubr.msk.f32.mxu0 %vm856_vm2, %v3925_v39  ;;  %v3155_v39 = vld [vmem:[%s4170_s8 + $0x2] ss:$0 sm:$0xff] }
 0x80d   : > { %3560 = vmatprep.subr.bf16.mxu0 %v3559_v9 }
 0x80e   : > { %v2044_v13 = vpop.xlane.xlu1 %2043 }
 0x80f   : > { %v2041_v10 = vpop.xlane.xlu0 %2040 }
 0x810   : > { %3658 = vrcp.f32 %v2041_v10 }
 0x811   : > { %3660 = vrcp.f32 %v2044_v13 }
 0x813   : > { %3395 = vmatmul.mubr.msk.f32.vlgmr.msra.gmra.mrb[14].mxu0 %vm856_vm2, %v3923_v38 }
 0x814   : > { %3562 = vmatpush3.bf16.msra.mxu0 %v3559_v9  ;;  %3415 = vmatprep.mubr.msk.f32.mxu0 %vm553_vm0, %v3823_v32 }
 0x817   : > { %3416 = vmatmul.mubr.msk.f32.vlgmr.msra.gmra.mrb[16].mxu0 %vm553_vm0, %v3833_v37 }
 0x81a   : > { %v3659_v11 = vpop.eup %3658 }
 0x81b   : > { %v2047_v12 = vmul.f32 %v3659_v11, %v3657_v63  ;;  %v3661_v18 = vpop.eup %3660 }
 0x81c   : > { %v2048_v20 = vmul.f32 %v3661_v18, %v3655_v62 }
 0x81d   : > { %3429 = vmatprep.mubr.msk.f32.mxu0 %vm946_vm8, %v2047_v12 }
 0x8ea   : > { %v3417_v14 = vpop.f32.mrb[16].mxu0 }
 0x8eb   : > { %v1935_v15 = vadd.f32 %v3417_v14, %v3155_v39  ;;  %v1929_v38 = vpop.f32.mrb[17].mxu0  ;;  %v2817_v14 = vld [vmem:[%s4175_s13] sm:$0xff] }
 0x8ec   : > { %v1930_v16 = vadd.f32 %v3155_v39, %v1929_v38 }
 0x8ee   : > { %v3569_v17 = vpack.c.bf16 %v1935_v15, %v1930_v16  ;;  %v2818_v15 = vld [vmem:[%s4175_s13 + $0x8] sm:$0xff] }
 0x8ef   : > { %v3599_v38 = vpack.c.bf16 %v2818_v15, %v2817_v14 }
 0x8f0   : > { %3571 = vmatprep.subr.msk.bf16.mxu0 %vm3871_vm6, %v3569_v17 }
 0x8f1   : > { %3574 = vmatpush3.bf16.msk.msra.mxu0 %vm3871_vm6, %v3569_v17  ;;  %3600 = vmatprep.subr.bf16.mxu1 %v3599_v38 }
 0x8f2   : > { %3432 = vmatprep.subr.msk.mxu0 %vm1517_vm9, %v3165_v19 }
 0x8f4   : > { %3430 = vmatmul.mubr.msk.f32.vlgmr.msra.gmra.mrb[18].mxu0 %vm946_vm8, %v2048_v20 }
 0x8f5   : > { %3433 = vmatpush3.msk.msra.mxu0 %vm1517_vm9, %v3165_v19 }
 0x8f6   : > { %3580 = vmatprep.subr.bf16.mxu0 %v3579_v23 }
 0x9c7   : > { %v3431_v24 = vpop.f32.mrb[18].mxu0 }
 0x9c8   : > { %v2124_v58 = vpop.f32.mrb[19].mxu0 }
 0x9c9   : > { %3434 = vmatprep.mubr.msk.f32.mxu0 %vm856_vm2, %v2124_v58 }
 0x9ca   : > { %3435 = vmatmul.mubr.msk.f32.vlgmr.msra.gmra.mrb[14].mxu0 %vm856_vm2, %v3431_v24 }
 0x9cb   : > { %3582 = vmatpush3.bf16.msra.mxu0 %v3579_v23  ;;  %3448 = vmatprep.mubr.msk.f32.mxu0 %vm553_vm0, %v3823_v32  ;;  %v3199_v23 = vld [vmem:[%s4173_s11] ss:$0 sm:$0xff] }
 0x9ce   : > { %3449 = vmatmul.mubr.msk.f32.vlgmr.msra.gmra.mrb[20].mxu0 %vm553_vm0, %v3833_v37 }
 0x9cf   : > { %3462 = vmatprep.mubr.msk.f32.mxu0 %vm856_vm2, %v2299_v25 }
 0xaa1   : > { %v3450_v27 = vpop.f32.mrb[20].mxu0 }
 0xaa2   : > { %v2390_v28 = vadd.f32 %v3450_v27, %v3178_v26  ;;  %v2384_v29 = vpop.f32.mrb[21].mxu0 }
 0xaa3   : > { %v2385_v30 = vadd.f32 %v3178_v26, %v2384_v29  ;;  %v3200_v26 = vld [vmem:[%s4174_s12] ss:$0 sm:$0xff] }
 0xaa5   : > { %v3587_v33 = vpack.c.bf16 %v2390_v28, %v2385_v30 }
 0xaa7   : > { %3589 = vmatprep.subr.msk.bf16.mxu0 %vm3863_vm3, %v3587_v33 }
 0xaa8   : > { %3592 = vmatpush3.bf16.xpose.msk.msra.mxu0 %vm3863_vm3, %v3587_v33  ;;  %v2925_v33 = vld [vmem:[%s4177_s15] sm:$0xff] }
 0xaa9   : > { %3472 = vmatprep.subr.msk.mxu0 %vm1517_vm9, %v3194_v49 }
 0xaaf   : > { %3463 = vmatmul.mubr.msk.f32.vlgmr.msra.gmra.mrb[22].mxu0 %vm856_vm2, %v3997_v36 }
 0xab0   : > { %3473 = vmatpush3.msk.msra.mxu0 %vm1517_vm9, %v3194_v49 }
 0xb82   : > { %v3464_v32 = vpop.f32.mrb[22].mxu0 }
 0xb83   : > { %v2567_v37 = vmul.f32 0.5, %v3464_v32  ;;  %v2557_v31 = vpop.f32.mrb[23].mxu0  ;;  %v2926_v32 = vld [vmem:[%s4177_s15 + $0x8] sm:$0xff] }
 0xb84   : > { %v2566_v34 = vmul.f32 0.5, %v2557_v31  ;;  %v2927_v31 = vld [vmem:[%s4177_s15 + $0x10] sm:$0xff] }
 0xb85   : > { %v2571_v35 = vsel %vm950_vm7, %v2567_v37, -inf }
 0xb86   : > { %2572 = vmax.xlane.f32.xlu1 %v2571_v35  ;;  %v2568_v40 = vsel %vm946_vm8, %v2566_v34, -inf }
 0xb87   : > { %2569 = vmax.xlane.f32.xlu0 %v2568_v40  ;;  %v2929_v40 = vld [vmem:[%s4177_s15 + $0x20] sm:$0xff] }
 0xc13   : > { %v2573_v41 = vpop.xlane.xlu1 %2572 }
 0xc14   : > { %v2575_v42 = vsub.f32 %v2567_v37, %v2573_v41  ;;  %v2570_v43 = vpop.xlane.xlu0 %2569  ;;  %v3603_v37 = vpack.c.bf16 %v2926_v32, %v2925_v33  ;;  %v2930_v41 = vld [vmem:[%s4177_s15 + $0x28] sm:$0xff] }
 0xc15   : > { %v2574_v44 = vsub.f32 %v2566_v34, %v2570_v43  ;;  %v2928_v34 = vld [vmem:[%s4177_s15 + $0x18] sm:$0xff]  ;;  %v2931_v43 = vld [vmem:[%s4177_s15 + $0x30] sm:$0xff] }
 0xc16   : > { %v2578_v45 = vmul.f32 1.442695, %v2575_v42  ;;  %v3607_v35 = vpack.c.bf16 %v2928_v34, %v2927_v31  ;;  %v3611_v42 = vpack.c.bf16 %v2930_v41, %v2929_v40 }
 0xc17   : > { %v2576_v51 = vmul.f32 1.442695, %v2574_v44  ;;  %v2932_v44 = vld [vmem:[%s4177_s15 + $0x38] sm:$0xff] }
 0xc18   : > { %3662 = vpow2.f32 %v2578_v45  ;;  %v3615_v45 = vpack.c.bf16 %v2932_v44, %v2931_v43 }
 0xc19   : > { %3664 = vpow2.f32 %v2576_v51  ;;  %v3201_v51 = vld [vmem:[%s4176_s14] ss:$0 sm:$0xff] }
 0xc22   : > { %v3663_v46 = vpop.eup %3662 }
 0xc23   : > { %v3665_v36 = vpop.eup %3664  ;;  %v2583_v47 = vsel %vm950_vm7, %v3663_v46, 0.0 }
 0xc24   : > { %2584 = vadd.xlane.f32.xlu1 %v2583_v47  ;;  %v2580_v48 = vsel %vm946_vm8, %v3665_v36, 0.0 }
 0xc25   : > { %2581 = vadd.xlane.f32.xlu0 %v2580_v48 }
 0xcb1   : > { %v2585_v50 = vpop.xlane.xlu1 %2584 }
 0xcb2   : > { %3666 = vrcp.f32 %v2585_v50  ;;  %v2582_v52 = vpop.xlane.xlu0 %2581 }
 0xcb3   : > { %3668 = vrcp.f32 %v2582_v52 }
 0xcbc   : > { %v3667_v53 = vpop.eup %3666 }
 0xcbd   : > { %v3669_v54 = vpop.eup %3668  ;;  %v2589_v56 = vmul.f32 %v3667_v53, %v3663_v46 }
 0xcbe   : > { %v2588_v55 = vmul.f32 %v3669_v54, %v3665_v36 }
 0xcc0   : > { %3469 = vmatprep.mubr.msk.f32.mxu1 %vm946_vm8, %v2588_v55 }
 0xcc1   : > { %3470 = vmatmul.mubr.msk.f32.vlgmr.msra.gmra.mrb[16].mxu1 %vm946_vm8, %v2589_v56 }
 0xcc2   : > { %3602 = vmatpush3.bf16.msra.mxu1 %v3599_v38 }
 0xcc3   : > { %3604 = vmatprep.subr.bf16.mxu1 %v3603_v37 }
 0xd94   : > { %v3471_v57 = vpop.f32.mrb[16].mxu1 }
 0xd95   : > { %v2665_v59 = vpop.f32.mrb[17].mxu1 }
 0xd96   : > { %3474 = vmatprep.mubr.msk.f32.mxu0 %vm856_vm2, %v2665_v59 }
 0xd97   : > { %3475 = vmatmul.mubr.msk.f32.vlgmr.msra.gmra.mrb[14].mxu0 %vm856_vm2, %v3471_v57 }
 0xe6a   : > { %v3476_v60 = vpop.f32.mrb[14].mxu0 }
 0xe6b   : > { %v2763_v62 = vadd.f32 %v3476_v60, %v3795_v1  ;;  %v2751_v63 = vpop.f32.mrb[15].mxu0 }
 0xe6c   : > { %v2762_v2 = vadd.f32 %v2751_v63, %v3793_v0 }
 0xe6d   : > { %v4094_v3 = vadd.f32 %v3198_v61, %v2763_v62 }
 0xe6e   : > { %v4096_v4 = vadd.f32 %v3198_v61, %v2762_v2 }
 0xe6f   : > { %v2778_v5 = vsel %vm557_vm1, %v4094_v3, 0.0 }
 0xe70   : > { %2779 = vadd.xlane.f32.xlu1 %v2778_v5  ;;  %v2775_v6 = vsel %vm553_vm0, %v4096_v4, 0.0 }
 0xe71   : > { %2776 = vadd.xlane.f32.xlu0 %v2775_v6 }
 0xefd   : > { %v2780_v7 = vpop.xlane.xlu1 %2779 }
 0xefe   : > { %v2782_v8 = vmul.f32 0.0625, %v2780_v7  ;;  %v2777_v9 = vpop.xlane.xlu0 %2776 }
 0xeff   : > { %v2781_v10 = vmul.f32 0.0625, %v2777_v9  ;;  %v3204_v9 = vld [vmem:[%s4178_s16] ss:$0 sm:$0xff] }
 0xf00   : > { %v2784_v1 = vsub.f32 %v4094_v3, %v2782_v8 }
 0xf01   : > { %v2783_v0 = vsub.f32 %v4096_v4, %v2781_v10 }
 0xf02   : > { %v2786_v11 = vmul.f32 %v2784_v1, %v2784_v1 }
 0xf03   : > { %v2785_v12 = vmul.f32 %v2783_v0, %v2783_v0 }
 0xf04   : > { %v2790_v13 = vsel %vm557_vm1, %v2786_v11, 0.0 }
 0xf05   : > { %2791 = vadd.xlane.f32.xlu1 %v2790_v13  ;;  %v2787_v39 = vsel %vm553_vm0, %v2785_v12, 0.0 }
 0xf06   : > { %2788 = vadd.xlane.f32.xlu0 %v2787_v39 }
 0xf92   : > { %v2792_v16 = vpop.xlane.xlu1 %2791 }
 0xf93   : > { %v2794_v17 = vmul.f32 0.0625, %v2792_v16  ;;  %v2789_v18 = vpop.xlane.xlu0 %2788 }
 0xf94   : > { %v2793_v19 = vmul.f32 0.0625, %v2789_v18 }
 0xf95   : > { %v2796_v20 = vadd.f32 1e-05, %v2794_v17 }
 0xf96   : > { %v2795_v21 = vadd.f32 1e-05, %v2793_v19 }
 0xf97   : > { %3670 = vrsqrt.f32 %v2796_v20 }
 0xf98   : > { %3672 = vrsqrt.f32 %v2795_v21 }
 0xfa1   : > { %v3671_v22 = vpop.eup %3670 }
 0xfa2   : > { %v3673_v24 = vpop.eup %3672  ;;  %v2800_v58 = vmul.f32 %v3671_v22, %v2784_v1 }
 0xfa3   : > { %v2799_v25 = vmul.f32 %v3673_v24, %v2783_v0 }
 0xfa4   : > { %v2808_v27 = vmul.f32 %v3199_v23, %v2800_v58 }
 0xfa5   : > { %v2807_v28 = vmul.f32 %v3199_v23, %v2799_v25 }
 0xfa6   : > { %v2816_v30 = vadd.f32 %v3200_v26, %v2808_v27 }
 0xfa7   : > { %v2815_v29 = vadd.f32 %v3200_v26, %v2807_v28 }
 0xfa9   : > { %3481 = vmatprep.mubr.msk.f32.mxu1 %vm553_vm0, %v2815_v29 }
 0xfaa   : > { %3482 = vmatmul.mubr.msk.f32.vlgmr.msra.gmra.mrb[18].mxu1 %vm553_vm0, %v2816_v30 }
 0xfab   : > { %3606 = vmatpush3.bf16.msra.mxu1 %v3603_v37 }
 0xfac   : > { %3608 = vmatprep.subr.bf16.mxu1 %v3607_v35 }
 0xfaf   : > { %3610 = vmatpush3.bf16.msra.mxu1 %v3607_v35 }
 0xfb0   : > { %3612 = vmatprep.subr.bf16.mxu1 %v3611_v42 }
 0xfb3   : > { %3614 = vmatpush3.bf16.msra.mxu1 %v3611_v42 }
 0xfb4   : > { %3616 = vmatprep.subr.bf16.mxu1 %v3615_v45 }
 0xfb7   : > { %3618 = vmatpush3.bf16.msra.mxu1 %v3615_v45 }
0x107d   : > { %v3483_v46 = vpop.f32.mrb[18].mxu1 }
0x107e   : > { %v2904_v36 = vadd.f32 %v3483_v46, %v3201_v51  ;;  %v2898_v47 = vpop.f32.mrb[19].mxu1 }
0x107f   : > { %v2899_v48 = vadd.f32 %v3201_v51, %v2898_v47 }
0x1080   : > { %v2908_v49 = vmul.f32 %v2904_v36, %v2904_v36 }
0x1081   : > { %v2907_v50 = vmul.f32 %v2899_v48, %v2899_v48 }
0x1082   : > { %v2910_v52 = vmul.f32 %v2908_v49, %v2904_v36 }
0x1083   : > { %v2909_v53 = vmul.f32 %v2907_v50, %v2899_v48 }
0x1084   : > { %v2912_v54 = vmul.f32 0.044715, %v2910_v52 }
0x1085   : > { %v2911_v55 = vmul.f32 0.044715, %v2909_v53 }
0x1086   : > { %v2914_v56 = vadd.f32 %v2912_v54, %v2904_v36 }
0x1087   : > { %v2913_v57 = vadd.f32 %v2911_v55, %v2899_v48 }
0x1088   : > { %v2916_v59 = vmul.f32 0.7978846, %v2914_v56 }
0x1089   : > { %v2915_v60 = vmul.f32 0.7978846, %v2913_v57 }
0x108a   : > { %3674 = vtanh.f32 %v2916_v59 }
0x108b   : > { %3676 = vtanh.f32 %v2915_v60 }
0x1094   : > { %v3675_v61 = vpop.eup %3674 }
0x1095   : > { %v3677_v62 = vpop.eup %3676  ;;  %v2920_v63 = vadd.f32 1.0, %v3675_v61 }
0x1096   : > { %v2919_v2 = vadd.f32 1.0, %v3677_v62 }
0x1097   : > { %v2922_v5 = vmul.f32 0.5, %v2920_v63 }
0x1098   : > { %v2921_v6 = vmul.f32 0.5, %v2919_v2 }
0x1099   : > { %v2924_v8 = vmul.f32 %v2922_v5, %v2904_v36 }
0x109a   : > { %v2923_v7 = vmul.f32 %v2921_v6, %v2899_v48 }
0x109c   : > { %3500 = vmatprep.mubr.msk.f32.mxu1 %vm2940_vm10, %v2923_v7 }
0x109d   : > { %3501 = vmatmul.mubr.msk.f32.vlgmr.msra.gmra.mrb[20].mxu1 %vm2940_vm10, %v2924_v8 }
0x1170   : > { %v3502_v10 = vpop.f32.mrb[20].mxu1 }
0x1171   : > { %v3019_v1 = vadd.f32 %v3502_v10, %v3204_v9  ;;  %v3013_v0 = vpop.f32.mrb[21].mxu1 }
0x1172   : > { %v3014_v11 = vadd.f32 %v3204_v9, %v3013_v0 }
0x1173   : > { %v3023_v12 = vadd.f32 %v3019_v1, %v4094_v3 }
0x1174   : > { %v3022_v13 = vadd.f32 %v3014_v11, %v4096_v4 }
0x1175   : > { %3025 = vst.msk [vmem:[%s548_s28 + $0x8] sm:$0x7] %vm557_vm1, %v3023_v12 }
0x1176   : > { %3024 = vst.msk [vmem:[%s548_s28] sm:$0xff] %vm553_vm0, %v3022_v13 }
0x1177 PF: > { %s27_s24 = sadd.s32 1, %s3684_s24  }
0x1178   : > { %p24_p4 = scmp.ge.s32.totalorder %s27_s24, 4  }
0x117a   :  { %26 = sbr.rel (!%p24_p4) target bundleno = 3 (0x3), region = 139 }

// kernel: mage_forward.22
= control target key start
LH: loop header
LB: loop body
LE: loop exit
PB: predicated region body
PF: predicated region fallthrough
CT: control target
= control target key end

     0   :  { %s3297_s24 = smov 0   ;;  %s3646_s0 = inlined_call_operand.vmem [shape: f32[5,8,16], index: 0, kind: input, shape index: {}]   ;;  %s3647_s1 = inlined_call_operand.vmem [shape: f32[1,16], index: 1, kind: input, shape index: {}]   ;;  %s3648_s2 = inlined_call_operand.vmem [shape: f32[1,16], index: 2, kind: input, shape index: {}]   ;;  %s3649_s3 = inlined_call_operand.vmem [shape: f32[4,16,4], index: 3, kind: input, shape index: {}]   ;;  %s3650_s4 = inlined_call_operand.vmem [shape: f32[4,16,4], index: 4, kind: input, shape index: {}]   ;;  %s3651_s5 = inlined_call_operand.vmem [shape: f32[4,16,4], index: 5, kind: input, shape index: {}]   ;;  %s3652_s6 = inlined_call_operand.vmem [shape: f32[4,1,4], index: 6, kind: input, shape index: {}]   ;;  %s3653_s7 = inlined_call_operand.vmem [shape: f32[4,1,4], index: 7, kind: input, shape index: {}]   ;;  %s3654_s8 = inlined_call_operand.vmem [shape: f32[4,1,4], index: 8, kind: input, shape index: {}]   ;;  %s3655_s9 = inlined_call_operand.vmem [shape: f32[4,4,16], index: 9, kind: input, shape index: {}]   ;;  %s3656_s10 = inlined_call_operand.vmem [shape: f32[1,16], index: 10, kind: input, shape index: {}]   ;;  %s3657_s11 = inlined_call_operand.vmem [shape: f32[1,16], index: 11, kind: input, shape index: {}]   ;;  %s3658_s12 = inlined_call_operand.vmem [shape: f32[1,16], index: 12, kind: input, shape index: {}]   ;;  %s3659_s13 = inlined_call_operand.vmem [shape: f32[16,64], index: 13, kind: input, shape index: {}]   ;;  %s3660_s14 = inlined_call_operand.vmem [shape: f32[1,64], index: 14, kind: input, shape index: {}]   ;;  %s3661_s15 = inlined_call_operand.vmem [shape: f32[64,16], index: 15, kind: input, shape index: {}]   ;;  %s3662_s16 = inlined_call_operand.vmem [shape: f32[1,16], index: 16, kind: input, shape index: {}]   ;;  %s3663_s17 = inlined_call_operand.vmem [shape: f32[5,8,16], index: 17, kind: output, shape index: {}]  }
   0x1   :  { %3664 = sst [smem:[#allocation2_spill]] %s3646_s0 }
   0x2   :  { %3665 = sst [smem:[#allocation3_spill]] %s3647_s1 }
   0x3 LB: > { %s2778_s25 = sadd.s32 4294967295, %s3202_s24   ;;  %p2782_p0 = scmp.ge.s32.totalorder %s3202_s24, 1  ;;  %s3202_s24 = sphi %s3297_s24, %s27_s24  }
   0x4   : > { %p486_p1 = scmp.lt.s32.totalorder %s3202_s24, 6 }
   0x6   : > { %p487_p2 = pnand %p2782_p0, %p486_p1 }
   0x7   : > { %p536_p3 = scmp.lt.s32.totalorder (!%p487_p2), %s2778_s25, 4  ;;  %vm547_vm0 = vcmask (!%p487_p2), 130048   ;;  %s3666_s29 = sld [smem:[#allocation2_spill]] (!%p487_p2)  ;;  %v576_v7 = vld [vmem:[%s3649_s3] sm:$0xff] (!%p487_p2)  ;;  %v577_v8 = vld [vmem:[%s3649_s3 + $0x8] sm:$0xff] (!%p487_p2)  ;;  %v3204_v10 = vmov (!%p487_p2), 0.0|0.0  }
   0x8   : > { %490 = sbr.rel (%p487_p2) target bundleno = 4950 (0x1356), region = 88  ;;  %v3113_v9 = vpack.c.bf16 (!%p487_p2), %v577_v8, %v576_v7  ;;  %3112 = vmatprep.subr.bf16.mxu0 (!%p487_p2), %v3204_v10  ;;  %vm3205_vm1 = vmmov (!%p487_p2), 0   ;;  %v3206_v11 = vmov (!%p487_p2), 0.0   ;;  %s3667_s22 = sld [smem:[#allocation3_spill]] (!%p487_p2)  ;;  %v658_v18 = vld [vmem:[%s3650_s4] sm:$0xff] (!%p487_p2)  ;;  %v659_v19 = vld [vmem:[%s3650_s4 + $0x8] sm:$0xff] (!%p487_p2) }
   0x9   : > { %2946 = vmatprep.mubr.msk.f32.mxu0 (!%p487_p2), %vm3205_vm1, %v3206_v11  ;;  %2963 = vmatprep.subr.mxu1 (!%p487_p2), %v3206_v11  ;;  %v2786_v20 = vld [vmem:[%s3648_s2] ss:$0 sm:$0xff] (!%p487_p2)  ;;  %v3116_v22 = vpack.c.bf16 (!%p487_p2), %v659_v19, %v658_v18  ;;  %v738_v25 = vld [vmem:[%s3651_s5 + $0x8] sm:$0xff] (!%p487_p2)  ;;  %vm816_vm2 = vcmask (!%p487_p2), 31744   ;;  %v2796_v31 = vld [vmem:[%s3649_s3 + $0x10] sm:$0xff] (!%p487_p2)  ;;  %vm894_vm3 = vcmask (!%p487_p2), 64512  }
   0xa   : > { %3114 = vmatpush3.bf16.msra.mxu0 (!%p487_p2), %v3113_v9  ;;  %2965 = vmatprep.mubr.msk.f32.mxu1 (!%p487_p2), %vm3205_vm1, %v3206_v11  ;;  %v737_v24 = vld [vmem:[%s3651_s5] sm:$0xff] (!%p487_p2)  ;;  %v2797_v32 = vld [vmem:[%s3649_s3 + $0x18] sm:$0xff] (!%p487_p2)  ;;  %v2806_v40 = vld [vmem:[%s3651_s5 + $0x10] sm:$0xff] (!%p487_p2)  ;;  %vm1389_vm4 = vcmask (!%p487_p2), 1043456   ;;  %vm2649_vm5 = vcmask (!%p487_p2), 523264  }
   0xb   : > { %3115 = vmatprep.subr.bf16.mxu0 (!%p487_p2), %v3204_v10  ;;  %v3119_v26 = vpack.c.bf16 (!%p487_p2), %v738_v25, %v737_v24  ;;  %v2789_v29 = vld [vmem:[%s3653_s7] ss:$0 sm:$0xff] (!%p487_p2)  ;;  %v3122_v37 = vpack.c.bf16 (!%p487_p2), %v2797_v32, %v2796_v31  ;;  %v2807_v41 = vld [vmem:[%s3651_s5 + $0x18] sm:$0xff] (!%p487_p2)  ;;  %v2809_v51 = vld [vmem:[%s3654_s8 + $0x1] ss:$0 sm:$0xff] (!%p487_p2) }
   0xc   : > { %v2787_v33 = vld [vmem:[%s3652_s6] ss:$0 sm:$0xff] (!%p487_p2)  ;;  %v3128_v44 = vpack.c.bf16 (!%p487_p2), %v2807_v41, %v2806_v40  ;;  %v2801_v61 = vld [vmem:[%s3650_s4 + $0x10] sm:$0xff] (!%p487_p2)  ;;  %v2802_v62 = vld [vmem:[%s3650_s4 + $0x18] sm:$0xff] (!%p487_p2) }
   0xd   : > { %v2791_v36 = vld [vmem:[%s3654_s8] ss:$0 sm:$0xff] (!%p487_p2)  ;;  %v2799_v7 = vld [vmem:[%s3652_s6 + $0x1] ss:$0 sm:$0xff] (!%p487_p2)  ;;  %v2820_v32 = vld [vmem:[%s3649_s3 + $0x28] sm:$0xff] (!%p487_p2) }
   0xe   : > { %v2785_v16 = vld [vmem:[%s3667_s22] ss:$0 sm:$0xff] (!%p487_p2)  ;;  %v2827_v41 = vld [vmem:[%s3653_s7 + $0x2] ss:$0 sm:$0xff] (!%p487_p2) }
   0xf   : > { %s3669_s25 = smov (!%p536_p3, %s2778_s25), 4  ;;  %v2819_v31 = vld [vmem:[%s3649_s3 + $0x20] sm:$0xff] }
  0x10   : > { %s2783_s26 = sshll.u32 %s3669_s25, 3 }
  0x11   : > { %s539_s0 = scalar_lea.vmem %s3666_s29, %s2783_s26  ;;  %s543_s28 = scalar_lea.vmem %s3663_s17, %s2783_s26 }
  0x12   : > { %v3313_v0 = vld [vmem:[%s539_s0] sm:$0xff] }
  0x13   : > { %v548_v1 = vsel %vm547_vm0, %v3313_v0, 0.0 }
  0x14   : > { %549 = vadd.xlane.f32.xlu0 %v548_v1  ;;  %v3125_v1 = vpack.c.bf16 %v2802_v62, %v2801_v61 }
  0xa1   : > { %v550_v2 = vpop.xlane.xlu0 %549 }
  0xa2   : > { %v552_v3 = vmul.f32 0.0625, %v550_v2 }
  0xa4   : > { %v553_v4 = vsub.f32 %v3313_v0, %v552_v3 }
  0xa6   : > { %v554_v5 = vmul.f32 %v553_v4, %v553_v4 }
  0xa8   : > { %v555_v6 = vsel %vm547_vm0, %v554_v5, 0.0  ;;  %v2804_v5 = vld [vmem:[%s3653_s7 + $0x1] ss:$0 sm:$0xff] }
  0xa9   : > { %556 = vadd.xlane.f32.xlu0 %v555_v6 }
 0x136   : > { %v557_v12 = vpop.xlane.xlu0 %556 }
 0x137   : > { %v558_v13 = vmul.f32 0.0625, %v557_v12 }
 0x139   : > { %v559_v14 = vadd.f32 1e-05, %v558_v13 }
 0x13b   : > { %3174 = vrsqrt.f32 %v559_v14 }
 0x145   : > { %v3175_v15 = vpop.eup %3174 }
 0x146   : > { %v561_v17 = vmul.f32 %v3175_v15, %v553_v4 }
 0x148   : > { %v568_v21 = vmul.f32 %v2785_v16, %v561_v17 }
 0x14a   : > { %v3344_v23 = vadd.f32 %v2786_v20, %v568_v21 }
 0x14c   : > { %2947 = vmatmul.mubr.msk.f32.vlgmr.msra.gmra.mrb[0].mxu0 %vm547_vm0, %v3344_v23 }
 0x14d   : > { %3117 = vmatpush3.bf16.msra.mxu0 %v3116_v22  ;;  %2953 = vmatprep.mubr.msk.f32.mxu0 %vm3205_vm1, %v3206_v11  ;;  %v2814_v22 = vld [vmem:[%s3655_s9 + $0x4] sm:$0xf] }
 0x14e   : > { %3118 = vmatprep.subr.bf16.mxu0 %v3204_v10 }
 0x150   : > { %2954 = vmatmul.mubr.msk.f32.vlgmr.msra.gmra.mrb[2].mxu0 %vm547_vm0, %v3344_v23 }
 0x151   : > { %3120 = vmatpush3.bf16.msra.mxu0 %v3119_v26  ;;  %2960 = vmatprep.mubr.msk.f32.mxu0 %vm3205_vm1, %v3206_v11 }
 0x152   : > { %2968 = vmatprep.subr.mxu0 %v3206_v11 }
 0x154   : > { %2961 = vmatmul.mubr.msk.f32.vlgmr.msra.gmra.mrb[4].mxu0 %vm547_vm0, %v3344_v23 }
 0x155   : > { %2970 = vmatprep.mubr.msk.f32.mxu0 %vm3205_vm1, %v3206_v11 }
 0x21f   : > { %v654_v27 = vpop.f32.mrb[0].mxu0 }
 0x220   : > { %v2948_v28 = vpop.f32.mrb[1].mxu0  ;;  %v655_v38 = vadd.f32 %v2787_v33, %v654_v27  ;;  %v979_v27 = vld [vmem:[%s3655_s9] sm:$0xf]  ;;  %v3131_v33 = vpack.c.bf16 %v2820_v32, %v2819_v31 }
 0x221   : > { %v2824_v28 = vld [vmem:[%s3650_s4 + $0x20] sm:$0xff] }
 0x223   : > { %v733_v30 = vpop.f32.mrb[2].mxu0 }
 0x224   : > { %v734_v34 = vadd.f32 %v2789_v29, %v733_v30  ;;  %v2955_v35 = vpop.f32.mrb[3].mxu0  ;;  %v2825_v29 = vld [vmem:[%s3650_s4 + $0x28] sm:$0xff] }
 0x225   : > { %v3134_v30 = vpack.c.bf16 %v2825_v29, %v2824_v28  ;;  %v2830_v35 = vld [vmem:[%s3651_s5 + $0x28] sm:$0xff] }
 0x226   : > { %2964 = vmatpush3.xpose.msk.msra.mxu1 %vm816_vm2, %v734_v34  ;;  %v2829_v34 = vld [vmem:[%s3651_s5 + $0x20] sm:$0xff] }
 0x227   : > { %v812_v39 = vpop.f32.mrb[4].mxu0  ;;  %3121 = vmatprep.subr.bf16.mxu1 %v3204_v10 }
 0x228   : > { %v813_v42 = vadd.f32 %v2791_v36, %v812_v39  ;;  %v2962_v43 = vpop.f32.mrb[5].mxu0 }
 0x229   : > { %2966 = vmatmul.mubr.msk.f32.vlgmr.msra.gmra.mrb[0].mxu1 %vm816_vm2, %v655_v38  ;;  %v3137_v38 = vpack.c.bf16 %v2830_v35, %v2829_v34 }
 0x22a   : > { %2969 = vmatpush3.msra.mxu0 %v813_v42  ;;  %3123 = vmatpush3.bf16.msra.mxu1 %v3122_v37 }
 0x22b   : > { %2977 = vmatprep.mubr.msk.f32.mxu1 %vm3205_vm1, %v3206_v11  ;;  %3127 = vmatprep.subr.bf16.mxu1 %v3204_v10 }
 0x22c   : > { %3124 = vmatprep.subr.bf16.mxu0 %v3204_v10 }
 0x22d   : > { %2978 = vmatmul.mubr.msk.f32.vlgmr.msra.gmra.mrb[2].mxu1 %vm547_vm0, %v3344_v23 }
 0x22e   : > { %3129 = vmatpush3.bf16.msra.mxu1 %v3128_v44  ;;  %2991 = vmatprep.mubr.msk.f32.mxu1 %vm3205_vm1, %v3206_v11 }
 0x22f   : > { %2999 = vmatprep.subr.mxu1 %v3206_v11 }
 0x231   : > { %2992 = vmatmul.mubr.msk.f32.vlgmr.msra.gmra.mrb[4].mxu1 %vm547_vm0, %v3344_v23 }
 0x232   : > { %3001 = vmatprep.mubr.msk.f32.mxu1 %vm3205_vm1, %v3206_v11 }
 0x2fc   : > { %v889_v45 = vpop.f32.mrb[0].mxu1 }
 0x2fd   : > { %v893_v46 = vmul.f32 0.5, %v889_v45  ;;  %v2967_v47 = vpop.f32.mrb[1].mxu1 }
 0x2ff   : > { %v895_v48 = vsel %vm894_vm3, %v893_v46, -inf }
 0x300   : > { %896 = vmax.xlane.f32.xlu1 %v895_v48  ;;  %v1057_v49 = vpop.f32.mrb[2].mxu1  ;;  %v2822_v48 = vld [vmem:[%s3652_s6 + $0x2] ss:$0 sm:$0xff] }
 0x301   : > { %v2979_v50 = vpop.f32.mrb[3].mxu1  ;;  %v1058_v12 = vadd.f32 %v2799_v7, %v1057_v49 }
 0x304   : > { %v1219_v52 = vpop.f32.mrb[4].mxu1 }
 0x305   : > { %v1220_v53 = vadd.f32 %v2809_v51, %v1219_v52  ;;  %v2993_v54 = vpop.f32.mrb[5].mxu1  ;;  %v2832_v52 = vld [vmem:[%s3654_s8 + $0x2] ss:$0 sm:$0xff] }
 0x307   : > { %3000 = vmatpush3.msra.mxu1 %v1220_v53 }
 0x308   : > { %3009 = vmatprep.subr.mxu1 %v3206_v11 }
 0x38d   : > { %v897_v55 = vpop.xlane.xlu1 %896 }
 0x38e   : > { %v898_v56 = vsub.f32 %v893_v46, %v897_v55 }
 0x390   : > { %v899_v57 = vmul.f32 1.442695, %v898_v56 }
 0x392   : > { %3176 = vpow2.f32 %v899_v57 }
 0x39c   : > { %v3177_v58 = vpop.eup %3176 }
 0x39d   : > { %v901_v59 = vsel %vm894_vm3, %v3177_v58, 0.0 }
 0x39e   : > { %902 = vadd.xlane.f32.xlu1 %v901_v59 }
 0x42b   : > { %v903_v60 = vpop.xlane.xlu1 %902 }
 0x42c   : > { %3178 = vrcp.f32 %v903_v60 }
 0x436   : > { %v3179_v63 = vpop.eup %3178 }
 0x437   : > { %v905_v2 = vmul.f32 %v3179_v63, %v3177_v58 }
 0x439   : > { %2971 = vmatmul.mubr.msk.f32.vlgmr.msra.gmra.mrb[6].mxu0 %vm894_vm3, %v905_v2  ;;  %v2837_v2 = vld [vmem:[%s3655_s9 + $0x8] sm:$0xf] }
 0x43a   : > { %3126 = vmatpush3.bf16.msra.mxu0 %v3125_v1  ;;  %2984 = vmatprep.mubr.msk.f32.mxu0 %vm3205_vm1, %v3206_v11 }
 0x43b   : > { %2994 = vmatprep.subr.mxu0 %v3206_v11 }
 0x43d   : > { %2985 = vmatmul.mubr.msk.f32.vlgmr.msra.gmra.mrb[8].mxu0 %vm547_vm0, %v3344_v23 }
 0x43e   : > { %2996 = vmatprep.mubr.msk.f32.mxu0 %vm3205_vm1, %v3206_v11 }
 0x50c   : > { %v975_v3 = vpop.f32.mrb[6].mxu0 }
 0x50d   : > { %v2972_v4 = vpop.f32.mrb[7].mxu0 }
 0x50e   : > { %v2840_v4 = vld [vmem:[%s3649_s3 + $0x30] sm:$0xff] }
 0x510   : > { %v1138_v6 = vpop.f32.mrb[8].mxu0 }
 0x511   : > { %v1139_v8 = vadd.f32 %v2804_v5, %v1138_v6  ;;  %v2986_v9 = vpop.f32.mrb[9].mxu0  ;;  %v2841_v5 = vld [vmem:[%s3649_s3 + $0x38] sm:$0xff] }
 0x512   : > { %v3140_v7 = vpack.c.bf16 %v2841_v5, %v2840_v4  ;;  %v2850_v9 = vld [vmem:[%s3651_s5 + $0x30] sm:$0xff]  ;;  %v2863_v5 = vld [vmem:[%s3658_s12] ss:$0 sm:$0xff] }
 0x513   : > { %2995 = vmatpush3.xpose.msk.msra.mxu0 %vm816_vm2, %v1139_v8 }
 0x514   : > { %3004 = vmatprep.subr.mxu0 %v3206_v11 }
 0x516   : > { %2997 = vmatmul.mubr.msk.f32.vlgmr.msra.gmra.mrb[10].mxu0 %vm816_vm2, %v1058_v12  ;;  %v2851_v12 = vld [vmem:[%s3651_s5 + $0x38] sm:$0xff] }
 0x517   : > { %3006 = vmatprep.mubr.msk.f32.mxu0 %vm3205_vm1, %v3206_v11  ;;  %3005 = vmatpush3.msk.msra.mxu0 %vm1389_vm4, %v2814_v22 }
 0x518   : > { %3130 = vmatprep.subr.bf16.mxu0 %v3204_v10 }
 0x5e9   : > { %v1295_v13 = vpop.f32.mrb[10].mxu0 }
 0x5ea   : > { %v1299_v14 = vmul.f32 0.5, %v1295_v13  ;;  %v2998_v15 = vpop.f32.mrb[11].mxu0  ;;  %v3146_v13 = vpack.c.bf16 %v2851_v12, %v2850_v9  ;;  %v2635_v9 = vld [vmem:[%s3661_s15 + $0x8] sm:$0xff] }
 0x5eb   : > { %v2846_v15 = vld [vmem:[%s3650_s4 + $0x38] sm:$0xff] }
 0x5ec   : > { %v1300_v16 = vsel %vm894_vm3, %v1299_v14, -inf }
 0x5ed   : > { %1301 = vmax.xlane.f32.xlu0 %v1300_v16 }
 0x67a   : > { %v1302_v17 = vpop.xlane.xlu0 %1301 }
 0x67b   : > { %v1303_v18 = vsub.f32 %v1299_v14, %v1302_v17  ;;  %v2845_v14 = vld [vmem:[%s3650_s4 + $0x30] sm:$0xff] }
 0x67c   : > { %v3143_v16 = vpack.c.bf16 %v2846_v15, %v2845_v14  ;;  %v2637_v14 = vld [vmem:[%s3661_s15 + $0x18] sm:$0xff] }
 0x67d   : > { %v1304_v19 = vmul.f32 1.442695, %v1303_v18 }
 0x67f   : > { %3180 = vpow2.f32 %v1304_v19 }
 0x689   : > { %v3181_v20 = vpop.eup %3180 }
 0x68a   : > { %v1306_v21 = vsel %vm894_vm3, %v3181_v20, 0.0 }
 0x68b   : > { %1307 = vadd.xlane.f32.xlu1 %v1306_v21  ;;  %v2853_v21 = vld [vmem:[%s3654_s8 + $0x3] ss:$0 sm:$0xff] }
 0x718   : > { %v1308_v24 = vpop.xlane.xlu1 %1307 }
 0x719   : > { %3182 = vrcp.f32 %v1308_v24 }
 0x723   : > { %v3183_v25 = vpop.eup %3182 }
 0x724   : > { %v1310_v26 = vmul.f32 %v3183_v25, %v3181_v20 }
 0x726   : > { %3002 = vmatmul.mubr.msk.f32.vlgmr.msra.gmra.mrb[6].mxu1 %vm894_vm3, %v1310_v26 }
 0x727   : > { %3010 = vmatpush3.msk.msra.mxu1 %vm1389_vm4, %v979_v27  ;;  %3011 = vmatprep.mubr.msk.f32.mxu1 %vm3205_vm1, %v3206_v11 }
 0x728   : > { %3133 = vmatprep.subr.bf16.mxu1 %v3204_v10 }
 0x72a   : > { %3012 = vmatmul.mubr.msk.f32.vlgmr.msra.gmra.mrb[8].mxu1 %vm816_vm2, %v975_v3 }
 0x72b   : > { %3135 = vmatpush3.bf16.msra.mxu1 %v3134_v30  ;;  %3025 = vmatprep.mubr.msk.f32.mxu1 %vm3205_vm1, %v3206_v11  ;;  %v2843_v30 = vld [vmem:[%s3652_s6 + $0x3] ss:$0 sm:$0xff] }
 0x72c   : > { %3035 = vmatprep.subr.mxu1 %v3206_v11 }
 0x72e   : > { %3026 = vmatmul.mubr.msk.f32.vlgmr.msra.gmra.mrb[10].mxu1 %vm547_vm0, %v3344_v23 }
 0x72f   : > { %3037 = vmatprep.mubr.msk.f32.mxu1 %vm3205_vm1, %v3206_v11 }
 0x7f9   : > { %v1380_v36 = vpop.f32.mrb[6].mxu1 }
 0x7fa   : > { %v3003_v37 = vpop.f32.mrb[7].mxu1  ;;  %3007 = vmatmul.mubr.msk.f32.vlgmr.msra.gmra.mrb[12].mxu0 %vm816_vm2, %v1380_v36 }
 0x7fb   : > { %3132 = vmatpush3.bf16.msra.mxu0 %v3131_v33  ;;  %3018 = vmatprep.mubr.msk.f32.mxu0 %vm3205_vm1, %v3206_v11 }
 0x7fc   : > { %3136 = vmatprep.subr.bf16.mxu0 %v3204_v10 }
 0x7fd   : > { %v1535_v39 = vpop.f32.mrb[8].mxu1 }
 0x7fe   : > { %v3013_v40 = vpop.f32.mrb[9].mxu1  ;;  %3019 = vmatmul.mubr.msk.f32.vlgmr.msra.gmra.mrb[14].mxu0 %vm547_vm0, %v3344_v23 }
 0x7ff   : > { %3138 = vmatpush3.bf16.msra.mxu0 %v3137_v38  ;;  %3032 = vmatprep.mubr.msk.f32.mxu0 %vm3205_vm1, %v3206_v11 }
 0x800   : > { %3040 = vmatprep.subr.mxu0 %v3206_v11 }
 0x801   : > { %v1697_v42 = vpop.f32.mrb[10].mxu1 }
 0x802   : > { %v1698_v43 = vadd.f32 %v2827_v41, %v1697_v42  ;;  %v3027_v44 = vpop.f32.mrb[11].mxu1  ;;  %3033 = vmatmul.mubr.msk.f32.vlgmr.msra.gmra.mrb[16].mxu0 %vm547_vm0, %v3344_v23 }
 0x803   : > { %3042 = vmatprep.mubr.msk.f32.mxu0 %vm3205_vm1, %v3206_v11 }
 0x804   : > { %3036 = vmatpush3.xpose.msk.msra.mxu1 %vm816_vm2, %v1698_v43  ;;  %v2858_v43 = vld [vmem:[%s3655_s9 + $0xc] sm:$0xf] }
 0x805   : > { %3045 = vmatprep.subr.mxu1 %v3206_v11 }
 0x8cd   : > { %v1459_v45 = vpop.f32.mrb[12].mxu0 }
 0x8ce   : > { %v3493_v46 = vadd.f32 %v1535_v39, %v1459_v45  ;;  %v3008_v47 = vpop.f32.mrb[13].mxu0 }
 0x8d1   : > { %v1616_v49 = vpop.f32.mrb[14].mxu0 }
 0x8d2   : > { %v1617_v50 = vadd.f32 %v2822_v48, %v1616_v49  ;;  %v3020_v51 = vpop.f32.mrb[15].mxu0 }
 0x8d4   : > { %3038 = vmatmul.mubr.msk.f32.vlgmr.msra.gmra.mrb[12].mxu1 %vm816_vm2, %v1617_v50 }
 0x8d5   : > { %v1778_v53 = vpop.f32.mrb[16].mxu0  ;;  %3047 = vmatprep.mubr.msk.f32.mxu1 %vm3205_vm1, %v3206_v11  ;;  %3046 = vmatpush3.msk.msra.mxu1 %vm1389_vm4, %v2837_v2 }
 0x8d6   : > { %v1779_v54 = vadd.f32 %v2832_v52, %v1778_v53  ;;  %v3034_v55 = vpop.f32.mrb[17].mxu0  ;;  %3142 = vmatprep.subr.bf16.mxu1 %v3204_v10  ;;  %v2861_v52 = vld [vmem:[%s3656_s10] ss:$0 sm:$0xff] }
 0x8d8   : > { %3041 = vmatpush3.msra.mxu0 %v1779_v54 }
 0x8d9   : > { %3139 = vmatprep.subr.bf16.mxu0 %v3204_v10 }
 0x9a7   : > { %v1854_v56 = vpop.f32.mrb[12].mxu1 }
 0x9a8   : > { %v1858_v57 = vmul.f32 0.5, %v1854_v56  ;;  %v3039_v58 = vpop.f32.mrb[13].mxu1 }
 0x9aa   : > { %v1859_v59 = vsel %vm894_vm3, %v1858_v57, -inf }
 0x9ab   : > { %1860 = vmax.xlane.f32.xlu0 %v1859_v59 }
 0xa38   : > { %v1861_v60 = vpop.xlane.xlu0 %1860 }
 0xa39   : > { %v1862_v61 = vsub.f32 %v1858_v57, %v1861_v60  ;;  %v2543_v60 = vld [vmem:[%s3659_s13] sm:$0xff] }
 0xa3b   : > { %v1863_v62 = vmul.f32 1.442695, %v1862_v61 }
 0xa3d   : > { %3184 = vpow2.f32 %v1863_v62 }
 0xa47   : > { %v3185_v63 = vpop.eup %3184 }
 0xa48   : > { %v1865_v1 = vsel %vm894_vm3, %v3185_v63, 0.0 }
 0xa49   : > { %1866 = vadd.xlane.f32.xlu1 %v1865_v1 }
 0xad6   : > { %v1867_v3 = vpop.xlane.xlu1 %1866 }
 0xad7   : > { %3186 = vrcp.f32 %v1867_v3  ;;  %v2862_v3 = vld [vmem:[%s3657_s11] ss:$0 sm:$0xff] }
 0xae1   : > { %v3187_v6 = vpop.eup %3186 }
 0xae2   : > { %v1869_v8 = vmul.f32 %v3187_v6, %v3185_v63 }
 0xae4   : > { %3043 = vmatmul.mubr.msk.f32.vlgmr.msra.gmra.mrb[18].mxu0 %vm894_vm3, %v1869_v8  ;;  %v2634_v8 = vld [vmem:[%s3661_s15] sm:$0xff] }
 0xae5   : > { %3141 = vmatpush3.bf16.msra.mxu0 %v3140_v7  ;;  %3054 = vmatprep.mubr.msk.f32.mxu0 %vm3205_vm1, %v3206_v11  ;;  %v3152_v12 = vpack.c.bf16 %v2635_v9, %v2634_v8 }
 0xae6   : > { %3145 = vmatprep.subr.bf16.mxu0 %v3204_v10 }
 0xae8   : > { %3055 = vmatmul.mubr.msk.f32.vlgmr.msra.gmra.mrb[20].mxu0 %vm547_vm0, %v3344_v23 }
 0xae9   : > { %3147 = vmatpush3.bf16.msra.mxu0 %v3146_v13  ;;  %3068 = vmatprep.mubr.msk.f32.mxu0 %vm3205_vm1, %v3206_v11  ;;  %v2636_v13 = vld [vmem:[%s3661_s15 + $0x10] sm:$0xff] }
 0xaea   : > { %3076 = vmatprep.subr.mxu0 %v3206_v11  ;;  %v3155_v15 = vpack.c.bf16 %v2637_v14, %v2636_v13 }
 0xaec   : > { %3069 = vmatmul.mubr.msk.f32.vlgmr.msra.gmra.mrb[22].mxu0 %vm547_vm0, %v3344_v23 }
 0xaed   : > { %3078 = vmatprep.mubr.msk.f32.mxu0 %vm3205_vm1, %v3206_v11 }
 0xbb7   : > { %v1939_v17 = vpop.f32.mrb[18].mxu0 }
 0xbb8   : > { %v3044_v18 = vpop.f32.mrb[19].mxu0  ;;  %3048 = vmatmul.mubr.msk.f32.vlgmr.msra.gmra.mrb[14].mxu1 %vm816_vm2, %v1939_v17  ;;  %v2639_v17 = vld [vmem:[%s3661_s15 + $0x28] sm:$0xff] }
 0xbb9   : > { %3144 = vmatpush3.bf16.msra.mxu1 %v3143_v16  ;;  %3061 = vmatprep.mubr.msk.f32.mxu1 %vm3205_vm1, %v3206_v11  ;;  %v2638_v16 = vld [vmem:[%s3661_s15 + $0x20] sm:$0xff] }
 0xbba   : > { %3071 = vmatprep.subr.mxu1 %v3206_v11  ;;  %v3158_v18 = vpack.c.bf16 %v2639_v17, %v2638_v16 }
 0xbbb   : > { %v2099_v19 = vpop.f32.mrb[20].mxu0 }
 0xbbc   : > { %v3056_v20 = vpop.f32.mrb[21].mxu0  ;;  %3062 = vmatmul.mubr.msk.f32.vlgmr.msra.gmra.mrb[16].mxu1 %vm547_vm0, %v3344_v23  ;;  %v2848_v23 = vld [vmem:[%s3653_s7 + $0x3] ss:$0 sm:$0xff]  ;;  %v2100_v33 = vadd.f32 %v2843_v30, %v2099_v19  ;;  %v2640_v19 = vld [vmem:[%s3661_s15 + $0x30] sm:$0xff] }
 0xbbd   : > { %3073 = vmatprep.mubr.msk.f32.mxu1 %vm3205_vm1, %v3206_v11  ;;  %v2641_v20 = vld [vmem:[%s3661_s15 + $0x38] sm:$0xff] }
 0xbbf   : > { %v2261_v22 = vpop.f32.mrb[22].mxu0 }
 0xbc0   : > { %v2262_v24 = vadd.f32 %v2853_v21, %v2261_v22  ;;  %v3070_v25 = vpop.f32.mrb[23].mxu0  ;;  %v3161_v21 = vpack.c.bf16 %v2641_v20, %v2640_v19  ;;  %v2864_v22 = vld [vmem:[%s3660_s14] ss:$0 sm:$0xff] }
 0xbc2   : > { %3077 = vmatpush3.msra.mxu0 %v2262_v24 }
 0xbc3   : > { %3148 = vmatprep.subr.bf16.mxu0 %v3204_v10 }
 0xc8b   : > { %v2017_v26 = vpop.f32.mrb[14].mxu1 }
 0xc8c   : > { %v2021_v27 = vadd.f32 %v2017_v26, %v3493_v46  ;;  %v3049_v28 = vpop.f32.mrb[15].mxu1 }
 0xc8f   : > { %v2180_v29 = vpop.f32.mrb[16].mxu1 }
 0xc90   : > { %v2181_v31 = vadd.f32 %v2848_v23, %v2180_v29  ;;  %v3063_v32 = vpop.f32.mrb[17].mxu1 }
 0xc92   : > { %3072 = vmatpush3.xpose.msk.msra.mxu1 %vm816_vm2, %v2181_v31 }
 0xc93   : > { %3081 = vmatprep.subr.mxu1 %v3206_v11 }
 0xc95   : > { %3074 = vmatmul.mubr.msk.f32.vlgmr.msra.gmra.mrb[18].mxu1 %vm816_vm2, %v2100_v33 }
 0xc96   : > { %3083 = vmatprep.mubr.msk.f32.mxu1 %vm3205_vm1, %v3206_v11  ;;  %3082 = vmatpush3.msk.msra.mxu1 %vm1389_vm4, %v2858_v43 }
 0xc97   : > { %3151 = vmatprep.subr.bf16.mxu1 %v3204_v10 }
 0xd68   : > { %v2337_v34 = vpop.f32.mrb[18].mxu1 }
 0xd69   : > { %v2341_v35 = vmul.f32 0.5, %v2337_v34  ;;  %v3075_v36 = vpop.f32.mrb[19].mxu1  ;;  %v2866_v34 = vld [vmem:[%s3662_s16] ss:$0 sm:$0xff] }
 0xd6b   : > { %v2342_v37 = vsel %vm894_vm3, %v2341_v35, -inf }
 0xd6c   : > { %2343 = vmax.xlane.f32.xlu0 %v2342_v37 }
 0xdf9   : > { %v2344_v38 = vpop.xlane.xlu0 %2343 }
 0xdfa   : > { %v2345_v39 = vsub.f32 %v2341_v35, %v2344_v38 }
 0xdfc   : > { %v2346_v40 = vmul.f32 1.442695, %v2345_v39 }
 0xdfe   : > { %3188 = vpow2.f32 %v2346_v40 }
 0xe08   : > { %v3189_v41 = vpop.eup %3188 }
 0xe09   : > { %v2348_v42 = vsel %vm894_vm3, %v3189_v41, 0.0 }
 0xe0a   : > { %2349 = vadd.xlane.f32.xlu1 %v2348_v42 }
 0xe97   : > { %v2350_v44 = vpop.xlane.xlu1 %2349 }
 0xe98   : > { %3190 = vrcp.f32 %v2350_v44 }
 0xea2   : > { %v3191_v45 = vpop.eup %3190 }
 0xea3   : > { %v2352_v46 = vmul.f32 %v3191_v45, %v3189_v41 }
 0xea5   : > { %3079 = vmatmul.mubr.msk.f32.vlgmr.msra.gmra.mrb[24].mxu0 %vm894_vm3, %v2352_v46 }
 0xea6   : > { %3090 = vmatprep.mubr.msk.f32.mxu0 %vm3205_vm1, %v3206_v11 }
 0xf78   : > { %v2422_v47 = vpop.f32.mrb[24].mxu0 }
 0xf79   : > { %v3080_v48 = vpop.f32.mrb[25].mxu0  ;;  %3084 = vmatmul.mubr.msk.f32.vlgmr.msra.gmra.mrb[20].mxu1 %vm816_vm2, %v2422_v47 }
 0xf7a   : > { %3109 = vmatprep.mubr.msk.f32.mxu1 %vm3205_vm1, %v3206_v11  ;;  %3153 = vmatpush3.bf16.msra.mxu1 %v3152_v12 }
 0xf7b   : > { %3154 = vmatprep.subr.bf16.mxu1 %v3204_v10 }
 0xf7e   : > { %3156 = vmatpush3.bf16.msra.mxu1 %v3155_v15 }
 0xf7f   : > { %3157 = vmatprep.subr.bf16.mxu1 %v3204_v10 }
 0xf82   : > { %3159 = vmatpush3.bf16.msra.mxu1 %v3158_v18 }
 0xf83   : > { %3160 = vmatprep.subr.bf16.mxu1 %v3204_v10 }
 0xf86   : > { %3162 = vmatpush3.bf16.msra.mxu1 %v3161_v21 }
0x104c   : > { %v2500_v49 = vpop.f32.mrb[20].mxu1 }
0x104d   : > { %v2504_v50 = vadd.f32 %v2500_v49, %v2021_v27  ;;  %v3085_v51 = vpop.f32.mrb[21].mxu1 }
0x104f   : > { %v2505_v53 = vadd.f32 %v2504_v50, %v3313_v0  ;;  %v2544_v0 = vld [vmem:[%s3659_s13 + $0x8] sm:$0xff] }
0x1050   : > { %v3149_v61 = vpack.c.bf16 %v2544_v0, %v2543_v60 }
0x1051   : > { %v3584_v54 = vadd.f32 %v2861_v52, %v2505_v53 }
0x1052   : > { %3150 = vmatpush3.bf16.msra.mxu0 %v3149_v61 }
0x1053   : > { %v2516_v55 = vsel %vm547_vm0, %v3584_v54, 0.0 }
0x1054   : > { %2517 = vadd.xlane.f32.xlu0 %v2516_v55 }
0x10e1   : > { %v2518_v56 = vpop.xlane.xlu0 %2517 }
0x10e2   : > { %v2519_v57 = vmul.f32 0.0625, %v2518_v56 }
0x10e4   : > { %v2520_v58 = vsub.f32 %v3584_v54, %v2519_v57 }
0x10e6   : > { %v2521_v11 = vmul.f32 %v2520_v58, %v2520_v58 }
0x10e8   : > { %v2522_v59 = vsel %vm547_vm0, %v2521_v11, 0.0 }
0x10e9   : > { %2523 = vadd.xlane.f32.xlu1 %v2522_v59 }
0x1176   : > { %v2524_v62 = vpop.xlane.xlu1 %2523 }
0x1177   : > { %v2525_v63 = vmul.f32 0.0625, %v2524_v62 }
0x1179   : > { %v2526_v1 = vadd.f32 1e-05, %v2525_v63 }
0x117b   : > { %3192 = vrsqrt.f32 %v2526_v1 }
0x1185   : > { %v3193_v2 = vpop.eup %3192 }
0x1186   : > { %v2528_v4 = vmul.f32 %v3193_v2, %v2520_v58 }
0x1188   : > { %v2535_v6 = vmul.f32 %v2862_v3, %v2528_v4 }
0x118a   : > { %v2542_v7 = vadd.f32 %v2863_v5, %v2535_v6 }
0x118c   : > { %3091 = vmatmul.mubr.msk.f32.vlgmr.msra.gmra.mrb[26].mxu0 %vm547_vm0, %v2542_v7 }
0x125f   : > { %v2621_v24 = vpop.f32.mrb[26].mxu0 }
0x1260   : > { %v2622_v25 = vadd.f32 %v2864_v22, %v2621_v24  ;;  %v3092_v26 = vpop.f32.mrb[27].mxu0 }
0x1262   : > { %v2625_v27 = vmul.f32 %v2622_v25, %v2622_v25 }
0x1264   : > { %v2626_v10 = vmul.f32 %v2625_v27, %v2622_v25 }
0x1266   : > { %v2627_v28 = vmul.f32 0.044715, %v2626_v10 }
0x1268   : > { %v2628_v23 = vadd.f32 %v2627_v28, %v2622_v25 }
0x126a   : > { %v2629_v29 = vmul.f32 0.7978846, %v2628_v23 }
0x126c   : > { %3194 = vtanh.f32 %v2629_v29 }
0x1276   : > { %v3195_v30 = vpop.eup %3194 }
0x1277   : > { %v2631_v31 = vadd.f32 1.0, %v3195_v30 }
0x1279   : > { %v2632_v32 = vmul.f32 0.5, %v2631_v31 }
0x127b   : > { %v2633_v33 = vmul.f32 %v2632_v32, %v2622_v25 }
0x127d   : > { %3110 = vmatmul.mubr.msk.f32.vlgmr.msra.gmra.mrb[22].mxu1 %vm2649_vm5, %v2633_v33 }
0x1350   : > { %v2719_v35 = vpop.f32.mrb[22].mxu1 }
0x1351   : > { %v2720_v36 = vadd.f32 %v2866_v34, %v2719_v35  ;;  %v3111_v37 = vpop.f32.mrb[23].mxu1 }
0x1353   : > { %v2723_v38 = vadd.f32 %v2720_v36, %v3584_v54 }
0x1355   : > { %2724 = vst.msk [vmem:[%s543_s28] sm:$0xff] %vm547_vm0, %v2723_v38 }
0x1356 PF: > { %s27_s24 = sadd.s32 1, %s3202_s24  }
0x1357   : > { %p24_p4 = scmp.ge.s32.totalorder %s27_s24, 7  }
0x1359   :  { %26 = sbr.rel (!%p24_p4) target bundleno = 3 (0x3), region = 139 }

</bundles_post_ra>
